<compile_context>
chip_gen: v5e
topology: v5e:2x2
jax: 0.10.0
libtpu: 0.0.40
codegen_flags: <defaults>
</compile_context>

<pallas_src>
import functools

import numpy as np
import jax
import jax.numpy as jnp
from jax.experimental import pallas as pl
from jax.experimental.pallas import tpu as pltpu

# Keep the pure-JAX reference at full f32 accuracy; the Pallas kernels explicitly feed the MXU
# bf16 operands with f32 accumulation.
jax.config.update("jax_default_matmul_precision", "highest")


# --------------------------------- in-kernel helpers ----------------------------------
def _bn_scale_shift(s_ref, q_ref, g_ref, b_ref, cnt, eps):
    """Fold per-block BN partial sums into (1, C) scale/shift (training-mode BN)."""
    s = jnp.sum(s_ref[...], axis=0)                       # (1, C)
    q = jnp.sum(q_ref[...], axis=0)                       # (1, C)
    mean = s * (1.0 / cnt)
    var = jnp.maximum(q * (1.0 / cnt) - mean * mean, 0.0)  # biased var (PyTorch training BN)
    scale = g_ref[...] * jax.lax.rsqrt(var + eps)           # rsqrt -> EUP slot
    shift = b_ref[...] - mean * scale
    return scale, shift


def _pad_hw(a):
    """(H, W, C) -> (H+2, W+2, C) zero halo, built in registers (no scratch, no masked RMW)."""
    H, W, C = a.shape
    zc = jnp.zeros((H, 1, C), a.dtype)
    a = jnp.concatenate([zc, a, zc], axis=1)
    zr = jnp.zeros((1, W + 2, C), a.dtype)
    return jnp.concatenate([zr, a, zr], axis=0)


def _conv3x3(a, w):
    """3x3 SAME conv as ONE 9-tap im2col matmul.

    a: (H, W, Cin) f32 activation (BN+ReLU already applied), w: (9*Cin, Cout) bf16.
    Returns (H*W, Cout) f32 (MXU bf16 operands, f32 accumulation).
    """
    H, W, Cin = a.shape
    ap = _pad_hw(a)                                                    # (H+2, W+2, Cin)
    taps = [ap[kh:kh + H, kw:kw + W, :] for kh in range(3) for kw in range(3)]
    lhs = jnp.concatenate(taps, axis=-1).reshape(H * W, 9 * Cin)       # (H*W, 9*Cin)
    return jnp.dot(lhs.astype(jnp.bfloat16), w, preferred_element_type=jnp.float32)


def _to_lane_dense(a3, out_dtype):
    """(H, W, C) -> (H, W*C) lane-dense value for unmasked output stores (built via lane concat)."""
    W = a3.shape[1]
    return jnp.concatenate([a3[:, w, :] for w in range(W)], axis=-1).astype(out_dtype)


# --------------------------- K1: conv1 (1->C1) + BN1 partials -------------------------
def conv1_kernel(x_ref, w_ref, o_ref, so_ref, qo_ref):
    # x_ref: (Nb, H, W, 1) f32   w_ref: (3, 3, 1, C1) f32
    # o_ref: (Nb, H, W*C1) bf16  so/qo: (1, 1, C1) per-block channel sum / sum-of-squares.
    Nb, H, W, _ = x_ref.shape
    C1 = w_ref.shape[3]
    s_acc = jnp.zeros((1, 1, C1), jnp.float32)
    q_acc = jnp.zeros((1, 1, C1), jnp.float32)
    for n in range(Nb):                       # static unroll over the batch block
        xp = _pad_hw(x_ref[n])                                         # (H+2, W+2, 1)
        acc = jnp.zeros((H, W, C1), jnp.float32)
        for kh in range(3):                   # Cin = 1: 9 broadcast FMAs on the VPU, no matmul
            for kw in range(3):
                acc = acc + xp[kh:kh + H, kw:kw + W, :] * w_ref[kh, kw]  # (H,W,1)*(1,C1)
        o_ref[n] = _to_lane_dense(acc, o_ref.dtype)
        s_acc = s_acc + jnp.sum(acc, axis=(0, 1), keepdims=True)
        q_acc = q_acc + jnp.sum(acc * acc, axis=(0, 1), keepdims=True)
    so_ref[...] = s_acc
    qo_ref[...] = q_acc


# -------------------- K2: BN+ReLU (prev layer) + conv 3x3 + BN partials ----------------
def bnrelu_conv_kernel(y_ref, s_ref, q_ref, g_ref, b_ref, w_ref,
                       o_ref, so_ref, qo_ref, *, cnt, eps):
    # y_ref: (Nb, H, W, Cin) bf16 pre-BN conv output of the previous layer
    # s/q:   (G, 1, Cin) f32 per-block BN partials;  g/b: (1, Cin);  w: (9*Cin, Cout) bf16
    Nb, H, W, Cin = y_ref.shape
    Cout = w_ref.shape[1]
    scale, shift = _bn_scale_shift(s_ref, q_ref, g_ref, b_ref, cnt, eps)   # (1, Cin) f32
    w = w_ref[...]
    s_acc = jnp.zeros((1, Cout), jnp.float32)
    q_acc = jnp.zeros((1, Cout), jnp.float32)
    for n in range(Nb):
        y = y_ref[n].astype(jnp.float32)                                   # (H, W, Cin)
        a = jnp.maximum(y * scale + shift, 0.0)                            # BN + ReLU
        acc = _conv3x3(a, w)                                               # (H*W, Cout) f32
        o_ref[n] = _to_lane_dense(acc.reshape(H, W, Cout), o_ref.dtype)
        s_acc = s_acc + jnp.sum(acc, axis=0, keepdims=True)
        q_acc = q_acc + jnp.sum(acc * acc, axis=0, keepdims=True)
    so_ref[...] = s_acc.reshape(1, 1, Cout)
    qo_ref[...] = q_acc.reshape(1, 1, Cout)


# ------------- K3: BN+ReLU + 2x2 maxpool (prev layer) + conv 3x3 + BN partials ---------
def bnrelu_pool_conv_kernel(y_ref, s_ref, q_ref, g_ref, b_ref, w_ref,
                            o_ref, so_ref, qo_ref, *, cnt, eps):
    # y_ref: (Nb, H2, 2, W2, 2*Cin) bf16 -- previous conv output viewed so the 2x2 pool window
    #        sits on one phase axis and on the low/high lane half (free HBM re-view).
    Nb, H2, _, W2, _ = y_ref.shape
    Cin = g_ref.shape[1]
    Cout = w_ref.shape[1]
    scale, shift = _bn_scale_shift(s_ref, q_ref, g_ref, b_ref, cnt, eps)   # (1, Cin)
    sc2 = jnp.concatenate([scale, scale], axis=-1)                          # (1, 2*Cin)
    sh2 = jnp.concatenate([shift, shift], axis=-1)
    w = w_ref[...]
    s_acc = jnp.zeros((1, Cout), jnp.float32)
    q_acc = jnp.zeros((1, Cout), jnp.float32)
    for n in range(Nb):
        y = jnp.maximum(y_ref[n].astype(jnp.float32) * sc2 + sh2, 0.0)      # (H2,2,W2,2Cin)
        yw = jnp.maximum(y[..., :Cin], y[..., Cin:])                        # W-phase max
        p = jnp.maximum(yw[:, 0], yw[:, 1])                                 # H-phase max -> (H2,W2,Cin)
        acc = _conv3x3(p, w)                                                # (H2*W2, Cout)
        o_ref[n] = _to_lane_dense(acc.reshape(H2, W2, Cout), o_ref.dtype)
        s_acc = s_acc + jnp.sum(acc, axis=0, keepdims=True)
        q_acc = q_acc + jnp.sum(acc * acc, axis=0, keepdims=True)
    so_ref[...] = s_acc.reshape(1, 1, Cout)
    qo_ref[...] = q_acc.reshape(1, 1, Cout)


# ------------------ K4: BN+ReLU + 2x2 maxpool + FC1 + FC2 (whole batch) ----------------
def head_kernel(y_ref, s_ref, q_ref, g_ref, b_ref, w1_ref, b1_ref, w2_ref, b2_ref,
                o_ref, *, cnt, eps):
    # y_ref: (N, H4, 2, W4, 2*C) bf16 conv2 output with the pool window split as in K3
    # w1_ref: (H4*W4*C, F) bf16 with rows permuted to NHWC (h, w, c) order at init
    # b1_ref: (1, F); w2_ref: (F, ncls) bf16; b2_ref: (1, ncls); o_ref: (N, ncls) f32
    N, H4, _, W4, _ = y_ref.shape
    C = g_ref.shape[1]
    scale, shift = _bn_scale_shift(s_ref, q_ref, g_ref, b_ref, cnt, eps)
    sc2 = jnp.concatenate([scale, scale], axis=-1)
    sh2 = jnp.concatenate([shift, shift], axis=-1)
    y = jnp.maximum(y_ref[...].astype(jnp.float32) * sc2 + sh2, 0.0)        # (N,H4,2,W4,2C)
    yw = jnp.maximum(y[..., :C], y[..., C:])                                # W-phase max
    p = jnp.maximum(yw[:, :, 0], yw[:, :, 1])                               # (N, H4, W4, C)
    # FC1 as ONE long-K matmul: flatten in (h, w, c) order via a lane concat (no 16-matmul loop).
    flat = jnp.concatenate([p[:, i, j, :] for i in range(H4) for j in range(W4)],
                           axis=-1).astype(jnp.bfloat16)                    # (N, H4*W4*C)
    h = jnp.dot(flat, w1_ref[...], preferred_element_type=jnp.float32) + b1_ref[...]
    out = jnp.dot(h.astype(jnp.bfloat16), w2_ref[...],
                  preferred_element_type=jnp.float32) + b2_ref[...]
    o_ref[...] = out.astype(o_ref.dtype)


# ------------------------------------ model wrapper ------------------------------------
def cnn_forward(params, x_nchw, eps=1e-5, max_block=8):
    # x_nchw: (N, 1, H, W) -- same convention as the PyTorch module.
    x = jnp.transpose(x_nchw, (0, 2, 3, 1)).astype(jnp.float32)             # -> (N, H, W, 1)
    N, H, W, _ = x.shape
    C1 = params["w1"].shape[-1]
    C2 = params["w2c"].shape[-1]
    H2, W2 = H // 2, W // 2
    H4, W4 = H2 // 2, W2 // 2
    ncls = params["fc2_b"].shape[-1]
    f32, bf16 = jnp.float32, jnp.bfloat16

    # Samples per grid step: largest divisor of N up to max_block (amortizes per-step overhead
    # and multiplies MXU row fill).  For larger images, H-tile + vmem_limit_bytes before scaling.
    nb = max(d for d in range(1, min(N, max_block) + 1) if N % d == 0)
    G = N // nb
    par = pltpu.CompilerParams(dimension_semantics=("parallel",))

    # ---- K1: conv1 + BN1 per-block partial stats ----
    y1, s1, q1 = pl.pallas_call(
        conv1_kernel,
        out_shape=(jax.ShapeDtypeStruct((N, H, W * C1), bf16),
                   jax.ShapeDtypeStruct((G, 1, C1), f32),
                   jax.ShapeDtypeStruct((G, 1, C1), f32)),
        grid=(G,),
        in_specs=[pl.BlockSpec((nb, H, W, 1), lambda g: (g, 0, 0, 0)),
                  pl.BlockSpec((3, 3, 1, C1), lambda g: (0, 0, 0, 0))],
        out_specs=(pl.BlockSpec((nb, H, W * C1), lambda g: (g, 0, 0)),
                   pl.BlockSpec((1, 1, C1), lambda g: (g, 0, 0)),
                   pl.BlockSpec((1, 1, C1), lambda g: (g, 0, 0))),
        compiler_params=par,
    )(x, params["w1"])

    # ---- K2: BN1+ReLU + conv12 + BN12 partial stats (BN fold done in-kernel) ----
    y2, s2, q2 = pl.pallas_call(
        functools.partial(bnrelu_conv_kernel, cnt=float(N * H * W), eps=eps),
        out_shape=(jax.ShapeDtypeStruct((N, H, W * C1), bf16),
                   jax.ShapeDtypeStruct((G, 1, C1), f32),
                   jax.ShapeDtypeStruct((G, 1, C1), f32)),
        grid=(G,),
        in_specs=[pl.BlockSpec((nb, H, W, C1), lambda g: (g, 0, 0, 0)),
                  pl.BlockSpec((G, 1, C1), lambda g: (0, 0, 0)),
                  pl.BlockSpec((G, 1, C1), lambda g: (0, 0, 0)),
                  pl.BlockSpec((1, C1), lambda g: (0, 0)),
                  pl.BlockSpec((1, C1), lambda g: (0, 0)),
                  pl.BlockSpec((9 * C1, C1), lambda g: (0, 0))],
        out_specs=(pl.BlockSpec((nb, H, W * C1), lambda g: (g, 0, 0)),
                   pl.BlockSpec((1, 1, C1), lambda g: (g, 0, 0)),
                   pl.BlockSpec((1, 1, C1), lambda g: (g, 0, 0))),
        compiler_params=par,
    )(y1.reshape(N, H, W, C1), s1, q1, params["g1"], params["be1"], params["w12_r"])

    # ---- K3: BN12+ReLU + 2x2 maxpool + conv2 + BN2 partial stats ----
    y3, s3, q3 = pl.pallas_call(
        functools.partial(bnrelu_pool_conv_kernel, cnt=float(N * H * W), eps=eps),
        out_shape=(jax.ShapeDtypeStruct((N, H2, W2 * C2), bf16),
                   jax.ShapeDtypeStruct((G, 1, C2), f32),
                   jax.ShapeDtypeStruct((G, 1, C2), f32)),
        grid=(G,),
        in_specs=[pl.BlockSpec((nb, H2, 2, W2, 2 * C1), lambda g: (g, 0, 0, 0, 0)),
                  pl.BlockSpec((G, 1, C1), lambda g: (0, 0, 0)),
                  pl.BlockSpec((G, 1, C1), lambda g: (0, 0, 0)),
                  pl.BlockSpec((1, C1), lambda g: (0, 0)),
                  pl.BlockSpec((1, C1), lambda g: (0, 0)),
                  pl.BlockSpec((9 * C1, C2), lambda g: (0, 0))],
        out_specs=(pl.BlockSpec((nb, H2, W2 * C2), lambda g: (g, 0, 0)),
                   pl.BlockSpec((1, 1, C2), lambda g: (g, 0, 0)),
                   pl.BlockSpec((1, 1, C2), lambda g: (g, 0, 0))),
        compiler_params=par,
    )(y2.reshape(N, H2, 2, W2, 2 * C1), s2, q2, params["g12"], params["be12"], params["w2c_r"])

    # ---- K4: BN2+ReLU + 2x2 maxpool + FC1 + FC2 (whole batch, single call) ----
    out = pl.pallas_call(
        functools.partial(head_kernel, cnt=float(N * H2 * W2), eps=eps),
        out_shape=jax.ShapeDtypeStruct((N, ncls), f32),
    )(y3.reshape(N, H4, 2, W4, 2 * C2), s3, q3, params["g2"], params["be2"],
      params["fc1_w_r"], params["fc1_b"], params["fc2_w_r"], params["fc2_b"])
    return out


# ------------------------------ deterministic parameters -------------------------------
def init_params(key, image_size, num_classes):
    f, hidden = 64, 256
    out_sz = image_size // 4
    ks = jax.random.split(key, 8)

    def conv_w(k, cin, cout):
        return jax.random.normal(k, (3, 3, cin, cout), jnp.float32) / np.sqrt(9.0 * cin)

    p = {}
    # conv biases are nonzero but only used by the reference: with training-mode BN right
    # after each conv they cancel exactly, so the kernels never touch them.
    p["w1"] = conv_w(ks[0], 1, f)
    p["b1"] = 0.1 * jax.random.normal(ks[1], (f,), jnp.float32)
    p["g1"], p["be1"] = jnp.ones((1, f), jnp.float32), jnp.zeros((1, f), jnp.float32)
    p["w12"] = conv_w(ks[2], f, f)
    p["b12"] = 0.1 * jax.random.normal(ks[3], (f,), jnp.float32)
    p["g12"], p["be12"] = jnp.ones((1, f), jnp.float32), jnp.zeros((1, f), jnp.float32)
    p["w2c"] = conv_w(ks[4], f, 2 * f)
    p["b2c"] = 0.1 * jax.random.normal(ks[5], (2 * f,), jnp.float32)
    p["g2"], p["be2"] = jnp.ones((1, 2 * f), jnp.float32), jnp.zeros((1, 2 * f), jnp.float32)

    fc_in = 2 * f * out_sz * out_sz
    p["fc1_w"] = jax.random.normal(ks[6], (fc_in, hidden), jnp.float32) / np.sqrt(fc_in)
    p["fc1_b"] = jnp.zeros((1, hidden), jnp.float32)
    p["fc2_w"] = jax.random.normal(ks[7], (hidden, num_classes), jnp.float32) / np.sqrt(hidden)
    p["fc2_b"] = jnp.zeros((1, num_classes), jnp.float32)

    # One-time kernel-side weight prep (no per-forward XLA glue):
    p["w12_r"] = p["w12"].reshape(9 * f, f).astype(jnp.bfloat16)            # (9*Cin, Cout)
    p["w2c_r"] = p["w2c"].reshape(9 * f, 2 * f).astype(jnp.bfloat16)
    # PyTorch's x.view(N,-1) flattens NCHW, i.e. rows ordered (c, h, w); the Pallas head flattens
    # NHWC -> (h, w, c), so permute fc1 weight rows once here.
    p["fc1_w_r"] = jnp.transpose(
        p["fc1_w"].reshape(2 * f, out_sz, out_sz, hidden), (1, 2, 0, 3)
    ).reshape(out_sz * out_sz * 2 * f, hidden).astype(jnp.bfloat16)
    p["fc2_w_r"] = p["fc2_w"].astype(jnp.bfloat16)
    return p


# -------------------------------- pure-JAX reference ------------------------------------
def reference_forward(params, x_nchw, eps=1e-5):
    x = jnp.transpose(x_nchw, (0, 2, 3, 1))

    def conv_bn_relu(x, w, b, g, be):
        y = jax.lax.conv_general_dilated(
            x, w, window_strides=(1, 1), padding="SAME",
            dimension_numbers=("NHWC", "HWIO", "NHWC")) + b
        m = jnp.mean(y, axis=(0, 1, 2))
        v = jnp.var(y, axis=(0, 1, 2))
        return jnp.maximum((y - m) * jax.lax.rsqrt(v + eps) * g + be, 0.0)

    def pool(x):
        return jax.lax.reduce_window(x, -jnp.inf, jax.lax.max,
                                     (1, 2, 2, 1), (1, 2, 2, 1), "VALID")

    y = conv_bn_relu(x, params["w1"], params["b1"], params["g1"], params["be1"])
    y = conv_bn_relu(y, params["w12"], params["b12"], params["g12"], params["be12"])
    y = pool(y)
    y = conv_bn_relu(y, params["w2c"], params["b2c"], params["g2"], params["be2"])
    y = pool(y)
    flat = jnp.transpose(y, (0, 3, 1, 2)).reshape(y.shape[0], -1)   # PyTorch NCHW flatten
    h = flat @ params["fc1_w"] + params["fc1_b"]
    return h @ params["fc2_w"] + params["fc2_b"]


if __name__ == "__main__":
    image_size, num_classes, batch = 16, 10, 2
    key = jax.random.PRNGKey(0)
    pkey, xkey = jax.random.split(key)
    params = init_params(pkey, image_size, num_classes)
    x = jax.random.normal(xkey, (batch, 1, image_size, image_size), jnp.float32)

    out = jax.block_until_ready(cnn_forward(params, x))
    assert out.shape == (batch, num_classes)

    ref = reference_forward(params, x)
    np.testing.assert_allclose(np.asarray(out), np.asarray(ref), rtol=5e-2, atol=5e-2)
    print("KERNEL_OK")
</pallas_src>

<mosaic_0001>
module attributes {stable_mosaic.version = 11 : i64} {
  func.func @conv1_kernel(%arg0: i32, %arg1: memref<2x16x16x1xf32, #tpu.memory_space<vmem>>, %arg2: memref<3x3x1x64xf32, #tpu.memory_space<vmem>>, %arg3: memref<2x16x1024xbf16, #tpu.memory_space<vmem>>, %arg4: memref<1x1x64xf32, #tpu.memory_space<vmem>>, %arg5: memref<1x1x64xf32, #tpu.memory_space<vmem>>) attributes {dimension_semantics = [#tpu.dimension_semantics<parallel>], iteration_bounds = array<i64: 1>, scalar_prefetch = 0 : i64, scratch_operands = 0 : i64, tpu.core_type = #tpu.core_type<tc>, window_params = [{transform_indices = @transform_0, window_bounds = array<i64: 2, 16, 16, 1>}, {pipeline_mode = #tpu.pipeline_mode<synchronous>, transform_indices = @transform_1, window_bounds = array<i64: 3, 3, 1, 64>}, {transform_indices = @transform_2, window_bounds = array<i64: 2, 16, 1024>}, {transform_indices = @transform_3, window_bounds = array<i64: 1, 1, 64>}, {transform_indices = @transform_4, window_bounds = array<i64: 1, 1, 64>}]} {
    %cst = arith.constant 0.000000e+00 : f32
    %0 = vector.broadcast %cst : f32 to vector<1x1x64xf32>
    %cst_0 = arith.constant 0.000000e+00 : f32
    %1 = vector.broadcast %cst_0 : f32 to vector<1x1x64xf32>
    %c0 = arith.constant 0 : index
    %c0_1 = arith.constant 0 : index
    %c0_2 = arith.constant 0 : index
    %c0_3 = arith.constant 0 : index
    %2 = vector.load %arg1[%c0, %c0_1, %c0_2, %c0_3] : memref<2x16x16x1xf32, #tpu.memory_space<vmem>>, vector<1x16x16x1xf32>
    %3 = vector.shape_cast %2 : vector<1x16x16x1xf32> to vector<16x16x1xf32>
    %cst_4 = arith.constant 0.000000e+00 : f32
    %4 = vector.broadcast %cst_4 : f32 to vector<16x1x1xf32>
    %5 = tpu.concatenate %4, %3, %4 in 1 : vector<16x1x1xf32>, vector<16x16x1xf32>, vector<16x1x1xf32> -> vector<16x18x1xf32>
    %cst_5 = arith.constant 0.000000e+00 : f32
    %6 = vector.broadcast %cst_5 : f32 to vector<1x18x1xf32>
    %7 = tpu.concatenate %6, %5, %6 in 0 : vector<1x18x1xf32>, vector<16x18x1xf32>, vector<1x18x1xf32> -> vector<18x18x1xf32>
    %cst_6 = arith.constant 0.000000e+00 : f32
    %8 = vector.broadcast %cst_6 : f32 to vector<16x16x64xf32>
    %9 = vector.extract_strided_slice %7 {offsets = [0, 0, 0], sizes = [16, 16, 1], strides = [1, 1, 1]} : vector<18x18x1xf32> to vector<16x16x1xf32>
    %c0_7 = arith.constant 0 : index
    %c0_8 = arith.constant 0 : index
    %c0_9 = arith.constant 0 : index
    %c0_10 = arith.constant 0 : index
    %10 = vector.load %arg2[%c0_7, %c0_8, %c0_9, %c0_10] : memref<3x3x1x64xf32, #tpu.memory_space<vmem>>, vector<1x1x1x64xf32>
    %11 = vector.shape_cast %10 : vector<1x1x1x64xf32> to vector<1x64xf32>
    %12 = vector.shape_cast %11 : vector<1x64xf32> to vector<1x1x64xf32>
    %13 = vector.broadcast %9 : vector<16x16x1xf32> to vector<16x16x64xf32>
    %14 = vector.broadcast %12 : vector<1x1x64xf32> to vector<16x16x64xf32>
    %15 = arith.mulf %13, %14 : vector<16x16x64xf32>
    %16 = arith.addf %8, %15 : vector<16x16x64xf32>
    %17 = vector.extract_strided_slice %7 {offsets = [0, 1, 0], sizes = [16, 16, 1], strides = [1, 1, 1]} : vector<18x18x1xf32> to vector<16x16x1xf32>
    %c0_11 = arith.constant 0 : index
    %c1 = arith.constant 1 : index
    %c0_12 = arith.constant 0 : index
    %c0_13 = arith.constant 0 : index
    %18 = vector.load %arg2[%c0_11, %c1, %c0_12, %c0_13] : memref<3x3x1x64xf32, #tpu.memory_space<vmem>>, vector<1x1x1x64xf32>
    %19 = vector.shape_cast %18 : vector<1x1x1x64xf32> to vector<1x64xf32>
    %20 = vector.shape_cast %19 : vector<1x64xf32> to vector<1x1x64xf32>
    %21 = vector.broadcast %17 : vector<16x16x1xf32> to vector<16x16x64xf32>
    %22 = vector.broadcast %20 : vector<1x1x64xf32> to vector<16x16x64xf32>
    %23 = arith.mulf %21, %22 : vector<16x16x64xf32>
    %24 = arith.addf %16, %23 : vector<16x16x64xf32>
    %25 = vector.extract_strided_slice %7 {offsets = [0, 2, 0], sizes = [16, 16, 1], strides = [1, 1, 1]} : vector<18x18x1xf32> to vector<16x16x1xf32>
    %c0_14 = arith.constant 0 : index
    %c2 = arith.constant 2 : index
    %c0_15 = arith.constant 0 : index
    %c0_16 = arith.constant 0 : index
    %26 = vector.load %arg2[%c0_14, %c2, %c0_15, %c0_16] : memref<3x3x1x64xf32, #tpu.memory_space<vmem>>, vector<1x1x1x64xf32>
    %27 = vector.shape_cast %26 : vector<1x1x1x64xf32> to vector<1x64xf32>
    %28 = vector.shape_cast %27 : vector<1x64xf32> to vector<1x1x64xf32>
    %29 = vector.broadcast %25 : vector<16x16x1xf32> to vector<16x16x64xf32>
    %30 = vector.broadcast %28 : vector<1x1x64xf32> to vector<16x16x64xf32>
    %31 = arith.mulf %29, %30 : vector<16x16x64xf32>
    %32 = arith.addf %24, %31 : vector<16x16x64xf32>
    %33 = vector.extract_strided_slice %7 {offsets = [1, 0, 0], sizes = [16, 16, 1], strides = [1, 1, 1]} : vector<18x18x1xf32> to vector<16x16x1xf32>
    %c1_17 = arith.constant 1 : index
    %c0_18 = arith.constant 0 : index
    %c0_19 = arith.constant 0 : index
    %c0_20 = arith.constant 0 : index
    %34 = vector.load %arg2[%c1_17, %c0_18, %c0_19, %c0_20] : memref<3x3x1x64xf32, #tpu.memory_space<vmem>>, vector<1x1x1x64xf32>
    %35 = vector.shape_cast %34 : vector<1x1x1x64xf32> to vector<1x64xf32>
    %36 = vector.shape_cast %35 : vector<1x64xf32> to vector<1x1x64xf32>
    %37 = vector.broadcast %33 : vector<16x16x1xf32> to vector<16x16x64xf32>
    %38 = vector.broadcast %36 : vector<1x1x64xf32> to vector<16x16x64xf32>
    %39 = arith.mulf %37, %38 : vector<16x16x64xf32>
    %40 = arith.addf %32, %39 : vector<16x16x64xf32>
    %41 = vector.extract_strided_slice %7 {offsets = [1, 1, 0], sizes = [16, 16, 1], strides = [1, 1, 1]} : vector<18x18x1xf32> to vector<16x16x1xf32>
    %c1_21 = arith.constant 1 : index
    %c1_22 = arith.constant 1 : index
    %c0_23 = arith.constant 0 : index
    %c0_24 = arith.constant 0 : index
    %42 = vector.load %arg2[%c1_21, %c1_22, %c0_23, %c0_24] : memref<3x3x1x64xf32, #tpu.memory_space<vmem>>, vector<1x1x1x64xf32>
    %43 = vector.shape_cast %42 : vector<1x1x1x64xf32> to vector<1x64xf32>
    %44 = vector.shape_cast %43 : vector<1x64xf32> to vector<1x1x64xf32>
    %45 = vector.broadcast %41 : vector<16x16x1xf32> to vector<16x16x64xf32>
    %46 = vector.broadcast %44 : vector<1x1x64xf32> to vector<16x16x64xf32>
    %47 = arith.mulf %45, %46 : vector<16x16x64xf32>
    %48 = arith.addf %40, %47 : vector<16x16x64xf32>
    %49 = vector.extract_strided_slice %7 {offsets = [1, 2, 0], sizes = [16, 16, 1], strides = [1, 1, 1]} : vector<18x18x1xf32> to vector<16x16x1xf32>
    %c1_25 = arith.constant 1 : index
    %c2_26 = arith.constant 2 : index
    %c0_27 = arith.constant 0 : index
    %c0_28 = arith.constant 0 : index
    %50 = vector.load %arg2[%c1_25, %c2_26, %c0_27, %c0_28] : memref<3x3x1x64xf32, #tpu.memory_space<vmem>>, vector<1x1x1x64xf32>
    %51 = vector.shape_cast %50 : vector<1x1x1x64xf32> to vector<1x64xf32>
    %52 = vector.shape_cast %51 : vector<1x64xf32> to vector<1x1x64xf32>
    %53 = vector.broadcast %49 : vector<16x16x1xf32> to vector<16x16x64xf32>
    %54 = vector.broadcast %52 : vector<1x1x64xf32> to vector<16x16x64xf32>
    %55 = arith.mulf %53, %54 : vector<16x16x64xf32>
    %56 = arith.addf %48, %55 : vector<16x16x64xf32>
    %57 = vector.extract_strided_slice %7 {offsets = [2, 0, 0], sizes = [16, 16, 1], strides = [1, 1, 1]} : vector<18x18x1xf32> to vector<16x16x1xf32>
    %c2_29 = arith.constant 2 : index
    %c0_30 = arith.constant 0 : index
    %c0_31 = arith.constant 0 : index
    %c0_32 = arith.constant 0 : index
    %58 = vector.load %arg2[%c2_29, %c0_30, %c0_31, %c0_32] : memref<3x3x1x64xf32, #tpu.memory_space<vmem>>, vector<1x1x1x64xf32>
    %59 = vector.shape_cast %58 : vector<1x1x1x64xf32> to vector<1x64xf32>
    %60 = vector.shape_cast %59 : vector<1x64xf32> to vector<1x1x64xf32>
    %61 = vector.broadcast %57 : vector<16x16x1xf32> to vector<16x16x64xf32>
    %62 = vector.broadcast %60 : vector<1x1x64xf32> to vector<16x16x64xf32>
    %63 = arith.mulf %61, %62 : vector<16x16x64xf32>
    %64 = arith.addf %56, %63 : vector<16x16x64xf32>
    %65 = vector.extract_strided_slice %7 {offsets = [2, 1, 0], sizes = [16, 16, 1], strides = [1, 1, 1]} : vector<18x18x1xf32> to vector<16x16x1xf32>
    %c2_33 = arith.constant 2 : index
    %c1_34 = arith.constant 1 : index
    %c0_35 = arith.constant 0 : index
    %c0_36 = arith.constant 0 : index
    %66 = vector.load %arg2[%c2_33, %c1_34, %c0_35, %c0_36] : memref<3x3x1x64xf32, #tpu.memory_space<vmem>>, vector<1x1x1x64xf32>
    %67 = vector.shape_cast %66 : vector<1x1x1x64xf32> to vector<1x64xf32>
    %68 = vector.shape_cast %67 : vector<1x64xf32> to vector<1x1x64xf32>
    %69 = vector.broadcast %65 : vector<16x16x1xf32> to vector<16x16x64xf32>
    %70 = vector.broadcast %68 : vector<1x1x64xf32> to vector<16x16x64xf32>
    %71 = arith.mulf %69, %70 : vector<16x16x64xf32>
    %72 = arith.addf %64, %71 : vector<16x16x64xf32>
    %73 = vector.extract_strided_slice %7 {offsets = [2, 2, 0], sizes = [16, 16, 1], strides = [1, 1, 1]} : vector<18x18x1xf32> to vector<16x16x1xf32>
    %c2_37 = arith.constant 2 : index
    %c2_38 = arith.constant 2 : index
    %c0_39 = arith.constant 0 : index
    %c0_40 = arith.constant 0 : index
    %74 = vector.load %arg2[%c2_37, %c2_38, %c0_39, %c0_40] : memref<3x3x1x64xf32, #tpu.memory_space<vmem>>, vector<1x1x1x64xf32>
    %75 = vector.shape_cast %74 : vector<1x1x1x64xf32> to vector<1x64xf32>
    %76 = vector.shape_cast %75 : vector<1x64xf32> to vector<1x1x64xf32>
    %77 = vector.broadcast %73 : vector<16x16x1xf32> to vector<16x16x64xf32>
    %78 = vector.broadcast %76 : vector<1x1x64xf32> to vector<16x16x64xf32>
    %79 = arith.mulf %77, %78 : vector<16x16x64xf32>
    %80 = arith.addf %72, %79 : vector<16x16x64xf32>
    %81 = vector.extract_strided_slice %80 {offsets = [0, 0, 0], sizes = [16, 1, 64], strides = [1, 1, 1]} : vector<16x16x64xf32> to vector<16x1x64xf32>
    %82 = vector.shape_cast %81 : vector<16x1x64xf32> to vector<16x64xf32>
    %83 = vector.extract_strided_slice %80 {offsets = [0, 1, 0], sizes = [16, 1, 64], strides = [1, 1, 1]} : vector<16x16x64xf32> to vector<16x1x64xf32>
    %84 = vector.shape_cast %83 : vector<16x1x64xf32> to vector<16x64xf32>
    %85 = vector.extract_strided_slice %80 {offsets = [0, 2, 0], sizes = [16, 1, 64], strides = [1, 1, 1]} : vector<16x16x64xf32> to vector<16x1x64xf32>
    %86 = vector.shape_cast %85 : vector<16x1x64xf32> to vector<16x64xf32>
    %87 = vector.extract_strided_slice %80 {offsets = [0, 3, 0], sizes = [16, 1, 64], strides = [1, 1, 1]} : vector<16x16x64xf32> to vector<16x1x64xf32>
    %88 = vector.shape_cast %87 : vector<16x1x64xf32> to vector<16x64xf32>
    %89 = vector.extract_strided_slice %80 {offsets = [0, 4, 0], sizes = [16, 1, 64], strides = [1, 1, 1]} : vector<16x16x64xf32> to vector<16x1x64xf32>
    %90 = vector.shape_cast %89 : vector<16x1x64xf32> to vector<16x64xf32>
    %91 = vector.extract_strided_slice %80 {offsets = [0, 5, 0], sizes = [16, 1, 64], strides = [1, 1, 1]} : vector<16x16x64xf32> to vector<16x1x64xf32>
    %92 = vector.shape_cast %91 : vector<16x1x64xf32> to vector<16x64xf32>
    %93 = vector.extract_strided_slice %80 {offsets = [0, 6, 0], sizes = [16, 1, 64], strides = [1, 1, 1]} : vector<16x16x64xf32> to vector<16x1x64xf32>
    %94 = vector.shape_cast %93 : vector<16x1x64xf32> to vector<16x64xf32>
    %95 = vector.extract_strided_slice %80 {offsets = [0, 7, 0], sizes = [16, 1, 64], strides = [1, 1, 1]} : vector<16x16x64xf32> to vector<16x1x64xf32>
    %96 = vector.shape_cast %95 : vector<16x1x64xf32> to vector<16x64xf32>
    %97 = vector.extract_strided_slice %80 {offsets = [0, 8, 0], sizes = [16, 1, 64], strides = [1, 1, 1]} : vector<16x16x64xf32> to vector<16x1x64xf32>
    %98 = vector.shape_cast %97 : vector<16x1x64xf32> to vector<16x64xf32>
    %99 = vector.extract_strided_slice %80 {offsets = [0, 9, 0], sizes = [16, 1, 64], strides = [1, 1, 1]} : vector<16x16x64xf32> to vector<16x1x64xf32>
    %100 = vector.shape_cast %99 : vector<16x1x64xf32> to vector<16x64xf32>
    %101 = vector.extract_strided_slice %80 {offsets = [0, 10, 0], sizes = [16, 1, 64], strides = [1, 1, 1]} : vector<16x16x64xf32> to vector<16x1x64xf32>
    %102 = vector.shape_cast %101 : vector<16x1x64xf32> to vector<16x64xf32>
    %103 = vector.extract_strided_slice %80 {offsets = [0, 11, 0], sizes = [16, 1, 64], strides = [1, 1, 1]} : vector<16x16x64xf32> to vector<16x1x64xf32>
    %104 = vector.shape_cast %103 : vector<16x1x64xf32> to vector<16x64xf32>
    %105 = vector.extract_strided_slice %80 {offsets = [0, 12, 0], sizes = [16, 1, 64], strides = [1, 1, 1]} : vector<16x16x64xf32> to vector<16x1x64xf32>
    %106 = vector.shape_cast %105 : vector<16x1x64xf32> to vector<16x64xf32>
    %107 = vector.extract_strided_slice %80 {offsets = [0, 13, 0], sizes = [16, 1, 64], strides = [1, 1, 1]} : vector<16x16x64xf32> to vector<16x1x64xf32>
    %108 = vector.shape_cast %107 : vector<16x1x64xf32> to vector<16x64xf32>
    %109 = vector.extract_strided_slice %80 {offsets = [0, 14, 0], sizes = [16, 1, 64], strides = [1, 1, 1]} : vector<16x16x64xf32> to vector<16x1x64xf32>
    %110 = vector.shape_cast %109 : vector<16x1x64xf32> to vector<16x64xf32>
    %111 = vector.extract_strided_slice %80 {offsets = [0, 15, 0], sizes = [16, 1, 64], strides = [1, 1, 1]} : vector<16x16x64xf32> to vector<16x1x64xf32>
    %112 = vector.shape_cast %111 : vector<16x1x64xf32> to vector<16x64xf32>
    %113 = tpu.concatenate %82, %84, %86, %88, %90, %92, %94, %96, %98, %100, %102, %104, %106, %108, %110, %112 in 1 : vector<16x64xf32>, vector<16x64xf32>, vector<16x64xf32>, vector<16x64xf32>, vector<16x64xf32>, vector<16x64xf32>, vector<16x64xf32>, vector<16x64xf32>, vector<16x64xf32>, vector<16x64xf32>, vector<16x64xf32>, vector<16x64xf32>, vector<16x64xf32>, vector<16x64xf32>, vector<16x64xf32>, vector<16x64xf32> -> vector<16x1024xf32>
    %114 = arith.truncf %113 : vector<16x1024xf32> to vector<16x1024xbf16>
    %c0_41 = arith.constant 0 : index
    %c0_42 = arith.constant 0 : index
    %c0_43 = arith.constant 0 : index
    %115 = vector.load %arg3[%c0_41, %c0_42, %c0_43] : memref<2x16x1024xbf16, #tpu.memory_space<vmem>>, vector<1x16x1024xbf16>
    %116 = vector.shape_cast %115 : vector<1x16x1024xbf16> to vector<16x1024xbf16>
    %117 = vector.shape_cast %114 : vector<16x1024xbf16> to vector<1x16x1024xbf16>
    tpu.vector_store %arg3[%c0_41, %c0_42, %c0_43], %117 {strides = array<i32>} : memref<2x16x1024xbf16, #tpu.memory_space<vmem>>, vector<1x16x1024xbf16>,
    %cst_44 = arith.constant dense<0.000000e+00> : vector<64xf32>
    %118 = vector.multi_reduction <add>, %80, %cst_44 [0, 1] : vector<16x16x64xf32> to vector<64xf32>
    %119 = vector.shape_cast %118 : vector<64xf32> to vector<1x1x64xf32>
    %120 = arith.addf %0, %119 : vector<1x1x64xf32>
    %121 = arith.mulf %80, %80 : vector<16x16x64xf32>
    %cst_45 = arith.constant dense<0.000000e+00> : vector<64xf32>
    %122 = vector.multi_reduction <add>, %121, %cst_45 [0, 1] : vector<16x16x64xf32> to vector<64xf32>
    %123 = vector.shape_cast %122 : vector<64xf32> to vector<1x1x64xf32>
    %124 = arith.addf %1, %123 : vector<1x1x64xf32>
    %c1_46 = arith.constant 1 : index
    %c0_47 = arith.constant 0 : index
    %c0_48 = arith.constant 0 : index
    %c0_49 = arith.constant 0 : index
    %125 = vector.load %arg1[%c1_46, %c0_47, %c0_48, %c0_49] : memref<2x16x16x1xf32, #tpu.memory_space<vmem>>, vector<1x16x16x1xf32>
    %126 = vector.shape_cast %125 : vector<1x16x16x1xf32> to vector<16x16x1xf32>
    %cst_50 = arith.constant 0.000000e+00 : f32
    %127 = vector.broadcast %cst_50 : f32 to vector<16x1x1xf32>
    %128 = tpu.concatenate %127, %126, %127 in 1 : vector<16x1x1xf32>, vector<16x16x1xf32>, vector<16x1x1xf32> -> vector<16x18x1xf32>
    %cst_51 = arith.constant 0.000000e+00 : f32
    %129 = vector.broadcast %cst_51 : f32 to vector<1x18x1xf32>
    %130 = tpu.concatenate %129, %128, %129 in 0 : vector<1x18x1xf32>, vector<16x18x1xf32>, vector<1x18x1xf32> -> vector<18x18x1xf32>
    %cst_52 = arith.constant 0.000000e+00 : f32
    %131 = vector.broadcast %cst_52 : f32 to vector<16x16x64xf32>
    %132 = vector.extract_strided_slice %130 {offsets = [0, 0, 0], sizes = [16, 16, 1], strides = [1, 1, 1]} : vector<18x18x1xf32> to vector<16x16x1xf32>
    %c0_53 = arith.constant 0 : index
    %c0_54 = arith.constant 0 : index
    %c0_55 = arith.constant 0 : index
    %c0_56 = arith.constant 0 : index
    %133 = vector.load %arg2[%c0_53, %c0_54, %c0_55, %c0_56] : memref<3x3x1x64xf32, #tpu.memory_space<vmem>>, vector<1x1x1x64xf32>
    %134 = vector.shape_cast %133 : vector<1x1x1x64xf32> to vector<1x64xf32>
    %135 = vector.shape_cast %134 : vector<1x64xf32> to vector<1x1x64xf32>
    %136 = vector.broadcast %132 : vector<16x16x1xf32> to vector<16x16x64xf32>
    %137 = vector.broadcast %135 : vector<1x1x64xf32> to vector<16x16x64xf32>
    %138 = arith.mulf %136, %137 : vector<16x16x64xf32>
    %139 = arith.addf %131, %138 : vector<16x16x64xf32>
    %140 = vector.extract_strided_slice %130 {offsets = [0, 1, 0], sizes = [16, 16, 1], strides = [1, 1, 1]} : vector<18x18x1xf32> to vector<16x16x1xf32>
    %c0_57 = arith.constant 0 : index
    %c1_58 = arith.constant 1 : index
    %c0_59 = arith.constant 0 : index
    %c0_60 = arith.constant 0 : index
    %141 = vector.load %arg2[%c0_57, %c1_58, %c0_59, %c0_60] : memref<3x3x1x64xf32, #tpu.memory_space<vmem>>, vector<1x1x1x64xf32>
    %142 = vector.shape_cast %141 : vector<1x1x1x64xf32> to vector<1x64xf32>
    %143 = vector.shape_cast %142 : vector<1x64xf32> to vector<1x1x64xf32>
    %144 = vector.broadcast %140 : vector<16x16x1xf32> to vector<16x16x64xf32>
    %145 = vector.broadcast %143 : vector<1x1x64xf32> to vector<16x16x64xf32>
    %146 = arith.mulf %144, %145 : vector<16x16x64xf32>
    %147 = arith.addf %139, %146 : vector<16x16x64xf32>
    %148 = vector.extract_strided_slice %130 {offsets = [0, 2, 0], sizes = [16, 16, 1], strides = [1, 1, 1]} : vector<18x18x1xf32> to vector<16x16x1xf32>
    %c0_61 = arith.constant 0 : index
    %c2_62 = arith.constant 2 : index
    %c0_63 = arith.constant 0 : index
    %c0_64 = arith.constant 0 : index
    %149 = vector.load %arg2[%c0_61, %c2_62, %c0_63, %c0_64] : memref<3x3x1x64xf32, #tpu.memory_space<vmem>>, vector<1x1x1x64xf32>
    %150 = vector.shape_cast %149 : vector<1x1x1x64xf32> to vector<1x64xf32>
    %151 = vector.shape_cast %150 : vector<1x64xf32> to vector<1x1x64xf32>
    %152 = vector.broadcast %148 : vector<16x16x1xf32> to vector<16x16x64xf32>
    %153 = vector.broadcast %151 : vector<1x1x64xf32> to vector<16x16x64xf32>
    %154 = arith.mulf %152, %153 : vector<16x16x64xf32>
    %155 = arith.addf %147, %154 : vector<16x16x64xf32>
    %156 = vector.extract_strided_slice %130 {offsets = [1, 0, 0], sizes = [16, 16, 1], strides = [1, 1, 1]} : vector<18x18x1xf32> to vector<16x16x1xf32>
    %c1_65 = arith.constant 1 : index
    %c0_66 = arith.constant 0 : index
    %c0_67 = arith.constant 0 : index
    %c0_68 = arith.constant 0 : index
    %157 = vector.load %arg2[%c1_65, %c0_66, %c0_67, %c0_68] : memref<3x3x1x64xf32, #tpu.memory_space<vmem>>, vector<1x1x1x64xf32>
    %158 = vector.shape_cast %157 : vector<1x1x1x64xf32> to vector<1x64xf32>
    %159 = vector.shape_cast %158 : vector<1x64xf32> to vector<1x1x64xf32>
    %160 = vector.broadcast %156 : vector<16x16x1xf32> to vector<16x16x64xf32>
    %161 = vector.broadcast %159 : vector<1x1x64xf32> to vector<16x16x64xf32>
    %162 = arith.mulf %160, %161 : vector<16x16x64xf32>
    %163 = arith.addf %155, %162 : vector<16x16x64xf32>
    %164 = vector.extract_strided_slice %130 {offsets = [1, 1, 0], sizes = [16, 16, 1], strides = [1, 1, 1]} : vector<18x18x1xf32> to vector<16x16x1xf32>
    %c1_69 = arith.constant 1 : index
    %c1_70 = arith.constant 1 : index
    %c0_71 = arith.constant 0 : index
    %c0_72 = arith.constant 0 : index
    %165 = vector.load %arg2[%c1_69, %c1_70, %c0_71, %c0_72] : memref<3x3x1x64xf32, #tpu.memory_space<vmem>>, vector<1x1x1x64xf32>
    %166 = vector.shape_cast %165 : vector<1x1x1x64xf32> to vector<1x64xf32>
    %167 = vector.shape_cast %166 : vector<1x64xf32> to vector<1x1x64xf32>
    %168 = vector.broadcast %164 : vector<16x16x1xf32> to vector<16x16x64xf32>
    %169 = vector.broadcast %167 : vector<1x1x64xf32> to vector<16x16x64xf32>
    %170 = arith.mulf %168, %169 : vector<16x16x64xf32>
    %171 = arith.addf %163, %170 : vector<16x16x64xf32>
    %172 = vector.extract_strided_slice %130 {offsets = [1, 2, 0], sizes = [16, 16, 1], strides = [1, 1, 1]} : vector<18x18x1xf32> to vector<16x16x1xf32>
    %c1_73 = arith.constant 1 : index
    %c2_74 = arith.constant 2 : index
    %c0_75 = arith.constant 0 : index
    %c0_76 = arith.constant 0 : index
    %173 = vector.load %arg2[%c1_73, %c2_74, %c0_75, %c0_76] : memref<3x3x1x64xf32, #tpu.memory_space<vmem>>, vector<1x1x1x64xf32>
    %174 = vector.shape_cast %173 : vector<1x1x1x64xf32> to vector<1x64xf32>
    %175 = vector.shape_cast %174 : vector<1x64xf32> to vector<1x1x64xf32>
    %176 = vector.broadcast %172 : vector<16x16x1xf32> to vector<16x16x64xf32>
    %177 = vector.broadcast %175 : vector<1x1x64xf32> to vector<16x16x64xf32>
    %178 = arith.mulf %176, %177 : vector<16x16x64xf32>
    %179 = arith.addf %171, %178 : vector<16x16x64xf32>
    %180 = vector.extract_strided_slice %130 {offsets = [2, 0, 0], sizes = [16, 16, 1], strides = [1, 1, 1]} : vector<18x18x1xf32> to vector<16x16x1xf32>
    %c2_77 = arith.constant 2 : index
    %c0_78 = arith.constant 0 : index
    %c0_79 = arith.constant 0 : index
    %c0_80 = arith.constant 0 : index
    %181 = vector.load %arg2[%c2_77, %c0_78, %c0_79, %c0_80] : memref<3x3x1x64xf32, #tpu.memory_space<vmem>>, vector<1x1x1x64xf32>
    %182 = vector.shape_cast %181 : vector<1x1x1x64xf32> to vector<1x64xf32>
    %183 = vector.shape_cast %182 : vector<1x64xf32> to vector<1x1x64xf32>
    %184 = vector.broadcast %180 : vector<16x16x1xf32> to vector<16x16x64xf32>
    %185 = vector.broadcast %183 : vector<1x1x64xf32> to vector<16x16x64xf32>
    %186 = arith.mulf %184, %185 : vector<16x16x64xf32>
    %187 = arith.addf %179, %186 : vector<16x16x64xf32>
    %188 = vector.extract_strided_slice %130 {offsets = [2, 1, 0], sizes = [16, 16, 1], strides = [1, 1, 1]} : vector<18x18x1xf32> to vector<16x16x1xf32>
    %c2_81 = arith.constant 2 : index
    %c1_82 = arith.constant 1 : index
    %c0_83 = arith.constant 0 : index
    %c0_84 = arith.constant 0 : index
    %189 = vector.load %arg2[%c2_81, %c1_82, %c0_83, %c0_84] : memref<3x3x1x64xf32, #tpu.memory_space<vmem>>, vector<1x1x1x64xf32>
    %190 = vector.shape_cast %189 : vector<1x1x1x64xf32> to vector<1x64xf32>
    %191 = vector.shape_cast %190 : vector<1x64xf32> to vector<1x1x64xf32>
    %192 = vector.broadcast %188 : vector<16x16x1xf32> to vector<16x16x64xf32>
    %193 = vector.broadcast %191 : vector<1x1x64xf32> to vector<16x16x64xf32>
    %194 = arith.mulf %192, %193 : vector<16x16x64xf32>
    %195 = arith.addf %187, %194 : vector<16x16x64xf32>
    %196 = vector.extract_strided_slice %130 {offsets = [2, 2, 0], sizes = [16, 16, 1], strides = [1, 1, 1]} : vector<18x18x1xf32> to vector<16x16x1xf32>
    %c2_85 = arith.constant 2 : index
    %c2_86 = arith.constant 2 : index
    %c0_87 = arith.constant 0 : index
    %c0_88 = arith.constant 0 : index
    %197 = vector.load %arg2[%c2_85, %c2_86, %c0_87, %c0_88] : memref<3x3x1x64xf32, #tpu.memory_space<vmem>>, vector<1x1x1x64xf32>
    %198 = vector.shape_cast %197 : vector<1x1x1x64xf32> to vector<1x64xf32>
    %199 = vector.shape_cast %198 : vector<1x64xf32> to vector<1x1x64xf32>
    %200 = vector.broadcast %196 : vector<16x16x1xf32> to vector<16x16x64xf32>
    %201 = vector.broadcast %199 : vector<1x1x64xf32> to vector<16x16x64xf32>
    %202 = arith.mulf %200, %201 : vector<16x16x64xf32>
    %203 = arith.addf %195, %202 : vector<16x16x64xf32>
    %204 = vector.extract_strided_slice %203 {offsets = [0, 0, 0], sizes = [16, 1, 64], strides = [1, 1, 1]} : vector<16x16x64xf32> to vector<16x1x64xf32>
    %205 = vector.shape_cast %204 : vector<16x1x64xf32> to vector<16x64xf32>
    %206 = vector.extract_strided_slice %203 {offsets = [0, 1, 0], sizes = [16, 1, 64], strides = [1, 1, 1]} : vector<16x16x64xf32> to vector<16x1x64xf32>
    %207 = vector.shape_cast %206 : vector<16x1x64xf32> to vector<16x64xf32>
    %208 = vector.extract_strided_slice %203 {offsets = [0, 2, 0], sizes = [16, 1, 64], strides = [1, 1, 1]} : vector<16x16x64xf32> to vector<16x1x64xf32>
    %209 = vector.shape_cast %208 : vector<16x1x64xf32> to vector<16x64xf32>
    %210 = vector.extract_strided_slice %203 {offsets = [0, 3, 0], sizes = [16, 1, 64], strides = [1, 1, 1]} : vector<16x16x64xf32> to vector<16x1x64xf32>
    %211 = vector.shape_cast %210 : vector<16x1x64xf32> to vector<16x64xf32>
    %212 = vector.extract_strided_slice %203 {offsets = [0, 4, 0], sizes = [16, 1, 64], strides = [1, 1, 1]} : vector<16x16x64xf32> to vector<16x1x64xf32>
    %213 = vector.shape_cast %212 : vector<16x1x64xf32> to vector<16x64xf32>
    %214 = vector.extract_strided_slice %203 {offsets = [0, 5, 0], sizes = [16, 1, 64], strides = [1, 1, 1]} : vector<16x16x64xf32> to vector<16x1x64xf32>
    %215 = vector.shape_cast %214 : vector<16x1x64xf32> to vector<16x64xf32>
    %216 = vector.extract_strided_slice %203 {offsets = [0, 6, 0], sizes = [16, 1, 64], strides = [1, 1, 1]} : vector<16x16x64xf32> to vector<16x1x64xf32>
    %217 = vector.shape_cast %216 : vector<16x1x64xf32> to vector<16x64xf32>
    %218 = vector.extract_strided_slice %203 {offsets = [0, 7, 0], sizes = [16, 1, 64], strides = [1, 1, 1]} : vector<16x16x64xf32> to vector<16x1x64xf32>
    %219 = vector.shape_cast %218 : vector<16x1x64xf32> to vector<16x64xf32>
    %220 = vector.extract_strided_slice %203 {offsets = [0, 8, 0], sizes = [16, 1, 64], strides = [1, 1, 1]} : vector<16x16x64xf32> to vector<16x1x64xf32>
    %221 = vector.shape_cast %220 : vector<16x1x64xf32> to vector<16x64xf32>
    %222 = vector.extract_strided_slice %203 {offsets = [0, 9, 0], sizes = [16, 1, 64], strides = [1, 1, 1]} : vector<16x16x64xf32> to vector<16x1x64xf32>
    %223 = vector.shape_cast %222 : vector<16x1x64xf32> to vector<16x64xf32>
    %224 = vector.extract_strided_slice %203 {offsets = [0, 10, 0], sizes = [16, 1, 64], strides = [1, 1, 1]} : vector<16x16x64xf32> to vector<16x1x64xf32>
    %225 = vector.shape_cast %224 : vector<16x1x64xf32> to vector<16x64xf32>
    %226 = vector.extract_strided_slice %203 {offsets = [0, 11, 0], sizes = [16, 1, 64], strides = [1, 1, 1]} : vector<16x16x64xf32> to vector<16x1x64xf32>
    %227 = vector.shape_cast %226 : vector<16x1x64xf32> to vector<16x64xf32>
    %228 = vector.extract_strided_slice %203 {offsets = [0, 12, 0], sizes = [16, 1, 64], strides = [1, 1, 1]} : vector<16x16x64xf32> to vector<16x1x64xf32>
    %229 = vector.shape_cast %228 : vector<16x1x64xf32> to vector<16x64xf32>
    %230 = vector.extract_strided_slice %203 {offsets = [0, 13, 0], sizes = [16, 1, 64], strides = [1, 1, 1]} : vector<16x16x64xf32> to vector<16x1x64xf32>
    %231 = vector.shape_cast %230 : vector<16x1x64xf32> to vector<16x64xf32>
    %232 = vector.extract_strided_slice %203 {offsets = [0, 14, 0], sizes = [16, 1, 64], strides = [1, 1, 1]} : vector<16x16x64xf32> to vector<16x1x64xf32>
    %233 = vector.shape_cast %232 : vector<16x1x64xf32> to vector<16x64xf32>
    %234 = vector.extract_strided_slice %203 {offsets = [0, 15, 0], sizes = [16, 1, 64], strides = [1, 1, 1]} : vector<16x16x64xf32> to vector<16x1x64xf32>
    %235 = vector.shape_cast %234 : vector<16x1x64xf32> to vector<16x64xf32>
    %236 = tpu.concatenate %205, %207, %209, %211, %213, %215, %217, %219, %221, %223, %225, %227, %229, %231, %233, %235 in 1 : vector<16x64xf32>, vector<16x64xf32>, vector<16x64xf32>, vector<16x64xf32>, vector<16x64xf32>, vector<16x64xf32>, vector<16x64xf32>, vector<16x64xf32>, vector<16x64xf32>, vector<16x64xf32>, vector<16x64xf32>, vector<16x64xf32>, vector<16x64xf32>, vector<16x64xf32>, vector<16x64xf32>, vector<16x64xf32> -> vector<16x1024xf32>
    %237 = arith.truncf %236 : vector<16x1024xf32> to vector<16x1024xbf16>
    %c1_89 = arith.constant 1 : index
    %c0_90 = arith.constant 0 : index
    %c0_91 = arith.constant 0 : index
    %238 = vector.load %arg3[%c1_89, %c0_90, %c0_91] : memref<2x16x1024xbf16, #tpu.memory_space<vmem>>, vector<1x16x1024xbf16>
    %239 = vector.shape_cast %238 : vector<1x16x1024xbf16> to vector<16x1024xbf16>
    %240 = vector.shape_cast %237 : vector<16x1024xbf16> to vector<1x16x1024xbf16>
    tpu.vector_store %arg3[%c1_89, %c0_90, %c0_91], %240 {strides = array<i32>} : memref<2x16x1024xbf16, #tpu.memory_space<vmem>>, vector<1x16x1024xbf16>,
    %cst_92 = arith.constant dense<0.000000e+00> : vector<64xf32>
    %241 = vector.multi_reduction <add>, %203, %cst_92 [0, 1] : vector<16x16x64xf32> to vector<64xf32>
    %242 = vector.shape_cast %241 : vector<64xf32> to vector<1x1x64xf32>
    %243 = arith.addf %120, %242 : vector<1x1x64xf32>
    %244 = arith.mulf %203, %203 : vector<16x16x64xf32>
    %cst_93 = arith.constant dense<0.000000e+00> : vector<64xf32>
    %245 = vector.multi_reduction <add>, %244, %cst_93 [0, 1] : vector<16x16x64xf32> to vector<64xf32>
    %246 = vector.shape_cast %245 : vector<64xf32> to vector<1x1x64xf32>
    %247 = arith.addf %124, %246 : vector<1x1x64xf32>
    %c0_94 = arith.constant 0 : index
    %c0_95 = arith.constant 0 : index
    %c0_96 = arith.constant 0 : index
    %248 = vector.load %arg4[%c0_94, %c0_95, %c0_96] : memref<1x1x64xf32, #tpu.memory_space<vmem>>, vector<1x1x64xf32>
    tpu.vector_store %arg4[%c0_94, %c0_95, %c0_96], %243 {strides = array<i32>} : memref<1x1x64xf32, #tpu.memory_space<vmem>>, vector<1x1x64xf32>,
    %c0_97 = arith.constant 0 : index
    %c0_98 = arith.constant 0 : index
    %c0_99 = arith.constant 0 : index
    %249 = vector.load %arg5[%c0_97, %c0_98, %c0_99] : memref<1x1x64xf32, #tpu.memory_space<vmem>>, vector<1x1x64xf32>
    tpu.vector_store %arg5[%c0_97, %c0_98, %c0_99], %247 {strides = array<i32>} : memref<1x1x64xf32, #tpu.memory_space<vmem>>, vector<1x1x64xf32>,
    return
  }
  func.func @transform_0(%arg0: i32) -> (i32, i32, i32, i32) {
    %c0_i32 = arith.constant 0 : i32
    %c0_i32_0 = arith.constant 0 : i32
    %c0_i32_1 = arith.constant 0 : i32
    %c0_i32_2 = arith.constant 0 : i32
    return %arg0, %c0_i32, %c0_i32_0, %c0_i32_1 : i32, i32, i32, i32
  }
  func.func @transform_1(%arg0: i32) -> (i32, i32, i32, i32) {
    %c0_i32 = arith.constant 0 : i32
    %c0_i32_0 = arith.constant 0 : i32
    %c0_i32_1 = arith.constant 0 : i32
    %c0_i32_2 = arith.constant 0 : i32
    %c0_i32_3 = arith.constant 0 : i32
    return %c0_i32, %c0_i32_0, %c0_i32_1, %c0_i32_2 : i32, i32, i32, i32
  }
  func.func @transform_2(%arg0: i32) -> (i32, i32, i32) {
    %c0_i32 = arith.constant 0 : i32
    %c0_i32_0 = arith.constant 0 : i32
    %c0_i32_1 = arith.constant 0 : i32
    return %arg0, %c0_i32, %c0_i32_0 : i32, i32, i32
  }
  func.func @transform_3(%arg0: i32) -> (i32, i32, i32) {
    %c0_i32 = arith.constant 0 : i32
    %c0_i32_0 = arith.constant 0 : i32
    %c0_i32_1 = arith.constant 0 : i32
    return %arg0, %c0_i32, %c0_i32_0 : i32, i32, i32
  }
  func.func @transform_4(%arg0: i32) -> (i32, i32, i32) {
    %c0_i32 = arith.constant 0 : i32
    %c0_i32_0 = arith.constant 0 : i32
    %c0_i32_1 = arith.constant 0 : i32
    return %arg0, %c0_i32, %c0_i32_0 : i32, i32, i32
  }
}

</mosaic_0001>

<bundles_post_ra>
// kernel: tpu_custom_call.1
= control target key start
LH: loop header
LB: loop body
LE: loop exit
PB: predicated region body
PF: predicated region fallthrough
CT: control target
= control target key end

     0   :  { %10 = vsyncpa [#allocation3], 0  ;;  %vm80_vm0 = vcmask 1040384   ;;  %v5919_v3 = vmov 0   ;;  %s12002_s0 = inlined_call_operand.vmem [shape: f32[2,16,16,1], index: 0, kind: input, shape index: {}]   ;;  %s12003_s1 = inlined_call_operand.vmem [shape: f32[3,3,1,64], index: 1, kind: input, shape index: {}]   ;;  %s12004_s2 = inlined_call_operand.hbm [shape: bf16[2,16,1024], index: 2, kind: output, shape index: {0}]   ;;  %s12005_s3 = inlined_call_operand.hbm [shape: f32[1,1,64], index: 3, kind: output, shape index: {1}]   ;;  %s12006_s4 = inlined_call_operand.hbm [shape: f32[1,1,64], index: 4, kind: output, shape index: {2}]  }
   0x1   :  { %v20_v0 = vld [vmem:[%s12002_s0 + $0x20] sm:$0xff]  ;;  %v18_v1 = vld [vmem:[%s12002_s0 + $0x10] sm:$0xff]  ;;  %5709 = vset.pattern.permute.xlu2 %v5919_v3  ;;  %5708 = vset.pattern.permute.xlu1 %v5919_v3  ;;  %v5963_v7 = vld [vmem:[%s12002_s0 + $0x28] sm:$0xff] }
   0x2   :  { %v16_v2 = vld [vmem:[%s12002_s0] sm:$0xff]  ;;  %v87_v4 = vrot.slane %v20_v0, 7  ;;  %v84_v5 = vrot.slane %v18_v1, 7  ;;  %5707 = vset.pattern.permute.xlu0 %v5919_v3  ;;  %v5968_v8 = vld [vmem:[%s12002_s0 + $0x18] sm:$0xff]  ;;  %v5976_v12 = vld [vmem:[%s12002_s0 + $0x8] sm:$0xff]  ;;  %v88_v13 = vrot.slane %v5963_v7, 7 }
   0x3   :  { %v81_v6 = vrot.slane %v16_v2, 7  ;;  %v85_v14 = vrot.slane %v5968_v8, 7  ;;  %v82_v15 = vrot.slane %v5976_v12, 7  ;;  %v24_v16 = vld [vmem:[%s12002_s0 + $0x40] sm:$0xff]  ;;  %v22_v19 = vld [vmem:[%s12002_s0 + $0x30] sm:$0xff]  ;;  %v5999_v21 = vld [vmem:[%s12002_s0 + $0x38] sm:$0xff] }
   0x4   :  { %v163_v9 = vsel %vm80_vm0, 0.0, %v87_v4  ;;  %v162_v10 = vsel %vm80_vm0, 0.0, %v84_v5  ;;  %v89_v17 = vsel %vm80_vm0, %v87_v4, %v88_v13  ;;  %v93_v22 = vrot.slane %v24_v16, 7 }
   0x5   :  { %v161_v11 = vsel %vm80_vm0, 0.0, %v81_v6  ;;  %219 = vperm.xlu2 %5709, %v163_v9   ;;  %210 = vperm.xlu1 %5708, %v162_v10   ;;  %v86_v18 = vsel %vm80_vm0, %v84_v5, %v85_v14  ;;  %v83_v20 = vsel %vm80_vm0, %v81_v6, %v82_v15  ;;  %v90_v23 = vrot.slane %v22_v19, 7 }
   0x6   :  { %201 = vperm.xlu0 %5707, %v161_v11   ;;  %v91_v24 = vrot.slane %v5999_v21, 7 }
   0xd   :  { %223 = vperm.xlu2 %5709, %v89_v17   ;;  %214 = vperm.xlu1 %5708, %v86_v18  }
   0xe   :  { %205 = vperm.xlu0 %5707, %v83_v20  }
   0xf   :  { %11 = vsyncpa [#allocation5], 0  ;;  %v165_v25 = vsel %vm80_vm0, 0.0, %v93_v22  ;;  %v92_v26 = vsel %vm80_vm0, %v90_v23, %v91_v24  ;;  %v164_v27 = vsel %vm80_vm0, 0.0, %v90_v23  ;;  %v26_v28 = vld [vmem:[%s12002_s0 + $0x50] sm:$0xff]  ;;  %v6013_v29 = vld [vmem:[%s12002_s0 + $0x58] sm:$0xff] }
  0x10   :  { %v6018_v30 = vld [vmem:[%s12002_s0 + $0x48] sm:$0xff]  ;;  %v96_v31 = vrot.slane %v26_v28, 7  ;;  %v97_v32 = vrot.slane %v6013_v29, 7  ;;  %v30_v37 = vld [vmem:[%s12002_s0 + $0x70] sm:$0xff]  ;;  %v28_v38 = vld [vmem:[%s12002_s0 + $0x60] sm:$0xff]  ;;  %v180_v8 = vsel %vm80_vm0, %v91_v24, 0.0 }
  0x11   :  { %v94_v33 = vrot.slane %v6018_v30, 7  ;;  %v6038_v39 = vld [vmem:[%s12002_s0 + $0x68] sm:$0xff]  ;;  %v102_v40 = vrot.slane %v30_v37, 7  ;;  %v99_v41 = vrot.slane %v28_v38, 7  ;;  %v32_v46 = vld [vmem:[%s12002_s0 + $0x80] sm:$0xff]  ;;  %v6057_v48 = vld [vmem:[%s12002_s0 + $0x78] sm:$0xff] }
  0x12   :  { %v98_v34 = vsel %vm80_vm0, %v96_v31, %v97_v32  ;;  %v166_v35 = vsel %vm80_vm0, 0.0, %v96_v31  ;;  %v100_v42 = vrot.slane %v6038_v39, 7  ;;  %v6052_v47 = vld [vmem:[%s12002_s0 + $0x88] sm:$0xff]  ;;  %v105_v49 = vrot.slane %v32_v46, 7  ;;  %v36_v55 = vld [vmem:[%s12002_s0 + $0xa0] sm:$0xff]  ;;  %v34_v56 = vld [vmem:[%s12002_s0 + $0x90] sm:$0xff] }
  0x13   :  { %v95_v36 = vsel %vm80_vm0, %v93_v22, %v94_v33  ;;  %v168_v43 = vsel %vm80_vm0, 0.0, %v102_v40  ;;  %v167_v45 = vsel %vm80_vm0, 0.0, %v99_v41  ;;  %v106_v50 = vrot.slane %v6052_v47, 7  ;;  %v6077_v57 = vld [vmem:[%s12002_s0 + $0x98] sm:$0xff]  ;;  %v38_v0 = vld [vmem:[%s12002_s0 + $0xb0] sm:$0xff]  ;;  %v6096_v2 = vld [vmem:[%s12002_s0 + $0xa8] sm:$0xff] }
  0x14   :  { %v101_v44 = vsel %vm80_vm0, %v99_v41, %v100_v42  ;;  %v103_v51 = vrot.slane %v6057_v48, 7  ;;  %v169_v53 = vsel %vm80_vm0, 0.0, %v105_v49  ;;  %v111_v58 = vrot.slane %v36_v55, 7  ;;  %v6091_v1 = vld [vmem:[%s12002_s0 + $0xb8] sm:$0xff]  ;;  %v42_v11 = vld [vmem:[%s12002_s0 + $0xd0] sm:$0xff]  ;;  %v40_v16 = vld [vmem:[%s12002_s0 + $0xc0] sm:$0xff] }
  0x15   :  { %237 = vperm.xlu2 %5709, %v165_v25   ;;  %232 = vperm.xlu1 %5708, %v92_v26   ;;  %v107_v52 = vsel %vm80_vm0, %v105_v49, %v106_v50  ;;  %v108_v59 = vrot.slane %v34_v56, 7  ;;  %v109_v60 = vrot.slane %v6077_v57, 7  ;;  %v114_v3 = vrot.slane %v38_v0, 7  ;;  %v6112_v17 = vld [vmem:[%s12002_s0 + $0xc8] sm:$0xff]  ;;  %v44_v26 = vld [vmem:[%s12002_s0 + $0xe0] sm:$0xff]  ;;  %v43_v28 = vld [vmem:[%s12002_s0 + $0xd8] sm:$0xff] }
  0x16   :  { %228 = vperm.xlu0 %5707, %v164_v27   ;;  %v104_v54 = vsel %vm80_vm0, %v102_v40, %v103_v51  ;;  %v171_v61 = vsel %vm80_vm0, 0.0, %v111_v58  ;;  %v115_v4 = vrot.slane %v6091_v1, 7  ;;  %v112_v5 = vrot.slane %v6096_v2, 7  ;;  %v45_v27 = vld [vmem:[%s12002_s0 + $0xe8] sm:$0xff]  ;;  %v6167_v24 = vld [vmem:[%s12003_s1] ss:$0 sm:$0xff] }
  0x17   :  { %v110_v62 = vsel %vm80_vm0, %v108_v59, %v109_v60  ;;  %v170_v63 = vsel %vm80_vm0, 0.0, %v108_v59  ;;  %v172_v9 = vsel %vm80_vm0, 0.0, %v114_v3  ;;  %v120_v18 = vrot.slane %v42_v11, 7  ;;  %v6172_v29 = vld [vmem:[%s12003_s1 + $0x2] ss:$0 sm:$0xff]  ;;  %s5920_s5 = smov 64  }
  0x18   :  { %v116_v6 = vsel %vm80_vm0, %v114_v3, %v115_v4  ;;  %v113_v10 = vsel %vm80_vm0, %v111_v58, %v112_v5  ;;  %v117_v19 = vrot.slane %v40_v16, 7  ;;  %v118_v20 = vrot.slane %v6112_v17, 7  ;;  %v6207_v56 = vld [vmem:[%s12003_s1 + $0x7] ss:$0 sm:$0xff]  ;;  %v6228_v2 = vld [vmem:[%s12003_s1 + $0x3] ss:$0 sm:$0xff] }
  0x19   :  { %v174_v22 = vsel %vm80_vm0, 0.0, %v120_v18  ;;  %v123_v31 = vrot.slane %v44_v26, 7  ;;  %v179_v40 = vsel %vm80_vm0, %v88_v13, 0.0  ;;  %v178_v41 = vsel %vm80_vm0, %v85_v14, 0.0  ;;  %v6233_v3 = vld [vmem:[%s12003_s1 + $0x6] ss:$0 sm:$0xff] }
  0x1a   :  { %v119_v23 = vsel %vm80_vm0, %v117_v19, %v118_v20  ;;  %v173_v25 = vsel %vm80_vm0, 0.0, %v117_v19  ;;  %v181_v7 = vsel %vm80_vm0, %v94_v33, 0.0  ;;  %v185_v13 = vsel %vm80_vm0, %v106_v50, 0.0  ;;  %v47_v50 = vld [vmem:[%s12002_s0 + $0xf8] sm:$0xff]  ;;  %s5609_s20 = sshll.u32 %s12004_s2, 4  ;;  %s5922_s2 = smov 512   ;;  %s5610_s20 = int_to_ptr.hbm [resolvable:$true] %s5609_s20 }
  0x1b   :  { %v175_v37 = vsel %vm80_vm0, 0.0, %v123_v31  ;;  %v184_v14 = vsel %vm80_vm0, %v103_v51, 0.0  ;;  %v183_v21 = vsel %vm80_vm0, %v100_v42, 0.0  ;;  %v188_v33 = vsel %vm80_vm0, %v115_v4, 0.0  ;;  %v6195_v51 = vld [vmem:[%s12003_s1 + $0x4] ss:$0 sm:$0xff] }
  0x1c   :  { %v187_v39 = vsel %vm80_vm0, %v112_v5, 0.0  ;;  %v186_v42 = vsel %vm80_vm0, %v109_v60, 0.0  ;;  %v716_v47 = vmul.f32 0.0, %v6172_v29  ;;  %v46_v60 = vld [vmem:[%s12002_s0 + $0xf0] sm:$0xff]  ;;  %vm571_vm1 = vcmask 1046528   ;;  %s5923_s21 = smov 32  }
  0x1d   :  { %250 = vperm.xlu2 %5709, %v98_v34   ;;  %246 = vperm.xlu1 %5708, %v166_v35   ;;  %v124_v34 = vrot.slane %v45_v27, 7  ;;  %v121_v35 = vrot.slane %v43_v28, 7  ;;  %v126_v16 = vrot.slane %v46_v60, 7  ;;  %vm808_vm2 = vcmask 1045504   ;;  %s5924_s22 = smov [#allocation4]   ;;  %s5623_s26 = sshll.u32 %s12005_s3, 4  ;;  %s5624_s26 = int_to_ptr.hbm [resolvable:$true] %s5623_s26 }
  0x1e   :  { %241 = vperm.xlu0 %5707, %v95_v36   ;;  %v809_v55 = vrot.slane %v716_v47, 2  ;;  %vm2080_vm3 = vcmask 1041409   ;;  %vm2083_vm4 = vcmask 1042434   ;;  %vm2086_vm5 = vcmask 1043459   ;;  %s5621_s23 = sshll.u32 %s5924_s22, 4  ;;  %s5925_s3 = smov [#allocation6]   ;;  %s5622_s23 = int_to_ptr.vmem [resolvable:$true] %s5621_s23 }
  0x1f   :  { %v125_v36 = vsel %vm80_vm0, %v123_v31, %v124_v34  ;;  %v122_v38 = vsel %vm80_vm0, %v120_v18, %v121_v35  ;;  %v191_v58 = vsel %vm80_vm0, %v124_v34, 0.0  ;;  %v190_v59 = vsel %vm80_vm0, %v121_v35, 0.0  ;;  %v6253_v18 = vld [vmem:[%s12002_s0 + $0x100] sm:$0xff]  ;;  %s5632_s27 = sshll.u32 %s5925_s3, 4  ;;  %s5634_s30 = sshll.u32 %s12006_s4, 4  ;;  %s5633_s27 = int_to_ptr.vmem [resolvable:$true] %s5632_s27  ;;  %s5635_s30 = int_to_ptr.hbm [resolvable:$true] %s5634_s30 }
  0x20   :  { %12351 = vst [vmem:[#allocation11_spill] sm:$0xff] %v6253_v18  ;;  %v12007_v35 = vrot.slane %v6253_v18, 7  ;;  %vm2089_vm6 = vcmask 1044484   ;;  %vm2092_vm7 = vcmask 1045509   ;;  %vm2095_vm8 = vcmask 1046534  }
  0x21   :  { %vm2098_vm9 = vcmask 1047559   ;;  %vm2614_vm10 = vcmask 523264   ;;  %vm5600_vm11 = vcmask 516096  }
  0x25   :  { %264 = vperm.xlu2 %5709, %v168_v43   ;;  %259 = vperm.xlu1 %5708, %v101_v44   ;;  %v177_v43 = vsel %vm80_vm0, %v82_v15, 0.0  ;;  %v182_v44 = vsel %vm80_vm0, %v97_v32, 0.0  ;;  %v6159_v15 = vld [vmem:[%s12003_s1 + $0x1] ss:$0 sm:$0xff] }
  0x26   :  { %255 = vperm.xlu0 %5707, %v167_v45   ;;  %v479_v32 = vmul.f32 0.0, %v6159_v15  ;;  %v337_v45 = vmul.f32 0.0, %v6167_v24 }
  0x28   :  { %v572_v46 = vrot.slane %v479_v32, 1 }
  0x2d   :  { %277 = vperm.xlu2 %5709, %v107_v52   ;;  %273 = vperm.xlu1 %5708, %v169_v53   ;;  %v6200_v52 = vld [vmem:[%s12003_s1 + $0x5] ss:$0 sm:$0xff] }
  0x2e   :  { %268 = vperm.xlu0 %5707, %v104_v54   ;;  %v680_v54 = vadd.f32 %v572_v46, %v337_v45 }
  0x30   :  { %v6248_v11 = vadd.f32 %v809_v55, %v680_v54 }
  0x32   :  { %12350 = vst [vmem:[#allocation10_spill] sm:$0xff] %v6248_v11 }
  0x35   :  { %291 = vperm.xlu2 %5709, %v171_v61   ;;  %286 = vperm.xlu1 %5708, %v110_v62   ;;  %v6218_v61 = vld [vmem:[%s12003_s1 + $0x8] ss:$0 sm:$0xff] }
  0x36   :  { %282 = vperm.xlu0 %5707, %v170_v63   ;;  %v127_v63 = vrot.slane %v47_v50, 7 }
  0x38   :  { %v192_v17 = vsel %vm80_vm0, %v127_v63, 0.0 }
  0x3d   :  { %304 = vperm.xlu2 %5709, %v116_v6   ;;  %300 = vperm.xlu1 %5708, %v172_v9  }
  0x3e   :  { %295 = vperm.xlu0 %5707, %v113_v10   ;;  %v189_v10 = vsel %vm80_vm0, %v118_v20, 0.0 }
  0x45   :  { %318 = vperm.xlu2 %5709, %v174_v22   ;;  %313 = vperm.xlu1 %5708, %v119_v23  }
  0x46   :  { %309 = vperm.xlu0 %5707, %v173_v25  }
  0x4d   :  { %331 = vperm.xlu2 %5709, %v125_v36   ;;  %327 = vperm.xlu1 %5708, %v175_v37  }
  0x4e   :  { %322 = vperm.xlu0 %5707, %v122_v38  }
  0x55   :  { %413 = vperm.xlu2 %5709, %v179_v40   ;;  %408 = vperm.xlu1 %5708, %v178_v41   ;;  %v128_v40 = vsel %vm80_vm0, %v126_v16, %v127_v63 }
  0x56   :  { %403 = vperm.xlu0 %5707, %v177_v43  }
  0x5d   :  { %428 = vperm.xlu2 %5709, %v182_v44   ;;  %423 = vperm.xlu1 %5708, %v181_v7   ;;  %v176_v7 = vsel %vm80_vm0, 0.0, %v126_v16 }
  0x5e   :  { %418 = vperm.xlu0 %5707, %v180_v8  }
  0x5f   :  { %v220_v12 = vpop.permute.xlu2 %219 }
  0x60   :  { %v486_v48 = vmul.f32 %v6159_v15, %v220_v12  ;;  %v723_v57 = vmul.f32 %v6172_v29, %v220_v12  ;;  %v1042_v4 = vmul.f32 %v6195_v51, %v220_v12  ;;  %v6237_v5 = vmul.f32 %v6200_v52, %v220_v12 }
  0x61   :  { %v6240_v6 = vmul.f32 %v6207_v56, %v220_v12  ;;  %v6243_v9 = vmul.f32 %v6218_v61, %v220_v12  ;;  %v342_v19 = vmul.f32 %v6167_v24, %v220_v12  ;;  %v6257_v23 = vmul.f32 %v6228_v2, %v220_v12 }
  0x62   :  { %v584_v62 = vrot.slane %v486_v48, 1  ;;  %v821_v22 = vrot.slane %v723_v57, 2  ;;  %v6260_v25 = vmul.f32 %v6233_v3, %v220_v12  ;;  %v1142_v28 = vrot.slane %v1042_v4, 1 }
  0x63   :  { %v1387_v31 = vrot.slane %v6237_v5, 2  ;;  %v1691_v34 = vrot.slane %v6240_v6, 1  ;;  %v1928_v36 = vrot.slane %v6243_v9, 2 }
  0x64   :  { %12352 = vst [vmem:[#allocation12_spill] sm:$0xff] %v6260_v25 }
  0x65   :  { %443 = vperm.xlu2 %5709, %v185_v13   ;;  %438 = vperm.xlu1 %5708, %v184_v14  }
  0x66   :  { %433 = vperm.xlu0 %5707, %v183_v21  }
  0x67   :  { %v6174_v30 = vpop.permute.xlu2 %223 }
  0x68   :  { %12349 = vst [vmem:[#allocation9_spill] sm:$0xff] %v6174_v30  ;;  %v6187_v49 = vmul.f32 %v6159_v15, %v6174_v30  ;;  %v6223_v1 = vmul.f32 %v6172_v29, %v6174_v30  ;;  %v6269_v27 = vmul.f32 %v6195_v51, %v6174_v30  ;;  %v6282_v41 = vmul.f32 %v6200_v52, %v6174_v30 }
  0x69   :  { %v6286_v43 = vmul.f32 %v6207_v56, %v6174_v30  ;;  %v6291_v12 = vmul.f32 %v6218_v61, %v6174_v30  ;;  %v6318_v45 = vmul.f32 %v6167_v24, %v6174_v30 }
  0x6a   :  { %v12013_v0 = vrot.slane %v6187_v49, 1  ;;  %v12012_v26 = vrot.slane %v6223_v1, 2  ;;  %v12011_v32 = vrot.slane %v6269_v27, 1  ;;  %v12010_v48 = vrot.slane %v6282_v41, 2 }
  0x6b   :  { %v12009_v50 = vrot.slane %v6286_v43, 1 }
  0x6c   :  { %v586_v20 = vsel %vm571_vm1, %v584_v62, %v12013_v0  ;;  %v823_v21 = vsel %vm808_vm2, %v821_v22, %v12012_v26  ;;  %v6350_v63 = vsel %vm571_vm1, %v1142_v28, %v12011_v32  ;;  %v6371_v22 = vsel %vm808_vm2, %v1387_v31, %v12010_v48 }
  0x6d   :  { %458 = vperm.xlu2 %5709, %v188_v33   ;;  %453 = vperm.xlu1 %5708, %v187_v39   ;;  %v685_v8 = vadd.f32 %v586_v20, %v342_v19  ;;  %12363 = vst [vmem:[#allocation23_spill] sm:$0xff] %v6350_v63 }
  0x6e   :  { %448 = vperm.xlu0 %5707, %v186_v42   ;;  %v2964_v42 = vsel %vm80_vm0, 0.0, %v12007_v35  ;;  %12364 = vst [vmem:[#allocation24_spill] sm:$0xff] %v6371_v22 }
  0x6f   :  { %v6202_v53 = vpop.permute.xlu2 %237  ;;  %v6338_v57 = vadd.f32 %v823_v21, %v685_v8 }
  0x70   :  { %v6295_v13 = vmul.f32 %v6159_v15, %v6202_v53  ;;  %v6299_v14 = vmul.f32 %v6172_v29, %v6202_v53  ;;  %v6307_v33 = vmul.f32 %v6195_v51, %v6202_v53  ;;  %v6311_v39 = vmul.f32 %v6200_v52, %v6202_v53 }
  0x71   :  { %v6322_v46 = vmul.f32 %v6207_v56, %v6202_v53  ;;  %v6326_v47 = vmul.f32 %v6218_v61, %v6202_v53  ;;  %v6332_v54 = vmul.f32 %v6167_v24, %v6202_v53  ;;  %v6336_v55 = vmul.f32 %v6228_v2, %v6202_v53 }
  0x72   :  { %12354 = vst [vmem:[#allocation14_spill] sm:$0xff] %v6295_v13  ;;  %v6345_v62 = vmul.f32 %v6233_v3, %v6202_v53 }
  0x73   :  { %12355 = vst [vmem:[#allocation15_spill] sm:$0xff] %v6299_v14 }
  0x74   :  { %12356 = vst [vmem:[#allocation16_spill] sm:$0xff] %v6307_v33 }
  0x75   :  { %473 = vperm.xlu2 %5709, %v191_v58   ;;  %468 = vperm.xlu1 %5708, %v190_v59   ;;  %12357 = vst [vmem:[#allocation17_spill] sm:$0xff] %v6311_v39  ;;  %v12008_v58 = vrot.slane %v6291_v12, 2 }
  0x76   :  { %463 = vperm.xlu0 %5707, %v189_v10   ;;  %12358 = vst [vmem:[#allocation18_spill] sm:$0xff] %v6322_v46 }
  0x77   :  { %v6275_v37 = vpop.permute.xlu2 %250  ;;  %v6277_v38 = vpop.permute.xlu1 %210  ;;  %12359 = vst [vmem:[#allocation19_spill] sm:$0xff] %v6326_v47  ;;  %v6395_v31 = vsel %vm808_vm2, %v1928_v36, %v12008_v58 }
  0x78   :  { %12353 = vst [vmem:[#allocation13_spill] sm:$0xff] %v6275_v37  ;;  %v202_v44 = vpop.permute.xlu0 %201  ;;  %v6356_v6 = vmul.f32 %v6159_v15, %v6277_v38  ;;  %v6360_v9 = vmul.f32 %v6172_v29, %v6277_v38  ;;  %v6380_v20 = vmul.f32 %v6233_v3, %v6275_v37  ;;  %v6384_v28 = vmul.f32 %v6195_v51, %v6277_v38 }
  0x79   :  { %12360 = vst [vmem:[#allocation20_spill] sm:$0xff] %v6332_v54  ;;  %v6403_v8 = vmul.f32 %v6207_v56, %v6277_v38  ;;  %v6407_v21 = vmul.f32 %v6218_v61, %v6277_v38  ;;  %v480_v35 = vmul.f32 %v6159_v15, %v202_v44  ;;  %v717_v36 = vmul.f32 %v6172_v29, %v202_v44 }
  0x7a   :  { %12361 = vst [vmem:[#allocation21_spill] sm:$0xff] %v6336_v55  ;;  %v1036_v5 = vmul.f32 %v6195_v51, %v202_v44  ;;  %v338_v4 = vmul.f32 %v6167_v24, %v202_v44  ;;  %v962_v60 = vmul.f32 %v6228_v2, %v202_v44  ;;  %v1281_v59 = vmul.f32 %v6200_v52, %v202_v44 }
  0x7b   :  { %12362 = vst [vmem:[#allocation22_spill] sm:$0xff] %v6345_v62  ;;  %v574_v26 = vrot.slane %v480_v35, 1 }
  0x7c   :  { %12366 = vst [vmem:[#allocation26_spill] sm:$0xff] %v6380_v20  ;;  %v1132_v10 = vrot.slane %v1036_v5, 1  ;;  %v994_v47 = vadd.f32 %v962_v60, %v6248_v11  ;;  %v1377_v62 = vrot.slane %v1281_v59, 2 }
  0x7d   :  { %1030 = vperm.xlu2 %5709, %v192_v17   ;;  %956 = vperm.xlu1 %5708, %v128_v40   ;;  %v6376_v17 = vsel %vm571_vm1, %v1691_v34, %v12009_v50  ;;  %12367 = vst [vmem:[#allocation27_spill] sm:$0xff] %v6384_v28  ;;  %v6388_v40 = vmul.f32 %v6200_v52, %v6277_v38  ;;  %v811_v50 = vrot.slane %v717_v36, 2 }
  0x7e   :  { %952 = vperm.xlu0 %5707, %v176_v7   ;;  %12365 = vst [vmem:[#allocation25_spill] sm:$0xff] %v6376_v17  ;;  %v6399_v34 = vmul.f32 %v6167_v24, %v6277_v38 }
  0x7f   :  { %v6364_v16 = vpop.permute.xlu2 %264  ;;  %v6366_v19 = vpop.permute.xlu1 %214  ;;  %12368 = vst [vmem:[#allocation28_spill] sm:$0xff] %v6388_v40 }
  0x80   :  { %v6390_v7 = vpop.permute.xlu0 %205  ;;  %12369 = vst [vmem:[#allocation29_spill] sm:$0xff] %v6395_v31 }
  0x81   :  { %12370 = vst [vmem:[#allocation30_spill] sm:$0xff] %v6403_v8  ;;  %v6419_v58 = vmul.f32 %v6159_v15, %v6390_v7  ;;  %v6425_v53 = vmul.f32 %v6172_v29, %v6390_v7  ;;  %v6429_v48 = vmul.f32 %v6195_v51, %v6390_v7  ;;  %v6435_v0 = vmul.f32 %v6200_v52, %v6390_v7 }
  0x82   :  { %12371 = vst [vmem:[#allocation31_spill] sm:$0xff] %v6407_v21 }
  0x83   :  { %12372 = vst [vmem:[#allocation32_spill] sm:$0xff] %v6419_v58  ;;  %v12017_v44 = vrot.slane %v6419_v58, 1  ;;  %v12019_v18 = vrot.slane %v6425_v53, 2  ;;  %v12020_v20 = vrot.slane %v6429_v48, 1  ;;  %v12378_v39 = vrot.slane %v6435_v0, 2 }
  0x84   :  { %12373 = vst [vmem:[#allocation33_spill] sm:$0xff] %v6425_v53 }
  0x85   :  { %12374 = vst [vmem:[#allocation34_spill] sm:$0xff] %v6429_v48  ;;  %2999 = vperm.xlu2 %5709, %v2964_v42   ;;  %v576_v35 = vsel %vm571_vm1, %v574_v26, %v12017_v44  ;;  %v813_v36 = vsel %vm808_vm2, %v811_v50, %v12019_v18  ;;  %v1134_v59 = vsel %vm571_vm1, %v1132_v10, %v12020_v20 }
  0x86   :  { %12375 = vst [vmem:[#allocation35_spill] sm:$0xff] %v6435_v0  ;;  %v681_v5 = vadd.f32 %v576_v35, %v338_v4  ;;  %v964_v26 = vmul.f32 %v6228_v2, %v6277_v38  ;;  %v1526_v44 = vmul.f32 %v6233_v3, %v6277_v38  ;;  %v1244_v32 = vadd.f32 %v1134_v59, %v994_v47 }
  0x87   :  { %v6444_v55 = vpop.permute.xlu2 %277  ;;  %v6446_v46 = vpop.permute.xlu1 %232  ;;  %v1379_v4 = vsel %vm808_vm2, %v1377_v62, %v12378_v39  ;;  %v6464_v35 = vmul.f32 %v6159_v15, %v6364_v16  ;;  %v6469_v10 = vmul.f32 %v6167_v24, %v6275_v37  ;;  %v6473_v20 = vmul.f32 %v6172_v29, %v6364_v16 }
  0x88   :  { %12376 = vst [vmem:[#allocation36_spill] sm:$0xff] %v6444_v55  ;;  %v229_v60 = vpop.permute.xlu0 %228  ;;  %v918_v50 = vadd.f32 %v813_v36, %v681_v5  ;;  %v6477_v38 = vmul.f32 %v6195_v51, %v6364_v16  ;;  %v6481_v39 = vmul.f32 %v6200_v52, %v6364_v16  ;;  %v1489_v47 = vadd.f32 %v1379_v4, %v1244_v32 }
  0x89   :  { %12377 = vst [vmem:[#allocation37_spill] sm:$0xff] %v6446_v46  ;;  %v968_v18 = vmul.f32 %v6228_v2, %v229_v60  ;;  %v6485_v62 = vmul.f32 %v6207_v56, %v6364_v16  ;;  %v6489_v5 = vmul.f32 %v6218_v61, %v6364_v16  ;;  %v6495_v59 = vmul.f32 %v6159_v15, %v6275_v37 }
  0x8a   :  { %12379 = vst [vmem:[#allocation38_spill] sm:$0xff] %v6464_v35  ;;  %v6491_v36 = vadd.f32 %v964_v26, %v918_v50  ;;  %v6497_v42 = vadd.f32 %v1526_v44, %v1489_v47  ;;  %v6504_v32 = vmul.f32 %v6172_v29, %v6275_v37  ;;  %v6508_v4 = vmul.f32 %v6195_v51, %v6275_v37 }
  0x8b   :  { %12380 = vst [vmem:[#allocation39_spill] sm:$0xff] %v6473_v20  ;;  %v6500_v33 = vadd.f32 %v968_v18, %v6338_v57  ;;  %v6512_v26 = vmul.f32 %v6167_v24, %v6364_v16  ;;  %v6517_v44 = vmul.f32 %v6228_v2, %v6364_v16  ;;  %v6521_v18 = vmul.f32 %v6233_v3, %v6364_v16 }
  0x8c   :  { %12381 = vst [vmem:[#allocation40_spill] sm:$0xff] %v6477_v38  ;;  %v6528_v46 = vmul.f32 %v6167_v24, %v6390_v7  ;;  %v6536_v16 = vmul.f32 %v6228_v2, %v6390_v7  ;;  %v6539_v57 = vmul.f32 %v6159_v15, %v229_v60  ;;  %v6555_v7 = vmul.f32 %v6207_v56, %v229_v60 }
  0x8d   :  { %12382 = vst [vmem:[#allocation41_spill] sm:$0xff] %v6481_v39  ;;  %v6564_v38 = vmul.f32 %v6233_v3, %v6444_v55  ;;  %v6570_v35 = vmul.f32 %v6207_v56, %v6275_v37  ;;  %v6574_v20 = vmul.f32 %v6218_v61, %v6275_v37  ;;  %v6581_v54 = vmul.f32 %v6218_v61, %v229_v60 }
  0x8e   :  { %12383 = vst [vmem:[#allocation42_spill] sm:$0xff] %v6485_v62  ;;  %v6560_v62 = vmul.f32 %v6200_v52, %v6275_v37  ;;  %v6588_v30 = vmul.f32 %v6233_v3, %v229_v60  ;;  %v6643_v53 = vmul.f32 %v6172_v29, %v6444_v55 }
  0x8f   :  { %12384 = vst [vmem:[#allocation43_spill] sm:$0xff] %v6489_v5  ;;  %v6530_v50 = vpop.permute.xlu1 %246  ;;  %v6577_v5 = vmul.f32 %v6167_v24, %v229_v60 }
  0x90   :  { %12385 = vst [vmem:[#allocation44_spill] sm:$0xff] %v6491_v36  ;;  %v6541_v47 = vpop.permute.xlu0 %241  ;;  %v495_v39 = vmul.f32 %v6159_v15, %v6530_v50  ;;  %v348_v14 = vmul.f32 %v6167_v24, %v6530_v50  ;;  %v12449_v28 = vrot.slane %v6643_v53, 2 }
  0x91   :  { %12386 = vst [vmem:[#allocation45_spill] sm:$0xff] %v6497_v42 }
  0x92   :  { %12387 = vst [vmem:[#allocation46_spill] sm:$0xff] %v6500_v33  ;;  %v6544_v33 = vmul.f32 %v6172_v29, %v229_v60  ;;  %v599_v37 = vrot.slane %v495_v39, 1  ;;  %v12405_v39 = vrot.slane %v6495_v59, 1 }
  0x93   :  { %12388 = vst [vmem:[#allocation47_spill] sm:$0xff] %v6512_v26  ;;  %v292_v26 = vpop.permute.xlu2 %291 }
  0x94   :  { %12389 = vst [vmem:[#allocation48_spill] sm:$0xff] %v6517_v44  ;;  %v6552_v44 = vmul.f32 %v6200_v52, %v229_v60  ;;  %v601_v31 = vsel %vm571_vm1, %v599_v37, %v12405_v39  ;;  %v6612_v13 = vmul.f32 %v6195_v51, %v292_v26  ;;  %v6621_v37 = vmul.f32 %v6159_v15, %v6444_v55 }
  0x95   :  { %12390 = vst [vmem:[#allocation49_spill] sm:$0xff] %v6521_v18  ;;  %v6547_v18 = vmul.f32 %v6195_v51, %v229_v60  ;;  %v6617_v60 = vmul.f32 %v6167_v24, %v6444_v55  ;;  %v6624_v39 = vmul.f32 %v6200_v52, %v292_v26  ;;  %v6648_v11 = vmul.f32 %v6233_v3, %v292_v26 }
  0x96   :  { %12391 = vst [vmem:[#allocation50_spill] sm:$0xff] %v6528_v46 }
  0x97   :  { %12392 = vst [vmem:[#allocation51_spill] sm:$0xff] %v6536_v16  ;;  %v6596_v17 = vpop.permute.xlu1 %259 }
  0x98   :  { %12393 = vst [vmem:[#allocation52_spill] sm:$0xff] %v6539_v57 }
  0x99   :  { %12394 = vst [vmem:[#allocation53_spill] sm:$0xff] %v6541_v47 }
  0x9a   :  { %12395 = vst [vmem:[#allocation54_spill] sm:$0xff] %v6544_v33  ;;  %v6639_v33 = vmul.f32 %v6228_v2, %v292_v26 }
  0x9b   :  { %12396 = vst [vmem:[#allocation55_spill] sm:$0xff] %v6547_v18  ;;  %v6594_v0 = vpop.permute.xlu2 %304  ;;  %v6636_v18 = vmul.f32 %v6167_v24, %v292_v26 }
  0x9c   :  { %12397 = vst [vmem:[#allocation56_spill] sm:$0xff] %v6552_v44  ;;  %v256_v44 = vpop.permute.xlu0 %255 }
  0x9d   :  { %12398 = vst [vmem:[#allocation57_spill] sm:$0xff] %v6555_v7  ;;  %v6606_v7 = vmul.f32 %v6159_v15, %v292_v26  ;;  %v974_v47 = vmul.f32 %v6228_v2, %v256_v44 }
  0x9e   :  { %12399 = vst [vmem:[#allocation58_spill] sm:$0xff] %v6564_v38  ;;  %v732_v38 = vmul.f32 %v6172_v29, %v6530_v50 }
  0x9f   :  { %12400 = vst [vmem:[#allocation59_spill] sm:$0xff] %v6577_v5  ;;  %v6627_v5 = vmul.f32 %v6207_v56, %v292_v26  ;;  %v6678_v25 = vpop.permute.xlu1 %273 }
  0xa0   :  { %12401 = vst [vmem:[#allocation60_spill] sm:$0xff] %v6581_v54  ;;  %v836_v57 = vrot.slane %v732_v38, 2  ;;  %v6609_v38 = vmul.f32 %v6172_v29, %v292_v26  ;;  %v1615_v36 = vmul.f32 %v6207_v56, %v6678_v25  ;;  %v1852_v22 = vmul.f32 %v6218_v61, %v6678_v25 }
  0xa1   :  { %12402 = vst [vmem:[#allocation61_spill] sm:$0xff] %v6588_v30  ;;  %v1305_v30 = vmul.f32 %v6200_v52, %v6678_v25  ;;  %v6820_v40 = vmul.f32 %v6228_v2, %v6678_v25 }
  0xa2   :  { %12403 = vst [vmem:[#allocation62_spill] sm:$0xff] %v6594_v0 }
  0xa3   :  { %12404 = vst [vmem:[#allocation63_spill] sm:$0xff] %v6596_v17  ;;  %v691_v17 = vadd.f32 %v601_v31, %v348_v14  ;;  %v6630_v14 = vmul.f32 %v6218_v61, %v292_v26  ;;  %v12412_v31 = vrot.slane %v6504_v32, 2  ;;  %v319_v16 = vpop.permute.xlu2 %318 }
  0xa4   :  { %12406 = vst [vmem:[#allocation64_spill] sm:$0xff] %v6606_v7  ;;  %v6692_v7 = vmul.f32 %v6218_v61, %v256_v44 }
  0xa5   :  { %12407 = vst [vmem:[#allocation65_spill] sm:$0xff] %v6609_v38  ;;  %v838_v54 = vsel %vm808_vm2, %v836_v57, %v12412_v31  ;;  %v1051_v57 = vmul.f32 %v6195_v51, %v6530_v50  ;;  %v6666_v31 = vmul.f32 %v6228_v2, %v6530_v50 }
  0xa6   :  { %12408 = vst [vmem:[#allocation66_spill] sm:$0xff] %v6612_v13  ;;  %v928_v48 = vadd.f32 %v838_v54, %v691_v17  ;;  %v1606_v54 = vmul.f32 %v6207_v56, %v6530_v50  ;;  %v6670_v13 = vmul.f32 %v6233_v3, %v6530_v50 }
  0xa7   :  { %12409 = vst [vmem:[#allocation67_spill] sm:$0xff] %v6624_v39  ;;  %v1157_v26 = vrot.slane %v1051_v57, 1  ;;  %v6687_v39 = vmul.f32 %v6207_v56, %v256_v44  ;;  %v6697_v57 = vmul.f32 %v6233_v3, %v6594_v0 }
  0xa8   :  { %12410 = vst [vmem:[#allocation68_spill] sm:$0xff] %v6627_v5  ;;  %v6657_v17 = vadd.f32 %v974_v47, %v928_v48  ;;  %v6673_v48 = vmul.f32 %v6159_v15, %v256_v44  ;;  %v6676_v47 = vmul.f32 %v6172_v29, %v256_v44  ;;  %v6684_v5 = vmul.f32 %v6200_v52, %v256_v44 }
  0xa9   :  { %12411 = vst [vmem:[#allocation69_spill] sm:$0xff] %v6630_v14  ;;  %v6681_v14 = vmul.f32 %v6195_v51, %v256_v44 }
  0xaa   :  { %12413 = vst [vmem:[#allocation70_spill] sm:$0xff] %v6636_v18  ;;  %v1706_v18 = vrot.slane %v1606_v54, 1  ;;  %v6706_v54 = vmul.f32 %v6233_v3, %v256_v44 }
  0xab   :  { %12414 = vst [vmem:[#allocation71_spill] sm:$0xff] %v6639_v33  ;;  %v1296_v33 = vmul.f32 %v6200_v52, %v6530_v50 }
  0xac   :  { %12415 = vst [vmem:[#allocation72_spill] sm:$0xff] %v6648_v11  ;;  %v1843_v11 = vmul.f32 %v6218_v61, %v6530_v50  ;;  %v6689_v50 = vpop.permute.xlu0 %268 }
  0xad   :  { %12416 = vst [vmem:[#allocation73_spill] sm:$0xff] %v6657_v17  ;;  %v1402_v38 = vrot.slane %v1296_v33, 2  ;;  %v504_v17 = vmul.f32 %v6159_v15, %v6678_v25  ;;  %v12429_v33 = vrot.slane %v6508_v4, 1 }
  0xae   :  { %12417 = vst [vmem:[#allocation74_spill] sm:$0xff] %v6666_v31  ;;  %v6700_v31 = vmul.f32 %v6167_v24, %v256_v44 }
  0xaf   :  { %12418 = vst [vmem:[#allocation75_spill] sm:$0xff] %v6670_v13  ;;  %v1943_v13 = vrot.slane %v1843_v11, 2  ;;  %v614_v42 = vrot.slane %v504_v17, 1  ;;  %v6719_v44 = vsel %vm571_vm1, %v1157_v26, %v12429_v33  ;;  %v12435_v11 = vrot.slane %v6574_v20, 2 }
  0xb0   :  { %12419 = vst [vmem:[#allocation76_spill] sm:$0xff] %v6673_v48  ;;  %v6738_v17 = vmul.f32 %v6195_v51, %v6444_v55  ;;  %v6742_v26 = vmul.f32 %v6200_v52, %v6444_v55  ;;  %v6763_v33 = vmul.f32 %v6159_v15, %v319_v16 }
  0xb1   :  { %12420 = vst [vmem:[#allocation77_spill] sm:$0xff] %v6676_v47  ;;  %v12431_v47 = vrot.slane %v6560_v62, 2  ;;  %v6734_v46 = vsel %vm808_vm2, %v1943_v13, %v12435_v11  ;;  %v6756_v13 = vmul.f32 %v6167_v24, %v6594_v0 }
  0xb2   :  { %12421 = vst [vmem:[#allocation78_spill] sm:$0xff] %v6681_v14 }
  0xb3   :  { %12422 = vst [vmem:[#allocation79_spill] sm:$0xff] %v6684_v5  ;;  %v6724_v48 = vsel %vm808_vm2, %v1402_v38, %v12431_v47  ;;  %v6744_v38 = vpop.permute.xlu2 %331  ;;  %v6748_v47 = vmul.f32 %v6207_v56, %v6444_v55  ;;  %v12440_v5 = vrot.slane %v6621_v37, 1 }
  0xb4   :  { %12423 = vst [vmem:[#allocation80_spill] sm:$0xff] %v6687_v39  ;;  %v283_v39 = vpop.permute.xlu0 %282 }
  0xb5   :  { %12424 = vst [vmem:[#allocation81_spill] sm:$0xff] %v6689_v50  ;;  %v12433_v50 = vrot.slane %v6570_v35, 1  ;;  %v616_v14 = vsel %vm571_vm1, %v614_v42, %v12440_v5  ;;  %v6789_v42 = vmul.f32 %v6200_v52, %v319_v16  ;;  %v6792_v5 = vmul.f32 %v6207_v56, %v319_v16 }
  0xb6   :  { %12425 = vst [vmem:[#allocation82_spill] sm:$0xff] %v6692_v7  ;;  %v6765_v7 = vpop.permute.xlu1 %286  ;;  %v980_v58 = vmul.f32 %v6228_v2, %v283_v39 }
  0xb7   :  { %12426 = vst [vmem:[#allocation83_spill] sm:$0xff] %v6697_v57  ;;  %v6729_v57 = vsel %vm571_vm1, %v1706_v18, %v12433_v50  ;;  %v6752_v18 = vmul.f32 %v6218_v61, %v6444_v55  ;;  %v6760_v50 = vmul.f32 %v6159_v15, %v6594_v0  ;;  %v6772_v55 = vmul.f32 %v6172_v29, %v6594_v0 }
  0xb8   :  { %12427 = vst [vmem:[#allocation84_spill] sm:$0xff] %v6700_v31  ;;  %v741_v31 = vmul.f32 %v6172_v29, %v6678_v25 }
  0xb9   :  { %12428 = vst [vmem:[#allocation85_spill] sm:$0xff] %v6706_v54  ;;  %v6781_v54 = vmul.f32 %v6195_v51, %v319_v16 }
  0xba   :  { %12430 = vst [vmem:[#allocation86_spill] sm:$0xff] %v6719_v44  ;;  %v851_v11 = vrot.slane %v741_v31, 2  ;;  %v354_v31 = vmul.f32 %v6167_v24, %v6678_v25  ;;  %v1060_v44 = vmul.f32 %v6195_v51, %v6678_v25 }
  0xbb   :  { %12432 = vst [vmem:[#allocation87_spill] sm:$0xff] %v6724_v48  ;;  %v6798_v48 = vmul.f32 %v6233_v3, %v319_v16 }
  0xbc   :  { %12434 = vst [vmem:[#allocation88_spill] sm:$0xff] %v6729_v57  ;;  %v6778_v57 = vmul.f32 %v6172_v29, %v319_v16  ;;  %v697_v8 = vadd.f32 %v616_v14, %v354_v31  ;;  %v853_v21 = vsel %vm808_vm2, %v851_v11, %v12449_v28  ;;  %v1172_v63 = vrot.slane %v1060_v44, 1  ;;  %v414_v11 = vpop.permute.xlu2 %413 }
  0xbd   :  { %12436 = vst [vmem:[#allocation89_spill] sm:$0xff] %v6734_v46  ;;  %v6775_v46 = vmul.f32 %v6167_v24, %v319_v16  ;;  %v6824_v28 = vmul.f32 %v6233_v3, %v6678_v25  ;;  %v1958_v31 = vrot.slane %v1852_v22, 2  ;;  %v6837_v44 = vmul.f32 %v6195_v51, %v283_v39 }
  0xbe   :  { %12437 = vst [vmem:[#allocation90_spill] sm:$0xff] %v6744_v38  ;;  %v934_v14 = vadd.f32 %v853_v21, %v697_v8  ;;  %v1417_v8 = vrot.slane %v1305_v30, 2  ;;  %v1721_v21 = vrot.slane %v1615_v36, 1  ;;  %v6844_v30 = vmul.f32 %v6207_v56, %v283_v39  ;;  %v6850_v22 = vpop.permute.xlu1 %300 }
  0xbf   :  { %12438 = vst [vmem:[#allocation91_spill] sm:$0xff] %v6763_v33  ;;  %v488_v36 = vmul.f32 %v6159_v15, %v414_v11  ;;  %v6857_v33 = vmul.f32 %v6167_v24, %v283_v39  ;;  %v6860_v25 = vmul.f32 %v6233_v3, %v283_v39 }
  0xc0   :  { %12439 = vst [vmem:[#allocation92_spill] sm:$0xff] %v6765_v7  ;;  %v6786_v7 = vmul.f32 %v6228_v2, %v319_v16 }
  0xc1   :  { %12441 = vst [vmem:[#allocation93_spill] sm:$0xff] %v6775_v46  ;;  %v6795_v46 = vmul.f32 %v6218_v61, %v319_v16  ;;  %v6841_v16 = vmul.f32 %v6200_v52, %v283_v39 }
  0xc2   :  { %12442 = vst [vmem:[#allocation94_spill] sm:$0xff] %v6778_v57  ;;  %v6834_v57 = vmul.f32 %v6172_v29, %v283_v39 }
  0xc3   :  { %12443 = vst [vmem:[#allocation95_spill] sm:$0xff] %v6781_v54  ;;  %v1044_v54 = vmul.f32 %v6195_v51, %v414_v11 }
  0xc4   :  { %12444 = vst [vmem:[#allocation96_spill] sm:$0xff] %v6786_v7  ;;  %v6830_v7 = vmul.f32 %v6159_v15, %v283_v39 }
  0xc5   :  { %12445 = vst [vmem:[#allocation97_spill] sm:$0xff] %v6789_v42  ;;  %v725_v42 = vmul.f32 %v6172_v29, %v414_v11 }
  0xc6   :  { %12446 = vst [vmem:[#allocation98_spill] sm:$0xff] %v6792_v5  ;;  %v12467_v5 = vrot.slane %v6748_v47, 1 }
  0xc7   :  { %12447 = vst [vmem:[#allocation99_spill] sm:$0xff] %v6795_v46  ;;  %v1145_v46 = vrot.slane %v1044_v54, 1  ;;  %v6912_v54 = vmul.f32 %v6195_v51, %v6594_v0 }
  0xc8   :  { %12448 = vst [vmem:[#allocation100_spill] sm:$0xff] %v6798_v48  ;;  %v6827_v48 = vadd.f32 %v980_v58, %v934_v14  ;;  %v6847_v58 = vmul.f32 %v6218_v61, %v283_v39  ;;  %v6854_v14 = vmul.f32 %v6233_v3, %v6744_v38  ;;  %v6871_v39 = vpop.permute.xlu0 %295  ;;  %v6878_v38 = vmul.f32 %v6159_v15, %v6850_v22 }
  0xc9   :  { %12450 = vst [vmem:[#allocation101_spill] sm:$0xff] %v6820_v40  ;;  %v1599_v40 = vmul.f32 %v6207_v56, %v414_v11 }
  0xca   :  { %12451 = vst [vmem:[#allocation102_spill] sm:$0xff] %v6824_v28  ;;  %v429_v28 = vpop.permute.xlu2 %428 }
  0xcb   :  { %12452 = vst [vmem:[#allocation103_spill] sm:$0xff] %v6827_v48  ;;  %v1289_v48 = vmul.f32 %v6200_v52, %v414_v11 }
  0xcc   :  { %12453 = vst [vmem:[#allocation104_spill] sm:$0xff] %v6830_v7  ;;  %v6893_v7 = vsel %vm571_vm1, %v1721_v21, %v12467_v5  ;;  %v6925_v5 = vmul.f32 %v6207_v56, %v6594_v0 }
  0xcd   :  { %12454 = vst [vmem:[#allocation105_spill] sm:$0xff] %v6834_v57 }
  0xce   :  { %12455 = vst [vmem:[#allocation106_spill] sm:$0xff] %v6837_v44 }
  0xcf   :  { %12456 = vst [vmem:[#allocation107_spill] sm:$0xff] %v6841_v16 }
  0xd0   :  { %12457 = vst [vmem:[#allocation108_spill] sm:$0xff] %v6844_v30  ;;  %v12469_v30 = vrot.slane %v6752_v18, 2 }
  0xd1   :  { %12458 = vst [vmem:[#allocation109_spill] sm:$0xff] %v6847_v58  ;;  %v1390_v58 = vrot.slane %v1289_v48, 2  ;;  %v497_v48 = vmul.f32 %v6159_v15, %v429_v28 }
  0xd2   :  { %12459 = vst [vmem:[#allocation110_spill] sm:$0xff] %v6854_v14  ;;  %v12463_v14 = vrot.slane %v6738_v17, 1  ;;  %v6898_v16 = vsel %vm808_vm2, %v1958_v31, %v12469_v30  ;;  %v12472_v31 = vrot.slane %v6223_v1, 2  ;;  %v12478_v1 = vrot.slane %v6286_v43, 1 }
  0xd3   :  { %12460 = vst [vmem:[#allocation111_spill] sm:$0xff] %v6857_v33  ;;  %v1836_v33 = vmul.f32 %v6218_v61, %v414_v11  ;;  %v12465_v11 = vrot.slane %v6742_v26, 2  ;;  %v6960_v43 = vmul.f32 %v6228_v2, %v6850_v22 }
  0xd4   :  { %12461 = vst [vmem:[#allocation112_spill] sm:$0xff] %v6860_v25  ;;  %v587_v25 = vrot.slane %v488_v36, 1  ;;  %v6883_v44 = vsel %vm571_vm1, %v1172_v63, %v12463_v14  ;;  %v824_v36 = vrot.slane %v725_v42, 2  ;;  %v1694_v63 = vrot.slane %v1599_v40, 1 }
  0xd5   :  { %12462 = vst [vmem:[#allocation113_spill] sm:$0xff] %v6871_v39  ;;  %v6888_v57 = vsel %vm808_vm2, %v1417_v8, %v12465_v11  ;;  %v1931_v14 = vrot.slane %v1836_v33, 2  ;;  %v12471_v11 = vrot.slane %v6187_v49, 1  ;;  %v6907_v42 = vmul.f32 %v6172_v29, %v6850_v22  ;;  %v6941_v39 = vpop.permute.xlu1 %313 }
  0xd6   :  { %12464 = vst [vmem:[#allocation114_spill] sm:$0xff] %v6883_v44  ;;  %v6916_v40 = vmul.f32 %v6167_v24, %v6850_v22  ;;  %v6921_v49 = vmul.f32 %v6200_v52, %v6594_v0  ;;  %v825_v21 = vsel %vm808_vm2, %v12472_v31, %v824_v36  ;;  %v734_v33 = vmul.f32 %v6172_v29, %v429_v28 }
  0xd7   :  { %12466 = vst [vmem:[#allocation115_spill] sm:$0xff] %v6888_v57  ;;  %v588_v57 = vsel %vm571_vm1, %v12471_v11, %v587_v25  ;;  %v12473_v25 = vrot.slane %v6269_v27, 1  ;;  %v12475_v11 = vrot.slane %v6282_v41, 2  ;;  %v6947_v36 = vsel %vm571_vm1, %v12478_v1, %v1694_v63  ;;  %v310_v63 = vpop.permute.xlu0 %309 }
  0xd8   :  { %12468 = vst [vmem:[#allocation116_spill] sm:$0xff] %v6893_v7  ;;  %v12480_v27 = vrot.slane %v6291_v12, 2  ;;  %v1053_v41 = vmul.f32 %v6195_v51, %v429_v28  ;;  %v602_v31 = vrot.slane %v497_v48, 1  ;;  %v6968_v12 = vmul.f32 %v6200_v52, %v6850_v22 }
  0xd9   :  { %12470 = vst [vmem:[#allocation117_spill] sm:$0xff] %v6898_v16  ;;  %v6933_v30 = vsel %vm571_vm1, %v12473_v25, %v1145_v46  ;;  %v6938_v8 = vsel %vm808_vm2, %v12475_v11, %v1390_v58  ;;  %v686_v16 = vadd.f32 %v588_v57, %v6318_v45  ;;  %v1298_v25 = vmul.f32 %v6200_v52, %v429_v28 }
  0xda   :  { %12474 = vst [vmem:[#allocation118_spill] sm:$0xff] %v6933_v30  ;;  %v6952_v46 = vsel %vm808_vm2, %v12480_v27, %v1931_v14  ;;  %v1608_v11 = vmul.f32 %v6207_v56, %v429_v28  ;;  %v6964_v45 = vmul.f32 %v6195_v51, %v6850_v22  ;;  %v6972_v57 = vmul.f32 %v6207_v56, %v6850_v22  ;;  %v444_v14 = vpop.permute.xlu2 %443 }
  0xdb   :  { %12476 = vst [vmem:[#allocation119_spill] sm:$0xff] %v6938_v8  ;;  %v6976_v48 = vmul.f32 %v6218_v61, %v6850_v22  ;;  %v839_v1 = vrot.slane %v734_v33, 2  ;;  %v1845_v27 = vmul.f32 %v6218_v61, %v429_v28  ;;  %v506_v58 = vmul.f32 %v6159_v15, %v444_v14 }
  0xdc   :  { %12477 = vst [vmem:[#allocation120_spill] sm:$0xff] %v6941_v39  ;;  %v6980_v39 = vadd.f32 %v825_v21, %v686_v16  ;;  %v1160_v7 = vrot.slane %v1053_v41, 1  ;;  %v12484_v8 = vrot.slane %v6495_v59, 1  ;;  %v1709_v30 = vrot.slane %v1608_v11, 1 }
  0xdd   :  { %12479 = vst [vmem:[#allocation121_spill] sm:$0xff] %v6947_v36  ;;  %v1405_v36 = vrot.slane %v1298_v25, 2  ;;  %v6991_v33 = vmul.f32 %v6159_v15, %v310_v63  ;;  %v12486_v44 = vrot.slane %v6504_v32, 2  ;;  %v12488_v25 = vrot.slane %v6508_v4, 1 }
  0xde   :  { %12481 = vst [vmem:[#allocation122_spill] sm:$0xff] %v6952_v46  ;;  %v603_v46 = vsel %vm571_vm1, %v12484_v8, %v602_v31  ;;  %v7001_v8 = vmul.f32 %v6167_v24, %v310_v63  ;;  %v743_v21 = vmul.f32 %v6172_v29, %v444_v14  ;;  %v12489_v41 = vrot.slane %v6560_v62, 2 }
  0xdf   :  { %12482 = vst [vmem:[#allocation123_spill] sm:$0xff] %v6960_v43  ;;  %v6984_v43 = vmul.f32 %v6233_v3, %v6850_v22  ;;  %v617_v22 = vrot.slane %v506_v58, 1  ;;  %v840_v59 = vsel %vm808_vm2, %v12486_v44, %v839_v1  ;;  %v692_v31 = vadd.f32 %v603_v46, %v6469_v10 }
  0xe0   :  { %12485 = vst [vmem:[#allocation125_spill] sm:$0xff] %v6991_v33  ;;  %v7007_v11 = vsel %vm571_vm1, %v12488_v25, %v1160_v7  ;;  %v1062_v58 = vmul.f32 %v6195_v51, %v444_v14  ;;  %v7014_v32 = vsel %vm808_vm2, %v12489_v41, %v1405_v36  ;;  %v12490_v44 = vrot.slane %v6570_v35, 1  ;;  %v7023_v7 = vpop.permute.xlu1 %327 }
  0xe1   :  { %12483 = vst [vmem:[#allocation124_spill] sm:$0xff] %v6984_v43  ;;  %v1946_v43 = vrot.slane %v1845_v27, 2  ;;  %v1307_v4 = vmul.f32 %v6200_v52, %v444_v14  ;;  %v7026_v46 = vmul.f32 %v6172_v29, %v310_v63  ;;  %v7029_v27 = vmul.f32 %v6195_v51, %v310_v63 }
  0xe2   :  { %12487 = vst [vmem:[#allocation126_spill] sm:$0xff] %v7001_v8  ;;  %v7019_v1 = vsel %vm571_vm1, %v12490_v44, %v1709_v30  ;;  %v12494_v62 = vrot.slane %v6621_v37, 1  ;;  %v1617_v35 = vmul.f32 %v6207_v56, %v444_v14  ;;  %v12495_v30 = vrot.slane %v6574_v20, 2  ;;  %v7053_v20 = vpop.permute.xlu2 %458 }
  0xe3   :  { %12491 = vst [vmem:[#allocation127_spill] sm:$0xff] %v7023_v7  ;;  %v7041_v25 = vmul.f32 %v6200_v52, %v310_v63  ;;  %v7044_v44 = vmul.f32 %v6207_v56, %v310_v63  ;;  %v7047_v10 = vmul.f32 %v6218_v61, %v310_v63  ;;  %v7050_v37 = vmul.f32 %v6228_v2, %v310_v63 }
  0xe4   :  { %12492 = vst [vmem:[#allocation128_spill] sm:$0xff] %v7026_v46  ;;  %v618_v36 = vsel %vm571_vm1, %v12494_v62, %v617_v22  ;;  %v7038_v41 = vsel %vm808_vm2, %v12495_v30, %v1946_v43  ;;  %v854_v22 = vrot.slane %v743_v21, 2  ;;  %v1175_v62 = vrot.slane %v1062_v58, 1 }
  0xe5   :  { %12493 = vst [vmem:[#allocation129_spill] sm:$0xff] %v7029_v27  ;;  %v1854_v16 = vmul.f32 %v6218_v61, %v444_v14  ;;  %v7055_v43 = vadd.f32 %v840_v59, %v692_v31  ;;  %v698_v30 = vadd.f32 %v618_v36, %v6617_v60  ;;  %v1420_v28 = vrot.slane %v1307_v4, 2  ;;  %v12531_v27 = vld [vmem:[#allocation28_spill] sm:$0xff] }
  0xe6   :  { %12496 = vst [vmem:[#allocation130_spill] sm:$0xff] %v7038_v41  ;;  %v7060_v8 = vmul.f32 %v6207_v56, %v7023_v7  ;;  %v7065_v21 = vmul.f32 %v6233_v3, %v310_v63  ;;  %v1724_v58 = vrot.slane %v1617_v35, 1  ;;  %v515_v60 = vmul.f32 %v6159_v15, %v7053_v20 }
  0xe7   :  { %12497 = vst [vmem:[#allocation131_spill] sm:$0xff] %v7041_v25  ;;  %v12501_v4 = vrot.slane %v6643_v53, 2  ;;  %v12502_v33 = vrot.slane %v6738_v17, 1  ;;  %v1961_v63 = vrot.slane %v1854_v16, 2  ;;  %v7082_v35 = vmul.f32 %v6233_v3, %v7023_v7 }
  0xe8   :  { %12498 = vst [vmem:[#allocation132_spill] sm:$0xff] %v7044_v44  ;;  %v12506_v31 = vrot.slane %v6742_v26, 2  ;;  %v7094_v17 = vmul.f32 %v6218_v61, %v7023_v7  ;;  %v12509_v16 = vrot.slane %v6748_v47, 1  ;;  %v12511_v26 = vrot.slane %v6760_v50, 1 }
  0xe9   :  { %12499 = vst [vmem:[#allocation133_spill] sm:$0xff] %v7047_v10  ;;  %v855_v36 = vsel %vm808_vm2, %v12501_v4, %v854_v22  ;;  %v7078_v41 = vsel %vm571_vm1, %v12502_v33, %v1175_v62  ;;  %v7096_v33 = vpop.permute.xlu0 %322  ;;  %v7105_v62 = vmul.f32 %v6218_v61, %v6594_v0  ;;  %v12513_v53 = vrot.slane %v6752_v18, 2 }
  0xea   :  { %12500 = vst [vmem:[#allocation134_spill] sm:$0xff] %v7065_v21  ;;  %v7084_v59 = vadd.f32 %v855_v36, %v698_v30  ;;  %v7089_v14 = vsel %vm808_vm2, %v12506_v31, %v1420_v28  ;;  %v7101_v22 = vsel %vm571_vm1, %v12509_v16, %v1724_v58  ;;  %v12512_v28 = vrot.slane %v6878_v38, 1  ;;  %v7120_v16 = vpop.permute.xlu1 %408 }
  0xeb   :  { %12503 = vst [vmem:[#allocation135_spill] sm:$0xff] %v7078_v41  ;;  %v484_v31 = vmul.f32 %v6159_v15, %v6366_v19  ;;  %v632_v36 = vrot.slane %v515_v60, 1  ;;  %v7118_v58 = vmul.f32 %v6172_v29, %v6366_v19  ;;  %v7125_v38 = vsel %vm808_vm2, %v12513_v53, %v1961_v63  ;;  %v12692_v41 = vld [vmem:[#allocation80_spill] sm:$0xff] }
  0xec   :  { %12504 = vst [vmem:[#allocation136_spill] sm:$0xff] %v7082_v35  ;;  %v631_v30 = vsel %vm571_vm1, %v12512_v28, %v12511_v26  ;;  %v752_v26 = vmul.f32 %v6172_v29, %v7053_v20  ;;  %v7131_v28 = vmul.f32 %v6195_v51, %v7053_v20  ;;  %v12515_v7 = vrot.slane %v6772_v55, 2 }
  0xed   :  { %12505 = vst [vmem:[#allocation137_spill] sm:$0xff] %v7084_v59  ;;  %v580_v47 = vrot.slane %v484_v31, 1  ;;  %v703_v4 = vadd.f32 %v631_v30, %v6916_v40  ;;  %v12516_v35 = vrot.slane %v6907_v42, 2  ;;  %v12088_v63 = vrot.slane %v7118_v58, 2 }
  0xee   :  { %12507 = vst [vmem:[#allocation138_spill] sm:$0xff] %v7089_v14  ;;  %v12517_v10 = vrot.slane %v6912_v54, 1  ;;  %v12518_v44 = vrot.slane %v6964_v45, 1  ;;  %v12520_v60 = vrot.slane %v6356_v6, 1  ;;  %v485_v42 = vmul.f32 %v6159_v15, %v7120_v16 }
  0xef   :  { %12508 = vst [vmem:[#allocation139_spill] sm:$0xff] %v7096_v33  ;;  %v868_v18 = vsel %vm808_vm2, %v12516_v35, %v12515_v7  ;;  %v12521_v7 = vrot.slane %v6760_v50, 1  ;;  %v7160_v53 = vmul.f32 %v6200_v52, %v6366_v19  ;;  %v7164_v45 = vmul.f32 %v6218_v61, %v6366_v19 }
  0xf0   :  { %12510 = vst [vmem:[#allocation140_spill] sm:$0xff] %v7101_v22  ;;  %v7147_v31 = vsel %vm571_vm1, %v12518_v44, %v12517_v10  ;;  %v581_v40 = vsel %vm571_vm1, %v12520_v60, %v580_v47  ;;  %v869_v6 = vrot.slane %v752_v26, 2  ;;  %v7169_v44 = vmul.f32 %v6200_v52, %v7053_v20 }
  0xf1   :  { %12514 = vst [vmem:[#allocation141_spill] sm:$0xff] %v7125_v38  ;;  %v633_v35 = vsel %vm571_vm1, %v12521_v7, %v632_v36  ;;  %v683_v30 = vadd.f32 %v581_v40, %v6399_v34  ;;  %v12522_v50 = vrot.slane %v6360_v9, 2  ;;  %v7176_v36 = vadd.f32 %v868_v18, %v703_v4 }
  0xf2   :  { %12519 = vst [vmem:[#allocation142_spill] sm:$0xff] %v7147_v31  ;;  %v12523_v60 = vrot.slane %v6921_v49, 2  ;;  %v12524_v40 = vrot.slane %v6968_v12, 2  ;;  %v7187_v7 = vmul.f32 %v6207_v56, %v7053_v20  ;;  %v7190_v25 = vadd.f32 %v633_v35, %v6756_v13  ;;  %v404_v35 = vpop.permute.xlu0 %403  ;;  %v12540_v31 = vld [vmem:[#allocation61_spill] sm:$0xff] }
  0xf3   :  { %v818_v34 = vsel %vm808_vm2, %v12522_v50, %v12088_v63  ;;  %v12526_v9 = vrot.slane %v6925_v5, 1  ;;  %v12527_v4 = vrot.slane %v6972_v57, 1  ;;  %v582_v50 = vrot.slane %v485_v42, 1 }
  0xf4   :  { %v7183_v26 = vsel %vm808_vm2, %v12524_v40, %v12523_v60  ;;  %v920_v10 = vadd.f32 %v818_v34, %v683_v30  ;;  %v722_v12 = vmul.f32 %v6172_v29, %v7120_v16  ;;  %v12092_v40 = vrot.slane %v7160_v53, 2 }
  0xf5   :  { %12525 = vst [vmem:[#allocation143_spill] sm:$0xff] %v7183_v26  ;;  %v7197_v18 = vsel %vm571_vm1, %v12527_v4, %v12526_v9  ;;  %v1040_v13 = vmul.f32 %v6195_v51, %v6366_v19  ;;  %v12529_v34 = vrot.slane %v6772_v55, 2  ;;  %v7214_v9 = vmul.f32 %v6218_v61, %v7053_v20 }
  0xf6   :  { %12528 = vst [vmem:[#allocation144_spill] sm:$0xff] %v7197_v18  ;;  %v998_v60 = vadd.f32 %v6257_v23, %v920_v10  ;;  %v341_v23 = vmul.f32 %v6167_v24, %v6366_v19  ;;  %v12530_v10 = vld [vmem:[#allocation23_spill] sm:$0xff]  ;;  %v1041_v63 = vmul.f32 %v6195_v51, %v7120_v16  ;;  %v1595_v55 = vmul.f32 %v6207_v56, %v6366_v19 }
  0xf7   :  { %v7209_v57 = vsel %vm808_vm2, %v12529_v34, %v869_v6  ;;  %v1138_v30 = vrot.slane %v1040_v13, 1  ;;  %v583_v6 = vsel %vm571_vm1, %v580_v47, %v582_v50  ;;  %v819_v34 = vrot.slane %v722_v12, 2  ;;  %v12535_v18 = vld [vmem:[#allocation31_spill] sm:$0xff]  ;;  %v12539_v12 = vld [vmem:[#allocation44_spill] sm:$0xff] }
  0xf8   :  { %v1248_v4 = vadd.f32 %v12530_v10, %v998_v60  ;;  %v482_v42 = vmul.f32 %v6159_v15, %v404_v35  ;;  %v719_v20 = vmul.f32 %v6172_v29, %v404_v35  ;;  %v12532_v24 = vrot.slane %v12531_v27, 2  ;;  %v12533_v10 = vld [vmem:[#allocation24_spill] sm:$0xff]  ;;  %v12537_v47 = vld [vmem:[#allocation27_spill] sm:$0xff] }
  0xf9   :  { %v12534_v13 = vrot.slane %v7164_v45, 2  ;;  %v12536_v33 = vrot.slane %v12535_v18, 2  ;;  %v12538_v50 = vrot.slane %v12537_v47, 1  ;;  %v1687_v21 = vrot.slane %v1595_v55, 1 }
  0xfa   :  { %v1384_v60 = vsel %vm808_vm2, %v12532_v24, %v12092_v40  ;;  %v1493_v46 = vadd.f32 %v12533_v10, %v1248_v4  ;;  %v577_v14 = vrot.slane %v482_v42, 1  ;;  %v814_v26 = vrot.slane %v719_v20, 2  ;;  %v12547_v20 = vld [vmem:[#allocation10_spill] sm:$0xff] }
  0xfb   :  { %v1925_v59 = vsel %vm808_vm2, %v12536_v33, %v12534_v13  ;;  %v1139_v15 = vsel %vm571_vm1, %v12538_v50, %v1138_v30  ;;  %v684_v27 = vadd.f32 %v583_v6, %v341_v23  ;;  %v1038_v4 = vmul.f32 %v6195_v51, %v404_v35  ;;  %v12541_v13 = vld [vmem:[#allocation30_spill] sm:$0xff] }
  0xfc   :  { %v1246_v29 = vadd.f32 %v1139_v15, %v12539_v12  ;;  %v7242_v24 = vadd.f32 %v12540_v31, %v1493_v46  ;;  %v1283_v10 = vmul.f32 %v6200_v52, %v404_v35  ;;  %v1596_v33 = vmul.f32 %v6207_v56, %v7120_v16  ;;  %v12543_v15 = vld [vmem:[#allocation32_spill] sm:$0xff]  ;;  %v12545_v31 = vld [vmem:[#allocation45_spill] sm:$0xff]  ;;  %v12546_v51 = vld [vmem:[#allocation50_spill] sm:$0xff] }
  0xfd   :  { %v12542_v47 = vrot.slane %v12541_v13, 1  ;;  %v12544_v55 = vrot.slane %v12543_v15, 1  ;;  %v1833_v46 = vmul.f32 %v6218_v61, %v7120_v16  ;;  %v1135_v35 = vrot.slane %v1038_v4, 1  ;;  %v12548_v12 = vld [vmem:[#allocation51_spill] sm:$0xff]  ;;  %v12550_v13 = vld [vmem:[#allocation33_spill] sm:$0xff] }
  0xfe   :  { %v1491_v18 = vadd.f32 %v1384_v60, %v1246_v29  ;;  %v995_v56 = vadd.f32 %v12548_v12, %v12547_v20  ;;  %v12549_v60 = vld [vmem:[#allocation12_spill] sm:$0xff]  ;;  %v12551_v40 = vrot.slane %v12550_v13, 2  ;;  %v1380_v15 = vrot.slane %v1283_v10, 2 }
  0xff   :  { %v1688_v50 = vsel %vm571_vm1, %v12542_v47, %v1687_v21  ;;  %v578_v42 = vsel %vm571_vm1, %v12544_v55, %v577_v14  ;;  %v965_v14 = vmul.f32 %v6228_v2, %v6366_v19  ;;  %v1689_v10 = vrot.slane %v1596_v33, 1 }
 0x100   :  { %v1794_v23 = vadd.f32 %v1688_v50, %v12545_v31  ;;  %v682_v6 = vadd.f32 %v578_v42, %v12546_v51  ;;  %v1559_v29 = vadd.f32 %v12549_v60, %v1491_v18  ;;  %v815_v47 = vsel %vm808_vm2, %v12551_v40, %v814_v26  ;;  %v12553_v50 = vld [vmem:[#allocation34_spill] sm:$0xff]  ;;  %v12555_v18 = vld [vmem:[#allocation25_spill] sm:$0xff] }
 0x101   :  { %v12554_v31 = vrot.slane %v12553_v50, 1  ;;  %v1140_v42 = vrot.slane %v1041_v63, 1  ;;  %v1286_v51 = vmul.f32 %v6200_v52, %v7120_v16  ;;  %v12556_v26 = vrot.slane %v7118_v58, 2 }
 0x102   :  { %v7266_v55 = vadd.f32 %v1925_v59, %v1794_v23  ;;  %v919_v61 = vadd.f32 %v815_v47, %v682_v6  ;;  %v1796_v20 = vadd.f32 %v12555_v18, %v1559_v29  ;;  %v12557_v59 = vld [vmem:[#allocation35_spill] sm:$0xff]  ;;  %v1527_v63 = vmul.f32 %v6233_v3, %v6366_v19  ;;  %v7338_v18 = vpop.permute.xlu1 %423 }
 0x103   :  { %v1136_v4 = vsel %vm571_vm1, %v12554_v31, %v1135_v35  ;;  %v820_v40 = vsel %vm808_vm2, %v12556_v26, %v819_v34  ;;  %v12558_v23 = vrot.slane %v12557_v59, 2  ;;  %v12559_v35 = vld [vmem:[#allocation29_spill] sm:$0xff]  ;;  %v12561_v16 = vrot.slane %v7131_v28, 1 }
 0x104   :  { %12552 = vst [vmem:[#allocation23_spill] sm:$0xff] %v7266_v55  ;;  %v1245_v12 = vadd.f32 %v1136_v4, %v995_v56  ;;  %v997_v60 = vadd.f32 %v965_v14, %v919_v61  ;;  %v921_v13 = vadd.f32 %v820_v40, %v684_v27  ;;  %v7283_v47 = vadd.f32 %v12559_v35, %v1796_v20  ;;  %v12564_v27 = vld [vmem:[#allocation9_spill] sm:$0xff]  ;;  %v474_v61 = vpop.permute.xlu2 %473 }
 0x105   :  { %v1381_v6 = vsel %vm808_vm2, %v12558_v23, %v1380_v15  ;;  %v12562_v58 = vrot.slane %v6912_v54, 1  ;;  %v1739_v33 = vrot.slane %v7187_v7, 1  ;;  %v1976_v56 = vrot.slane %v7214_v9, 2  ;;  %v7353_v40 = vld [vmem:[%s12003_s1 + $0x4] ss:$0 sm:$0xff] }
 0x106   :  { %12560 = vst [vmem:[#allocation28_spill] sm:$0xff] %v7283_v47  ;;  %v1490_v52 = vadd.f32 %v1381_v6, %v1245_v12  ;;  %v1926_v29 = vrot.slane %v1833_v46, 2  ;;  %v967_v15 = vmul.f32 %v6228_v2, %v12564_v27  ;;  %v1385_v3 = vrot.slane %v1286_v51, 2  ;;  %v7369_v59 = vld [vmem:[%s12003_s1 + $0x7] ss:$0 sm:$0xff] }
 0x107   :  { %v7290_v34 = vsel %vm571_vm1, %v12562_v58, %v12561_v16  ;;  %v1141_v19 = vsel %vm571_vm1, %v1138_v30, %v1140_v42  ;;  %v7299_v28 = vadd.f32 %v7050_v37, %v7176_v36  ;;  %v12566_v54 = vrot.slane %v7105_v62, 2  ;;  %12583 = vst [vmem:[#allocation51_spill] sm:$0xff] %v7353_v40  ;;  %v7362_v62 = vld [vmem:[%s12003_s1 + $0x6] ss:$0 sm:$0xff] }
 0x108   :  { %12563 = vst [vmem:[#allocation24_spill] sm:$0xff] %v7290_v34  ;;  %v1558_v14 = vadd.f32 %v1527_v63, %v1490_v52  ;;  %v12567_v50 = vrot.slane %v6976_v48, 2  ;;  %v1690_v9 = vsel %vm571_vm1, %v1687_v21, %v1689_v10  ;;  %v1247_v46 = vadd.f32 %v1141_v19, %v997_v60  ;;  %v12585_v6 = vld [vmem:[#allocation53_spill] sm:$0xff]  ;;  %v12586_v63 = vld [vmem:[#allocation118_spill] sm:$0xff] }
 0x109   :  { %12565 = vst [vmem:[#allocation31_spill] sm:$0xff] %v7299_v28  ;;  %v7311_v2 = vadd.f32 %v7209_v57, %v7190_v25  ;;  %v12570_v30 = vrot.slane %v7169_v44, 2  ;;  %v12571_v31 = vrot.slane %v6921_v49, 2  ;;  %v999_v36 = vadd.f32 %v967_v15, %v921_v13  ;;  %v7331_v25 = vld [vmem:[%s12003_s1 + $0x1] ss:$0 sm:$0xff]  ;;  %v12577_v49 = vld [vmem:[#allocation90_spill] sm:$0xff] }
 0x10a   :  { %v7306_v7 = vsel %vm808_vm2, %v12567_v50, %v12566_v54  ;;  %v1795_v4 = vadd.f32 %v1690_v9, %v1558_v14  ;;  %v12573_v48 = vrot.slane %v6925_v5, 1  ;;  %v12575_v21 = vrot.slane %v7164_v45, 2  ;;  %12576 = vst [vmem:[#allocation32_spill] sm:$0xff] %v7331_v25  ;;  %v7381_v52 = vld [vmem:[%s12003_s1 + $0x8] ss:$0 sm:$0xff] }
 0x10b   :  { %12568 = vst [vmem:[#allocation27_spill] sm:$0xff] %v7306_v7  ;;  %v7318_v37 = vsel %vm808_vm2, %v12571_v31, %v12570_v30  ;;  %v7335_v44 = vmul.f32 %v7331_v25, %v12577_v49  ;;  %v524_v57 = vmul.f32 %v7331_v25, %v474_v61  ;;  %v12579_v5 = vmov %v12566_v54  ;;  %v12589_v30 = vld [vmem:[#allocation14_spill] sm:$0xff] }
 0x10c   :  { %12569 = vst [vmem:[#allocation44_spill] sm:$0xff] %v7311_v2  ;;  %v7323_v42 = vsel %vm571_vm1, %v12573_v48, %v1739_v33  ;;  %v1927_v51 = vsel %vm808_vm2, %v12575_v21, %v1926_v29  ;;  %v7343_v20 = vsel %vm808_vm2, %v12579_v5, %v1976_v56  ;;  %v12581_v45 = vrot.slane %v7160_v53, 2 }
 0x10d   :  { %12572 = vst [vmem:[#allocation61_spill] sm:$0xff] %v7318_v37  ;;  %v7348_v26 = vadd.f32 %v1927_v51, %v1795_v4  ;;  %v7357_v10 = vmul.f32 %v7353_v40, %v12577_v49  ;;  %v1529_v53 = vmul.f32 %v7362_v62, %v12564_v27  ;;  %v1634_v23 = vmul.f32 %v7369_v59, %v12577_v49  ;;  %v7394_v27 = vld [vmem:[%s12003_s1 + $0x2] ss:$0 sm:$0xff]  ;;  %v12636_v37 = vld [vmem:[#allocation22_spill] sm:$0xff] }
 0x10e   :  { %12574 = vst [vmem:[#allocation30_spill] sm:$0xff] %v7323_v42  ;;  %v1386_v12 = vsel %vm808_vm2, %v12581_v45, %v1385_v3  ;;  %v493_v13 = vmul.f32 %v7331_v25, %v12585_v6  ;;  %v7376_v35 = vadd.f32 %v12586_v63, %v999_v36  ;;  %v7385_v16 = vmul.f32 %v7381_v52, %v12577_v49  ;;  %v12591_v51 = vld [vmem:[#allocation20_spill] sm:$0xff] }
 0x10f   :  { %12578 = vst [vmem:[#allocation45_spill] sm:$0xff] %v7335_v44  ;;  %v1492_v60 = vadd.f32 %v1386_v12, %v1247_v46  ;;  %v1080_v58 = vmul.f32 %v7353_v40, %v474_v61  ;;  %v494_v33 = vmul.f32 %v7331_v25, %v7338_v18  ;;  %v12093_v56 = vrot.slane %v7335_v44, 1  ;;  %v12610_v12 = vld [vmem:[#allocation86_spill] sm:$0xff] }
 0x110   :  { %12580 = vst [vmem:[#allocation50_spill] sm:$0xff] %v7343_v20  ;;  %v647_v29 = vrot.slane %v524_v57, 1  ;;  %v7397_v15 = vmul.f32 %v7394_v27, %v474_v61  ;;  %v595_v3 = vrot.slane %v493_v13, 1  ;;  %v12094_v19 = vrot.slane %v7357_v10, 1 }
 0x111   :  { %12582 = vst [vmem:[#allocation10_spill] sm:$0xff] %v7348_v26  ;;  %v1635_v14 = vmul.f32 %v7369_v59, %v474_v61  ;;  %v597_v54 = vrot.slane %v494_v33, 1  ;;  %v730_v50 = vmul.f32 %v7394_v27, %v12585_v6  ;;  %v1560_v9 = vadd.f32 %v1529_v53, %v1492_v60  ;;  %v7419_v53 = vld [vmem:[%s12003_s1 + $0x5] ss:$0 sm:$0xff]  ;;  %v12595_v33 = vld [vmem:[#allocation15_spill] sm:$0xff] }
 0x112   :  { %12584 = vst [vmem:[#allocation12_spill] sm:$0xff] %v7357_v10  ;;  %v1752_v46 = vrot.slane %v1634_v23, 1  ;;  %v12590_v31 = vrot.slane %v12589_v30, 1  ;;  %v731_v4 = vmul.f32 %v7394_v27, %v7338_v18  ;;  %v12095_v48 = vrot.slane %v7385_v16, 2  ;;  %v12597_v30 = vld [vmem:[#allocation121_spill] sm:$0xff] }
 0x113   :  { %12587 = vst [vmem:[#allocation33_spill] sm:$0xff] %v7394_v27  ;;  %v1205_v21 = vrot.slane %v1080_v58, 1  ;;  %v832_v5 = vrot.slane %v730_v50, 2  ;;  %v7413_v45 = vsel %vm571_vm1, %v12093_v56, %v647_v29  ;;  %v7422_v60 = vmul.f32 %v7419_v53, %v474_v61 }
 0x114   :  { %12588 = vst [vmem:[#allocation34_spill] sm:$0xff] %v7397_v15  ;;  %v596_v36 = vsel %vm571_vm1, %v12590_v31, %v595_v3  ;;  %v7426_v23 = vmul.f32 %v7353_v40, %v12585_v6  ;;  %v1754_v13 = vrot.slane %v1635_v14, 1  ;;  %v7429_v63 = vmul.f32 %v7381_v52, %v474_v61 }
 0x115   :  { %v689_v57 = vadd.f32 %v596_v36, %v12591_v51  ;;  %12592 = vst [vmem:[#allocation25_spill] sm:$0xff] %v7413_v45  ;;  %v598_v58 = vsel %vm571_vm1, %v595_v3, %v597_v54  ;;  %v12596_v29 = vrot.slane %v12595_v33, 2  ;;  %v1797_v31 = vadd.f32 %v12597_v30, %v1560_v9  ;;  %v7439_v36 = vld [vmem:[%s12003_s1] ss:$0 sm:$0xff]  ;;  %v12625_v45 = vld [vmem:[#allocation59_spill] sm:$0xff] }
 0x116   :  { %12593 = vst [vmem:[#allocation35_spill] sm:$0xff] %v7419_v53  ;;  %v347_v51 = vmul.f32 %v7439_v36, %v12585_v6  ;;  %v834_v14 = vrot.slane %v731_v4, 2  ;;  %v7446_v61 = vsel %vm571_vm1, %v12094_v19, %v1205_v21  ;;  %v12600_v3 = vrot.slane %v7060_v8, 1  ;;  %v7475_v19 = vld [vmem:[%s12003_s1 + $0x3] ss:$0 sm:$0xff]  ;;  %v12606_v4 = vld [vmem:[#allocation13_spill] sm:$0xff] }
 0x117   :  { %12594 = vst [vmem:[#allocation29_spill] sm:$0xff] %v7422_v60  ;;  %v833_v50 = vsel %vm808_vm2, %v12596_v29, %v832_v5  ;;  %v7455_v9 = vmul.f32 %v7419_v53, %v12585_v6  ;;  %v7459_v33 = vmul.f32 %v7369_v59, %v12585_v6  ;;  %v12602_v29 = vld [vmem:[#allocation74_spill] sm:$0xff]  ;;  %v12603_v8 = vrot.slane %v7094_v17, 2 }
 0x118   :  { %12598 = vst [vmem:[#allocation9_spill] sm:$0xff] %v7439_v36  ;;  %v926_v56 = vadd.f32 %v833_v50, %v689_v57  ;;  %v7451_v54 = vsel %vm571_vm1, %v12600_v3, %v1752_v46  ;;  %v690_v57 = vadd.f32 %v598_v58, %v347_v51  ;;  %v7479_v58 = vmul.f32 %v7475_v19, %v12606_v4  ;;  %v12607_v51 = vld [vmem:[#allocation122_spill] sm:$0xff]  ;;  %v12611_v4 = vld [vmem:[#allocation37_spill] sm:$0xff] }
 0x119   :  { %12599 = vst [vmem:[#allocation53_spill] sm:$0xff] %v7446_v61  ;;  %v7469_v30 = vsel %vm808_vm2, %v12603_v8, %v12095_v48  ;;  %v7486_v17 = vadd.f32 %v12607_v51, %v1797_v31  ;;  %v835_v8 = vsel %vm808_vm2, %v832_v5, %v834_v14  ;;  %v490_v26 = vmul.f32 %v7331_v25, %v12611_v4  ;;  %v12613_v51 = vld [vmem:[#allocation16_spill] sm:$0xff] }
 0x11a   :  { %12601 = vst [vmem:[#allocation118_spill] sm:$0xff] %v7451_v54  ;;  %v1004_v50 = vadd.f32 %v12602_v29, %v926_v56  ;;  %v7483_v56 = vmul.f32 %v7353_v40, %v7338_v18  ;;  %v7489_v29 = vsel %vm571_vm1, %v1752_v46, %v1754_v13  ;;  %v727_v47 = vmul.f32 %v7394_v27, %v12611_v4  ;;  %v12623_v61 = vld [vmem:[#allocation52_spill] sm:$0xff] }
 0x11b   :  { %12604 = vst [vmem:[#allocation14_spill] sm:$0xff] %v7469_v30  ;;  %v927_v55 = vadd.f32 %v835_v8, %v690_v57  ;;  %v12612_v31 = vrot.slane %v7426_v23, 1  ;;  %v12614_v46 = vrot.slane %v12613_v51, 1  ;;  %v7506_v5 = vmul.f32 %v7419_v53, %v7338_v18  ;;  %v12616_v57 = vld [vmem:[#allocation85_spill] sm:$0xff] }
 0x11c   :  { %12605 = vst [vmem:[#allocation20_spill] sm:$0xff] %v7475_v19  ;;  %v1254_v48 = vadd.f32 %v12610_v12, %v1004_v50  ;;  %v12615_v12 = vld [vmem:[#allocation87_spill] sm:$0xff]  ;;  %v590_v21 = vrot.slane %v490_v26, 1  ;;  %v827_v3 = vrot.slane %v727_v47, 2  ;;  %v7517_v51 = vmul.f32 %v7369_v59, %v7338_v18  ;;  %v419_v26 = vpop.permute.xlu0 %418  ;;  %v12621_v50 = vld [vmem:[#allocation18_spill] sm:$0xff] }
 0x11d   :  { %12608 = vst [vmem:[#allocation15_spill] sm:$0xff] %v7486_v17  ;;  %v1154_v13 = vsel %vm571_vm1, %v12614_v46, %v12612_v31  ;;  %v1046_v17 = vmul.f32 %v7353_v40, %v12611_v4  ;;  %v7521_v31 = vmul.f32 %v7381_v52, %v12585_v6  ;;  %v12617_v47 = vrot.slane %v7455_v9, 2  ;;  %v12618_v46 = vld [vmem:[#allocation17_spill] sm:$0xff] }
 0x11e   :  { %12609 = vst [vmem:[#allocation121_spill] sm:$0xff] %v7489_v29  ;;  %v1499_v14 = vadd.f32 %v12615_v12, %v1254_v48  ;;  %v7525_v48 = vmul.f32 %v7419_v53, %v12611_v4  ;;  %v12619_v12 = vrot.slane %v12618_v46, 2  ;;  %v12622_v10 = vrot.slane %v12621_v50, 1  ;;  %v12626_v46 = vld [vmem:[#allocation54_spill] sm:$0xff]  ;;  %v12628_v50 = vld [vmem:[#allocation55_spill] sm:$0xff] }
 0x11f   :  { %v12624_v60 = vrot.slane %v12623_v61, 1  ;;  %v1148_v15 = vrot.slane %v1046_v17, 1  ;;  %v7542_v30 = vmul.f32 %v7381_v52, %v7338_v18  ;;  %v12627_v49 = vrot.slane %v12626_v46, 2 }
 0x120   :  { %v7513_v8 = vadd.f32 %v12616_v57, %v1499_v14  ;;  %v1399_v14 = vsel %vm808_vm2, %v12619_v12, %v12617_v47  ;;  %v12620_v57 = vrot.slane %v7459_v33, 1  ;;  %v12105_v12 = vrot.slane %v7525_v48, 2 }
 0x121   :  { %v591_v29 = vsel %vm571_vm1, %v12624_v60, %v590_v21  ;;  %v828_v47 = vsel %vm808_vm2, %v12627_v49, %v827_v3  ;;  %v12629_v28 = vrot.slane %v12628_v50, 1  ;;  %v7554_v60 = vmul.f32 %v7369_v59, %v12611_v4  ;;  %v12630_v49 = vld [vmem:[#allocation46_spill] sm:$0xff] }
 0x122   :  { %v1703_v44 = vsel %vm571_vm1, %v12622_v10, %v12620_v57  ;;  %v687_v54 = vadd.f32 %v591_v29, %v12625_v45  ;;  %v7558_v18 = vmul.f32 %v7381_v52, %v12611_v4  ;;  %v491_v45 = vmul.f32 %v7331_v25, %v419_v26  ;;  %v12631_v57 = vld [vmem:[#allocation56_spill] sm:$0xff] }
 0x123   :  { %v1149_v10 = vsel %vm571_vm1, %v12629_v28, %v1148_v15  ;;  %v1939_v61 = vrot.slane %v7521_v31, 2  ;;  %v12632_v46 = vrot.slane %v12631_v57, 2  ;;  %v1697_v50 = vrot.slane %v7554_v60, 1  ;;  %v12633_v31 = vld [vmem:[#allocation21_spill] sm:$0xff] }
 0x124   :  { %v924_v17 = vadd.f32 %v828_v47, %v687_v54  ;;  %v1250_v29 = vadd.f32 %v1149_v10, %v12630_v49  ;;  %v592_v2 = vrot.slane %v491_v45, 1  ;;  %v728_v20 = vmul.f32 %v7394_v27, %v419_v26  ;;  %v12634_v49 = vld [vmem:[#allocation57_spill] sm:$0xff] }
 0x125   :  { %v1394_v28 = vsel %vm808_vm2, %v12632_v46, %v12105_v12  ;;  %v345_v42 = vmul.f32 %v7439_v36, %v12611_v4  ;;  %v1047_v10 = vmul.f32 %v7353_v40, %v419_v26  ;;  %v12635_v7 = vrot.slane %v12634_v49, 1 }
 0x126   :  { %v1002_v54 = vadd.f32 %v12633_v31, %v924_v17  ;;  %v1495_v47 = vadd.f32 %v1394_v28, %v1250_v29  ;;  %v593_v46 = vsel %vm571_vm1, %v590_v21, %v592_v2  ;;  %v829_v60 = vrot.slane %v728_v20, 2  ;;  %v12638_v29 = vld [vmem:[#allocation60_spill] sm:$0xff] }
 0x127   :  { %v1698_v57 = vsel %vm571_vm1, %v12635_v7, %v1697_v50  ;;  %v1292_v12 = vmul.f32 %v7419_v53, %v419_v26  ;;  %v688_v22 = vadd.f32 %v593_v46, %v345_v42  ;;  %v12637_v17 = vrot.slane %v7558_v18, 2  ;;  %v12641_v42 = vld [vmem:[#allocation19_spill] sm:$0xff]  ;;  %v12646_v46 = vld [vmem:[#allocation88_spill] sm:$0xff] }
 0x128   :  { %v1252_v45 = vadd.f32 %v1154_v13, %v1002_v54  ;;  %v1563_v34 = vadd.f32 %v12636_v37, %v1495_v47  ;;  %v1798_v38 = vadd.f32 %v1698_v57, %v7242_v24  ;;  %v12639_v28 = vrot.slane %v12638_v29, 2 }
 0x129   :  { %v830_v49 = vsel %vm808_vm2, %v827_v3, %v829_v60  ;;  %v1150_v7 = vrot.slane %v1047_v10, 1  ;;  %v1602_v2 = vmul.f32 %v7369_v59, %v419_v26  ;;  %v1005_v37 = vadd.f32 %v7479_v58, %v927_v55  ;;  %v12643_v10 = vld [vmem:[#allocation75_spill] sm:$0xff] }
 0x12a   :  { %v1935_v31 = vsel %vm808_vm2, %v12639_v28, %v12637_v17  ;;  %v1497_v20 = vadd.f32 %v1399_v14, %v1252_v45  ;;  %v1800_v21 = vadd.f32 %v1703_v44, %v1563_v34  ;;  %v925_v13 = vadd.f32 %v830_v49, %v688_v22  ;;  %v12645_v58 = vld [vmem:[#allocation119_spill] sm:$0xff] }
 0x12b   :  { %v7589_v0 = vadd.f32 %v1935_v31, %v1798_v38  ;;  %v1400_v24 = vrot.slane %v7506_v5, 2  ;;  %v12642_v54 = vrot.slane %v12641_v42, 2  ;;  %v969_v57 = vmul.f32 %v7475_v19, %v12611_v4 }
 0x12c   :  { %v971_v3 = vmul.f32 %v7475_v19, %v12585_v6  ;;  %v1565_v14 = vadd.f32 %v12643_v10, %v1497_v20  ;;  %v1151_v22 = vsel %vm571_vm1, %v1148_v15, %v1150_v7  ;;  %v1704_v38 = vrot.slane %v7517_v51, 1 }
 0x12d   :  { %12640 = vst [vmem:[#allocation74_spill] sm:$0xff] %v7589_v0  ;;  %v1940_v47 = vsel %vm808_vm2, %v12642_v54, %v1939_v61  ;;  %v1941_v55 = vrot.slane %v7542_v30, 2  ;;  %v1001_v44 = vadd.f32 %v969_v57, %v6980_v39  ;;  %v1494_v5 = vadd.f32 %v12645_v58, %v7376_v35  ;;  %v12657_v54 = vld [vmem:[#allocation81_spill] sm:$0xff]  ;;  %v12686_v0 = vld [vmem:[#allocation78_spill] sm:$0xff] }
 0x12e   :  { %v7601_v34 = vadd.f32 %v1940_v47, %v1800_v21  ;;  %v1802_v60 = vadd.f32 %v12646_v46, %v1565_v14  ;;  %v1003_v45 = vadd.f32 %v971_v3, %v925_v13  ;;  %v1395_v17 = vrot.slane %v1292_v12, 2  ;;  %v1031_v13 = vpop.permute.xlu2 %1030 }
 0x12f   :  { %v1699_v29 = vrot.slane %v1602_v2, 1  ;;  %v12647_v28 = vrot.slane %v7429_v63, 2  ;;  %v12648_v31 = vrot.slane %v7385_v16, 2  ;;  %v1531_v30 = vmul.f32 %v7362_v62, %v12611_v4  ;;  %v12653_v2 = vld [vmem:[#allocation89_spill] sm:$0xff]  ;;  %v439_v4 = vpop.permute.xlu1 %438 }
 0x130   :  { %12644 = vst [vmem:[#allocation13_spill] sm:$0xff] %v7601_v34  ;;  %v1251_v51 = vadd.f32 %v1151_v22, %v1001_v44  ;;  %v7620_v39 = vmul.f32 %v7381_v52, %v419_v26  ;;  %v12650_v35 = vrot.slane %v7483_v56, 1  ;;  %v12651_v49 = vrot.slane %v7426_v23, 1 }
 0x131   :  { %v7615_v15 = vsel %vm808_vm2, %v12648_v31, %v12647_v28  ;;  %v7628_v63 = vadd.f32 %v7007_v11, %v1005_v37  ;;  %v12652_v16 = vrot.slane %v7455_v9, 2  ;;  %v7634_v20 = vadd.f32 %v12653_v2, %v1802_v60  ;;  %v12660_v31 = vld [vmem:[#allocation47_spill] sm:$0xff] }
 0x132   :  { %12649 = vst [vmem:[#allocation122_spill] sm:$0xff] %v7615_v15  ;;  %v1156_v12 = vsel %vm571_vm1, %v12651_v49, %v12650_v35  ;;  %v12655_v26 = vrot.slane %v7459_v33, 1  ;;  %v7640_v56 = vsel %vm808_vm2, %v1939_v61, %v1941_v55  ;;  %v1533_v23 = vmul.f32 %v7362_v62, %v12585_v6 }
 0x133   :  { %v1401_v7 = vsel %vm808_vm2, %v12652_v16, %v1400_v24  ;;  %12654 = vst [vmem:[#allocation86_spill] sm:$0xff] %v7634_v20  ;;  %v1562_v11 = vadd.f32 %v1531_v30, %v1494_v5  ;;  %v1253_v37 = vadd.f32 %v1156_v12, %v1003_v45  ;;  %v12656_v9 = vrot.slane %v7525_v48, 2  ;;  %v12658_v5 = vld [vmem:[#allocation38_spill] sm:$0xff] }
 0x134   :  { %v1705_v21 = vsel %vm571_vm1, %v12655_v26, %v1704_v38  ;;  %v1700_v42 = vsel %vm571_vm1, %v1697_v50, %v1699_v29  ;;  %v502_v33 = vmul.f32 %v7331_v25, %v12657_v54  ;;  %v503_v61 = vmul.f32 %v7331_v25, %v439_v4 }
 0x135   :  { %v1396_v24 = vsel %vm808_vm2, %v12656_v9, %v1395_v17  ;;  %v739_v6 = vmul.f32 %v7394_v27, %v12657_v54  ;;  %v7655_v3 = vmul.f32 %v7353_v40, %v1031_v13  ;;  %v740_v48 = vmul.f32 %v7394_v27, %v439_v4 }
 0x136   :  { %v1496_v47 = vadd.f32 %v1396_v24, %v1251_v51  ;;  %v610_v10 = vrot.slane %v502_v33, 1  ;;  %v7660_v50 = vmul.f32 %v7353_v40, %v12657_v54  ;;  %v7662_v14 = vadd.f32 %v1700_v42, %v1562_v11  ;;  %v12661_v51 = vld [vmem:[#allocation39_spill] sm:$0xff]  ;;  %v12665_v33 = vld [vmem:[#allocation26_spill] sm:$0xff] }
 0x137   :  { %v7665_v22 = vmul.f32 %v7419_v53, %v1031_v13  ;;  %v612_v38 = vrot.slane %v503_v61, 1  ;;  %v847_v55 = vrot.slane %v739_v6, 2  ;;  %v1498_v44 = vadd.f32 %v1401_v7, %v1253_v37  ;;  %v12666_v61 = vld [vmem:[#allocation36_spill] sm:$0xff] }
 0x138   :  { %v7668_v58 = vmul.f32 %v7369_v59, %v1031_v13  ;;  %v12659_v46 = vrot.slane %v12658_v5, 1  ;;  %v7675_v45 = vmul.f32 %v7419_v53, %v12657_v54  ;;  %v1564_v17 = vadd.f32 %v1533_v23, %v1496_v47 }
 0x139   :  { %v353_v29 = vmul.f32 %v7439_v36, %v12657_v54  ;;  %v613_v28 = vsel %vm571_vm1, %v610_v10, %v612_v38  ;;  %v12662_v35 = vrot.slane %v12661_v51, 2  ;;  %v849_v12 = vrot.slane %v740_v48, 2  ;;  %v12681_v51 = vld [vmem:[#allocation76_spill] sm:$0xff] }
 0x13a   :  { %v611_v60 = vsel %vm571_vm1, %v12659_v46, %v610_v10  ;;  %v7685_v16 = vmul.f32 %v7353_v40, %v439_v4  ;;  %v12109_v7 = vrot.slane %v7660_v50, 1  ;;  %v7689_v23 = vmul.f32 %v7419_v53, %v439_v4  ;;  %v12667_v10 = vld [vmem:[#allocation101_spill] sm:$0xff]  ;;  %v12668_v46 = vld [vmem:[#allocation40_spill] sm:$0xff] }
 0x13b   :  { %v695_v30 = vadd.f32 %v611_v60, %v12660_v31  ;;  %v848_v49 = vsel %vm808_vm2, %v12662_v35, %v847_v55  ;;  %v696_v2 = vadd.f32 %v613_v28, %v353_v29  ;;  %v7693_v11 = vmul.f32 %v7369_v59, %v12657_v54  ;;  %v12670_v31 = vld [vmem:[#allocation114_spill] sm:$0xff] }
 0x13c   :  { %v7696_v37 = vmul.f32 %v7381_v52, %v1031_v13  ;;  %v12107_v9 = vrot.slane %v7675_v45, 2  ;;  %v7700_v24 = vmul.f32 %v7369_v59, %v439_v4  ;;  %v7704_v42 = vmul.f32 %v7381_v52, %v12657_v54 }
 0x13d   :  { %v932_v26 = vadd.f32 %v848_v49, %v695_v30  ;;  %v7707_v47 = vadd.f32 %v12665_v33, %v1498_v44  ;;  %v7711_v6 = vmul.f32 %v7475_v19, %v12666_v61  ;;  %v12108_v13 = vrot.slane %v7693_v11, 1  ;;  %v12674_v33 = vld [vmem:[#allocation115_spill] sm:$0xff] }
 0x13e   :  { %12663 = vst [vmem:[#allocation37_spill] sm:$0xff] %v7696_v37  ;;  %v7715_v38 = vadd.f32 %v1705_v21, %v1564_v17  ;;  %v850_v5 = vsel %vm808_vm2, %v847_v55, %v849_v12  ;;  %v12669_v60 = vrot.slane %v12668_v46, 1  ;;  %v12112_v35 = vrot.slane %v7704_v42, 2  ;;  %v12671_v21 = vld [vmem:[#allocation41_spill] sm:$0xff] }
 0x13f   :  { %12664 = vst [vmem:[#allocation16_spill] sm:$0xff] %v7704_v42  ;;  %v1010_v48 = vadd.f32 %v12667_v10, %v932_v26  ;;  %v7724_v28 = vadd.f32 %v850_v5, %v696_v2  ;;  %v12672_v55 = vrot.slane %v12671_v21, 2  ;;  %v7736_v12 = vmul.f32 %v7381_v52, %v439_v4  ;;  %v12673_v26 = vld [vmem:[#allocation63_spill] sm:$0xff]  ;;  %v12675_v10 = vld [vmem:[#allocation42_spill] sm:$0xff] }
 0x140   :  { %v1169_v29 = vsel %vm571_vm1, %v12669_v60, %v12109_v7  ;;  %v499_v2 = vmul.f32 %v7331_v25, %v12673_v26  ;;  %v351_v46 = vmul.f32 %v7439_v36, %v12673_v26  ;;  %v736_v60 = vmul.f32 %v7394_v27, %v12673_v26  ;;  %v12691_v36 = vld [vmem:[#allocation48_spill] sm:$0xff] }
 0x141   :  { %v1260_v30 = vadd.f32 %v12670_v31, %v1010_v48  ;;  %v1414_v17 = vsel %vm808_vm2, %v12672_v55, %v12107_v9  ;;  %v12676_v48 = vrot.slane %v12675_v10, 1  ;;  %v975_v4 = vmul.f32 %v7475_v19, %v12673_v26  ;;  %v12677_v55 = vld [vmem:[#allocation112_spill] sm:$0xff]  ;;  %v12679_v10 = vld [vmem:[#allocation43_spill] sm:$0xff] }
 0x142   :  { %v605_v31 = vrot.slane %v499_v2, 1  ;;  %v1055_v21 = vmul.f32 %v7353_v40, %v12673_v26  ;;  %v842_v9 = vrot.slane %v736_v60, 2  ;;  %v977_v2 = vmul.f32 %v7475_v19, %v12657_v54 }
 0x143   :  { %v1505_v61 = vadd.f32 %v12674_v33, %v1260_v30  ;;  %v1718_v5 = vsel %vm571_vm1, %v12676_v48, %v12108_v13  ;;  %v1300_v30 = vmul.f32 %v7419_v53, %v12673_v26  ;;  %v12680_v48 = vrot.slane %v12679_v10, 2 }
 0x144   :  { %v12682_v13 = vrot.slane %v12681_v51, 1  ;;  %v1007_v7 = vadd.f32 %v975_v4, %v7055_v43  ;;  %v1163_v44 = vrot.slane %v1055_v21, 1  ;;  %v1500_v10 = vadd.f32 %v7014_v32, %v7628_v63  ;;  %v12688_v21 = vld [vmem:[#allocation79_spill] sm:$0xff] }
 0x145   :  { %v7757_v33 = vadd.f32 %v12677_v55, %v1505_v61  ;;  %v1955_v57 = vsel %vm808_vm2, %v12680_v48, %v12112_v35  ;;  %v1408_v20 = vrot.slane %v1300_v30, 2  ;;  %v434_v61 = vpop.permute.xlu0 %433  ;;  %v12683_v55 = vld [vmem:[#allocation84_spill] sm:$0xff]  ;;  %v1537_v60 = vmul.f32 %v7362_v62, %v12673_v26  ;;  %v12684_v35 = vld [vmem:[#allocation77_spill] sm:$0xff] }
 0x146   :  { %v606_v49 = vsel %vm571_vm1, %v12682_v13, %v605_v31  ;;  %v1610_v48 = vmul.f32 %v7369_v59, %v12673_v26  ;;  %v12685_v51 = vrot.slane %v12684_v35, 2  ;;  %v12687_v43 = vrot.slane %v12686_v0, 1 }
 0x147   :  { %12678 = vst [vmem:[#allocation87_spill] sm:$0xff] %v7757_v33  ;;  %v693_v34 = vadd.f32 %v606_v49, %v12683_v55  ;;  %v12689_v30 = vrot.slane %v12688_v21, 2  ;;  %v7788_v32 = vmul.f32 %v7381_v52, %v12673_v26  ;;  %v12690_v55 = vld [vmem:[#allocation73_spill] sm:$0xff]  ;;  %v500_v35 = vmul.f32 %v7331_v25, %v434_v61 }
 0x148   :  { %v843_v13 = vsel %vm808_vm2, %v12685_v51, %v842_v9  ;;  %v1164_v4 = vsel %vm571_vm1, %v12687_v43, %v1163_v44  ;;  %v1712_v33 = vrot.slane %v1610_v48, 1  ;;  %v737_v0 = vmul.f32 %v7394_v27, %v434_v61 }
 0x149   :  { %v1409_v49 = vsel %vm808_vm2, %v12689_v30, %v1408_v20  ;;  %v930_v63 = vadd.f32 %v843_v13, %v693_v34  ;;  %v1256_v15 = vadd.f32 %v1164_v4, %v12690_v55  ;;  %v1949_v51 = vrot.slane %v7788_v32, 2  ;;  %v12694_v4 = vld [vmem:[#allocation82_spill] sm:$0xff] }
 0x14a   :  { %v1056_v43 = vmul.f32 %v7353_v40, %v434_v61  ;;  %v1301_v21 = vmul.f32 %v7419_v53, %v434_v61  ;;  %v12693_v26 = vrot.slane %v12692_v41, 1  ;;  %v607_v13 = vrot.slane %v500_v35, 1  ;;  %v12696_v40 = vld [vmem:[#allocation49_spill] sm:$0xff] }
 0x14b   :  { %v1008_v30 = vadd.f32 %v12691_v36, %v930_v63  ;;  %v1501_v19 = vadd.f32 %v1409_v49, %v1256_v15  ;;  %v12695_v55 = vrot.slane %v12694_v4, 2  ;;  %v844_v25 = vrot.slane %v737_v0, 2 }
 0x14c   :  { %v1713_v34 = vsel %vm571_vm1, %v12693_v26, %v1712_v33  ;;  %v1165_v27 = vrot.slane %v1056_v43, 1  ;;  %v608_v53 = vsel %vm571_vm1, %v605_v31, %v607_v13  ;;  %v1410_v36 = vrot.slane %v1301_v21, 2  ;;  %v12698_v21 = vld [vmem:[#allocation102_spill] sm:$0xff] }
 0x14d   :  { %v1804_v48 = vadd.f32 %v1713_v34, %v7513_v8  ;;  %v1950_v32 = vsel %vm808_vm2, %v12695_v55, %v1949_v51  ;;  %v1258_v42 = vadd.f32 %v1169_v29, %v1008_v30  ;;  %v1569_v37 = vadd.f32 %v12696_v40, %v1501_v19 }
 0x14e   :  { %v1539_v41 = vmul.f32 %v7362_v62, %v12657_v54  ;;  %v694_v49 = vadd.f32 %v608_v53, %v351_v46  ;;  %v1166_v8 = vsel %vm571_vm1, %v1163_v44, %v1165_v27  ;;  %v845_v26 = vsel %vm808_vm2, %v842_v9, %v844_v25 }
 0x14f   :  { %v7808_v15 = vadd.f32 %v1950_v32, %v1804_v48  ;;  %v1503_v63 = vadd.f32 %v1414_v17, %v1258_v42  ;;  %v1806_v35 = vadd.f32 %v1718_v5, %v1569_v37  ;;  %v1257_v0 = vadd.f32 %v1166_v8, %v1007_v7  ;;  %v12704_v5 = vld [vmem:[#allocation116_spill] sm:$0xff]  ;;  %v12713_v32 = vld [vmem:[#allocation37_spill] sm:$0xff] }
 0x150   :  { %v931_v43 = vadd.f32 %v845_v26, %v694_v49  ;;  %v1411_v29 = vsel %vm808_vm2, %v1408_v20, %v1410_v36  ;;  %v1611_v40 = vmul.f32 %v7369_v59, %v434_v61  ;;  %v1848_v19 = vmul.f32 %v7381_v52, %v434_v61  ;;  %v454_v36 = vpop.permute.xlu1 %453  ;;  %v12716_v49 = vld [vmem:[#allocation16_spill] sm:$0xff] }
 0x151   :  { %12697 = vst [vmem:[#allocation85_spill] sm:$0xff] %v7808_v15  ;;  %v1568_v31 = vadd.f32 %v1537_v60, %v1500_v10  ;;  %v1571_v54 = vadd.f32 %v12698_v21, %v1503_v63  ;;  %v7816_v30 = vadd.f32 %v1955_v57, %v1806_v35  ;;  %v1502_v53 = vadd.f32 %v1411_v29, %v1257_v0  ;;  %v12718_v35 = vld [vmem:[#allocation58_spill] sm:$0xff]  ;;  %v12719_v0 = vld [vmem:[#allocation135_spill] sm:$0xff]  ;;  %v12765_v48 = vld [vmem:[#allocation108_spill] sm:$0xff] }
 0x152   :  { %v1803_v27 = vadd.f32 %v7019_v1, %v7707_v47  ;;  %v12700_v37 = vrot.slane %v7685_v16, 1  ;;  %v12701_v25 = vrot.slane %v7660_v50, 1  ;;  %v1009_v20 = vadd.f32 %v977_v2, %v931_v43  ;;  %v12722_v29 = vld [vmem:[#allocation62_spill] sm:$0xff] }
 0x153   :  { %12699 = vst [vmem:[#allocation17_spill] sm:$0xff] %v7816_v30  ;;  %v1714_v9 = vrot.slane %v1611_v40, 1  ;;  %v1011_v42 = vadd.f32 %v7711_v6, %v7724_v28  ;;  %v12702_v44 = vrot.slane %v7700_v24, 1  ;;  %v12703_v57 = vrot.slane %v7693_v11, 1  ;;  %v12707_v24 = vld [vmem:[#allocation117_spill] sm:$0xff]  ;;  %v12723_v40 = vld [vmem:[#allocation20_spill] sm:$0xff] }
 0x154   :  { %v1171_v7 = vsel %vm571_vm1, %v12701_v25, %v12700_v37  ;;  %v1808_v46 = vadd.f32 %v12704_v5, %v1571_v54  ;;  %v1570_v1 = vadd.f32 %v1539_v41, %v1502_v53  ;;  %v1956_v16 = vrot.slane %v7736_v12, 2  ;;  %v12725_v54 = vld [vmem:[#allocation113_spill] sm:$0xff]  ;;  %v12727_v37 = vld [vmem:[#allocation32_spill] sm:$0xff] }
 0x155   :  { %v1720_v17 = vsel %vm571_vm1, %v12703_v57, %v12702_v44  ;;  %v1259_v47 = vadd.f32 %v1171_v7, %v1009_v20  ;;  %v1715_v50 = vsel %vm571_vm1, %v1712_v33, %v1714_v9  ;;  %v1951_v61 = vrot.slane %v1848_v19, 2  ;;  %v12726_v53 = vld [vmem:[#allocation9_spill] sm:$0xff] }
 0x156   :  { %v12705_v2 = vrot.slane %v7689_v23, 2  ;;  %v12706_v10 = vrot.slane %v7675_v45, 2  ;;  %v7841_v28 = vadd.f32 %v12707_v24, %v1808_v46  ;;  %v1805_v11 = vadd.f32 %v1715_v50, %v1568_v31  ;;  %v12724_v31 = vld [vmem:[#allocation140_spill] sm:$0xff]  ;;  %v12728_v7 = vld [vmem:[#allocation33_spill] sm:$0xff] }
 0x157   :  { %v1807_v60 = vadd.f32 %v1720_v17, %v1570_v1  ;;  %v12709_v34 = vrot.slane %v7620_v39, 2  ;;  %v12710_v13 = vrot.slane %v7558_v18, 2  ;;  %v7855_v4 = vadd.f32 %v7640_v56, %v7715_v38  ;;  %v12714_v18 = vld [vmem:[#allocation130_spill] sm:$0xff]  ;;  %v12730_v17 = vld [vmem:[#allocation141_spill] sm:$0xff]  ;;  %v12764_v39 = vld [vmem:[#allocation71_spill] sm:$0xff] }
 0x158   :  { %v1416_v6 = vsel %vm808_vm2, %v12706_v10, %v12705_v2  ;;  %12708 = vst [vmem:[#allocation18_spill] sm:$0xff] %v7841_v28  ;;  %v7860_v41 = vadd.f32 %v12714_v18, %v1803_v27  ;;  %v12717_v8 = vrot.slane %v12716_v49, 2  ;;  %v7868_v43 = vadd.f32 %v12719_v0, %v1011_v42  ;;  %v12729_v42 = vld [vmem:[#allocation51_spill] sm:$0xff]  ;;  %v12736_v49 = vld [vmem:[#allocation65_spill] sm:$0xff] }
 0x159   :  { %v1937_v12 = vsel %vm808_vm2, %v12710_v13, %v12709_v34  ;;  %v1504_v23 = vadd.f32 %v1416_v6, %v1259_v47  ;;  %12712 = vst [vmem:[#allocation59_spill] sm:$0xff] %v7855_v4  ;;  %v985_v19 = vmul.f32 %v12723_v40, %v12722_v29  ;;  %v359_v27 = vmul.f32 %v12726_v53, %v12725_v54  ;;  %v12733_v6 = vld [vmem:[#allocation64_spill] sm:$0xff] }
 0x15a   :  { %v7851_v45 = vadd.f32 %v1937_v12, %v7662_v14  ;;  %12715 = vst [vmem:[#allocation54_spill] sm:$0xff] %v7860_v41  ;;  %v1957_v63 = vsel %vm808_vm2, %v12717_v8, %v1956_v16  ;;  %v1952_v14 = vsel %vm808_vm2, %v1949_v51, %v1951_v61  ;;  %v511_v25 = vmul.f32 %v12727_v37, %v12725_v54  ;;  %v12732_v16 = vld [vmem:[#allocation35_spill] sm:$0xff]  ;;  %v12735_v12 = vld [vmem:[#allocation70_spill] sm:$0xff] }
 0x15b   :  { %v1572_v26 = vadd.f32 %v12718_v35, %v1504_v23  ;;  %v7870_v56 = vadd.f32 %v1952_v14, %v1805_v11  ;;  %v7872_v38 = vadd.f32 %v1957_v63, %v1807_v60  ;;  %v512_v51 = vmul.f32 %v12727_v37, %v454_v36 }
 0x15c   :  { %12711 = vst [vmem:[#allocation52_spill] sm:$0xff] %v7851_v45  ;;  %v748_v20 = vmul.f32 %v12728_v7, %v12725_v54  ;;  %v749_v9 = vmul.f32 %v12728_v7, %v454_v36  ;;  %v1067_v44 = vmul.f32 %v12729_v42, %v12725_v54  ;;  %v1068_v57 = vmul.f32 %v12729_v42, %v454_v36 }
 0x15d   :  { %12720 = vst [vmem:[#allocation55_spill] sm:$0xff] %v7870_v56  ;;  %v1809_v21 = vadd.f32 %v12724_v31, %v1572_v26  ;;  %v625_v46 = vrot.slane %v511_v25, 1  ;;  %v627_v1 = vrot.slane %v512_v51, 1  ;;  %v1312_v47 = vmul.f32 %v12732_v16, %v12725_v54  ;;  %v12738_v26 = vld [vmem:[#allocation66_spill] sm:$0xff]  ;;  %v12740_v31 = vld [vmem:[#allocation67_spill] sm:$0xff] }
 0x15e   :  { %12721 = vst [vmem:[#allocation46_spill] sm:$0xff] %v7872_v38  ;;  %v862_v50 = vrot.slane %v748_v20, 2  ;;  %v864_v61 = vrot.slane %v749_v9, 2  ;;  %v1183_v2 = vrot.slane %v1067_v44, 1  ;;  %v1185_v10 = vrot.slane %v1068_v57, 1 }
 0x15f   :  { %v7889_v5 = vadd.f32 %v12730_v17, %v1809_v21  ;;  %v12734_v24 = vrot.slane %v12733_v6, 1  ;;  %v628_v60 = vsel %vm571_vm1, %v625_v46, %v627_v1  ;;  %v1313_v34 = vmul.f32 %v12732_v16, %v454_v36  ;;  %v12742_v1 = vld [vmem:[#allocation92_spill] sm:$0xff] }
 0x160   :  { %v1428_v13 = vrot.slane %v1312_v47, 2  ;;  %v702_v18 = vadd.f32 %v628_v60, %v359_v27  ;;  %v12737_v8 = vrot.slane %v12736_v49, 2  ;;  %v865_v35 = vsel %vm808_vm2, %v862_v50, %v864_v61 }
 0x161   :  { %12731 = vst [vmem:[#allocation56_spill] sm:$0xff] %v7889_v5  ;;  %v626_v11 = vsel %vm571_vm1, %v12734_v24, %v625_v46  ;;  %v12739_v14 = vrot.slane %v12738_v26, 1  ;;  %v7907_v29 = vsel %vm571_vm1, %v1183_v2, %v1185_v10  ;;  %v12741_v21 = vrot.slane %v12740_v31, 2 }
 0x162   :  { %v701_v23 = vadd.f32 %v626_v11, %v12735_v12  ;;  %v863_v63 = vsel %vm808_vm2, %v12737_v8, %v862_v50  ;;  %v1430_v51 = vrot.slane %v1313_v34, 2  ;;  %v939_v20 = vadd.f32 %v865_v35, %v702_v18  ;;  %v12743_v50 = vld [vmem:[#allocation123_spill] sm:$0xff]  ;;  %v12746_v18 = vld [vmem:[#allocation68_spill] sm:$0xff] }
 0x163   :  { %v1184_v0 = vsel %vm571_vm1, %v12739_v14, %v1183_v2  ;;  %v7912_v25 = vsel %vm808_vm2, %v12741_v21, %v1428_v13  ;;  %v1622_v9 = vmul.f32 %v7369_v59, %v12725_v54  ;;  %v1623_v44 = vmul.f32 %v7369_v59, %v454_v36 }
 0x164   :  { %v938_v27 = vadd.f32 %v863_v63, %v701_v23  ;;  %v7918_v57 = vsel %vm808_vm2, %v1428_v13, %v1430_v51  ;;  %v1859_v17 = vmul.f32 %v7381_v52, %v12725_v54  ;;  %v1860_v46 = vmul.f32 %v7381_v52, %v454_v36  ;;  %v12744_v13 = vld [vmem:[#allocation142_spill] sm:$0xff]  ;;  %v12745_v23 = vld [vmem:[#allocation24_spill] sm:$0xff]  ;;  %v12748_v63 = vld [vmem:[#allocation69_spill] sm:$0xff] }
 0x165   :  { %v357_v47 = vmul.f32 %v12726_v53, %v12742_v1  ;;  %v1017_v2 = vadd.f32 %v985_v19, %v939_v20  ;;  %v1732_v10 = vrot.slane %v1622_v9, 1  ;;  %v1734_v6 = vrot.slane %v1623_v44, 1  ;;  %v12750_v51 = vld [vmem:[#allocation143_spill] sm:$0xff] }
 0x166   :  { %v1016_v61 = vadd.f32 %v12743_v50, %v938_v27  ;;  %v1969_v24 = vrot.slane %v1859_v17, 2  ;;  %v1971_v11 = vrot.slane %v1860_v46, 2  ;;  %v508_v60 = vmul.f32 %v12727_v37, %v12742_v1  ;;  %v12751_v17 = vld [vmem:[#allocation104_spill] sm:$0xff] }
 0x167   :  { %v745_v34 = vmul.f32 %v12728_v7, %v12742_v1  ;;  %v7932_v36 = vadd.f32 %v12745_v23, %v1017_v2  ;;  %v12747_v49 = vrot.slane %v12746_v18, 1  ;;  %v7938_v19 = vsel %vm571_vm1, %v1732_v10, %v1734_v6  ;;  %v12758_v18 = vld [vmem:[#allocation137_spill] sm:$0xff] }
 0x168   :  { %v1266_v12 = vadd.f32 %v12744_v13, %v1016_v61  ;;  %v12749_v35 = vrot.slane %v12748_v63, 2  ;;  %v7944_v14 = vsel %vm808_vm2, %v1969_v24, %v1971_v11  ;;  %v620_v31 = vrot.slane %v508_v60, 1  ;;  %v12753_v61 = vld [vmem:[#allocation105_spill] sm:$0xff]  ;;  %v449_v60 = vpop.permute.xlu0 %448 }
 0x169   :  { %v1733_v8 = vsel %vm571_vm1, %v12747_v49, %v1732_v10  ;;  %v857_v21 = vrot.slane %v745_v34, 2  ;;  %v981_v20 = vmul.f32 %v12723_v40, %v12742_v1  ;;  %v983_v9 = vmul.f32 %v12723_v40, %v12725_v54  ;;  %v12756_v34 = vld [vmem:[#allocation134_spill] sm:$0xff] }
 0x16a   :  { %v1970_v26 = vsel %vm808_vm2, %v12749_v35, %v1969_v24  ;;  %v1511_v27 = vadd.f32 %v12750_v51, %v1266_v12  ;;  %v1064_v44 = vmul.f32 %v12729_v42, %v12742_v1  ;;  %v12752_v46 = vrot.slane %v12751_v17, 1  ;;  %v12755_v24 = vld [vmem:[#allocation138_spill] sm:$0xff]  ;;  %v12757_v12 = vld [vmem:[#allocation111_spill] sm:$0xff] }
 0x16b   :  { %v12754_v2 = vrot.slane %v12753_v61, 2  ;;  %v1309_v6 = vmul.f32 %v12732_v16, %v12742_v1  ;;  %v1506_v11 = vadd.f32 %v12755_v24, %v7868_v43  ;;  %v1013_v49 = vadd.f32 %v981_v20, %v12758_v18  ;;  %v12759_v61 = vld [vmem:[#allocation106_spill] sm:$0xff]  ;;  %v12762_v24 = vld [vmem:[#allocation107_spill] sm:$0xff] }
 0x16c   :  { %v621_v50 = vsel %vm571_vm1, %v12752_v46, %v620_v31  ;;  %v7964_v13 = vadd.f32 %v12756_v34, %v1511_v27  ;;  %v1178_v63 = vrot.slane %v1064_v44, 1  ;;  %v1543_v51 = vmul.f32 %v7362_v62, %v12742_v1  ;;  %v12761_v44 = vld [vmem:[#allocation103_spill] sm:$0xff] }
 0x16d   :  { %v858_v10 = vsel %vm808_vm2, %v12754_v2, %v857_v21  ;;  %v699_v23 = vadd.f32 %v621_v50, %v12757_v12  ;;  %v1423_v35 = vrot.slane %v1309_v6, 2  ;;  %v1545_v17 = vmul.f32 %v7362_v62, %v12725_v54 }
 0x16e   :  { %v1619_v46 = vmul.f32 %v7369_v59, %v12742_v1  ;;  %v12760_v2 = vrot.slane %v12759_v61, 1  ;;  %v1856_v50 = vmul.f32 %v7381_v52, %v12742_v1  ;;  %v509_v20 = vmul.f32 %v12727_v37, %v449_v60 }
 0x16f   :  { %v936_v43 = vadd.f32 %v858_v10, %v699_v23  ;;  %v12763_v34 = vrot.slane %v12762_v24, 2  ;;  %v1574_v54 = vadd.f32 %v1543_v51, %v1506_v11  ;;  %v746_v61 = vmul.f32 %v12728_v7, %v449_v60  ;;  %v12767_v24 = vld [vmem:[#allocation87_spill] sm:$0xff]  ;;  %v12768_v11 = vld [vmem:[#allocation109_spill] sm:$0xff] }
 0x170   :  { %v1179_v27 = vsel %vm571_vm1, %v12760_v2, %v1178_v63  ;;  %v1727_v18 = vrot.slane %v1619_v46, 1  ;;  %v1964_v10 = vrot.slane %v1856_v50, 2  ;;  %v622_v23 = vrot.slane %v509_v20, 1 }
 0x171   :  { %v1262_v6 = vadd.f32 %v1179_v27, %v12761_v44  ;;  %v1424_v12 = vsel %vm808_vm2, %v12763_v34, %v1423_v35  ;;  %v1014_v55 = vadd.f32 %v12764_v39, %v936_v43  ;;  %v12766_v33 = vrot.slane %v12765_v48, 1  ;;  %v12770_v43 = vld [vmem:[#allocation72_spill] sm:$0xff] }
 0x172   :  { %v1065_v4 = vmul.f32 %v12729_v42, %v449_v60  ;;  %v1310_v27 = vmul.f32 %v12732_v16, %v449_v60  ;;  %v12769_v51 = vrot.slane %v12768_v11, 2  ;;  %v623_v46 = vsel %vm571_vm1, %v620_v31, %v622_v23  ;;  %v12772_v31 = vld [vmem:[#allocation124_spill] sm:$0xff] }
 0x173   :  { %v1507_v2 = vadd.f32 %v1424_v12, %v1262_v6  ;;  %v1728_v1 = vsel %vm571_vm1, %v12766_v33, %v1727_v18  ;;  %v1264_v44 = vadd.f32 %v1184_v0, %v1014_v55  ;;  %v700_v20 = vadd.f32 %v623_v46, %v357_v47  ;;  %v12776_v46 = vld [vmem:[#allocation27_spill] sm:$0xff] }
 0x174   :  { %v1810_v34 = vadd.f32 %v1728_v1, %v12767_v24  ;;  %v1965_v39 = vsel %vm808_vm2, %v12769_v51, %v1964_v10  ;;  %v859_v6 = vrot.slane %v746_v61, 2  ;;  %v1180_v48 = vrot.slane %v1065_v4, 1  ;;  %v469_v61 = vpop.permute.xlu1 %468  ;;  %v12775_v51 = vld [vmem:[#allocation144_spill] sm:$0xff] }
 0x175   :  { %v1575_v50 = vadd.f32 %v12770_v43, %v1507_v2  ;;  %v1509_v33 = vadd.f32 %v7912_v25, %v1264_v44  ;;  %v1425_v5 = vrot.slane %v1310_v27, 2  ;;  %v1620_v55 = vmul.f32 %v7369_v59, %v449_v60 }
 0x176   :  { %v7998_v12 = vadd.f32 %v1965_v39, %v1810_v34  ;;  %v860_v1 = vsel %vm808_vm2, %v857_v21, %v859_v6  ;;  %v1181_v24 = vsel %vm571_vm1, %v1178_v63, %v1180_v48  ;;  %v1857_v11 = vmul.f32 %v7381_v52, %v449_v60  ;;  %v12774_v34 = vld [vmem:[#allocation139_spill] sm:$0xff] }
 0x177   :  { %v1812_v0 = vadd.f32 %v1733_v8, %v1575_v50  ;;  %v1577_v23 = vadd.f32 %v12772_v31, %v1509_v33  ;;  %v937_v2 = vadd.f32 %v860_v1, %v700_v20  ;;  %v1263_v47 = vadd.f32 %v1181_v24, %v1013_v49 }
 0x178   :  { %12771 = vst [vmem:[#allocation21_spill] sm:$0xff] %v7998_v12  ;;  %v1426_v4 = vsel %vm808_vm2, %v1423_v35, %v1425_v5  ;;  %v1729_v44 = vrot.slane %v1620_v55, 1  ;;  %v1966_v27 = vrot.slane %v1857_v11, 2  ;;  %v365_v8 = vmul.f32 %v12726_v53, %v12774_v34  ;;  %v12779_v11 = vld [vmem:[#allocation83_spill] sm:$0xff] }
 0x179   :  { %v8006_v25 = vadd.f32 %v1970_v26, %v1812_v0  ;;  %v1814_v21 = vadd.f32 %v12775_v51, %v1577_v23  ;;  %v1015_v39 = vadd.f32 %v983_v9, %v937_v2  ;;  %v1508_v63 = vadd.f32 %v1426_v4, %v1263_v47 }
 0x17a   :  { %v8013_v60 = vmul.f32 %v12727_v37, %v12774_v34  ;;  %v1730_v49 = vsel %vm571_vm1, %v1727_v18, %v1729_v44  ;;  %v1967_v5 = vsel %vm808_vm2, %v1964_v10, %v1966_v27  ;;  %v521_v26 = vmul.f32 %v12727_v37, %v469_v61  ;;  %v12781_v27 = vld [vmem:[#allocation30_spill] sm:$0xff] }
 0x17b   :  { %12773 = vst [vmem:[#allocation57_spill] sm:$0xff] %v8006_v25  ;;  %v8020_v35 = vmul.f32 %v12728_v7, %v12774_v34  ;;  %v8023_v43 = vadd.f32 %v12776_v46, %v1814_v21  ;;  %v1265_v9 = vadd.f32 %v7907_v29, %v1015_v39  ;;  %v1576_v50 = vadd.f32 %v1545_v17, %v1508_v63  ;;  %v12782_v39 = vld [vmem:[#allocation95_spill] sm:$0xff] }
 0x17c   :  { %v1811_v20 = vadd.f32 %v1730_v49, %v1574_v54  ;;  %v12131_v6 = vrot.slane %v8013_v60, 1  ;;  %v642_v48 = vrot.slane %v521_v26, 1  ;;  %v758_v18 = vmul.f32 %v12728_v7, %v469_v61 }
 0x17d   :  { %12777 = vst [vmem:[#allocation22_spill] sm:$0xff] %v8023_v43  ;;  %v12130_v10 = vrot.slane %v8020_v35, 2  ;;  %v1510_v33 = vadd.f32 %v7918_v57, %v1265_v9  ;;  %v1813_v55 = vadd.f32 %v7938_v19, %v1576_v50  ;;  %v1076_v1 = vmul.f32 %v12729_v42, %v12774_v34 }
 0x17e   :  { %v8031_v0 = vadd.f32 %v1967_v5, %v1811_v20  ;;  %v643_v29 = vsel %vm571_vm1, %v12131_v6, %v642_v48  ;;  %v879_v17 = vrot.slane %v758_v18, 2  ;;  %v1077_v54 = vmul.f32 %v12729_v42, %v469_v61  ;;  %v12784_v5 = vld [vmem:[#allocation97_spill] sm:$0xff]  ;;  %v12786_v20 = vld [vmem:[#allocation50_spill] sm:$0xff] }
 0x17f   :  { %v1321_v24 = vmul.f32 %v12732_v16, %v12774_v34  ;;  %v1578_v31 = vadd.f32 %v12779_v11, %v1510_v33  ;;  %v8043_v57 = vadd.f32 %v7944_v14, %v1813_v55  ;;  %v708_v19 = vadd.f32 %v643_v29, %v365_v8  ;;  %v12789_v11 = vld [vmem:[#allocation98_spill] sm:$0xff] }
 0x180   :  { %12778 = vst [vmem:[#allocation60_spill] sm:$0xff] %v8031_v0  ;;  %v1198_v23 = vrot.slane %v1076_v1, 1  ;;  %v880_v2 = vsel %vm808_vm2, %v12130_v10, %v879_v17  ;;  %v1200_v47 = vrot.slane %v1077_v54, 1  ;;  %v1322_v4 = vmul.f32 %v12732_v16, %v469_v61  ;;  %v12788_v17 = vld [vmem:[#allocation120_spill] sm:$0xff]  ;;  %v12802_v10 = vld [vmem:[#allocation31_spill] sm:$0xff] }
 0x181   :  { %12780 = vst [vmem:[#allocation19_spill] sm:$0xff] %v8043_v57  ;;  %v1443_v44 = vrot.slane %v1321_v24, 2  ;;  %v1815_v51 = vadd.f32 %v12781_v27, %v1578_v31  ;;  %v8050_v21 = vadd.f32 %v880_v2, %v708_v19  ;;  %v12783_v63 = vrot.slane %v12782_v39, 1  ;;  %v12805_v0 = vld [vmem:[#allocation96_spill] sm:$0xff] }
 0x182   :  { %v1631_v14 = vmul.f32 %v7369_v59, %v12774_v34  ;;  %v8058_v8 = vsel %vm571_vm1, %v1198_v23, %v1200_v47  ;;  %v12785_v26 = vrot.slane %v12784_v5, 2  ;;  %v1445_v9 = vrot.slane %v1322_v4, 2 }
 0x183   :  { %v1199_v49 = vsel %vm571_vm1, %v12783_v63, %v1198_v23  ;;  %v1632_v50 = vmul.f32 %v7369_v59, %v469_v61  ;;  %v8065_v48 = vadd.f32 %v12786_v20, %v1815_v51  ;;  %v1868_v33 = vmul.f32 %v7381_v52, %v12774_v34  ;;  %v12791_v51 = vld [vmem:[#allocation99_spill] sm:$0xff] }
 0x184   :  { %v1444_v46 = vsel %vm808_vm2, %v12785_v26, %v1443_v44  ;;  %v1747_v18 = vrot.slane %v1631_v14, 1  ;;  %v1869_v55 = vmul.f32 %v7381_v52, %v469_v61  ;;  %v8071_v1 = vsel %vm808_vm2, %v1443_v44, %v1445_v9  ;;  %v12793_v9 = vld [vmem:[#allocation125_spill] sm:$0xff] }
 0x185   :  { %12787 = vst [vmem:[#allocation75_spill] sm:$0xff] %v8065_v48  ;;  %v1749_v29 = vrot.slane %v1632_v50, 1  ;;  %v363_v54 = vmul.f32 %v12726_v53, %v12788_v17  ;;  %v517_v24 = vmul.f32 %v12727_v37, %v12788_v17  ;;  %v12790_v31 = vrot.slane %v12789_v11, 1  ;;  %v464_v11 = vpop.permute.xlu0 %463 }
 0x186   :  { %v1984_v23 = vrot.slane %v1868_v33, 2  ;;  %v1986_v2 = vrot.slane %v1869_v55, 2  ;;  %v754_v47 = vmul.f32 %v12728_v7, %v12788_v17  ;;  %v987_v44 = vmul.f32 %v12723_v40, %v12788_v17 }
 0x187   :  { %v1748_v19 = vsel %vm571_vm1, %v12790_v31, %v1747_v18  ;;  %v8083_v61 = vsel %vm571_vm1, %v1747_v18, %v1749_v29  ;;  %v635_v4 = vrot.slane %v517_v24, 1  ;;  %v989_v27 = vmul.f32 %v12723_v40, %v12774_v34  ;;  %v12795_v18 = vld [vmem:[#allocation44_spill] sm:$0xff]  ;;  %v12796_v29 = vld [vmem:[#allocation61_spill] sm:$0xff]  ;;  %v12797_v31 = vld [vmem:[#allocation126_spill] sm:$0xff] }
 0x188   :  { %v12792_v39 = vrot.slane %v12791_v51, 2  ;;  %v8093_v14 = vsel %vm808_vm2, %v1984_v23, %v1986_v2  ;;  %v872_v5 = vrot.slane %v754_v47, 2  ;;  %v1073_v26 = vmul.f32 %v12729_v42, %v12788_v17  ;;  %v12798_v2 = vld [vmem:[#allocation128_spill] sm:$0xff] }
 0x189   :  { %v12794_v50 = vrot.slane %v12793_v9, 1  ;;  %v1019_v33 = vadd.f32 %v987_v44, %v12795_v18  ;;  %v1318_v55 = vmul.f32 %v12732_v16, %v12788_v17  ;;  %v1512_v24 = vadd.f32 %v12796_v29, %v7932_v36 }
 0x18a   :  { %v1985_v63 = vsel %vm808_vm2, %v12792_v39, %v1984_v23  ;;  %v12799_v47 = vrot.slane %v12798_v2, 2  ;;  %v1193_v39 = vrot.slane %v1073_v26, 1  ;;  %v1549_v9 = vmul.f32 %v7362_v62, %v12788_v17 }
 0x18b   :  { %v636_v20 = vsel %vm571_vm1, %v12794_v50, %v635_v4  ;;  %v1438_v50 = vrot.slane %v1318_v55, 2  ;;  %v1551_v44 = vmul.f32 %v7362_v62, %v12774_v34  ;;  %v1628_v18 = vmul.f32 %v7369_v59, %v12788_v17  ;;  %v12803_v55 = vld [vmem:[#allocation131_spill] sm:$0xff] }
 0x18c   :  { %v705_v23 = vadd.f32 %v636_v20, %v12797_v31  ;;  %v873_v51 = vsel %vm808_vm2, %v12799_v47, %v872_v5  ;;  %v1865_v36 = vmul.f32 %v7381_v52, %v12788_v17  ;;  %v12800_v20 = vld [vmem:[#allocation129_spill] sm:$0xff]  ;;  %v1580_v47 = vadd.f32 %v1549_v9, %v1512_v24 }
 0x18d   :  { %v12801_v31 = vrot.slane %v12800_v20, 1  ;;  %v518_v26 = vmul.f32 %v12727_v37, %v464_v11  ;;  %v12804_v48 = vrot.slane %v12803_v55, 2  ;;  %v1742_v34 = vrot.slane %v1628_v18, 1  ;;  %v12806_v20 = vld [vmem:[#allocation132_spill] sm:$0xff]  ;;  %v12808_v9 = vld [vmem:[#allocation133_spill] sm:$0xff] }
 0x18e   :  { %v942_v29 = vadd.f32 %v873_v51, %v705_v23  ;;  %v1979_v57 = vrot.slane %v1865_v36, 2  ;;  %v755_v17 = vmul.f32 %v12728_v7, %v464_v11  ;;  %v1074_v23 = vmul.f32 %v12729_v42, %v464_v11 }
 0x18f   :  { %v1194_v2 = vsel %vm571_vm1, %v12801_v31, %v1193_v39  ;;  %v1439_v62 = vsel %vm808_vm2, %v12804_v48, %v1438_v50  ;;  %v637_v56 = vrot.slane %v518_v26, 1  ;;  %v12807_v24 = vrot.slane %v12806_v20, 1 }
 0x190   :  { %v1268_v6 = vadd.f32 %v1194_v2, %v12802_v10  ;;  %v1020_v38 = vadd.f32 %v12805_v0, %v942_v29  ;;  %v12809_v10 = vrot.slane %v12808_v9, 2  ;;  %v1319_v48 = vmul.f32 %v12732_v16, %v464_v11  ;;  %v12810_v2 = vld [vmem:[#allocation100_spill] sm:$0xff] }
 0x191   :  { %v1743_v37 = vsel %vm571_vm1, %v12807_v24, %v1742_v34  ;;  %v638_v0 = vsel %vm571_vm1, %v635_v4, %v637_v56  ;;  %v874_v29 = vrot.slane %v755_v17, 2  ;;  %v1629_v9 = vmul.f32 %v7369_v59, %v464_v11  ;;  %v12812_v56 = vld [vmem:[#allocation136_spill] sm:$0xff] }
 0x192   :  { %v1513_v51 = vadd.f32 %v1439_v62, %v1268_v6  ;;  %v1980_v31 = vsel %vm808_vm2, %v12809_v10, %v1979_v57  ;;  %v1270_v18 = vadd.f32 %v1199_v49, %v1020_v38  ;;  %v1816_v36 = vadd.f32 %v1743_v37, %v7964_v13 }
 0x193   :  { %v706_v42 = vadd.f32 %v638_v0, %v363_v54  ;;  %v1195_v6 = vrot.slane %v1074_v23, 1  ;;  %v1440_v55 = vrot.slane %v1319_v48, 2  ;;  %v875_v24 = vsel %vm808_vm2, %v872_v5, %v874_v29 }
 0x194   :  { %v1581_v26 = vadd.f32 %v12810_v2, %v1513_v51  ;;  %v1515_v62 = vadd.f32 %v1444_v46, %v1270_v18  ;;  %v8138_v20 = vadd.f32 %v1980_v31, %v1816_v36  ;;  %v1744_v17 = vrot.slane %v1629_v9, 1  ;;  %v12814_v51 = vld [vmem:[#allocation90_spill] sm:$0xff]  ;;  %v957_v36 = vpop.permute.xlu1 %956 }
 0x195   :  { %v943_v41 = vadd.f32 %v875_v24, %v706_v42  ;;  %v1196_v38 = vsel %vm571_vm1, %v1193_v39, %v1195_v6  ;;  %v1441_v13 = vsel %vm808_vm2, %v1438_v50, %v1440_v55  ;;  %v1866_v54 = vmul.f32 %v7381_v52, %v464_v11  ;;  %v12816_v52 = vld [vmem:[#allocation25_spill] sm:$0xff] }
 0x196   :  { %12811 = vst [vmem:[#allocation119_spill] sm:$0xff] %v8138_v20  ;;  %v1818_v10 = vadd.f32 %v1748_v19, %v1581_v26  ;;  %v1583_v49 = vadd.f32 %v12812_v56, %v1515_v62  ;;  %v1269_v4 = vadd.f32 %v1196_v38, %v1019_v33  ;;  %v367_v5 = vmul.f32 %v12726_v53, %v12814_v51  ;;  %v12815_v19 = vld [vmem:[#allocation118_spill] sm:$0xff]  ;;  %v8181_v26 = vld [vmem:[%s12003_s1 + $0x6] ss:$0 sm:$0xff]  ;;  %v8189_v42 = vld [vmem:[%s12003_s1 + $0x7] ss:$0 sm:$0xff] }
 0x197   :  { %v1021_v46 = vadd.f32 %v989_v27, %v943_v41  ;;  %v8152_v59 = vmul.f32 %v12728_v7, %v12814_v51  ;;  %v1745_v50 = vsel %vm571_vm1, %v1742_v34, %v1744_v17  ;;  %v1981_v31 = vrot.slane %v1866_v54, 2  ;;  %v12817_v27 = vld [vmem:[#allocation14_spill] sm:$0xff]  ;;  %v8199_v62 = vld [vmem:[%s12003_s1 + $0x8] ss:$0 sm:$0xff]  ;;  %v5820_v56 = vld [vmem:[%s12003_s1 + $0x4] ss:$0 sm:$0xff] }
 0x198   :  { %v8146_v23 = vadd.f32 %v1985_v63, %v1818_v10  ;;  %v1820_v39 = vadd.f32 %v12815_v19, %v1583_v49  ;;  %v1514_v37 = vadd.f32 %v1441_v13, %v1269_v4  ;;  %v1817_v48 = vadd.f32 %v1745_v50, %v1580_v47  ;;  %v12824_v4 = vld [vmem:[#allocation121_spill] sm:$0xff] }
 0x199   :  { %v1271_v33 = vadd.f32 %v8058_v8, %v1021_v46  ;;  %v710_v63 = vadd.f32 %v12816_v52, %v367_v5  ;;  %v882_v41 = vrot.slane %v8152_v59, 2  ;;  %v1982_v7 = vsel %vm808_vm2, %v1979_v57, %v1981_v31  ;;  %v12820_v8 = vld [vmem:[#allocation34_spill] sm:$0xff]  ;;  %v12825_v54 = vld [vmem:[#allocation29_spill] sm:$0xff] }
 0x19a   :  { %12813 = vst [vmem:[#allocation88_spill] sm:$0xff] %v8146_v23  ;;  %v8160_v11 = vadd.f32 %v12817_v27, %v1820_v39  ;;  %v1582_v53 = vadd.f32 %v1551_v44, %v1514_v37  ;;  %v991_v18 = vmul.f32 %v12723_v40, %v12814_v51  ;;  %v8166_v0 = vadd.f32 %v1982_v7, %v1817_v48  ;;  %v5821_v39 = vld [vmem:[%s12003_s1 + $0x5] ss:$0 sm:$0xff]  ;;  %v12828_v31 = vld [vmem:[#allocation122_spill] sm:$0xff]  ;;  %v12830_v27 = vld [vmem:[#allocation127_spill] sm:$0xff] }
 0x19b   :  { %v1516_v34 = vadd.f32 %v8071_v1, %v1271_v33  ;;  %v12821_v47 = vrot.slane %v12820_v8, 2  ;;  %v8175_v2 = vmul.f32 %v12732_v16, %v12814_v51  ;;  %v8184_v1 = vmul.f32 0.0, %v8181_v26  ;;  %v12822_v16 = vld [vmem:[#allocation110_spill] sm:$0xff] }
 0x19c   :  { %12818 = vst [vmem:[#allocation89_spill] sm:$0xff] %v8160_v11  ;;  %v1819_v57 = vadd.f32 %v8083_v61, %v1582_v53  ;;  %v8192_v6 = vmul.f32 0.0, %v8189_v42  ;;  %v8202_v24 = vmul.f32 0.0, %v8199_v62  ;;  %v993_v9 = vmul.f32 %v12723_v40, %v957_v36 }
 0x19d   :  { %12819 = vst [vmem:[#allocation81_spill] sm:$0xff] %v8166_v0  ;;  %v885_v29 = vsel %vm808_vm2, %v882_v41, %v12821_v47  ;;  %v1584_v55 = vadd.f32 %v12822_v16, %v1516_v34  ;;  %v1448_v61 = vrot.slane %v8175_v2, 2  ;;  %v1023_v13 = vadd.f32 %v991_v18, %v8050_v21  ;;  %v12827_v21 = vld [vmem:[#allocation53_spill] sm:$0xff]  ;;  %v5823_v47 = vld [vmem:[%s12003_s1 + $0x1] ss:$0 sm:$0xff] }
 0x19e   :  { %v947_v44 = vadd.f32 %v885_v29, %v710_v63  ;;  %v8206_v10 = vadd.f32 %v8093_v14, %v1819_v57  ;;  %v1761_v38 = vrot.slane %v8192_v6, 1  ;;  %v8213_v49 = vmul.f32 %v5820_v56, %v957_v36  ;;  %v5822_v63 = vld [vmem:[%s12003_s1] ss:$0 sm:$0xff] }
 0x19f   :  { %v1821_v17 = vadd.f32 %v12824_v4, %v1584_v55  ;;  %v12826_v46 = vrot.slane %v12825_v54, 2  ;;  %v1998_v14 = vrot.slane %v8202_v24, 2  ;;  %v1273_v19 = vadd.f32 %v12827_v21, %v1023_v13  ;;  %v12833_v55 = vld [vmem:[#allocation91_spill] sm:$0xff]  ;;  %v12836_v54 = vld [vmem:[#allocation93_spill] sm:$0xff] }
 0x1a0   :  { %12823 = vst [vmem:[#allocation38_spill] sm:$0xff] %v8206_v10  ;;  %v1025_v51 = vadd.f32 %v993_v9, %v947_v44  ;;  %v1208_v5 = vrot.slane %v8213_v49, 1  ;;  %v1327_v37 = vmul.f32 %v5821_v39, %v957_v36  ;;  %v1555_v50 = vmul.f32 %v8181_v26, %v957_v36 }
 0x1a1   :  { %v1451_v40 = vsel %vm808_vm2, %v1448_v61, %v12826_v46  ;;  %v8229_v33 = vadd.f32 %v12828_v31, %v1821_v17  ;;  %v8232_v48 = vmul.f32 %v8189_v42, %v957_v36  ;;  %v8235_v52 = vmul.f32 %v8199_v62, %v957_v36  ;;  %v953_v31 = vpop.permute.xlu0 %952 }
 0x1a2   :  { %v366_v53 = vmul.f32 %v5822_v63, %v12830_v27  ;;  %v12831_v7 = vrot.slane %v7655_v3, 1  ;;  %v1453_v34 = vrot.slane %v1327_v37, 2  ;;  %v1518_v8 = vadd.f32 %v1451_v40, %v1273_v19  ;;  %v5824_v37 = vld [vmem:[%s12003_s1 + $0x2] ss:$0 sm:$0xff] }
 0x1a3   :  { %12829 = vst [vmem:[#allocation47_spill] sm:$0xff] %v8229_v33  ;;  %v522_v29 = vmul.f32 %v5823_v47, %v12830_v27  ;;  %v1757_v57 = vrot.slane %v8232_v48, 1  ;;  %v1994_v44 = vrot.slane %v8235_v52, 2  ;;  %v12832_v16 = vrot.slane %v8013_v60, 1  ;;  %v12839_v48 = vld [vmem:[#allocation45_spill] sm:$0xff] }
 0x1a4   :  { %v1211_v18 = vsel %vm571_vm1, %v1208_v5, %v12831_v7  ;;  %v12834_v9 = vrot.slane %v12833_v55, 1  ;;  %v12835_v13 = vrot.slane %v7665_v22, 2  ;;  %v1586_v4 = vadd.f32 %v1555_v50, %v1518_v8  ;;  %v12842_v7 = vld [vmem:[#allocation94_spill] sm:$0xff]  ;;  %v5825_v8 = vld [vmem:[%s12003_s1 + $0x3] ss:$0 sm:$0xff] }
 0x1a5   :  { %v1275_v36 = vadd.f32 %v1211_v18, %v1025_v51  ;;  %v644_v17 = vrot.slane %v522_v29, 1  ;;  %v12837_v51 = vrot.slane %v7668_v58, 1  ;;  %v12838_v19 = vrot.slane %v12713_v32, 2 }
 0x1a6   :  { %v641_v3 = vsel %vm571_vm1, %v12834_v9, %v12832_v16  ;;  %v1456_v49 = vsel %vm808_vm2, %v1453_v34, %v12835_v13  ;;  %v759_v22 = vmul.f32 %v5824_v37, %v12830_v27  ;;  %v12840_v52 = vrot.slane %v12839_v48, 1  ;;  %v12846_v37 = vld [vmem:[#allocation12_spill] sm:$0xff] }
 0x1a7   :  { %v707_v46 = vadd.f32 %v641_v3, %v12836_v54  ;;  %v1520_v40 = vadd.f32 %v1456_v49, %v1275_v36  ;;  %v1760_v21 = vsel %vm571_vm1, %v1757_v57, %v12837_v51  ;;  %v1997_v60 = vsel %vm808_vm2, %v1994_v44, %v12838_v19 }
 0x1a8   :  { %v1823_v50 = vadd.f32 %v1760_v21, %v1586_v4  ;;  %v646_v63 = vsel %vm571_vm1, %v644_v17, %v12840_v52  ;;  %v12841_v58 = vrot.slane %v8020_v35, 2  ;;  %v12843_v18 = vrot.slane %v12842_v7, 2 }
 0x1a9   :  { %v990_v47 = vmul.f32 %v5825_v8, %v12830_v27  ;;  %v1588_v29 = vadd.f32 %v8184_v1, %v1520_v40  ;;  %v709_v36 = vadd.f32 %v646_v63, %v366_v53  ;;  %v881_v16 = vrot.slane %v759_v22, 2 }
 0x1aa   :  { %v878_v32 = vsel %vm808_vm2, %v12843_v18, %v12841_v58  ;;  %v8282_v9 = vadd.f32 %v1997_v60, %v1823_v50  ;;  %v1078_v3 = vmul.f32 %v5820_v56, %v12830_v27  ;;  %v1323_v35 = vmul.f32 %v5821_v39, %v12830_v27 }
 0x1ab   :  { %v944_v55 = vadd.f32 %v878_v32, %v707_v46  ;;  %v992_v13 = vmul.f32 %v5825_v8, %v953_v31  ;;  %v1825_v49 = vadd.f32 %v1761_v38, %v1588_v29  ;;  %v883_v4 = vsel %vm808_vm2, %v881_v16, %v882_v41  ;;  %v12848_v32 = vld [vmem:[#allocation23_spill] sm:$0xff] }
 0x1ac   :  { %12844 = vst [vmem:[#allocation39_spill] sm:$0xff] %v8282_v9  ;;  %v1081_v54 = vmul.f32 %v5820_v56, %v953_v31  ;;  %v946_v40 = vadd.f32 %v883_v4, %v709_v36  ;;  %v1202_v53 = vrot.slane %v1078_v3, 1  ;;  %v1447_v51 = vrot.slane %v1323_v35, 2  ;;  %v12851_v36 = vld [vmem:[#allocation13_spill] sm:$0xff] }
 0x1ad   :  { %v1022_v17 = vadd.f32 %v990_v47, %v944_v55  ;;  %v1326_v46 = vmul.f32 %v5821_v39, %v953_v31  ;;  %v8293_v21 = vadd.f32 %v1998_v14, %v1825_v49  ;;  %v1554_v27 = vmul.f32 %v8181_v26, %v953_v31  ;;  %v12850_v47 = vld [vmem:[#allocation74_spill] sm:$0xff] }
 0x1ae   :  { %v1207_v19 = vrot.slane %v1081_v54, 1  ;;  %v1636_v60 = vmul.f32 %v8189_v42, %v953_v31  ;;  %v12847_v22 = vrot.slane %v12846_v37, 1  ;;  %v1449_v41 = vsel %vm808_vm2, %v1447_v51, %v1448_v61  ;;  %v12852_v55 = vld [vmem:[#allocation86_spill] sm:$0xff] }
 0x1af   :  { %12845 = vst [vmem:[#allocation26_spill] sm:$0xff] %v8293_v21  ;;  %v1024_v56 = vadd.f32 %v992_v13, %v946_v40  ;;  %v1452_v50 = vrot.slane %v1326_v46, 2  ;;  %v1873_v63 = vmul.f32 %v8199_v62, %v953_v31  ;;  %v2244_v62 = vrot.slane %v12848_v32, 5 }
 0x1b0   :  { %v1204_v59 = vsel %vm571_vm1, %v1202_v53, %v12847_v22  ;;  %v1209_v48 = vsel %vm571_vm1, %v1207_v19, %v1208_v5  ;;  %v1756_v52 = vrot.slane %v1636_v60, 1  ;;  %v2247_v29 = vrot.slane %v12850_v47, 3 }
 0x1b1   :  { %v1272_v39 = vadd.f32 %v1204_v59, %v1022_v17  ;;  %v1274_v58 = vadd.f32 %v1209_v48, %v1024_v56  ;;  %v1454_v26 = vsel %vm808_vm2, %v1452_v50, %v1453_v34  ;;  %v1993_v18 = vrot.slane %v1873_v63, 2  ;;  %v12849_v34 = vld [vmem:[#allocation28_spill] sm:$0xff] }
 0x1b2   :  { %v1758_v7 = vsel %vm571_vm1, %v1756_v52, %v1757_v57  ;;  %v2245_v8 = vrot.slane %v12849_v34, 4  ;;  %v2249_v57 = vrot.slane %v12851_v36, 2  ;;  %v2251_v3 = vrot.slane %v12852_v55, 1 }
 0x1b3   :  { %v1517_v42 = vadd.f32 %v1449_v41, %v1272_v39  ;;  %v1519_v2 = vadd.f32 %v1454_v26, %v1274_v58  ;;  %v1995_v5 = vsel %vm808_vm2, %v1993_v18, %v1994_v44  ;;  %v2254_v35 = vrot.slane %v7816_v30, 7 }
 0x1b4   :  { %v2256_v13 = vrot.slane %v7841_v28, 6  ;;  %v2246_v49 = vsel %vm2080_vm3, %v2245_v8, %v2244_v62  ;;  %v2259_v4 = vrot.slane %v8006_v25, 4  ;;  %v2261_v40 = vrot.slane %v8023_v43, 3 }
 0x1b5   :  { %v1585_v61 = vadd.f32 %v1554_v27, %v1517_v42  ;;  %v1587_v31 = vadd.f32 %v8184_v1, %v1519_v2  ;;  %v2258_v1 = vrot.slane %v7998_v12, 5  ;;  %v2248_v54 = vsel %vm2083_vm4, %v2247_v29, %v2246_v49 }
 0x1b6   :  { %v2263_v53 = vrot.slane %v8138_v20, 2  ;;  %v2250_v6 = vsel %vm2086_vm5, %v2249_v57, %v2248_v54  ;;  %v2265_v46 = vrot.slane %v8146_v23, 1  ;;  %v2180_v37 = vrot.slane %v12848_v32, 3 }
 0x1b7   :  { %v1822_v16 = vadd.f32 %v1758_v7, %v1585_v61  ;;  %v1824_v44 = vadd.f32 %v1761_v38, %v1587_v31  ;;  %v2260_v38 = vsel %vm2080_vm3, %v2259_v4, %v2258_v1  ;;  %v2252_v19 = vsel %vm2089_vm6, %v2251_v3, %v2250_v6 }
 0x1b8   :  { %v2262_v27 = vsel %vm2083_vm4, %v2261_v40, %v2260_v38  ;;  %v2253_v22 = vsel %vm2092_vm7, %v7808_v15, %v2252_v19  ;;  %v2181_v59 = vrot.slane %v12849_v34, 2  ;;  %v2183_v50 = vrot.slane %v12850_v47, 1 }
 0x1b9   :  { %v8321_v17 = vadd.f32 %v1995_v5, %v1822_v16  ;;  %v8328_v51 = vadd.f32 %v1998_v14, %v1824_v44  ;;  %v2264_v24 = vsel %vm2086_vm5, %v2263_v53, %v2262_v27  ;;  %v2255_v41 = vsel %vm2095_vm8, %v2254_v35, %v2253_v22 }
 0x1ba   :  { %v2266_v56 = vsel %vm2089_vm6, %v2265_v46, %v2264_v24  ;;  %v2186_v39 = vrot.slane %v12852_v55, 7  ;;  %v2257_v48 = vsel %vm2098_vm9, %v2256_v13, %v2255_v41  ;;  %v2182_v63 = vsel %vm2080_vm3, %v2181_v59, %v2180_v37 }
 0x1bb   :  { %12853 = vst [vmem:[#allocation36_spill] sm:$0xff] %v8321_v17  ;;  %v2268_v60 = vrot.slane %v8321_v17, 7  ;;  %v2270_v14 = vrot.slane %v8328_v51, 6  ;;  %v2267_v52 = vsel %vm2092_vm7, %v8160_v11, %v2266_v56  ;;  %v2188_v58 = vrot.slane %v7808_v15, 6 }
 0x1bc   :  { %12854 = vst [vmem:[#allocation101_spill] sm:$0xff] %v8328_v51  ;;  %v2184_v42 = vsel %vm2083_vm4, %v2183_v50, %v2182_v63  ;;  %v2190_v7 = vrot.slane %v7816_v30, 5  ;;  %v2192_v18 = vrot.slane %v7841_v28, 4  ;;  %v2194_v5 = vrot.slane %v7998_v12, 3 }
 0x1bd   :  { %v2269_v26 = vsel %vm2095_vm8, %v2268_v60, %v2267_v52  ;;  %v2185_v61 = vsel %vm2086_vm5, %v12851_v36, %v2184_v42  ;;  %v2195_v62 = vrot.slane %v8006_v25, 2  ;;  %v2197_v29 = vrot.slane %v8023_v43, 1 }
 0x1be   :  { %v2271_v2 = vsel %vm2098_vm9, %v2270_v14, %v2269_v26  ;;  %v2187_v8 = vsel %vm2089_vm6, %v2186_v39, %v2185_v61  ;;  %v2200_v57 = vrot.slane %v8146_v23, 7  ;;  %v2202_v35 = vrot.slane %v8160_v11, 6 }
 0x1bf   :  { %v5720_v31 = vpack.i.bf16 %v2271_v2, %v2257_v48  ;;  %v2189_v16 = vsel %vm2092_vm7, %v2188_v58, %v2187_v8  ;;  %v2196_v3 = vsel %vm2080_vm3, %v2195_v62, %v2194_v5  ;;  %v2204_v13 = vrot.slane %v8321_v17, 5 }
 0x1c0   :  { %v2191_v44 = vsel %vm2095_vm8, %v2190_v7, %v2189_v16  ;;  %v2198_v49 = vsel %vm2083_vm4, %v2197_v29, %v2196_v3  ;;  %v2206_v1 = vrot.slane %v8328_v51, 4  ;;  %v2116_v4 = vrot.slane %v12848_v32, 1  ;;  %v12856_v29 = vld [vmem:[#allocation15_spill] sm:$0xff] }
 0x1c1   :  { %5721 = vrot.lane.b32.xlu2 %v5720_v31, %s5920_s5  ;;  %v2193_v54 = vsel %vm2098_vm9, %v2192_v18, %v2191_v44  ;;  %v2199_v40 = vsel %vm2086_vm5, %v8138_v20, %v2198_v49  ;;  %v2118_v53 = vrot.slane %v12850_v47, 7  ;;  %v2120_v6 = vrot.slane %v12851_v36, 6  ;;  %v12855_v31 = vld [vmem:[#allocation10_spill] sm:$0xff]  ;;  %v12858_v44 = vld [vmem:[#allocation55_spill] sm:$0xff] }
 0x1c2   :  { %v2201_v38 = vsel %vm2089_vm6, %v2200_v57, %v2199_v40  ;;  %v2117_v46 = vsel %vm2080_vm3, %v12849_v34, %v2116_v4  ;;  %v2122_v19 = vrot.slane %v12852_v55, 5  ;;  %v2124_v27 = vrot.slane %v7808_v15, 4 }
 0x1c3   :  { %v2203_v60 = vsel %vm2092_vm7, %v2202_v35, %v2201_v38  ;;  %v2119_v37 = vsel %vm2083_vm4, %v2118_v53, %v2117_v46  ;;  %v2126_v22 = vrot.slane %v7816_v30, 3  ;;  %v2128_v24 = vrot.slane %v7841_v28, 2  ;;  %v12857_v35 = vld [vmem:[#allocation54_spill] sm:$0xff]  ;;  %v12860_v53 = vld [vmem:[#allocation56_spill] sm:$0xff] }
 0x1c4   :  { %v2205_v14 = vsel %vm2095_vm8, %v2204_v13, %v2203_v60  ;;  %v2121_v59 = vsel %vm2086_vm5, %v2120_v6, %v2119_v37  ;;  %v2130_v41 = vrot.slane %v7998_v12, 1  ;;  %v2132_v56 = vrot.slane %v8023_v43, 7  ;;  %v12862_v60 = vld [vmem:[#allocation19_spill] sm:$0xff] }
 0x1c5   :  { %v2207_v50 = vsel %vm2098_vm9, %v2206_v1, %v2205_v14  ;;  %v2123_v39 = vsel %vm2089_vm6, %v2122_v19, %v2121_v59  ;;  %v2134_v48 = vrot.slane %v8138_v20, 6  ;;  %v2136_v52 = vrot.slane %v8146_v23, 5  ;;  %v12861_v19 = vld [vmem:[#allocation60_spill] sm:$0xff]  ;;  %v12864_v59 = vld [vmem:[#allocation75_spill] sm:$0xff] }
 0x1c6   :  { %v5715_v63 = vpack.i.bf16 %v2207_v50, %v2193_v54  ;;  %v2125_v58 = vsel %vm2092_vm7, %v2124_v27, %v2123_v39  ;;  %v2131_v26 = vsel %vm2080_vm3, %v8006_v25, %v2130_v41  ;;  %v2138_v42 = vrot.slane %v8160_v11, 4  ;;  %v12859_v54 = vld [vmem:[#allocation46_spill] sm:$0xff] }
 0x1c7   :  { %v2127_v7 = vsel %vm2095_vm8, %v2126_v22, %v2125_v58  ;;  %v2133_v18 = vsel %vm2083_vm4, %v2132_v56, %v2131_v26  ;;  %v2140_v2 = vrot.slane %v8321_v17, 3  ;;  %v2142_v61 = vrot.slane %v8328_v51, 2 }
 0x1c8   :  { %5716 = vrot.lane.b32.xlu1 %v5715_v63, %s5920_s5  ;;  %v2129_v5 = vsel %vm2098_vm9, %v2128_v24, %v2127_v7  ;;  %v2135_v62 = vsel %vm2086_vm5, %v2134_v48, %v2133_v18  ;;  %v2452_v8 = vrot.slane %v12855_v31, 3  ;;  %v2453_v57 = vrot.slane %v12856_v29, 2  ;;  %v12863_v24 = vld [vmem:[#allocation59_spill] sm:$0xff] }
 0x1c9   :  { %v2137_v16 = vsel %vm2089_vm6, %v2136_v52, %v2135_v62  ;;  %v2455_v3 = vrot.slane %v7851_v45, 1  ;;  %v2458_v13 = vrot.slane %v12857_v35, 7  ;;  %v2460_v49 = vrot.slane %v12858_v44, 6 }
 0x1ca   :  { %v2139_v1 = vsel %vm2092_vm7, %v2138_v42, %v2137_v16  ;;  %v2454_v4 = vsel %vm2080_vm3, %v2453_v57, %v2452_v8  ;;  %v2462_v40 = vrot.slane %v12859_v54, 5  ;;  %v2464_v6 = vrot.slane %v12860_v53, 4 }
 0x1cb   :  { %v2141_v38 = vsel %vm2095_vm8, %v2140_v2, %v2139_v1  ;;  %v2456_v46 = vsel %vm2083_vm4, %v2455_v3, %v2454_v4  ;;  %v2466_v27 = vrot.slane %v12861_v19, 3  ;;  %v2467_v37 = vrot.slane %v12862_v60, 2 }
 0x1cc   :  { %v2143_v22 = vsel %vm2098_vm9, %v2142_v61, %v2141_v38  ;;  %v2457_v14 = vsel %vm2086_vm5, %v12863_v24, %v2456_v46  ;;  %v2469_v41 = vrot.slane %v12864_v59, 1  ;;  %v2472_v56 = vrot.slane %v8206_v10, 7 }
 0x1cd   :  { %v5710_v50 = vpack.i.bf16 %v2143_v22, %v2129_v5  ;;  %v2459_v39 = vsel %vm2089_vm6, %v2458_v13, %v2457_v14  ;;  %v2468_v48 = vsel %vm2080_vm3, %v2467_v37, %v2466_v27  ;;  %v2474_v52 = vrot.slane %v8229_v33, 6 }
 0x1ce   :  { %v2461_v63 = vsel %vm2092_vm7, %v2460_v49, %v2459_v39  ;;  %v2470_v58 = vsel %vm2083_vm4, %v2469_v41, %v2468_v48  ;;  %v2476_v26 = vrot.slane %v8282_v9, 5  ;;  %v2478_v42 = vrot.slane %v8293_v21, 4 }
 0x1cf   :  { %5711 = vrot.lane.b32.xlu0 %v5710_v50, %s5920_s5  ;;  %v2463_v7 = vsel %vm2095_vm8, %v2462_v40, %v2461_v63  ;;  %v2471_v18 = vsel %vm2086_vm5, %v8166_v0, %v2470_v58  ;;  %v2388_v2 = vrot.slane %v12855_v31, 1  ;;  %v2390_v61 = vrot.slane %v7851_v45, 7 }
 0x1d0   :  { %v2465_v5 = vsel %vm2098_vm9, %v2464_v6, %v2463_v7  ;;  %v2473_v62 = vsel %vm2089_vm6, %v2472_v56, %v2471_v18  ;;  %v2392_v8 = vrot.slane %v12863_v24, 6  ;;  %v2394_v57 = vrot.slane %v12857_v35, 5 }
 0x1d1   :  { %v2475_v16 = vsel %vm2092_vm7, %v2474_v52, %v2473_v62  ;;  %v2389_v3 = vsel %vm2080_vm3, %v12856_v29, %v2388_v2  ;;  %v2396_v13 = vrot.slane %v12858_v44, 4  ;;  %v2398_v49 = vrot.slane %v12859_v54, 3 }
 0x1d2   :  { %v2477_v1 = vsel %vm2095_vm8, %v2476_v26, %v2475_v16  ;;  %v2391_v4 = vsel %vm2083_vm4, %v2390_v61, %v2389_v3  ;;  %v2400_v40 = vrot.slane %v12860_v53, 2  ;;  %v2402_v6 = vrot.slane %v12861_v19, 1 }
 0x1d3   :  { %v2479_v38 = vsel %vm2098_vm9, %v2478_v42, %v2477_v1  ;;  %v2393_v46 = vsel %vm2086_vm5, %v2392_v8, %v2391_v4  ;;  %v2404_v27 = vrot.slane %v12864_v59, 7  ;;  %v2406_v37 = vrot.slane %v8166_v0, 6 }
 0x1d4   :  { %v5735_v22 = vpack.i.bf16 %v2479_v38, %v2465_v5  ;;  %v2395_v14 = vsel %vm2089_vm6, %v2394_v57, %v2393_v46  ;;  %v2403_v41 = vsel %vm2080_vm3, %v12862_v60, %v2402_v6  ;;  %v2408_v56 = vrot.slane %v8206_v10, 5  ;;  %v8486_v38 = vld [vmem:[%s12002_s0 + $0x110] sm:$0xff]  ;;  %v8491_v46 = vld [vmem:[%s12002_s0 + $0x118] sm:$0xff] }
 0x1d5   :  { %v2397_v50 = vsel %vm2092_vm7, %v2396_v13, %v2395_v14  ;;  %v2405_v39 = vsel %vm2083_vm4, %v2404_v27, %v2403_v41  ;;  %v2410_v48 = vrot.slane %v8229_v33, 4  ;;  %v2412_v52 = vrot.slane %v8282_v9, 3  ;;  %12865 = vst [vmem:[#allocation40_spill] sm:$0xff] %v8491_v46 }
 0x1d6   :  { %5736 = vrot.lane.b32.xlu2 %v5735_v22, %s5920_s5  ;;  %v2399_v63 = vsel %vm2095_vm8, %v2398_v49, %v2397_v50  ;;  %v2407_v58 = vsel %vm2086_vm5, %v2406_v37, %v2405_v39  ;;  %v2414_v26 = vrot.slane %v8293_v21, 2  ;;  %v2308_v42 = vrot.slane %v12848_v32, 7 }
 0x1d7   :  { %v2401_v7 = vsel %vm2098_vm9, %v2400_v40, %v2399_v63  ;;  %v2409_v18 = vsel %vm2089_vm6, %v2408_v56, %v2407_v58  ;;  %v2309_v2 = vrot.slane %v12849_v34, 6  ;;  %v2311_v61 = vrot.slane %v12850_v47, 5 }
 0x1d8   :  { %v2411_v5 = vsel %vm2092_vm7, %v2410_v48, %v2409_v18  ;;  %v2313_v62 = vrot.slane %v12851_v36, 4  ;;  %v2315_v8 = vrot.slane %v12852_v55, 3  ;;  %v2317_v57 = vrot.slane %v7808_v15, 2 }
 0x1d9   :  { %v2413_v16 = vsel %vm2095_vm8, %v2412_v52, %v2411_v5  ;;  %v2310_v3 = vsel %vm2080_vm3, %v2309_v2, %v2308_v42  ;;  %v2319_v13 = vrot.slane %v7816_v30, 1  ;;  %v2322_v49 = vrot.slane %v7998_v12, 7 }
 0x1da   :  { %v2415_v1 = vsel %vm2098_vm9, %v2414_v26, %v2413_v16  ;;  %v2312_v4 = vsel %vm2083_vm4, %v2311_v61, %v2310_v3  ;;  %v2323_v40 = vrot.slane %v8006_v25, 6  ;;  %v2325_v6 = vrot.slane %v8023_v43, 5 }
 0x1db   :  { %v5730_v27 = vpack.i.bf16 %v2415_v1, %v2401_v7  ;;  %v2314_v37 = vsel %vm2086_vm5, %v2313_v62, %v2312_v4  ;;  %v2327_v22 = vrot.slane %v8138_v20, 4  ;;  %v2329_v14 = vrot.slane %v8146_v23, 3 }
 0x1dc   :  { %v2316_v41 = vsel %vm2089_vm6, %v2315_v8, %v2314_v37  ;;  %v2324_v56 = vsel %vm2080_vm3, %v2323_v40, %v2322_v49  ;;  %v2331_v50 = vrot.slane %v8160_v11, 2  ;;  %v2333_v39 = vrot.slane %v8321_v17, 1 }
 0x1dd   :  { %5731 = vrot.lane.b32.xlu1 %v5730_v27, %s5920_s5  ;;  %v2318_v48 = vsel %vm2092_vm7, %v2317_v57, %v2316_v41  ;;  %v2326_v52 = vsel %vm2083_vm4, %v2325_v6, %v2324_v56  ;;  %v2887_v63 = vrot.slane %v8486_v38, 7  ;;  %v12141_v58 = vrot.slane %v8491_v46, 7 }
 0x1de   :  { %v2320_v26 = vsel %vm2095_vm8, %v2319_v13, %v2318_v48  ;;  %v2328_v42 = vsel %vm2086_vm5, %v2327_v22, %v2326_v52  ;;  %v2580_v7 = vrot.slane %v12855_v31, 7  ;;  %v2581_v18 = vrot.slane %v12856_v29, 6 }
 0x1df   :  { %v2321_v2 = vsel %vm2098_vm9, %v7841_v28, %v2320_v26  ;;  %v2330_v61 = vsel %vm2089_vm6, %v2329_v14, %v2328_v42  ;;  %v2889_v5 = vsel %vm80_vm0, %v2887_v63, %v12141_v58  ;;  %v2583_v62 = vrot.slane %v7851_v45, 5 }
 0x1e0   :  { %v2332_v8 = vsel %vm2092_vm7, %v2331_v50, %v2330_v61  ;;  %3012 = vperm.xlu2 %5709, %v2889_v5   ;;  %v2582_v57 = vsel %vm2080_vm3, %v2581_v18, %v2580_v7  ;;  %v2585_v16 = vrot.slane %v12863_v24, 4  ;;  %v2587_v3 = vrot.slane %v12857_v35, 3 }
 0x1e1   :  { %v2334_v13 = vsel %vm2095_vm8, %v2333_v39, %v2332_v8  ;;  %v2584_v49 = vsel %vm2083_vm4, %v2583_v62, %v2582_v57  ;;  %v2589_v1 = vrot.slane %v12858_v44, 2  ;;  %v2591_v4 = vrot.slane %v12859_v54, 1 }
 0x1e2   :  { %v2335_v40 = vsel %vm2098_vm9, %v8328_v51, %v2334_v13  ;;  %v2586_v6 = vsel %vm2086_vm5, %v2585_v16, %v2584_v49  ;;  %v2594_v27 = vrot.slane %v12861_v19, 7  ;;  %v2595_v37 = vrot.slane %v12862_v60, 6 }
 0x1e3   :  { %v5725_v22 = vpack.i.bf16 %v2335_v40, %v2321_v2  ;;  %v2588_v14 = vsel %vm2089_vm6, %v2587_v3, %v2586_v6  ;;  %v2597_v41 = vrot.slane %v12864_v59, 5  ;;  %v2599_v56 = vrot.slane %v8166_v0, 4 }
 0x1e4   :  { %v2590_v50 = vsel %vm2092_vm7, %v2589_v1, %v2588_v14  ;;  %v2596_v39 = vsel %vm2080_vm3, %v2595_v37, %v2594_v27  ;;  %v2601_v48 = vrot.slane %v8206_v10, 3  ;;  %v2603_v52 = vrot.slane %v8229_v33, 2  ;;  %v8561_v27 = vld [vmem:[%s12002_s0 + $0x130] sm:$0xff] }
 0x1e5   :  { %5726 = vrot.lane.b32.xlu0 %v5725_v22, %s5920_s5  ;;  %v2598_v26 = vsel %vm2083_vm4, %v2597_v41, %v2596_v39  ;;  %v2605_v42 = vrot.slane %v8282_v9, 1  ;;  %v2516_v18 = vrot.slane %v12855_v31, 5  ;;  %v2517_v2 = vrot.slane %v12856_v29, 4 }
 0x1e6   :  { %v2600_v7 = vsel %vm2086_vm5, %v2599_v56, %v2598_v26  ;;  %v2519_v61 = vrot.slane %v7851_v45, 3  ;;  %v2592_v5 = vsel %vm2095_vm8, %v2591_v4, %v2590_v50  ;;  %v2521_v8 = vrot.slane %v12863_v24, 2 }
 0x1e7   :  { %v2602_v62 = vsel %vm2089_vm6, %v2601_v48, %v2600_v7  ;;  %v2523_v57 = vrot.slane %v12857_v35, 1  ;;  %v2593_v16 = vsel %vm2098_vm9, %v12860_v53, %v2592_v5  ;;  %v2518_v13 = vsel %vm2080_vm3, %v2517_v2, %v2516_v18  ;;  %v5668_v5 = vld [vmem:[%s12002_s0 + $0x140] sm:$0xff] }
 0x1e8   :  { %v2604_v3 = vsel %vm2092_vm7, %v2603_v52, %v2602_v62  ;;  %v2530_v49 = vrot.slane %v12861_v19, 5  ;;  %v2520_v40 = vsel %vm2083_vm4, %v2519_v61, %v2518_v13  ;;  %v2531_v4 = vrot.slane %v12862_v60, 4  ;;  %v8586_v62 = vld [vmem:[%s12002_s0 + $0x148] sm:$0xff] }
 0x1e9   :  { %v2606_v1 = vsel %vm2095_vm8, %v2605_v42, %v2604_v3  ;;  %v2533_v6 = vrot.slane %v12864_v59, 3  ;;  %v2522_v22 = vsel %vm2086_vm5, %v2521_v8, %v2520_v40  ;;  %v2535_v14 = vrot.slane %v8166_v0, 2  ;;  %12866 = vst [vmem:[#allocation114_spill] sm:$0xff] %v8586_v62 }
 0x1ea   :  { %v2607_v37 = vsel %vm2098_vm9, %v8293_v21, %v2606_v1  ;;  %v2537_v41 = vrot.slane %v8206_v10, 1  ;;  %v2524_v50 = vsel %vm2089_vm6, %v2523_v57, %v2522_v22  ;;  %v2532_v39 = vsel %vm2080_vm3, %v2531_v4, %v2530_v49  ;;  %v5664_v22 = vld [vmem:[%s12002_s0 + $0x120] sm:$0xff] }
 0x1eb   :  { %v5745_v56 = vpack.i.bf16 %v2607_v37, %v2593_v16  ;;  %v2526_v48 = vrot.slane %v12859_v54, 7  ;;  %v2534_v52 = vsel %vm2083_vm4, %v2533_v6, %v2532_v39  ;;  %v2540_v26 = vrot.slane %v8282_v9, 7  ;;  %v8603_v37 = vld [vmem:[%s12002_s0 + $0x108] sm:$0xff] }
 0x1ec   :  { %v2893_v42 = vrot.slane %v8561_v27, 7  ;;  %v2525_v7 = vsel %vm2092_vm7, %v12858_v44, %v2524_v50  ;;  %v2528_v18 = vrot.slane %v12860_v53, 6  ;;  %v2536_v2 = vsel %vm2086_vm5, %v2535_v14, %v2534_v52  ;;  %v8611_v14 = vld [vmem:[%s12002_s0 + $0x128] sm:$0xff] }
 0x1ed   :  { %5746 = vrot.lane.b32.xlu1 %v5745_v56, %s5920_s5  ;;  %v2542_v61 = vrot.slane %v8293_v21, 6  ;;  %v2538_v8 = vsel %vm2089_vm6, %v2537_v41, %v2536_v2  ;;  %v2527_v3 = vsel %vm2095_vm8, %v2526_v48, %v2525_v7  ;;  %v2896_v49 = vrot.slane %v5668_v5, 7  ;;  %v8621_v41 = vld [vmem:[%s12002_s0 + $0x160] sm:$0xff]  ;;  %v12867_v48 = vld [vmem:[#allocation11_spill] sm:$0xff] }
 0x1ee   :  { %v2967_v57 = vsel %vm80_vm0, 0.0, %v2893_v42  ;;  %v2539_v16 = vsel %vm2092_vm7, %v8229_v33, %v2538_v8  ;;  %v12139_v1 = vrot.slane %v8586_v62, 7  ;;  %v2529_v40 = vsel %vm2098_vm9, %v2528_v18, %v2527_v3  ;;  %v5674_v2 = vld [vmem:[%s12002_s0 + $0x170] sm:$0xff]  ;;  %v8650_v3 = vld [vmem:[%s12002_s0 + $0x138] sm:$0xff] }
 0x1ef   :  { %3026 = vperm.xlu2 %5709, %v2967_v57   ;;  %v2541_v13 = vsel %vm2095_vm8, %v2540_v26, %v2539_v16  ;;  %v2965_v27 = vsel %vm80_vm0, 0.0, %v2887_v63  ;;  %v12144_v63 = vrot.slane %v8603_v37, 7  ;;  %v2890_v56 = vrot.slane %v5664_v22, 7  ;;  %v8849_v62 = vld [vmem:[%s12002_s0 + $0x198] sm:$0xff] }
 0x1f0   :  { %v2543_v4 = vsel %vm2098_vm9, %v2542_v61, %v2541_v13  ;;  %v2898_v38 = vsel %vm80_vm0, %v2896_v49, %v12139_v1  ;;  %v12142_v50 = vrot.slane %v8611_v14, 7  ;;  %v12148_v39 = vrot.slane %v8621_v41, 7  ;;  %v8642_v61 = vld [vmem:[%s12002_s0 + $0x178] sm:$0xff]  ;;  %v5670_v13 = vld [vmem:[%s12002_s0 + $0x150] sm:$0xff] }
 0x1f1   :  { %v5740_v6 = vpack.i.bf16 %v2543_v4, %v2529_v40  ;;  %v12868_v52 = vrot.slane %v12867_v48, 7  ;;  %12869 = vst [vmem:[#allocation41_spill] sm:$0xff] %v8642_v61  ;;  %v2905_v5 = vrot.slane %v5674_v2, 7  ;;  %v12138_v8 = vrot.slane %v8642_v61, 7  ;;  %v8658_v40 = vld [vmem:[%s12002_s0 + $0x158] sm:$0xff]  ;;  %v8699_v2 = vld [vmem:[%s12002_s0 + $0x1a0] sm:$0xff] }
 0x1f2   :  { %v2892_v7 = vsel %vm80_vm0, %v2890_v56, %v12142_v50  ;;  %v2970_v18 = vsel %vm80_vm0, 0.0, %v12148_v39  ;;  %v2966_v57 = vsel %vm80_vm0, 0.0, %v2890_v56  ;;  %v2968_v16 = vsel %vm80_vm0, 0.0, %v2896_v49  ;;  %12870 = vst [vmem:[#allocation63_spill] sm:$0xff] %v8658_v40 }
 0x1f3   :  { %5741 = vrot.lane.b32.xlu0 %v5740_v6, %s5920_s5  ;;  %v2886_v26 = vsel %vm80_vm0, %v12868_v52, %v12144_v63  ;;  %v2907_v4 = vsel %vm80_vm0, %v2905_v5, %v12138_v8  ;;  %v12143_v49 = vrot.slane %v8650_v3, 7  ;;  %v8667_v6 = vld [vmem:[%s12002_s0 + $0x190] sm:$0xff]  ;;  %v12140_v22 = vrot.slane %v8658_v40, 7 }
 0x1f4   :  { %v12145_v56 = vrot.slane %v8667_v6, 7  ;;  %v2971_v1 = vsel %vm80_vm0, 0.0, %v2905_v5  ;;  %v2215_v58 = vrot.slane %v12849_v34, 3  ;;  %v8731_v5 = vld [vmem:[%s12003_s1 + $0x3] ss:$0 sm:$0xff]  ;;  %v2279_v40 = vrot.slane %v12849_v34, 5 }
 0x1f5   :  { %3008 = vperm.xlu1 %5708, %v2965_v27   ;;  %v2899_v27 = vrot.slane %v5670_v13, 7  ;;  %v2895_v48 = vsel %vm80_vm0, %v2893_v42, %v12143_v49  ;;  %12876 = vst [vmem:[#allocation84_spill] sm:$0xff] %v8731_v5  ;;  %v8733_v49 = vpop.permute.xlu2 %2999 }
 0x1f6   :  { %v2973_v42 = vsel %vm80_vm0, 0.0, %v12145_v56  ;;  %12877 = vst [vmem:[#allocation77_spill] sm:$0xff] %v8733_v49  ;;  %v8743_v56 = vld [vmem:[%s12003_s1 + $0x4] ss:$0 sm:$0xff] }
 0x1f7   :  { %3039 = vperm.xlu2 %5709, %v2898_v38   ;;  %v8673_v38 = vld [vmem:[%s12003_s1 + $0x1] ss:$0 sm:$0xff]  ;;  %v2901_v52 = vsel %vm80_vm0, %v2899_v27, %v12140_v22  ;;  %v2969_v8 = vsel %vm80_vm0, 0.0, %v2899_v27  ;;  %v8715_v22 = vld [vmem:[%s12002_s0 + $0x168] sm:$0xff]  ;;  %12878 = vst [vmem:[#allocation78_spill] sm:$0xff] %v8743_v56 }
 0x1f8   :  { %12871 = vst [vmem:[#allocation115_spill] sm:$0xff] %v8673_v38  ;;  %v8762_v39 = vmul.f32 %v8673_v38, %v8733_v49 }
 0x1fa   :  { %12880 = vst [vmem:[#allocation73_spill] sm:$0xff] %v8762_v39  ;;  %v2082_v39 = vrot.slane %v12850_v47, 6 }
 0x1fb   :  { %3003 = vperm.xlu0 %5707, %v2886_v26   ;;  %v8685_v26 = vld [vmem:[%s12003_s1] ss:$0 sm:$0xff] }
 0x1fc   :  { %12872 = vst [vmem:[#allocation42_spill] sm:$0xff] %v8685_v26 }
 0x1fd   :  { %3021 = vperm.xlu1 %5708, %v2892_v7   ;;  %v3276_v7 = vmul.f32 0.0, %v8673_v38 }
 0x1ff   :  { %3053 = vperm.xlu2 %5709, %v2970_v18   ;;  %v8691_v18 = vld [vmem:[%s12003_s1 + $0x2] ss:$0 sm:$0xff]  ;;  %v3368_v13 = vrot.slane %v3276_v7, 1  ;;  %v8725_v7 = vld [vmem:[%s12002_s0 + $0x188] sm:$0xff] }
 0x200   :  { %12873 = vst [vmem:[#allocation112_spill] sm:$0xff] %v8691_v18  ;;  %v12888_v38 = vrot.slane %v8725_v7, 7 }
 0x201   :  { %12875 = vst [vmem:[#allocation76_spill] sm:$0xff] %v8725_v7  ;;  %v2085_v7 = vrot.slane %v12851_v36, 5 }
 0x203   :  { %3017 = vperm.xlu0 %5707, %v2966_v57   ;;  %v8704_v57 = vld [vmem:[%s12002_s0 + $0x1a8] sm:$0xff] }
 0x204   :  { %12874 = vst [vmem:[#allocation43_spill] sm:$0xff] %v8704_v57 }
 0x205   :  { %3035 = vperm.xlu1 %5708, %v2968_v16   ;;  %v3135_v16 = vmul.f32 0.0, %v8685_v26  ;;  %v2151_v26 = vrot.slane %v12849_v34, 1 }
 0x207   :  { %3066 = vperm.xlu2 %5709, %v2907_v4   ;;  %v3511_v4 = vmul.f32 0.0, %v8691_v18  ;;  %v3476_v27 = vadd.f32 %v3368_v13, %v3135_v16  ;;  %v8749_v13 = vld [vmem:[%s12002_s0 + $0x1c0] sm:$0xff] }
 0x209   :  { %v3603_v50 = vrot.slane %v3511_v4, 2  ;;  %v8755_v4 = vld [vmem:[%s12003_s1 + $0x5] ss:$0 sm:$0xff] }
 0x20a   :  { %12879 = vst [vmem:[#allocation79_spill] sm:$0xff] %v8755_v4 }
 0x20b   :  { %3030 = vperm.xlu0 %5707, %v2895_v48   ;;  %v12147_v48 = vrot.slane %v8699_v2, 7  ;;  %v8767_v61 = vadd.f32 %v3603_v50, %v3476_v27  ;;  %v2222_v27 = vrot.slane %v7808_v15, 7 }
 0x20d   :  { %3048 = vperm.xlu1 %5708, %v2901_v52   ;;  %v12146_v52 = vrot.slane %v8704_v57, 7  ;;  %v2219_v57 = vrot.slane %v12851_v36, 1  ;;  %12881 = vst [vmem:[#allocation48_spill] sm:$0xff] %v8767_v61  ;;  %v2079_v61 = vrot.slane %v12849_v34, 7 }
 0x20f   :  { %3080 = vperm.xlu2 %5709, %v2973_v42   ;;  %v8720_v42 = vld [vmem:[%s12002_s0 + $0x180] sm:$0xff]  ;;  %v2916_v63 = vsel %vm80_vm0, %v12147_v48, %v12146_v52  ;;  %v8775_v48 = vmul.f32 %v8731_v5, %v8733_v49  ;;  %v8791_v5 = vmul.f32 %v8755_v4, %v8733_v49  ;;  %v12889_v4 = vrot.slane %v8749_v13, 7 }
 0x210   :  { %v2908_v52 = vrot.slane %v8720_v42, 7  ;;  %v8771_v42 = vmul.f32 %v8691_v18, %v8733_v49  ;;  %v2150_v18 = vrot.slane %v12848_v32, 2 }
 0x211   :  { %12883 = vst [vmem:[#allocation82_spill] sm:$0xff] %v8775_v48 }
 0x212   :  { %12882 = vst [vmem:[#allocation80_spill] sm:$0xff] %v8771_v42  ;;  %v2910_v48 = vsel %vm80_vm0, %v2908_v52, %v12888_v38 }
 0x213   :  { %3044 = vperm.xlu0 %5707, %v2969_v8   ;;  %v2214_v8 = vrot.slane %v12848_v32, 4  ;;  %12887 = vst [vmem:[#allocation102_spill] sm:$0xff] %v8791_v5  ;;  %v2976_v5 = vsel %vm80_vm0, 0.0, %v12889_v4  ;;  %v2158_v4 = vrot.slane %v7808_v15, 5 }
 0x215   :  { %3062 = vperm.xlu1 %5708, %v2971_v1   ;;  %v2217_v1 = vrot.slane %v12850_v47, 2  ;;  %v2216_v16 = vsel %vm2080_vm3, %v2215_v58, %v2214_v8  ;;  %v12885_v58 = vrot.slane %v8715_v22, 7  ;;  %v12886_v8 = vrot.slane %v8621_v41, 7 }
 0x217   :  { %3093 = vperm.xlu2 %5709, %v2916_v63   ;;  %v8780_v63 = vmul.f32 %v8743_v56, %v8733_v49  ;;  %v2904_v50 = vsel %vm80_vm0, %v12886_v8, %v12885_v58  ;;  %v2218_v56 = vsel %vm2083_vm4, %v2217_v1, %v2216_v16  ;;  %v2152_v58 = vsel %vm2080_vm3, %v2151_v26, %v2150_v18  ;;  %v8817_v26 = vld [vmem:[%s12002_s0 + $0x1d8] sm:$0xff] }
 0x218   :  { %v2220_v41 = vsel %vm2086_vm5, %v2219_v57, %v2218_v56  ;;  %v2154_v8 = vrot.slane %v12851_v36, 7  ;;  %v2226_v16 = vrot.slane %v7841_v28, 5  ;;  %v2156_v1 = vrot.slane %v12852_v55, 6  ;;  %v8812_v56 = vld [vmem:[%s12002_s0 + $0x1d0] sm:$0xff]  ;;  %12890 = vst [vmem:[#allocation116_spill] sm:$0xff] %v8817_v26 }
 0x219   :  { %12884 = vst [vmem:[#allocation49_spill] sm:$0xff] %v8780_v63  ;;  %v2224_v63 = vrot.slane %v7816_v30, 6  ;;  %v2221_v38 = vsel %vm2089_vm6, %v12852_v55, %v2220_v41  ;;  %v2228_v57 = vrot.slane %v7998_v12, 4  ;;  %v2229_v41 = vrot.slane %v8006_v25, 3 }
 0x21a   :  { %v2223_v18 = vsel %vm2092_vm7, %v2222_v27, %v2221_v38  ;;  %v2153_v42 = vsel %vm2083_vm4, %v12850_v47, %v2152_v58  ;;  %v2162_v27 = vrot.slane %v7841_v28, 3  ;;  %v2081_v38 = vsel %vm2080_vm3, %v2079_v61, %v12848_v32 }
 0x21b   :  { %3057 = vperm.xlu0 %5707, %v2904_v50   ;;  %v2160_v50 = vrot.slane %v7816_v30, 4  ;;  %v2155_v49 = vsel %vm2086_vm5, %v2154_v8, %v2153_v42  ;;  %v2164_v8 = vrot.slane %v7998_v12, 2  ;;  %v12891_v61 = vrot.slane %v8699_v2, 7  ;;  %v8860_v2 = vld [vmem:[%s12002_s0 + $0x1b8] sm:$0xff] }
 0x21c   :  { %v2157_v58 = vsel %vm2089_vm6, %v2156_v1, %v2155_v49  ;;  %v5682_v1 = vld [vmem:[%s12002_s0 + $0x1b0] sm:$0xff] }
 0x21d   :  { %3075 = vperm.xlu1 %5708, %v2910_v48   ;;  %v2225_v48 = vsel %vm2095_vm8, %v2224_v63, %v2223_v18  ;;  %v12175_v63 = vrot.slane %v8817_v26, 7  ;;  %v2159_v42 = vsel %vm2092_vm7, %v2158_v4, %v2157_v58  ;;  %v2974_v46 = vsel %vm80_vm0, 0.0, %v12891_v61 }
 0x21e   :  { %v8836_v18 = vsel %vm2098_vm9, %v2226_v16, %v2225_v48  ;;  %v2230_v16 = vsel %vm2080_vm3, %v2229_v41, %v2228_v57  ;;  %v2161_v49 = vsel %vm2095_vm8, %v2160_v50, %v2159_v42  ;;  %v2088_v48 = vrot.slane %v12852_v55, 4 }
 0x21f   :  { %3107 = vperm.xlu2 %5709, %v2976_v5   ;;  %v2972_v5 = vsel %vm80_vm0, 0.0, %v2908_v52  ;;  %v2084_v52 = vsel %vm2083_vm4, %v2082_v39, %v2081_v38  ;;  %v2091_v58 = vrot.slane %v7808_v15, 3  ;;  %v2278_v57 = vrot.slane %v12848_v32, 6 }
 0x220   :  { %v2087_v4 = vsel %vm2086_vm5, %v2085_v7, %v2084_v52  ;;  %v12892_v39 = vrot.slane %v8812_v56, 7  ;;  %v2165_v41 = vrot.slane %v8006_v25, 1  ;;  %v2094_v38 = vrot.slane %v7816_v30, 2 }
 0x221   :  { %v2281_v42 = vrot.slane %v12850_v47, 4  ;;  %v2100_v61 = vrot.slane %v8006_v25, 7  ;;  %v2280_v52 = vsel %vm2080_vm3, %v2279_v40, %v2278_v57  ;;  %v2917_v34 = vrot.slane %v5682_v1, 7 }
 0x222   :  { %v2925_v50 = vsel %vm80_vm0, %v12892_v39, %v12175_v63  ;;  %v2231_v39 = vrot.slane %v8023_v43, 2  ;;  %v2285_v63 = vrot.slane %v12852_v55, 2  ;;  %v2233_v26 = vrot.slane %v8138_v20, 1 }
 0x223   :  { %3071 = vperm.xlu0 %5707, %v2972_v5   ;;  %v2283_v5 = vrot.slane %v12851_v36, 3  ;;  %v2097_v7 = vrot.slane %v7841_v28, 1  ;;  %v2287_v47 = vrot.slane %v7808_v15, 1  ;;  %v8886_v40 = vsel %vm2098_vm9, %v2162_v27, %v2161_v49 }
 0x224   :  { %v2166_v1 = vsel %vm2080_vm3, %v2165_v41, %v2164_v8  ;;  %v2282_v32 = vsel %vm2083_vm4, %v2281_v42, %v2280_v52  ;;  %v12893_v55 = vrot.slane %v8849_v62, 7  ;;  %v12895_v49 = vrot.slane %v8860_v2, 7 }
 0x225   :  { %3089 = vperm.xlu1 %5708, %v2974_v46   ;;  %v2090_v46 = vsel %vm2089_vm6, %v2088_v48, %v2087_v4  ;;  %v2101_v48 = vsel %vm2080_vm3, %v2100_v61, %v7998_v12  ;;  %v2284_v27 = vsel %vm2086_vm5, %v2283_v5, %v2282_v32  ;;  %v2102_v41 = vrot.slane %v8023_v43, 6 }
 0x226   :  { %v2093_v57 = vsel %vm2092_vm7, %v2091_v58, %v2090_v46  ;;  %v2919_v8 = vsel %vm80_vm0, %v2917_v34, %v12895_v49  ;;  %v2232_v58 = vsel %vm2083_vm4, %v2231_v39, %v2230_v16  ;;  %v2286_v42 = vsel %vm2089_vm6, %v2285_v63, %v2284_v27 }
 0x227   :  { %3120 = vperm.xlu2 %5709, %v2925_v50   ;;  %v12894_v50 = vrot.slane %v8667_v6, 7  ;;  %v2096_v4 = vsel %vm2095_vm8, %v2094_v38, %v2093_v57  ;;  %v2234_v6 = vsel %vm2086_vm5, %v2233_v26, %v2232_v58  ;;  %v2288_v61 = vsel %vm2092_vm7, %v2287_v47, %v2286_v42 }
 0x228   :  { %v8910_v38 = vsel %vm2098_vm9, %v2097_v7, %v2096_v4  ;;  %v2290_v32 = vrot.slane %v7841_v28, 7  ;;  %v12896_v52 = vrot.slane %v8603_v37, 7  ;;  %v2168_v5 = vrot.slane %v8138_v20, 7 }
 0x229   :  { %v2913_v36 = vsel %vm80_vm0, %v12894_v50, %v12893_v55  ;;  %v8907_v55 = vpop.permute.xlu2 %5721  ;;  %v2104_v63 = vrot.slane %v8138_v20, 5  ;;  %v2293_v26 = vrot.slane %v8006_v25, 5  ;;  %v2167_v7 = vsel %vm2083_vm4, %v8023_v43, %v2166_v1  ;;  %v8934_v1 = vld [vmem:[%s12002_s0 + $0x1c8] sm:$0xff] }
 0x22a   :  { %v2980_v16 = vsel %vm80_vm0, %v12896_v52, 0.0  ;;  %v2170_v39 = vrot.slane %v8146_v23, 6  ;;  %v2106_v47 = vrot.slane %v8146_v23, 4  ;;  %v2423_v37 = vrot.slane %v12856_v29, 1 }
 0x22b   :  { %3084 = vperm.xlu0 %5707, %v2913_v36   ;;  %v2295_v36 = vrot.slane %v8023_v43, 4  ;;  %v2103_v46 = vsel %vm2083_vm4, %v2102_v41, %v2101_v48  ;;  %v2289_v57 = vsel %vm2095_vm8, %v7816_v30, %v2288_v61  ;;  %v2292_v50 = vrot.slane %v7998_v12, 6 }
 0x22c   :  { %v2975_v4 = vsel %vm80_vm0, 0.0, %v2917_v34  ;;  %v2235_v27 = vsel %vm2089_vm6, %v8146_v23, %v2234_v6  ;;  %v2236_v49 = vrot.slane %v8160_v11, 7  ;;  %v8940_v48 = vsel %vm2098_vm9, %v2290_v32, %v2289_v57  ;;  %v5688_v6 = vld [vmem:[%s12002_s0 + $0x1e0] sm:$0xff] }
 0x22d   :  { %3102 = vperm.xlu1 %5708, %v2919_v8   ;;  %v2422_v8 = vrot.slane %v12855_v31, 2  ;;  %v2169_v58 = vsel %vm2086_vm5, %v2168_v5, %v2167_v7  ;;  %v2105_v34 = vsel %vm2086_vm5, %v2104_v63, %v2103_v46  ;;  %v2294_v41 = vsel %vm2080_vm3, %v2293_v26, %v2292_v50 }
 0x22e   :  { %v12897_v42 = vrot.slane %v8812_v56, 7  ;;  %v2171_v52 = vsel %vm2089_vm6, %v2170_v39, %v2169_v58  ;;  %v2107_v32 = vsel %vm2089_vm6, %v2106_v47, %v2105_v34  ;;  %v12184_v5 = vrot.slane %v8934_v1, 7  ;;  %v8960_v56 = vld [vmem:[%s12002_s0 + $0x1e8] sm:$0xff] }
 0x22f   :  { %3200 = vperm.xlu2 %5709, %v2980_v16   ;;  %v2296_v16 = vsel %vm2083_vm4, %v2295_v36, %v2294_v41  ;;  %v2238_v63 = vrot.slane %v8321_v17, 6  ;;  %v2424_v26 = vsel %vm2080_vm3, %v2423_v37, %v2422_v8  ;;  %v2172_v7 = vrot.slane %v8160_v11, 5 }
 0x230   :  { %v2977_v61 = vsel %vm80_vm0, 0.0, %v12897_v42  ;;  %v2237_v46 = vsel %vm2092_vm7, %v2236_v49, %v2235_v27  ;;  %v2240_v39 = vrot.slane %v8328_v51, 5  ;;  %v2108_v47 = vrot.slane %v8160_v11, 3 }
 0x231   :  { %v2297_v36 = vrot.slane %v8138_v20, 3  ;;  %v5723_v57 = vunpack.i.l.bf16 %v8907_v55  ;;  %v12898_v50 = vrot.slane %v8650_v3, 7  ;;  %v2926_v34 = vrot.slane %v5688_v6, 7  ;;  %v8977_v41 = vpop.permute.xlu2 %5736 }
 0x232   :  { %v2426_v37 = vrot.slane %v12863_v24, 7  ;;  %v2425_v27 = vsel %vm2083_vm4, %v7851_v45, %v2424_v26  ;;  %v2428_v49 = vrot.slane %v12857_v35, 6  ;;  %v12899_v3 = vrot.slane %v8749_v13, 7 }
 0x233   :  { %3098 = vperm.xlu0 %5707, %v2975_v4   ;;  %v2983_v58 = vsel %vm80_vm0, %v12898_v50, 0.0  ;;  %v2299_v4 = vrot.slane %v8146_v23, 2  ;;  %v2239_v6 = vsel %vm2095_vm8, %v2238_v63, %v2237_v46  ;;  %v2173_v50 = vsel %vm2092_vm7, %v2172_v7, %v2171_v52 }
 0x234   :  { %v2922_v42 = vsel %vm80_vm0, %v12899_v3, %v12184_v5  ;;  %v8990_v8 = vsel %vm2098_vm9, %v2240_v39, %v2239_v6  ;;  %v2109_v23 = vsel %vm2092_vm7, %v2108_v47, %v2107_v32  ;;  %v2298_v20 = vsel %vm2086_vm5, %v2297_v36, %v2296_v16 }
 0x235   :  { %3116 = vperm.xlu1 %5708, %v2977_v61   ;;  %v2437_v61 = vrot.slane %v12862_v60, 1  ;;  %v8996_v13 = vsel %vm2614_vm10, %v8836_v18, %v5723_v57  ;;  %v2427_v63 = vsel %vm2086_vm5, %v2426_v37, %v2425_v27  ;;  %v2430_v46 = vrot.slane %v12858_v44, 5 }
 0x236   :  { %v2436_v52 = vrot.slane %v12861_v19, 2  ;;  %v12900_v7 = vrot.slane %v8960_v56, 7  ;;  %v2429_v32 = vsel %vm2089_vm6, %v2428_v49, %v2427_v63  ;;  %v9007_v16 = vsel %vm2089_vm6, %v2299_v4, %v2298_v20 }
 0x237   :  { %3215 = vperm.xlu2 %5709, %v2983_v58   ;;  %v2978_v58 = vsel %vm80_vm0, 0.0, %v2926_v34  ;;  %v2432_v18 = vrot.slane %v12859_v54, 4  ;;  %v2440_v36 = vrot.slane %v8166_v0, 7  ;;  %v2444_v49 = vrot.slane %v8229_v33, 5 }
 0x238   :  { %v2928_v39 = vsel %vm80_vm0, %v2926_v34, %v12900_v7  ;;  %v2438_v47 = vsel %vm2080_vm3, %v2437_v61, %v2436_v52  ;;  %v2442_v34 = vrot.slane %v8206_v10, 6  ;;  %v2431_v20 = vsel %vm2092_vm7, %v2430_v46, %v2429_v32 }
 0x239   :  { %v2439_v27 = vsel %vm2083_vm4, %v12864_v59, %v2438_v47  ;;  %v12901_v4 = vrot.slane %v8715_v22, 7  ;;  %v2174_v61 = vrot.slane %v8321_v17, 4  ;;  %v2358_v63 = vrot.slane %v12856_v29, 7 }
 0x23a   :  { %v5717_v3 = vpop.permute.xlu1 %5716  ;;  %v2446_v52 = vrot.slane %v8282_v9, 4  ;;  %v2176_v47 = vrot.slane %v8328_v51, 3  ;;  %v2110_v57 = vrot.slane %v8321_v17, 2  ;;  %v12902_v46 = vrot.slane %v8611_v14, 7 }
 0x23b   :  { %3111 = vperm.xlu0 %5707, %v2922_v42   ;;  %v2986_v6 = vsel %vm80_vm0, %v12901_v4, 0.0  ;;  %v2441_v42 = vsel %vm2086_vm5, %v2440_v36, %v2439_v27  ;;  %v5719_v32 = vunpack.i.h.bf16 %v5717_v3  ;;  %v5718_v4 = vunpack.i.l.bf16 %v5717_v3 }
 0x23c   :  { %v2982_v22 = vsel %vm80_vm0, %v12902_v46, 0.0  ;;  %v2433_v26 = vsel %vm2095_vm8, %v2432_v18, %v2431_v20  ;;  %v2112_v5 = vrot.slane %v8328_v51, 1  ;;  %v2360_v7 = vrot.slane %v7851_v45, 6 }
 0x23d   :  { %3129 = vperm.xlu1 %5708, %v2928_v39   ;;  %v9033_v39 = vpop.permute.xlu2 %3012  ;;  %v2372_v37 = vrot.slane %v12862_v60, 7  ;;  %v2175_v43 = vsel %vm2095_vm8, %v2174_v61, %v2173_v50  ;;  %v2359_v14 = vsel %vm2080_vm3, %v2358_v63, %v12855_v31  ;;  %v2362_v36 = vrot.slane %v12863_v24, 5 }
 0x23e   :  { %12903 = vst [vmem:[#allocation117_spill] sm:$0xff] %v9033_v39  ;;  %v2374_v27 = vrot.slane %v12864_v59, 6  ;;  %v2443_v18 = vsel %vm2089_vm6, %v2442_v34, %v2441_v42  ;;  %v12904_v3 = vrot.slane %v8849_v62, 7  ;;  %v2111_v46 = vsel %vm2095_vm8, %v2110_v57, %v2109_v23 }
 0x23f   :  { %3230 = vperm.xlu2 %5709, %v2986_v6   ;;  %v2177_v6 = vsel %vm2098_vm9, %v2176_v47, %v2175_v43  ;;  %v2617_v50 = vsel %vm2614_vm10, %v8886_v40, %v5718_v4  ;;  %v2113_v28 = vsel %vm2098_vm9, %v2112_v5, %v2111_v46  ;;  %v2361_v34 = vsel %vm2083_vm4, %v2360_v7, %v2359_v14 }
 0x240   :  { %v2989_v20 = vsel %vm80_vm0, %v12904_v3, 0.0  ;;  %v2618_v61 = vsel %vm2614_vm10, %v2177_v6, %v5719_v32  ;;  %v2373_v62 = vsel %vm2080_vm3, %v2372_v37, %v12861_v19  ;;  %v2376_v42 = vrot.slane %v8166_v0, 5  ;;  %v12905_v37 = vld [vmem:[#allocation40_spill] sm:$0xff] }
 0x241   :  { %v5712_v25 = vpop.permute.xlu0 %5711  ;;  %v2364_v40 = vrot.slane %v12857_v35, 4  ;;  %v2375_v57 = vsel %vm2083_vm4, %v2374_v27, %v2373_v62  ;;  %v2551_v47 = vrot.slane %v12856_v29, 5  ;;  %v12906_v32 = vrot.slane %v12905_v37, 7 }
 0x242   :  { %v5714_v63 = vunpack.i.h.bf16 %v5712_v25  ;;  %v5713_v12 = vunpack.i.l.bf16 %v5712_v25  ;;  %v2445_v25 = vsel %vm2092_vm7, %v2444_v49, %v2443_v18  ;;  %v2363_v4 = vsel %vm2086_vm5, %v2362_v36, %v2361_v34  ;;  %v12907_v18 = vld [vmem:[#allocation63_spill] sm:$0xff] }
 0x243   :  { %3125 = vperm.xlu0 %5707, %v2978_v58   ;;  %v2981_v58 = vsel %vm80_vm0, %v12906_v32, 0.0  ;;  %v2377_v49 = vsel %vm2086_vm5, %v2376_v42, %v2375_v57  ;;  %v2487_v14 = vrot.slane %v12856_v29, 3  ;;  %v2447_v27 = vsel %vm2095_vm8, %v2446_v52, %v2445_v25 }
 0x244   :  { %v2615_v43 = vsel %vm2614_vm10, %v8910_v38, %v5713_v12  ;;  %v2616_v23 = vsel %vm2614_vm10, %v2113_v28, %v5714_v63  ;;  %v2378_v12 = vrot.slane %v8206_v10, 4  ;;  %v2550_v28 = vrot.slane %v12855_v31, 6 }
 0x245   :  { %3210 = vperm.xlu1 %5708, %v2982_v22   ;;  %v2631_v5 = vpack.c.bf16 %v2617_v50, %v2615_v43  ;;  %v2635_v7 = vpack.c.bf16 %v2618_v61, %v2616_v23  ;;  %v2366_v38 = vrot.slane %v12858_v44, 3  ;;  %v2380_v22 = vrot.slane %v8229_v33, 3 }
 0x246   :  { %v12908_v3 = vrot.slane %v12907_v18, 7  ;;  %v2365_v6 = vsel %vm2089_vm6, %v2364_v40, %v2363_v4  ;;  %v5739_v46 = vunpack.i.h.bf16 %v8977_v41  ;;  %v2368_v61 = vrot.slane %v12859_v54, 2 }
 0x247   :  { %3245 = vperm.xlu2 %5709, %v2989_v20   ;;  %2639 = vst [vmem:[#allocation2] sm:$0xff] %v2631_v5  ;;  %v2553_v20 = vrot.slane %v7851_v45, 4  ;;  %v2552_v63 = vsel %vm2080_vm3, %v2551_v47, %v2550_v28  ;;  %v2486_v34 = vrot.slane %v12855_v31, 4  ;;  %v5738_v52 = vunpack.i.l.bf16 %v8977_v41  ;;  %v12912_v28 = vld [vmem:[#allocation114_spill] sm:$0xff] }
 0x248   :  { %v2985_v36 = vsel %vm80_vm0, %v12908_v3, 0.0  ;;  %2643 = vst [vmem:[#allocation2 + $0x20] sm:$0xff] %v2635_v7  ;;  %v2379_v62 = vsel %vm2089_vm6, %v2378_v12, %v2377_v49  ;;  %v2382_v42 = vrot.slane %v8282_v9, 2  ;;  %v2489_v43 = vrot.slane %v7851_v45, 2 }
 0x249   :  { %v9081_v50 = vpop.permute.xlu2 %3026  ;;  %v2367_v23 = vsel %vm2092_vm7, %v2366_v38, %v2365_v6  ;;  %v2381_v40 = vsel %vm2092_vm7, %v2380_v22, %v2379_v62  ;;  %v2555_v57 = vrot.slane %v12863_v24, 3  ;;  %v2488_v25 = vsel %vm2080_vm3, %v2487_v14, %v2486_v34  ;;  %v12914_v6 = vld [vmem:[#allocation76_spill] sm:$0xff] }
 0x24a   :  { %v12909_v5 = vrot.slane %v12860_v53, 3  ;;  %v12910_v41 = vrot.slane %v8934_v1, 7  ;;  %v2370_v37 = vrot.slane %v12860_v53, 1  ;;  %v2554_v32 = vsel %vm2083_vm4, %v2553_v20, %v2552_v63  ;;  %v9112_v1 = vld [vmem:[%s12002_s0 + $0x1f0] sm:$0xff] }
 0x24b   :  { %3205 = vperm.xlu0 %5707, %v2981_v58   ;;  %v12911_v4 = vrot.slane %v8293_v21, 3  ;;  %v12913_v38 = vrot.slane %v12912_v28, 7  ;;  %v2491_v58 = vrot.slane %v12863_v24, 1  ;;  %v2369_v22 = vsel %vm2095_vm8, %v2368_v61, %v2367_v23 }
 0x24c   :  { %v2435_v7 = vsel %vm2098_vm9, %v12909_v5, %v2433_v26  ;;  %v2992_v47 = vsel %vm80_vm0, %v12910_v41, 0.0  ;;  %v2384_v26 = vrot.slane %v8293_v21, 1  ;;  %v2383_v14 = vsel %vm2095_vm8, %v2382_v42, %v2381_v40 }
 0x24d   :  { %v2449_v12 = vsel %vm2098_vm9, %v12911_v4, %v2447_v27  ;;  %3225 = vperm.xlu1 %5708, %v2985_v36   ;;  %v2984_v49 = vsel %vm80_vm0, %v12913_v38, 0.0  ;;  %v2557_v27 = vrot.slane %v12857_v35, 2  ;;  %v2490_v18 = vsel %vm2083_vm4, %v2489_v43, %v2488_v25 }
 0x24e   :  { %v2626_v3 = vsel %vm2614_vm10, %v2449_v12, %v5739_v46  ;;  %v2625_v36 = vsel %vm2614_vm10, %v2435_v7, %v5738_v52  ;;  %v12915_v20 = vrot.slane %v12914_v6, 7  ;;  %v2556_v62 = vsel %vm2086_vm5, %v2555_v57, %v2554_v32 }
 0x24f   :  { %3260 = vperm.xlu2 %5709, %v2992_v47   ;;  %v5732_v34 = vpop.permute.xlu1 %5731  ;;  %v2371_v61 = vsel %vm2098_vm9, %v2370_v37, %v2369_v22  ;;  %v12193_v40 = vrot.slane %v9112_v1, 7  ;;  %v2385_v46 = vsel %vm2098_vm9, %v2384_v26, %v2383_v14  ;;  %v2559_v52 = vrot.slane %v12858_v44, 1 }
 0x250   :  { %v2988_v63 = vsel %vm80_vm0, %v12915_v20, 0.0  ;;  %v5734_v23 = vunpack.i.h.bf16 %v5732_v34  ;;  %v5733_v42 = vunpack.i.l.bf16 %v5732_v34  ;;  %v2492_v43 = vsel %vm2086_vm5, %v2491_v58, %v2490_v18 }
 0x251   :  { %v9127_v5 = vpop.permute.xlu2 %3039  ;;  %v2494_v25 = vrot.slane %v12858_v44, 7  ;;  %v2558_v41 = vsel %vm2089_vm6, %v2557_v27, %v2556_v62  ;;  %v2493_v47 = vsel %vm2089_vm6, %v12857_v35, %v2492_v43  ;;  %v2304_v4 = vrot.slane %v8328_v51, 7  ;;  %v12919_v27 = vld [vmem:[#allocation41_spill] sm:$0xff] }
 0x252   :  { %12916 = vst [vmem:[#allocation37_spill] sm:$0xff] %v9127_v5  ;;  %v2624_v7 = vsel %vm2614_vm10, %v2385_v46, %v5734_v23  ;;  %v2623_v57 = vsel %vm2614_vm10, %v2371_v61, %v5733_v42  ;;  %v2565_v12 = vrot.slane %v12862_v60, 5  ;;  %v12917_v28 = vunpack.i.h.bf16 %v8907_v55 }
 0x253   :  { %v2637_v37 = vpack.c.bf16 %v2626_v3, %v2624_v7  ;;  %v2633_v32 = vpack.c.bf16 %v2625_v36, %v2623_v57  ;;  %3220 = vperm.xlu0 %5707, %v2984_v49   ;;  %v12918_v26 = vrot.slane %v8160_v11, 1  ;;  %v2979_v22 = vsel %vm80_vm0, 0.0, %v12193_v40 }
 0x254   :  { %v2620_v38 = vsel %vm2614_vm10, %v8990_v8, %v12917_v28  ;;  %v2567_v14 = vrot.slane %v12864_v59, 4  ;;  %v12920_v18 = vrot.slane %v12919_v27, 7  ;;  %v2564_v8 = vrot.slane %v12861_v19, 6  ;;  %v12923_v27 = vld [vmem:[#allocation42_spill] sm:$0xff] }
 0x255   :  { %v2302_v58 = vsel %vm2092_vm7, %v12918_v26, %v9007_v16  ;;  %3240 = vperm.xlu1 %5708, %v2988_v63   ;;  %2645 = vst [vmem:[#allocation2 + $0x30] sm:$0xff] %v2637_v37  ;;  %v2495_v49 = vsel %vm2092_vm7, %v2494_v25, %v2493_v47  ;;  %v2496_v3 = vrot.slane %v12859_v54, 6  ;;  %v12921_v36 = vrot.slane %v8860_v2, 7 }
 0x256   :  { %v2987_v55 = vsel %vm80_vm0, %v12920_v18, 0.0  ;;  %2641 = vst [vmem:[#allocation2 + $0x10] sm:$0xff] %v2633_v32  ;;  %v2303_v16 = vsel %vm2095_vm8, %v8321_v17, %v2302_v58  ;;  %v2560_v20 = vsel %vm2092_vm7, %v2559_v52, %v2558_v41  ;;  %v2501_v63 = vrot.slane %v12862_v60, 3 }
 0x257   :  { %v2991_v6 = vsel %vm80_vm0, %v12921_v36, 0.0  ;;  %v2305_v34 = vsel %vm2098_vm9, %v2304_v4, %v2303_v16  ;;  %v5727_v62 = vpop.permute.xlu0 %5726  ;;  %3745 = vperm.xlu2 %5709, %v2979_v22   ;;  %v2566_v61 = vsel %vm2080_vm3, %v2565_v12, %v2564_v8  ;;  %v2569_v23 = vrot.slane %v8166_v0, 3  ;;  %v12924_v8 = vld [vmem:[#allocation73_spill] sm:$0xff]  ;;  %v12925_v36 = vld [vmem:[#allocation80_spill] sm:$0xff] }
 0x258   :  { %v2503_v42 = vrot.slane %v12864_v59, 2  ;;  %v5729_v46 = vunpack.i.h.bf16 %v5727_v62  ;;  %v5728_v43 = vunpack.i.l.bf16 %v5727_v62  ;;  %v2568_v2 = vsel %vm2083_vm4, %v2567_v14, %v2566_v61  ;;  %v12922_v14 = vld [vmem:[#allocation77_spill] sm:$0xff]  ;;  %v12927_v62 = vld [vmem:[#allocation82_spill] sm:$0xff] }
 0x259   :  { %v2500_v25 = vrot.slane %v12861_v19, 4  ;;  %v9171_v7 = vpop.permute.xlu2 %3053  ;;  %v2562_v52 = vrot.slane %v12860_v53, 7  ;;  %v2571_v57 = vrot.slane %v8206_v10, 2  ;;  %v2573_v41 = vrot.slane %v8229_v33, 1 }
 0x25a   :  { %v2498_v47 = vrot.slane %v12860_v53, 5  ;;  %v2622_v37 = vsel %vm2614_vm10, %v2305_v34, %v5729_v46  ;;  %v2621_v32 = vsel %vm2614_vm10, %v8940_v48, %v5728_v43  ;;  %v2505_v12 = vrot.slane %v8166_v0, 1  ;;  %v12926_v48 = vld [vmem:[#allocation48_spill] sm:$0xff] }
 0x25b   :  { %v2502_v4 = vsel %vm2080_vm3, %v2501_v63, %v2500_v25  ;;  %v2636_v28 = vpack.c.bf16 %v2622_v37, %v2620_v38  ;;  %v2632_v26 = vpack.c.bf16 %v2621_v32, %v8996_v13  ;;  %v2570_v58 = vsel %vm2086_vm5, %v2569_v23, %v2568_v2  ;;  %3235 = vperm.xlu0 %5707, %v2987_v55   ;;  %v12928_v38 = vld [vmem:[#allocation49_spill] sm:$0xff]  ;;  %v12929_v13 = vld [vmem:[#allocation102_spill] sm:$0xff]  ;;  %v12930_v23 = vld [vmem:[#allocation43_spill] sm:$0xff] }
 0x25c   :  { %v2504_v22 = vsel %vm2083_vm4, %v2503_v42, %v2502_v4  ;;  %v9187_v18 = vmul.f32 %v12923_v27, %v12922_v14  ;;  %v9193_v63 = vadd.f32 %v12927_v62, %v12926_v48  ;;  %v12931_v42 = vrot.slane %v12930_v23, 7  ;;  %v12941_v0 = vld [vmem:[#allocation116_spill] sm:$0xff] }
 0x25d   :  { %2644 = vst [vmem:[#allocation2 + $0x28] sm:$0xff] %v2636_v28  ;;  %3255 = vperm.xlu1 %5708, %v2991_v6   ;;  %v2561_v2 = vsel %vm2095_vm8, %v12859_v54, %v2560_v20  ;;  %v2572_v25 = vsel %vm2089_vm6, %v2571_v57, %v2570_v58  ;;  %v2497_v37 = vsel %vm2095_vm8, %v2496_v3, %v2495_v49  ;;  %v2508_v32 = vrot.slane %v8229_v33, 7  ;;  %v9209_v6 = vld [vmem:[%s12003_s1 + $0x7] ss:$0 sm:$0xff]  ;;  %v9218_v49 = vld [vmem:[%s12003_s1 + $0x8] ss:$0 sm:$0xff] }
 0x25e   :  { %v2990_v43 = vsel %vm80_vm0, %v12931_v42, 0.0  ;;  %2640 = vst [vmem:[#allocation2 + $0x8] sm:$0xff] %v2632_v26  ;;  %v2506_v55 = vsel %vm2086_vm5, %v2505_v12, %v2504_v22  ;;  %v2563_v4 = vsel %vm2098_vm9, %v2562_v52, %v2561_v2  ;;  %v2574_v28 = vsel %vm2092_vm7, %v2573_v41, %v2572_v25  ;;  %v12932_v3 = vld [vmem:[#allocation115_spill] sm:$0xff]  ;;  %v12933_v58 = vld [vmem:[#allocation112_spill] sm:$0xff]  ;;  %v12934_v52 = vld [vmem:[#allocation78_spill] sm:$0xff] }
 0x25f   :  { %v2576_v20 = vrot.slane %v8293_v21, 7  ;;  %v5747_v26 = vpop.permute.xlu1 %5746  ;;  %v2499_v57 = vsel %vm2098_vm9, %v2498_v47, %v2497_v37  ;;  %v9222_v12 = vmul.f32 %v12932_v3, %v9081_v50  ;;  %v9226_v22 = vmul.f32 %v12933_v58, %v9081_v50  ;;  %v12935_v47 = vld [vmem:[#allocation79_spill] sm:$0xff]  ;;  %v9249_v37 = vld [vmem:[%s12003_s1 + $0x6] ss:$0 sm:$0xff] }
 0x260   :  { %v9230_v41 = vmul.f32 %v12934_v52, %v9081_v50  ;;  %v2510_v14 = vrot.slane %v8282_v9, 6  ;;  %v9235_v62 = vmul.f32 %v12935_v47, %v9081_v50  ;;  %v9239_v23 = vmul.f32 %v9209_v6, %v9081_v50 }
 0x261   :  { %v2507_v42 = vsel %vm2089_vm6, %v8206_v10, %v2506_v55  ;;  %v2512_v2 = vrot.slane %v8293_v21, 5  ;;  %v9244_v25 = vpop.permute.xlu2 %3066  ;;  %v9253_v46 = vmul.f32 %v9218_v49, %v9081_v50  ;;  %v2575_v34 = vsel %vm2095_vm8, %v8282_v9, %v2574_v28  ;;  %v12938_v21 = vld [vmem:[#allocation84_spill] sm:$0xff] }
 0x262   :  { %12936 = vst [vmem:[#allocation130_spill] sm:$0xff] %v9244_v25  ;;  %v2509_v61 = vsel %vm2092_vm7, %v2508_v32, %v2507_v42  ;;  %v12937_v55 = vrot.slane %v8960_v56, 7  ;;  %v9263_v40 = vmul.f32 %v12923_v27, %v9081_v50  ;;  %v9267_v51 = vmul.f32 %v12938_v21, %v9081_v50  ;;  %v5691_v28 = vld [vmem:[%s12002_s0 + $0x1f8] sm:$0xff] }
 0x263   :  { %v5749_v17 = vunpack.i.h.bf16 %v5747_v26  ;;  %v5748_v33 = vunpack.i.l.bf16 %v5747_v26  ;;  %3250 = vperm.xlu0 %5707, %v2990_v43   ;;  %v2577_v26 = vsel %vm2098_vm9, %v2576_v20, %v2575_v34  ;;  %v2511_v10 = vsel %vm2095_vm8, %v2510_v14, %v2509_v61 }
 0x264   :  { %v2994_v16 = vsel %vm80_vm0, %v12937_v55, 0.0  ;;  %12939 = vst [vmem:[#allocation16_spill] sm:$0xff] %v9267_v51  ;;  %v9277_v55 = vmul.f32 %v9249_v37, %v9081_v50  ;;  %v9286_v56 = vmul.f32 %v12932_v3, %v9171_v7  ;;  %v12942_v50 = vrot.slane %v12941_v0, 7 }
 0x265   :  { %3270 = vperm.xlu1 %5708, %v2994_v16   ;;  %v5742_v42 = vpop.permute.xlu0 %5741  ;;  %v2930_v59 = vrot.slane %v5691_v28, 7  ;;  %v2630_v9 = vsel %vm2614_vm10, %v2577_v26, %v5749_v17  ;;  %v2629_v11 = vsel %vm2614_vm10, %v2563_v4, %v5748_v33  ;;  %v9295_v16 = vmul.f32 %v12933_v58, %v9171_v7 }
 0x266   :  { %12940 = vst [vmem:[#allocation58_spill] sm:$0xff] %v9277_v55  ;;  %v2993_v43 = vsel %vm80_vm0, %v12942_v50, 0.0  ;;  %v5744_v34 = vunpack.i.h.bf16 %v5742_v42  ;;  %v5743_v20 = vunpack.i.l.bf16 %v5742_v42  ;;  %v9299_v14 = vmul.f32 %v12934_v52, %v9171_v7 }
 0x267   :  { %v3009_v61 = vpop.permute.xlu1 %3008  ;;  %v9303_v0 = vmul.f32 %v12935_v47, %v9171_v7  ;;  %v2513_v28 = vsel %vm2098_vm9, %v2512_v2, %v2511_v10  ;;  %v9308_v33 = vmul.f32 %v9209_v6, %v9171_v7  ;;  %v9312_v17 = vmul.f32 %v9218_v49, %v9171_v7 }
 0x268   :  { %v2628_v4 = vsel %vm2614_vm10, %v2513_v28, %v5744_v34  ;;  %v2627_v42 = vsel %vm2614_vm10, %v2499_v57, %v5743_v20  ;;  %v9319_v60 = vmul.f32 %v12932_v3, %v3009_v61  ;;  %v2995_v10 = vsel %vm80_vm0, %v2930_v59, 0.0 }
 0x269   :  { %v9316_v26 = vpop.permute.xlu2 %3080  ;;  %v2638_v50 = vpack.c.bf16 %v2630_v9, %v2628_v4  ;;  %v2634_v32 = vpack.c.bf16 %v2629_v11, %v2627_v42  ;;  %v9324_v2 = vmul.f32 %v12923_v27, %v9171_v7  ;;  %v9329_v34 = vmul.f32 %v12938_v21, %v9171_v7 }
 0x26a   :  { %12943 = vst [vmem:[#allocation135_spill] sm:$0xff] %v9319_v60  ;;  %v9332_v57 = vmul.f32 %v12933_v58, %v3009_v61  ;;  %v9337_v9 = vmul.f32 %v9249_v37, %v9171_v7  ;;  %v9340_v20 = vmul.f32 %v12934_v52, %v3009_v61  ;;  %v9343_v28 = vmul.f32 %v12935_v47, %v3009_v61 }
 0x26b   :  { %12944 = vst [vmem:[#allocation62_spill] sm:$0xff] %v9329_v34  ;;  %3265 = vperm.xlu0 %5707, %v2993_v43   ;;  %v9349_v11 = vmul.f32 %v9209_v6, %v3009_v61  ;;  %v9353_v43 = vmul.f32 %v12923_v27, %v3009_v61  ;;  %v12951_v54 = vrot.slane %v9112_v1, 7  ;;  %v3757_v42 = vmul.f32 %v12938_v21, %v3009_v61 }
 0x26c   :  { %12945 = vst [vmem:[#allocation20_spill] sm:$0xff] %v9332_v57  ;;  %v9390_v29 = vmul.f32 %v12923_v27, %v9316_v26  ;;  %v12955_v45 = vrot.slane %v12924_v8, 1  ;;  %v9400_v31 = vmul.f32 %v12932_v3, %v9316_v26  ;;  %v9418_v8 = vmul.f32 %v12935_v47, %v9316_v26 }
 0x26d   :  { %12946 = vst [vmem:[#allocation140_spill] sm:$0xff] %v9337_v9  ;;  %3822 = vperm.xlu1 %5708, %v2995_v10   ;;  %v3004_v53 = vpop.permute.xlu0 %3003  ;;  %v2931_v4 = vsel %vm80_vm0, %v12951_v54, %v2930_v59  ;;  %v12956_v59 = vrot.slane %v12928_v38, 1  ;;  %v12958_v25 = vrot.slane %v12925_v36, 2  ;;  %v9428_v38 = vmul.f32 %v12938_v21, %v9316_v26 }
 0x26e   :  { %2646 = vst [vmem:[#allocation2 + $0x38] sm:$0xff] %v2638_v50  ;;  %v9364_v19 = vmul.f32 %v12932_v3, %v3004_v53  ;;  %v9367_v10 = vmul.f32 %v12933_v58, %v3004_v53  ;;  %v9374_v1 = vmul.f32 %v12934_v52, %v3004_v53  ;;  %v9377_v54 = vmul.f32 %v12935_v47, %v3004_v53 }
 0x26f   :  { %12947 = vst [vmem:[#allocation113_spill] sm:$0xff] %v9340_v20  ;;  %v9369_v7 = vpop.permute.xlu1 %3021  ;;  %v4316_v50 = vmul.f32 %v9249_v37, %v3009_v61  ;;  %v12962_v36 = vrot.slane %v12929_v13, 2 }
 0x270   :  { %12948 = vst [vmem:[#allocation9_spill] sm:$0xff] %v9343_v28  ;;  %v12227_v35 = vrot.slane %v9364_v19, 1  ;;  %v12229_v44 = vrot.slane %v9374_v1, 1  ;;  %v12961_v9 = vrot.slane %v9377_v54, 2 }
 0x271   :  { %2642 = vst [vmem:[#allocation2 + $0x18] sm:$0xff] %v2634_v32  ;;  %v9361_v32 = vmul.f32 %v9218_v49, %v3009_v61  ;;  %v9383_v30 = vpop.permute.xlu2 %3093  ;;  %v9404_v61 = vmul.f32 %v12933_v58, %v9316_v26 }
 0x272   :  { %12949 = vst [vmem:[#allocation32_spill] sm:$0xff] %v9349_v11  ;;  %v3372_v24 = vsel %vm571_vm1, %v12955_v45, %v12227_v35  ;;  %v9414_v45 = vmul.f32 %v12934_v52, %v9316_v26  ;;  %v12957_v35 = vrot.slane %v9367_v10, 2 }
 0x273   :  { %12950 = vst [vmem:[#allocation33_spill] sm:$0xff] %v9353_v43  ;;  %v3477_v15 = vadd.f32 %v3372_v24, %v9187_v18  ;;  %3749 = vperm.xlu0 %5707, %v2931_v4   ;;  %v9432_v4 = vmul.f32 %v9209_v6, %v9316_v26 }
 0x274   :  { %12952 = vst [vmem:[#allocation51_spill] sm:$0xff] %v9361_v32  ;;  %v3607_v24 = vsel %vm808_vm2, %v12958_v25, %v12957_v35  ;;  %v4170_v35 = vsel %vm808_vm2, %v12962_v36, %v12961_v9  ;;  %v3756_v25 = vmul.f32 %v12938_v21, %v3004_v53  ;;  %v9474_v36 = vmul.f32 %v12938_v21, %v9033_v39  ;;  %v9493_v9 = vld [vmem:[%s12003_s1] ss:$0 sm:$0xff] }
 0x275   :  { %12953 = vst [vmem:[#allocation141_spill] sm:$0xff] %v9369_v7 }
 0x276   :  { %12954 = vst [vmem:[#allocation35_spill] sm:$0xff] %v9383_v30  ;;  %v3926_v30 = vsel %vm571_vm1, %v12956_v59, %v12229_v44  ;;  %v9435_v59 = vmul.f32 %v12923_v27, %v3004_v53  ;;  %v3712_v44 = vadd.f32 %v3607_v24, %v3477_v15  ;;  %v9450_v27 = vmul.f32 %v9218_v49, %v9316_v26 }
 0x277   :  { %v4036_v18 = vadd.f32 %v3926_v30, %v9193_v63  ;;  %12959 = vst [vmem:[#allocation64_spill] sm:$0xff] %v9428_v38  ;;  %v9444_v30 = vmul.f32 %v9249_v37, %v9316_v26  ;;  %v3018_v63 = vpop.permute.xlu0 %3017  ;;  %v3036_v15 = vpop.permute.xlu1 %3035  ;;  %v9488_v53 = vadd.f32 %v3756_v25, %v12926_v48  ;;  %v9512_v48 = vld [vmem:[%s12003_s1 + $0x2] ss:$0 sm:$0xff] }
 0x278   :  { %12960 = vst [vmem:[#allocation70_spill] sm:$0xff] %v9432_v4  ;;  %v9452_v24 = vadd.f32 %v3757_v42, %v3712_v44  ;;  %v9467_v44 = vmul.f32 %v12934_v52, %v3018_v63  ;;  %v9470_v42 = vmul.f32 %v12935_v47, %v3018_v63  ;;  %v9496_v13 = vmul.f32 %v9493_v9, %v3018_v63 }
 0x279   :  { %12963 = vst [vmem:[#allocation65_spill] sm:$0xff] %v9444_v30  ;;  %v4280_v38 = vadd.f32 %v4170_v35, %v4036_v18  ;;  %v9461_v18 = vmul.f32 %v12932_v3, %v3018_v63  ;;  %v9464_v35 = vmul.f32 %v12933_v58, %v3018_v63  ;;  %v3108_v26 = vpop.permute.xlu2 %3107  ;;  %v9482_v58 = vmul.f32 %v9209_v6, %v3018_v63  ;;  %v9504_v3 = vld [vmem:[%s12003_s1 + $0x1] ss:$0 sm:$0xff] }
 0x27a   :  { %12964 = vst [vmem:[#allocation66_spill] sm:$0xff] %v9450_v27  ;;  %v9499_v5 = vmul.f32 %v12938_v21, %v3018_v63  ;;  %v9507_v34 = vmul.f32 %v9504_v3, %v3036_v15  ;;  %v9515_v25 = vmul.f32 %v9512_v48, %v3036_v15  ;;  %v9520_v32 = vmul.f32 %v9249_v37, %v3018_v63 }
 0x27b   :  { %12965 = vst [vmem:[#allocation67_spill] sm:$0xff] %v9452_v24  ;;  %v9457_v30 = vadd.f32 %v4316_v50, %v4280_v38  ;;  %v9478_v50 = vmul.f32 %v9249_v37, %v9033_v39  ;;  %v9485_v38 = vmul.f32 %v9218_v49, %v3018_v63  ;;  %v9528_v28 = vmul.f32 %v9493_v9, %v3036_v15  ;;  %v9563_v24 = vld [vmem:[%s12003_s1 + $0x4] ss:$0 sm:$0xff] }
 0x27c   :  { %12967 = vst [vmem:[#allocation123_spill] sm:$0xff] %v9461_v18  ;;  %v9531_v20 = vmul.f32 %v12935_v47, %v3036_v15  ;;  %v9538_v55 = vmul.f32 %v12938_v21, %v3036_v15  ;;  %v9548_v47 = vmul.f32 %v9249_v37, %v3036_v15  ;;  %v9555_v21 = vmul.f32 %v9504_v3, %v3108_v26 }
 0x27d   :  { %12966 = vst [vmem:[#allocation92_spill] sm:$0xff] %v9457_v30  ;;  %v9523_v30 = vmul.f32 %v12934_v52, %v3036_v15  ;;  %v9541_v52 = vmul.f32 %v9209_v6, %v3036_v15  ;;  %v9572_v63 = vmul.f32 %v9493_v9, %v3108_v26 }
 0x27e   :  { %12968 = vst [vmem:[#allocation142_spill] sm:$0xff] %v9464_v35 }
 0x27f   :  { %12969 = vst [vmem:[#allocation24_spill] sm:$0xff] %v9467_v44  ;;  %v9533_v43 = vpop.permute.xlu0 %3030  ;;  %v9543_v11 = vpop.permute.xlu1 %3048 }
 0x280   :  { %12970 = vst [vmem:[#allocation68_spill] sm:$0xff] %v9470_v42  ;;  %v9600_v57 = vmul.f32 %v9249_v37, %v9533_v43  ;;  %v9612_v60 = vmul.f32 %v9504_v3, %v9533_v43  ;;  %v9628_v44 = vmul.f32 %v9563_v24, %v9533_v43  ;;  %v9635_v39 = vmul.f32 %v9493_v9, %v9533_v43 }
 0x281   :  { %12971 = vst [vmem:[#allocation69_spill] sm:$0xff] %v9482_v58 }
 0x282   :  { %12972 = vst [vmem:[#allocation143_spill] sm:$0xff] %v9485_v38  ;;  %v9664_v38 = vmul.f32 %v9209_v6, %v9533_v43 }
 0x283   :  { %12973 = vst [vmem:[#allocation104_spill] sm:$0xff] %v9496_v13 }
 0x284   :  { %12974 = vst [vmem:[#allocation105_spill] sm:$0xff] %v9499_v5  ;;  %v9558_v5 = vmul.f32 %v9512_v48, %v3108_v26 }
 0x285   :  { %12975 = vst [vmem:[#allocation138_spill] sm:$0xff] %v9507_v34  ;;  %v9583_v34 = vmul.f32 %v9209_v6, %v3108_v26 }
 0x286   :  { %12976 = vst [vmem:[#allocation134_spill] sm:$0xff] %v9515_v25 }
 0x287   :  { %12977 = vst [vmem:[#allocation111_spill] sm:$0xff] %v9520_v32  ;;  %v9551_v32 = vmul.f32 %v9218_v49, %v3036_v15  ;;  %v3045_v42 = vpop.permute.xlu0 %3044 }
 0x288   :  { %12978 = vst [vmem:[#allocation137_spill] sm:$0xff] %v9523_v30  ;;  %v9577_v30 = vld [vmem:[%s12003_s1 + $0x5] ss:$0 sm:$0xff]  ;;  %v9638_v58 = vmul.f32 %v9504_v3, %v3045_v42  ;;  %v9644_v51 = vmul.f32 %v9563_v24, %v3045_v42  ;;  %v9654_v35 = vmul.f32 %v9218_v49, %v3045_v42 }
 0x289   :  { %12979 = vst [vmem:[#allocation106_spill] sm:$0xff] %v9528_v28  ;;  %v9566_v28 = vmul.f32 %v9563_v24, %v3108_v26  ;;  %v9580_v25 = vmul.f32 %v9577_v30, %v3108_v26  ;;  %v9658_v18 = vmul.f32 %v9577_v30, %v9533_v43 }
 0x28a   :  { %12980 = vst [vmem:[#allocation103_spill] sm:$0xff] %v9531_v20 }
 0x28b   :  { %12981 = vst [vmem:[#allocation107_spill] sm:$0xff] %v9533_v43 }
 0x28c   :  { %12982 = vst [vmem:[#allocation71_spill] sm:$0xff] %v9538_v55  ;;  %v9605_v55 = vld [vmem:[%s12003_s1 + $0x3] ss:$0 sm:$0xff] }
 0x28d   :  { %12983 = vst [vmem:[#allocation108_spill] sm:$0xff] %v9541_v52  ;;  %v9608_v52 = vmul.f32 %v9605_v55, %v3108_v26 }
 0x28e   :  { %12984 = vst [vmem:[#allocation87_spill] sm:$0xff] %v9543_v11  ;;  %v9587_v11 = vmul.f32 %v9218_v49, %v3108_v26 }
 0x28f   :  { %12985 = vst [vmem:[#allocation109_spill] sm:$0xff] %v9548_v47  ;;  %v9568_v47 = vpop.permute.xlu2 %3120 }
 0x290   :  { %12986 = vst [vmem:[#allocation72_spill] sm:$0xff] %v9551_v32  ;;  %v9591_v15 = vmul.f32 %v9504_v3, %v9568_v47  ;;  %v9595_v20 = vmul.f32 %v9512_v48, %v9568_v47  ;;  %v9648_v32 = vmul.f32 %v9577_v30, %v3045_v42 }
 0x291   :  { %12987 = vst [vmem:[#allocation124_spill] sm:$0xff] %v9555_v21 }
 0x292   :  { %12988 = vst [vmem:[#allocation139_spill] sm:$0xff] %v9558_v5 }
 0x293   :  { %12989 = vst [vmem:[#allocation144_spill] sm:$0xff] %v9566_v28  ;;  %v9698_v28 = vpop.permute.xlu0 %3057 }
 0x294   :  { %12990 = vst [vmem:[#allocation27_spill] sm:$0xff] %v9568_v47  ;;  %v3063_v47 = vpop.permute.xlu1 %3062 }
 0x295   :  { %12991 = vst [vmem:[#allocation83_spill] sm:$0xff] %v9572_v63  ;;  %v9680_v7 = vmul.f32 %v9504_v3, %v3063_v47  ;;  %v9704_v63 = vmul.f32 %v9563_v24, %v3063_v47  ;;  %v9716_v21 = vmul.f32 %v9249_v37, %v3063_v47 }
 0x296   :  { %12992 = vst [vmem:[#allocation30_spill] sm:$0xff] %v9580_v25  ;;  %v9677_v25 = vmul.f32 %v9249_v37, %v3045_v42 }
 0x297   :  { %12993 = vst [vmem:[#allocation95_spill] sm:$0xff] %v9583_v34  ;;  %v3201_v13 = vpop.permute.xlu2 %3200  ;;  %v9668_v34 = vmul.f32 %v9218_v49, %v9533_v43 }
 0x298   :  { %12994 = vst [vmem:[#allocation97_spill] sm:$0xff] %v9587_v11  ;;  %v9696_v11 = vmul.f32 %v9605_v55, %v3063_v47  ;;  %v3514_v5 = vmul.f32 %v9512_v48, %v3201_v13 }
 0x299   :  { %12995 = vst [vmem:[#allocation50_spill] sm:$0xff] %v9591_v15  ;;  %v9674_v15 = vmul.f32 %v9605_v55, %v3045_v42 }
 0x29a   :  { %12996 = vst [vmem:[#allocation120_spill] sm:$0xff] %v9595_v20  ;;  %v9671_v20 = vmul.f32 %v9493_v9, %v3045_v42 }
 0x29b   :  { %12997 = vst [vmem:[#allocation98_spill] sm:$0xff] %v9600_v57  ;;  %v9618_v57 = vmul.f32 %v9249_v37, %v3108_v26  ;;  %v9651_v26 = vmul.f32 %v9209_v6, %v3045_v42 }
 0x29c   :  { %12998 = vst [vmem:[#allocation99_spill] sm:$0xff] %v9608_v52  ;;  %v9624_v52 = vmul.f32 %v9512_v48, %v9533_v43  ;;  %v9686_v43 = vmul.f32 %v9493_v9, %v3063_v47  ;;  %v9724_v27 = vpop.permute.xlu1 %3075 }
 0x29d   :  { %12999 = vst [vmem:[#allocation125_spill] sm:$0xff] %v9618_v57  ;;  %v9641_v57 = vmul.f32 %v9512_v48, %v3045_v42  ;;  %v3279_v42 = vmul.f32 %v9504_v3, %v3201_v13 }
 0x29e   :  { %13000 = vst [vmem:[#allocation44_spill] sm:$0xff] %v9638_v58 }
 0x29f   :  { %13001 = vst [vmem:[#allocation61_spill] sm:$0xff] %v9641_v57  ;;  %v13016_v57 = vrot.slane %v9222_v12, 1 }
 0x2a0   :  { %13002 = vst [vmem:[#allocation126_spill] sm:$0xff] %v9644_v51 }
 0x2a1   :  { %13003 = vst [vmem:[#allocation128_spill] sm:$0xff] %v9648_v32  ;;  %v3608_v32 = vrot.slane %v3514_v5, 2  ;;  %v3216_v5 = vpop.permute.xlu2 %3215 }
 0x2a2   :  { %13004 = vst [vmem:[#allocation129_spill] sm:$0xff] %v9651_v26  ;;  %v9708_v26 = vmul.f32 %v9577_v30, %v3063_v47 }
 0x2a3   :  { %13005 = vst [vmem:[#allocation31_spill] sm:$0xff] %v9654_v35  ;;  %v4074_v35 = vmul.f32 %v9577_v30, %v3201_v13 }
 0x2a4   :  { %13006 = vst [vmem:[#allocation131_spill] sm:$0xff] %v9671_v20  ;;  %v9719_v20 = vmul.f32 %v9209_v6, %v3063_v47 }
 0x2a5   :  { %13007 = vst [vmem:[#allocation96_spill] sm:$0xff] %v9674_v15  ;;  %v3373_v15 = vrot.slane %v3279_v42, 1  ;;  %v13019_v42 = vrot.slane %v9364_v19, 1  ;;  %v13023_v19 = vrot.slane %v9377_v54, 2  ;;  %v3839_v54 = vmul.f32 %v9563_v24, %v3216_v5 }
 0x2a6   :  { %13008 = vst [vmem:[#allocation132_spill] sm:$0xff] %v9677_v25  ;;  %v9693_v25 = vmul.f32 %v9512_v48, %v3063_v47 }
 0x2a7   :  { %13009 = vst [vmem:[#allocation133_spill] sm:$0xff] %v9680_v7  ;;  %v4171_v7 = vrot.slane %v4074_v35, 2 }
 0x2a8   :  { %13010 = vst [vmem:[#allocation100_spill] sm:$0xff] %v9686_v43  ;;  %v3830_v43 = vmul.f32 %v9563_v24, %v3201_v13  ;;  %v3374_v13 = vsel %vm571_vm1, %v13019_v42, %v3373_v15  ;;  %v3523_v42 = vmul.f32 %v9512_v48, %v3216_v5 }
 0x2a9   :  { %13011 = vst [vmem:[#allocation136_spill] sm:$0xff] %v9693_v25  ;;  %v3478_v12 = vadd.f32 %v3374_v13, %v9435_v59  ;;  %v4172_v35 = vsel %vm808_vm2, %v13023_v19, %v4171_v7  ;;  %v13025_v19 = vrot.slane %v9624_v52, 2  ;;  %v13026_v59 = vrot.slane %v9226_v22, 2 }
 0x2aa   :  { %13012 = vst [vmem:[#allocation90_spill] sm:$0xff] %v9696_v11  ;;  %v3927_v51 = vrot.slane %v3830_v43, 1  ;;  %v13015_v11 = vrot.slane %v9612_v60, 1  ;;  %v9727_v43 = vmul.f32 %v9218_v49, %v3063_v47 }
 0x2ab   :  { %13013 = vst [vmem:[#allocation118_spill] sm:$0xff] %v9704_v63 }
 0x2ac   :  { %13014 = vst [vmem:[#allocation25_spill] sm:$0xff] %v9708_v26  ;;  %v3387_v58 = vsel %vm571_vm1, %v13016_v57, %v13015_v11  ;;  %v13022_v57 = vrot.slane %v9374_v1, 1  ;;  %v3622_v1 = vsel %vm808_vm2, %v13026_v59, %v13025_v19  ;;  %v4391_v19 = vmul.f32 %v9209_v6, %v3216_v5 }
 0x2ad   :  { %13017 = vst [vmem:[#allocation14_spill] sm:$0xff] %v9716_v21  ;;  %v3288_v21 = vmul.f32 %v9504_v3, %v3216_v5  ;;  %v3483_v15 = vadd.f32 %v3387_v58, %v9263_v40  ;;  %v3072_v58 = vpop.permute.xlu0 %3071 }
 0x2ae   :  { %13018 = vst [vmem:[#allocation34_spill] sm:$0xff] %v9719_v20  ;;  %v3928_v11 = vsel %vm571_vm1, %v13022_v57, %v3927_v51  ;;  %v13024_v51 = vrot.slane %v9367_v10, 2  ;;  %v4083_v10 = vmul.f32 %v9577_v30, %v3216_v5  ;;  %v9769_v22 = vmul.f32 %v9504_v3, %v3072_v58 }
 0x2af   :  { %13020 = vst [vmem:[#allocation110_spill] sm:$0xff] %v9724_v27  ;;  %v4037_v4 = vadd.f32 %v3928_v11, %v9488_v53  ;;  %v3388_v11 = vrot.slane %v3288_v21, 1  ;;  %v9759_v21 = vadd.f32 %v3622_v1, %v3483_v15  ;;  %v9772_v59 = vmul.f32 %v9512_v48, %v3072_v58 }
 0x2b0   :  { %13021 = vst [vmem:[#allocation121_spill] sm:$0xff] %v9727_v43  ;;  %v3609_v13 = vsel %vm808_vm2, %v13024_v51, %v3608_v32  ;;  %v9757_v32 = vmul.f32 %v9249_v37, %v9698_v28  ;;  %v9789_v40 = vmul.f32 %v9493_v9, %v3072_v58  ;;  %v4186_v7 = vrot.slane %v4083_v10, 2 }
 0x2b1   :  { %v3713_v57 = vadd.f32 %v3609_v13, %v3478_v12  ;;  %v4281_v53 = vadd.f32 %v4172_v35, %v4037_v4  ;;  %v3623_v4 = vrot.slane %v3523_v42, 2  ;;  %13028 = vst [vmem:[#allocation53_spill] sm:$0xff] %v9759_v21  ;;  %v13029_v12 = vrot.slane %v9628_v44, 1  ;;  %v13181_v21 = vld [vmem:[#allocation51_spill] sm:$0xff] }
 0x2b2   :  { %13027 = vst [vmem:[#allocation29_spill] sm:$0xff] %v9757_v32  ;;  %v13030_v35 = vrot.slane %v9230_v41, 1  ;;  %v4184_v13 = vrot.slane %v9658_v18, 2  ;;  %v9780_v42 = vmul.f32 %v9563_v24, %v3072_v58  ;;  %v13034_v41 = vrot.slane %v9612_v60, 1 }
 0x2b3   :  { %13031 = vst [vmem:[#allocation122_spill] sm:$0xff] %v9769_v22  ;;  %v9777_v15 = vadd.f32 %v9474_v36, %v3713_v57  ;;  %v9792_v18 = vmul.f32 %v9577_v30, %v3072_v58  ;;  %v9795_v36 = vmul.f32 %v9605_v55, %v3072_v58  ;;  %v9798_v57 = vmul.f32 %v9249_v37, %v3072_v58 }
 0x2b4   :  { %v9766_v51 = vsel %vm571_vm1, %v13030_v35, %v13029_v12  ;;  %13032 = vst [vmem:[#allocation127_spill] sm:$0xff] %v9772_v59  ;;  %v3389_v1 = vsel %vm571_vm1, %v13034_v41, %v3388_v11  ;;  %v3942_v12 = vrot.slane %v3839_v54, 1  ;;  %v9786_v35 = vadd.f32 %v9478_v50, %v4281_v53  ;;  %v3090_v50 = vpop.permute.xlu1 %3089 }
 0x2b5   :  { %13033 = vst [vmem:[#allocation91_spill] sm:$0xff] %v9780_v42  ;;  %v9801_v60 = vmul.f32 %v9209_v6, %v3072_v58  ;;  %v9804_v11 = vmul.f32 %v9218_v49, %v3072_v58  ;;  %v3484_v41 = vadd.f32 %v3389_v1, %v9635_v39  ;;  %v4486_v10 = vrot.slane %v9664_v38, 1 }
 0x2b6   :  { %13035 = vst [vmem:[#allocation93_spill] sm:$0xff] %v9789_v40  ;;  %v4488_v43 = vrot.slane %v4391_v19, 1  ;;  %v4722_v20 = vrot.slane %v9668_v34, 2  ;;  %v13041_v58 = vrot.slane %v9624_v52, 2  ;;  %v9818_v53 = vmul.f32 %v9504_v3, %v3090_v50  ;;  %v13173_v40 = vld [vmem:[#allocation113_spill] sm:$0xff] }
 0x2b7   :  { %13036 = vst [vmem:[#allocation45_spill] sm:$0xff] %v9792_v18  ;;  %v9821_v39 = vmul.f32 %v9512_v48, %v3090_v50  ;;  %v13045_v1 = vrot.slane %v9235_v62, 2  ;;  %v13050_v38 = vrot.slane %v9239_v23, 1  ;;  %v3847_v23 = vmul.f32 %v9563_v24, %v9698_v28 }
 0x2b8   :  { %13037 = vst [vmem:[#allocation94_spill] sm:$0xff] %v9795_v36  ;;  %v3624_v26 = vsel %vm808_vm2, %v13041_v58, %v3623_v4  ;;  %v9835_v4 = vpop.permute.xlu0 %3084  ;;  %v9840_v36 = vsel %vm808_vm2, %v4184_v13, %v4186_v7  ;;  %v9851_v62 = vsel %vm571_vm1, %v4486_v10, %v4488_v43  ;;  %v9859_v7 = vmul.f32 %v9605_v55, %v3090_v50 }
 0x2b9   :  { %13038 = vst [vmem:[#allocation12_spill] sm:$0xff] %v9798_v57  ;;  %v4627_v57 = vmul.f32 %v9218_v49, %v3216_v5  ;;  %v13044_v5 = vrot.slane %v9628_v44, 1  ;;  %v9833_v52 = vsel %vm808_vm2, %v13045_v1, %v4184_v13  ;;  %v9837_v58 = vadd.f32 %v3624_v26, %v3484_v41 }
 0x2ba   :  { %13039 = vst [vmem:[#allocation11_spill] sm:$0xff] %v9801_v60  ;;  %v9845_v19 = vsel %vm571_vm1, %v13050_v38, %v4486_v10  ;;  %v9848_v44 = vmul.f32 %v9493_v9, %v3090_v50  ;;  %v9864_v38 = vmul.f32 %v9563_v24, %v3090_v50  ;;  %v3296_v43 = vmul.f32 %v9504_v3, %v9698_v28 }
 0x2bb   :  { %13040 = vst [vmem:[#allocation40_spill] sm:$0xff] %v9804_v11  ;;  %v9828_v34 = vsel %vm571_vm1, %v13044_v5, %v3942_v12  ;;  %v3231_v12 = vpop.permute.xlu2 %3230  ;;  %v13052_v5 = vrot.slane %v9253_v46, 2  ;;  %v4724_v41 = vrot.slane %v4627_v57, 2  ;;  %v9869_v10 = vmul.f32 %v9577_v30, %v3090_v50 }
 0x2bc   :  { %13042 = vst [vmem:[#allocation63_spill] sm:$0xff] %v9818_v53  ;;  %v9872_v46 = vmul.f32 %v9249_v37, %v3090_v50  ;;  %v3297_v57 = vmul.f32 %v9504_v3, %v3231_v12  ;;  %v3531_v1 = vmul.f32 %v9512_v48, %v9698_v28  ;;  %v3532_v13 = vmul.f32 %v9512_v48, %v3231_v12 }
 0x2bd   :  { %13043 = vst [vmem:[#allocation114_spill] sm:$0xff] %v9821_v39  ;;  %v9856_v26 = vsel %vm808_vm2, %v13052_v5, %v4722_v20  ;;  %v3401_v5 = vrot.slane %v3296_v43, 1  ;;  %v3848_v47 = vmul.f32 %v9563_v24, %v3231_v12  ;;  %v9882_v54 = vsel %vm808_vm2, %v4722_v20, %v4724_v41 }
 0x2be   :  { %13046 = vst [vmem:[#allocation76_spill] sm:$0xff] %v9833_v52  ;;  %v9885_v39 = vmul.f32 %v9209_v6, %v3090_v50  ;;  %v9891_v43 = vmul.f32 %v9218_v49, %v3090_v50  ;;  %v4092_v25 = vmul.f32 %v9577_v30, %v3231_v12  ;;  %v9900_v41 = vmul.f32 %v9249_v37, %v9835_v4 }
 0x2bf   :  { %13047 = vst [vmem:[#allocation41_spill] sm:$0xff] %v9835_v4  ;;  %v3636_v11 = vrot.slane %v3531_v1, 2  ;;  %v3149_v53 = vmul.f32 %v9493_v9, %v9698_v28  ;;  %v3638_v50 = vrot.slane %v3532_v13, 2  ;;  %v3957_v60 = vrot.slane %v3848_v47, 1 }
 0x2c0   :  { %13048 = vst [vmem:[#allocation77_spill] sm:$0xff] %v9837_v58  ;;  %v4399_v18 = vmul.f32 %v9209_v6, %v9698_v28  ;;  %v4400_v20 = vmul.f32 %v9209_v6, %v3231_v12  ;;  %v4636_v1 = vmul.f32 %v9218_v49, %v3231_v12  ;;  %v13174_v32 = vrot.slane %v13173_v40, 1 }
 0x2c1   :  { %13049 = vst [vmem:[#allocation42_spill] sm:$0xff] %v9840_v36 }
 0x2c2   :  { %13051 = vst [vmem:[#allocation73_spill] sm:$0xff] %v9848_v44  ;;  %v4091_v44 = vmul.f32 %v9577_v30, %v9698_v28 }
 0x2c3   :  { %13053 = vst [vmem:[#allocation80_spill] sm:$0xff] %v9859_v7  ;;  %v13059_v7 = vrot.slane %v9286_v56, 1 }
 0x2c4   :  { %13054 = vst [vmem:[#allocation48_spill] sm:$0xff] %v9864_v38  ;;  %v3955_v38 = vrot.slane %v3847_v23, 1  ;;  %v3639_v23 = vsel %vm808_vm2, %v3636_v11, %v3638_v50  ;;  %v9936_v50 = vpop.permute.xlu1 %3102 }
 0x2c5   :  { %13055 = vst [vmem:[#allocation82_spill] sm:$0xff] %v9869_v10  ;;  %v3402_v63 = vsel %vm571_vm1, %v13059_v7, %v3401_v5  ;;  %v4199_v7 = vrot.slane %v4091_v44, 2  ;;  %v3099_v10 = vpop.permute.xlu0 %3098  ;;  %v4501_v44 = vrot.slane %v4399_v18, 1 }
 0x2c6   :  { %13056 = vst [vmem:[#allocation49_spill] sm:$0xff] %v9872_v46  ;;  %v3403_v46 = vrot.slane %v3297_v57, 1  ;;  %v3489_v56 = vadd.f32 %v3402_v63, %v9324_v2  ;;  %v13061_v2 = vrot.slane %v9295_v16, 2  ;;  %v9929_v47 = vsel %vm571_vm1, %v3955_v38, %v3957_v60 }
 0x2c7   :  { %13057 = vst [vmem:[#allocation102_spill] sm:$0xff] %v9885_v39  ;;  %v13067_v16 = vrot.slane %v9303_v0, 2  ;;  %v13073_v60 = vrot.slane %v9308_v33, 1  ;;  %v3305_v33 = vmul.f32 %v9504_v3, %v9835_v4  ;;  %v10001_v39 = vmul.f32 %v9218_v49, %v3099_v10 }
 0x2c8   :  { %13058 = vst [vmem:[#allocation43_spill] sm:$0xff] %v9891_v43  ;;  %v3404_v57 = vsel %vm571_vm1, %v3401_v5, %v3403_v46  ;;  %v4635_v46 = vmul.f32 %v9218_v49, %v9698_v28  ;;  %v3637_v63 = vsel %vm808_vm2, %v13061_v2, %v3636_v11  ;;  %v13062_v5 = vrot.slane %v9299_v14, 1  ;;  %v3246_v14 = vpop.permute.xlu2 %3245 }
 0x2c9   :  { %13060 = vst [vmem:[#allocation115_spill] sm:$0xff] %v9900_v41  ;;  %v3490_v42 = vadd.f32 %v3404_v57, %v3149_v53  ;;  %v4201_v41 = vrot.slane %v4092_v25, 2  ;;  %v4503_v53 = vrot.slane %v4400_v20, 1  ;;  %v9924_v57 = vmul.f32 %v9504_v3, %v3099_v10 }
 0x2ca   :  { %v9921_v25 = vsel %vm571_vm1, %v13062_v5, %v3955_v38  ;;  %v9926_v12 = vadd.f32 %v3637_v63, %v3489_v56  ;;  %13066 = vst [vmem:[#allocation84_spill] sm:$0xff] %v9929_v47  ;;  %v9934_v18 = vsel %vm808_vm2, %v13067_v16, %v4199_v7  ;;  %v4737_v11 = vrot.slane %v4635_v46, 2 }
 0x2cb   :  { %13063 = vst [vmem:[#allocation112_spill] sm:$0xff] %v9921_v25  ;;  %v9938_v2 = vadd.f32 %v3639_v23, %v3490_v42  ;;  %v9941_v20 = vsel %vm808_vm2, %v4199_v7, %v4201_v41  ;;  %v4739_v5 = vrot.slane %v4636_v1, 2  ;;  %v9944_v56 = vmul.f32 %v9493_v9, %v3099_v10 }
 0x2cc   :  { %13064 = vst [vmem:[#allocation78_spill] sm:$0xff] %v9924_v57  ;;  %v9949_v0 = vsel %vm571_vm1, %v13073_v60, %v4501_v44  ;;  %v9952_v38 = vmul.f32 %v9512_v48, %v3099_v10  ;;  %v9955_v46 = vmul.f32 %v9605_v55, %v3099_v10  ;;  %v9958_v42 = vmul.f32 %v9563_v24, %v3099_v10 }
 0x2cd   :  { %13065 = vst [vmem:[#allocation79_spill] sm:$0xff] %v9926_v12  ;;  %v9961_v41 = vsel %vm571_vm1, %v4501_v44, %v4503_v53  ;;  %v3306_v1 = vmul.f32 %v9504_v3, %v3246_v14  ;;  %v13079_v63 = vrot.slane %v9312_v17, 2  ;;  %v9973_v16 = vmul.f32 %v9577_v30, %v3099_v10 }
 0x2ce   :  { %13068 = vst [vmem:[#allocation116_spill] sm:$0xff] %v9934_v18  ;;  %v3540_v60 = vmul.f32 %v9512_v48, %v9835_v4  ;;  %v3541_v44 = vmul.f32 %v9512_v48, %v3246_v14  ;;  %v3416_v53 = vrot.slane %v3305_v33, 1  ;;  %v3856_v7 = vmul.f32 %v9563_v24, %v9835_v4 }
 0x2cf   :  { %13069 = vst [vmem:[#allocation145_spill] sm:$0xff] %v9936_v50  ;;  %v9970_v23 = vsel %vm808_vm2, %v13079_v63, %v4737_v11  ;;  %v3418_v13 = vrot.slane %v3306_v1, 1  ;;  %v3857_v43 = vmul.f32 %v9563_v24, %v3246_v14  ;;  %v9982_v17 = vsel %vm808_vm2, %v4737_v11, %v4739_v5 }
 0x2d0   :  { %13070 = vst [vmem:[#allocation146_spill] sm:$0xff] %v9938_v2  ;;  %v4100_v57 = vmul.f32 %v9577_v30, %v9835_v4  ;;  %v4101_v50 = vmul.f32 %v9577_v30, %v3246_v14  ;;  %v9998_v5 = vmul.f32 %v9209_v6, %v3099_v10  ;;  %v3651_v63 = vrot.slane %v3540_v60, 2 }
 0x2d1   :  { %13071 = vst [vmem:[#allocation147_spill] sm:$0xff] %v9941_v20  ;;  %v3419_v1 = vsel %vm571_vm1, %v3416_v53, %v3418_v13  ;;  %v3972_v13 = vrot.slane %v3857_v43, 1  ;;  %v4409_v11 = vmul.f32 %v9209_v6, %v3246_v14  ;;  %v4645_v2 = vmul.f32 %v9218_v49, %v3246_v14 }
 0x2d2   :  { %13072 = vst [vmem:[#allocation148_spill] sm:$0xff] %v9944_v56  ;;  %v13084_v56 = vrot.slane %v9400_v31, 1  ;;  %v3155_v31 = vmul.f32 %v9493_v9, %v9835_v4  ;;  %v4214_v20 = vrot.slane %v4100_v57, 2  ;;  %v4216_v18 = vrot.slane %v4101_v50, 2 }
 0x2d3   :  { %13074 = vst [vmem:[#allocation149_spill] sm:$0xff] %v9949_v0  ;;  %v13088_v50 = vrot.slane %v9414_v45, 1 }
 0x2d4   :  { %13075 = vst [vmem:[#allocation150_spill] sm:$0xff] %v9952_v38  ;;  %v3417_v33 = vsel %vm571_vm1, %v13084_v56, %v3416_v53  ;;  %v3653_v56 = vrot.slane %v3541_v44, 2  ;;  %v4408_v38 = vmul.f32 %v9209_v6, %v9835_v4  ;;  %v13087_v44 = vrot.slane %v9404_v61, 2  ;;  %v10032_v61 = vpop.permute.xlu0 %3111 }
 0x2d5   :  { %13076 = vst [vmem:[#allocation151_spill] sm:$0xff] %v9955_v46  ;;  %v9987_v46 = vmul.f32 %v9249_v37, %v3099_v10  ;;  %v3495_v53 = vadd.f32 %v3417_v33, %v9390_v29  ;;  %v4644_v10 = vmul.f32 %v9218_v49, %v9835_v4  ;;  %v4518_v29 = vrot.slane %v4409_v11, 1 }
 0x2d6   :  { %13077 = vst [vmem:[#allocation152_spill] sm:$0xff] %v9958_v42  ;;  %v3496_v42 = vadd.f32 %v3419_v1, %v3155_v31  ;;  %v3652_v33 = vsel %vm808_vm2, %v13087_v44, %v3651_v63  ;;  %v3654_v1 = vsel %vm808_vm2, %v3651_v63, %v3653_v56  ;;  %v13094_v56 = vrot.slane %v9418_v8, 2  ;;  %v13102_v8 = vld [vmem:[#allocation66_spill] sm:$0xff] }
 0x2d7   :  { %13078 = vst [vmem:[#allocation153_spill] sm:$0xff] %v9961_v41  ;;  %v4752_v31 = vrot.slane %v4644_v10, 2  ;;  %v10034_v44 = vadd.f32 %v3652_v33, %v3495_v53  ;;  %v10044_v10 = vsel %vm808_vm2, %v4214_v20, %v4216_v18  ;;  %v13103_v33 = vrot.slane %v13102_v8, 2 }
 0x2d8   :  { %13080 = vst [vmem:[#allocation154_spill] sm:$0xff] %v9970_v23  ;;  %v10036_v63 = vadd.f32 %v3654_v1, %v3496_v42  ;;  %v10041_v45 = vsel %vm808_vm2, %v13094_v56, %v4214_v20  ;;  %v3314_v56 = vmul.f32 %v9504_v3, %v10032_v61  ;;  %v10107_v4 = vmul.f32 %v9249_v37, %v10032_v61  ;;  %v13175_v23 = vld [vmem:[#allocation9_spill] sm:$0xff] }
 0x2d9   :  { %13081 = vst [vmem:[#allocation155_spill] sm:$0xff] %v9973_v16  ;;  %v3117_v16 = vpop.permute.xlu1 %3116  ;;  %v10061_v1 = vsel %vm808_vm2, %v13103_v33, %v4752_v31 }
 0x2da   :  { %13082 = vst [vmem:[#allocation156_spill] sm:$0xff] %v9982_v17  ;;  %v10019_v57 = vmul.f32 %v9504_v3, %v3117_v16  ;;  %v10030_v11 = vmul.f32 %v9512_v48, %v3117_v16  ;;  %v3162_v42 = vmul.f32 %v9493_v9, %v3117_v16  ;;  %v10056_v53 = vmul.f32 %v9605_v55, %v3117_v16 }
 0x2db   :  { %13083 = vst [vmem:[#allocation157_spill] sm:$0xff] %v9987_v46  ;;  %v3970_v46 = vrot.slane %v3856_v7, 1  ;;  %v4516_v7 = vrot.slane %v4408_v38, 1  ;;  %v4754_v38 = vrot.slane %v4645_v2, 2  ;;  %v10065_v20 = vmul.f32 %v9563_v24, %v3117_v16 }
 0x2dc   :  { %13085 = vst [vmem:[#allocation158_spill] sm:$0xff] %v9998_v5  ;;  %v3435_v18 = vrot.slane %v10019_v57, 1  ;;  %v3431_v8 = vrot.slane %v3314_v56, 1  ;;  %v3865_v57 = vmul.f32 %v9563_v24, %v10032_v61  ;;  %v10088_v56 = vmul.f32 %v9209_v6, %v3117_v16 }
 0x2dd   :  { %13086 = vst [vmem:[#allocation159_spill] sm:$0xff] %v10001_v39  ;;  %v10024_v14 = vsel %vm571_vm1, %v13088_v50, %v3970_v46  ;;  %v10027_v60 = vsel %vm571_vm1, %v3970_v46, %v3972_v13  ;;  %v3261_v46 = vpop.permute.xlu2 %3260  ;;  %v13097_v13 = vld [vmem:[#allocation70_spill] sm:$0xff]  ;;  %v10052_v43 = vsel %vm571_vm1, %v4516_v7, %v4518_v29  ;;  %v3670_v29 = vrot.slane %v10030_v11, 2 }
 0x2de   :  { %13089 = vst [vmem:[#allocation160_spill] sm:$0xff] %v10024_v14  ;;  %v13098_v2 = vrot.slane %v13097_v13, 1  ;;  %v3315_v13 = vmul.f32 %v9504_v3, %v3261_v46  ;;  %v3550_v33 = vmul.f32 %v9512_v48, %v3261_v46  ;;  %v4110_v11 = vmul.f32 %v9577_v30, %v3261_v46 }
 0x2df   :  { %13090 = vst [vmem:[#allocation161_spill] sm:$0xff] %v10027_v60  ;;  %v3985_v60 = vrot.slane %v3865_v57, 1  ;;  %v4653_v57 = vmul.f32 %v9218_v49, %v10032_v61 }
 0x2e0   :  { %13091 = vst [vmem:[#allocation162_spill] sm:$0xff] %v10032_v61  ;;  %v10049_v50 = vsel %vm571_vm1, %v13098_v2, %v4516_v7  ;;  %v10070_v7 = vsel %vm808_vm2, %v4752_v31, %v4754_v38  ;;  %v3549_v2 = vmul.f32 %v9512_v48, %v10032_v61  ;;  %v3433_v31 = vrot.slane %v3315_v13, 1 }
 0x2e1   :  { %13092 = vst [vmem:[#allocation163_spill] sm:$0xff] %v10034_v44  ;;  %v4109_v38 = vmul.f32 %v9577_v30, %v10032_v61  ;;  %v13110_v44 = vld [vmem:[#allocation124_spill] sm:$0xff]  ;;  %v3161_v13 = vmul.f32 %v9493_v9, %v10032_v61  ;;  %v4231_v41 = vrot.slane %v4110_v11, 2 }
 0x2e2   :  { %13093 = vst [vmem:[#allocation164_spill] sm:$0xff] %v10036_v63  ;;  %v10091_v63 = vmul.f32 %v9218_v49, %v3117_v16  ;;  %v13111_v39 = vrot.slane %v13110_v44, 1 }
 0x2e3   :  { %13095 = vst [vmem:[#allocation165_spill] sm:$0xff] %v10041_v45  ;;  %v13113_v45 = vld [vmem:[#allocation83_spill] sm:$0xff]  ;;  %v4229_v44 = vrot.slane %v4109_v38, 2  ;;  %v13118_v38 = vld [vmem:[#allocation144_spill] sm:$0xff] }
 0x2e4   :  { %13096 = vst [vmem:[#allocation166_spill] sm:$0xff] %v10044_v10  ;;  %v10081_v10 = vmul.f32 %v9577_v30, %v3117_v16  ;;  %v3432_v5 = vsel %vm571_vm1, %v13111_v39, %v3431_v8  ;;  %v13119_v11 = vrot.slane %v13118_v38, 1 }
 0x2e5   :  { %13099 = vst [vmem:[#allocation70_spill] sm:$0xff] %v10049_v50  ;;  %v10100_v50 = vmul.f32 %v9249_v37, %v3117_v16  ;;  %v4418_v16 = vmul.f32 %v9209_v6, %v3261_v46 }
 0x2e6   :  { %13100 = vst [vmem:[#allocation167_spill] sm:$0xff] %v10052_v43  ;;  %v3666_v43 = vrot.slane %v3549_v2, 2  ;;  %v4417_v2 = vmul.f32 %v9209_v6, %v10032_v61 }
 0x2e7   :  { %13101 = vst [vmem:[#allocation168_spill] sm:$0xff] %v10056_v53  ;;  %v3866_v53 = vmul.f32 %v9563_v24, %v3261_v46 }
 0x2e8   :  { %13104 = vst [vmem:[#allocation66_spill] sm:$0xff] %v10061_v1  ;;  %v3668_v1 = vrot.slane %v3550_v33, 2  ;;  %v4531_v38 = vrot.slane %v4417_v2, 1 }
 0x2e9   :  { %13105 = vst [vmem:[#allocation169_spill] sm:$0xff] %v10065_v20  ;;  %v3501_v20 = vadd.f32 %v3432_v5, %v13113_v45  ;;  %v3987_v12 = vrot.slane %v3866_v53, 1  ;;  %v13115_v45 = vld [vmem:[#allocation139_spill] sm:$0xff]  ;;  %v4654_v5 = vmul.f32 %v9218_v49, %v3261_v46 }
 0x2ea   :  { %13106 = vst [vmem:[#allocation170_spill] sm:$0xff] %v10070_v7  ;;  %v3434_v7 = vsel %vm571_vm1, %v3431_v8, %v3433_v31  ;;  %v3126_v8 = vpop.permute.xlu0 %3125  ;;  %v13116_v53 = vrot.slane %v13115_v45, 2  ;;  %v3669_v33 = vsel %vm808_vm2, %v3666_v43, %v3668_v1  ;;  %v10130_v45 = vpop.permute.xlu1 %3129 }
 0x2eb   :  { %13107 = vst [vmem:[#allocation171_spill] sm:$0xff] %v10081_v10  ;;  %v3502_v17 = vadd.f32 %v3434_v7, %v3161_v13  ;;  %v10124_v13 = vsel %vm571_vm1, %v13119_v11, %v3985_v60  ;;  %v10127_v39 = vsel %vm571_vm1, %v3985_v60, %v3987_v12  ;;  %v4533_v11 = vrot.slane %v4418_v16, 1 }
 0x2ec   :  { %13108 = vst [vmem:[#allocation172_spill] sm:$0xff] %v10088_v56  ;;  %v3667_v7 = vsel %vm808_vm2, %v13116_v53, %v3666_v43  ;;  %v13124_v43 = vld [vmem:[#allocation30_spill] sm:$0xff]  ;;  %v10144_v12 = vmul.f32 %v9249_v37, %v3126_v8  ;;  %v10147_v60 = vmul.f32 %v9209_v6, %v3126_v8  ;;  %v10151_v46 = vmul.f32 %v9504_v3, %v10130_v45  ;;  %v13135_v56 = vld [vmem:[#allocation120_spill] sm:$0xff] }
 0x2ed   :  { %13109 = vst [vmem:[#allocation173_spill] sm:$0xff] %v10091_v63  ;;  %v10119_v31 = vadd.f32 %v3667_v7, %v3501_v20  ;;  %v10132_v53 = vadd.f32 %v3669_v33, %v3502_v17  ;;  %v13125_v1 = vrot.slane %v13124_v43, 2  ;;  %v10140_v20 = vsel %vm808_vm2, %v4229_v44, %v4231_v41  ;;  %v13131_v33 = vld [vmem:[#allocation50_spill] sm:$0xff] }
 0x2ee   :  { %13112 = vst [vmem:[#allocation124_spill] sm:$0xff] %v10100_v50  ;;  %v3319_v7 = vmul.f32 %v9504_v3, %v3126_v8  ;;  %v4767_v17 = vrot.slane %v4653_v57, 2  ;;  %v13132_v43 = vrot.slane %v13131_v33, 1  ;;  %v3554_v2 = vmul.f32 %v9512_v48, %v3126_v8  ;;  %v10164_v57 = vpop.permute.xlu2 %3745 }
 0x2ef   :  { %13114 = vst [vmem:[#allocation83_spill] sm:$0xff] %v10107_v4  ;;  %v10137_v14 = vsel %vm808_vm2, %v13125_v1, %v4229_v44  ;;  %v4769_v1 = vrot.slane %v4654_v5, 2  ;;  %v10159_v16 = vmul.f32 %v9512_v48, %v10130_v45  ;;  %v10162_v6 = vmul.f32 %v9218_v49, %v3126_v8  ;;  %v13155_v4 = vld [vmem:[#allocation142_spill] sm:$0xff] }
 0x2f0   :  { %13117 = vst [vmem:[#allocation139_spill] sm:$0xff] %v10119_v31  ;;  %v3437_v41 = vsel %vm571_vm1, %v3435_v18, %v13132_v43  ;;  %v3440_v44 = vrot.slane %v3319_v7, 1  ;;  %v13136_v33 = vrot.slane %v13135_v56, 2  ;;  %v3870_v5 = vmul.f32 %v9563_v24, %v3126_v8 }
 0x2f1   :  { %13120 = vst [vmem:[#allocation144_spill] sm:$0xff] %v10124_v13  ;;  %v3503_v63 = vadd.f32 %v3437_v41, %v3162_v42  ;;  %v3164_v42 = vmul.f32 %v9493_v9, %v3126_v8  ;;  %v3783_v43 = vmul.f32 %v9605_v55, %v3126_v8  ;;  %v10175_v41 = vmul.f32 %v9563_v24, %v10130_v45 }
 0x2f2   :  { %13121 = vst [vmem:[#allocation174_spill] sm:$0xff] %v10127_v39  ;;  %v3672_v18 = vsel %vm808_vm2, %v3670_v29, %v13136_v33  ;;  %v3994_v10 = vrot.slane %v3870_v5, 1  ;;  %v4114_v56 = vmul.f32 %v9577_v30, %v3126_v8  ;;  %v10183_v29 = vmul.f32 %v9577_v30, %v10130_v45 }
 0x2f3   :  { %13122 = vst [vmem:[#allocation175_spill] sm:$0xff] %v10130_v45  ;;  %v3738_v7 = vadd.f32 %v3672_v18, %v3503_v63  ;;  %v3675_v33 = vrot.slane %v3554_v2, 2  ;;  %v10188_v18 = vmul.f32 %v9563_v24, %v10164_v57  ;;  %v10197_v8 = vsel %vm571_vm1, %v4531_v38, %v4533_v11  ;;  %v13144_v2 = vld [vmem:[#allocation97_spill] sm:$0xff] }
 0x2f4   :  { %13123 = vst [vmem:[#allocation176_spill] sm:$0xff] %v10132_v53  ;;  %v13145_v53 = vrot.slane %v13144_v2, 2  ;;  %v10206_v31 = vsel %vm808_vm2, %v4767_v17, %v4769_v1  ;;  %v4238_v5 = vrot.slane %v4114_v56, 2  ;;  %v10221_v1 = vmul.f32 %v9577_v30, %v10164_v57  ;;  %v3211_v2 = vpop.permute.xlu1 %3210 }
 0x2f5   :  { %13126 = vst [vmem:[#allocation30_spill] sm:$0xff] %v10137_v14  ;;  %v4080_v45 = vmul.f32 %v9577_v30, %v3211_v2 }
 0x2f6   :  { %13127 = vst [vmem:[#allocation177_spill] sm:$0xff] %v10140_v20  ;;  %v13140_v20 = vld [vmem:[#allocation95_spill] sm:$0xff]  ;;  %v10203_v63 = vsel %vm808_vm2, %v13145_v53, %v4767_v17 }
 0x2f7   :  { %13128 = vst [vmem:[#allocation178_spill] sm:$0xff] %v10144_v12  ;;  %v12302_v12 = vrot.slane %v10151_v46, 1  ;;  %v13141_v14 = vrot.slane %v13140_v20, 1  ;;  %v3815_v20 = vadd.f32 %v3783_v43, %v3738_v7  ;;  %v13151_v7 = vld [vmem:[#allocation141_spill] sm:$0xff]  ;;  %v4181_v61 = vrot.slane %v4080_v45, 2 }
 0x2f8   :  { %13129 = vst [vmem:[#allocation179_spill] sm:$0xff] %v10147_v60  ;;  %v3284_v43 = vmul.f32 %v9504_v3, %v13151_v7  ;;  %v3519_v56 = vmul.f32 %v9512_v48, %v13151_v7 }
 0x2f9   :  { %13130 = vst [vmem:[#allocation180_spill] sm:$0xff] %v10151_v46  ;;  %v3442_v49 = vsel %vm571_vm1, %v3440_v44, %v12302_v12  ;;  %v10194_v44 = vsel %vm571_vm1, %v13141_v14, %v4531_v38  ;;  %v3785_v14 = vmul.f32 %v9605_v55, %v10164_v57  ;;  %v13148_v38 = vrot.slane %v10175_v41, 1 }
 0x2fa   :  { %13133 = vst [vmem:[#allocation181_spill] sm:$0xff] %v10159_v16  ;;  %v3505_v12 = vadd.f32 %v3442_v49, %v3164_v42  ;;  %v12305_v42 = vrot.slane %v10183_v29, 2  ;;  %v13149_v49 = vrot.slane %v10159_v16, 2  ;;  %v13156_v46 = vrot.slane %v13155_v4, 2 }
 0x2fb   :  { %13134 = vst [vmem:[#allocation182_spill] sm:$0xff] %v10162_v6  ;;  %v3996_v11 = vsel %vm571_vm1, %v3994_v10, %v13148_v38  ;;  %v10227_v10 = vmul.f32 %v9249_v37, %v10164_v57  ;;  %v4079_v37 = vmul.f32 %v9577_v30, %v13151_v7 }
 0x2fc   :  { %13137 = vst [vmem:[#allocation183_spill] sm:$0xff] %v10175_v41  ;;  %v3677_v53 = vsel %vm808_vm2, %v3675_v33, %v13149_v49  ;;  %v3835_v33 = vmul.f32 %v9563_v24, %v13151_v7  ;;  %v4064_v38 = vadd.f32 %v3996_v11, %v3815_v20  ;;  %v10236_v49 = vld [vmem:[%s12003_s1 + $0x7] ss:$0 sm:$0xff]  ;;  %v3285_v11 = vmul.f32 %v9504_v3, %v3211_v2  ;;  %v13154_v41 = vld [vmem:[#allocation104_spill] sm:$0xff] }
 0x2fd   :  { %13138 = vst [vmem:[#allocation184_spill] sm:$0xff] %v10183_v29  ;;  %v3740_v50 = vadd.f32 %v3677_v53, %v3505_v12  ;;  %v10240_v17 = vmul.f32 %v10236_v49, %v10164_v57  ;;  %v3381_v12 = vrot.slane %v3284_v43, 1  ;;  %v4240_v53 = vsel %vm808_vm2, %v4238_v5, %v12305_v42  ;;  %v10258_v43 = vld [vmem:[%s12003_s1 + $0x8] ss:$0 sm:$0xff] }
 0x2fe   :  { %13139 = vst [vmem:[#allocation185_spill] sm:$0xff] %v10188_v18  ;;  %v3616_v18 = vrot.slane %v3519_v56, 2  ;;  %v10249_v20 = vmul.f32 %v10236_v49, %v13151_v7  ;;  %v10262_v5 = vmul.f32 %v10258_v43, %v13151_v7  ;;  %v13152_v56 = vld [vmem:[#allocation123_spill] sm:$0xff]  ;;  %v3383_v6 = vrot.slane %v3285_v11, 1 }
 0x2ff   :  { %13142 = vst [vmem:[#allocation95_spill] sm:$0xff] %v10194_v44  ;;  %v13153_v42 = vrot.slane %v13152_v56, 1  ;;  %v4179_v60 = vrot.slane %v4079_v37, 2  ;;  %v3836_v44 = vmul.f32 %v9563_v24, %v3211_v2  ;;  %v10276_v11 = vadd.f32 %v3785_v14, %v3740_v50 }
 0x300   :  { %13143 = vst [vmem:[#allocation186_spill] sm:$0xff] %v10197_v8  ;;  %v3935_v8 = vrot.slane %v3835_v33, 1  ;;  %v12316_v39 = vrot.slane %v10249_v20, 1  ;;  %v3384_v56 = vsel %vm571_vm1, %v3381_v12, %v3383_v6  ;;  %v10282_v37 = vadd.f32 %v4240_v53, %v4064_v38  ;;  %v13170_v6 = vld [vmem:[#allocation20_spill] sm:$0xff] }
 0x301   :  { %13146 = vst [vmem:[#allocation97_spill] sm:$0xff] %v10203_v63  ;;  %v3382_v29 = vsel %vm571_vm1, %v13153_v42, %v3381_v12  ;;  %v3617_v63 = vsel %vm808_vm2, %v13156_v46, %v3616_v18  ;;  %v3937_v4 = vrot.slane %v3836_v44, 1  ;;  %v13158_v46 = vld [vmem:[#allocation16_spill] sm:$0xff]  ;;  %v10286_v59 = vmul.f32 %v10236_v49, %v3211_v2  ;;  %v13165_v12 = vld [vmem:[#allocation69_spill] sm:$0xff] }
 0x302   :  { %13147 = vst [vmem:[#allocation187_spill] sm:$0xff] %v10206_v31  ;;  %v3141_v31 = vmul.f32 %v9493_v9, %v13151_v7  ;;  %v3481_v16 = vadd.f32 %v3382_v29, %v13154_v41  ;;  %v10280_v41 = vmul.f32 %v10258_v43, %v10164_v57  ;;  %v13166_v53 = vrot.slane %v13165_v12, 1  ;;  %v13168_v12 = vld [vmem:[#allocation135_spill] sm:$0xff] }
 0x303   :  { %13150 = vst [vmem:[#allocation188_spill] sm:$0xff] %v10221_v1  ;;  %v3520_v1 = vmul.f32 %v9512_v48, %v3211_v2 }
 0x304   :  { %v3716_v33 = vadd.f32 %v3617_v63, %v3481_v16  ;;  %13157 = vst [vmem:[#allocation141_spill] sm:$0xff] %v10276_v11  ;;  %v3482_v29 = vadd.f32 %v3384_v56, %v3141_v31  ;;  %v13160_v16 = vld [vmem:[#allocation24_spill] sm:$0xff]  ;;  %v4482_v56 = vsel %vm571_vm1, %v13166_v53, %v12316_v39  ;;  %v13169_v53 = vrot.slane %v13168_v12, 1 }
 0x305   :  { %v3618_v42 = vrot.slane %v3520_v1, 2  ;;  %v13159_v1 = vld [vmem:[#allocation107_spill] sm:$0xff]  ;;  %v13161_v63 = vrot.slane %v13160_v16, 1  ;;  %v13162_v31 = vld [vmem:[#allocation68_spill] sm:$0xff]  ;;  %v13167_v16 = vld [vmem:[#allocation117_spill] sm:$0xff]  ;;  %v13171_v11 = vrot.slane %v13170_v6, 2 }
 0x306   :  { %v3793_v13 = vadd.f32 %v13158_v46, %v3716_v33  ;;  %v10291_v50 = vmul.f32 %v9605_v55, %v13159_v1  ;;  %v13163_v44 = vrot.slane %v13162_v31, 2  ;;  %v10309_v33 = vmul.f32 %v10258_v43, %v3211_v2 }
 0x307   :  { %v3936_v57 = vsel %vm571_vm1, %v13161_v63, %v3935_v8  ;;  %v3619_v38 = vsel %vm808_vm2, %v3616_v18, %v3618_v42  ;;  %v10312_v1 = vsel %vm571_vm1, %v3935_v8, %v3937_v4  ;;  %v3281_v63 = vmul.f32 %v9504_v3, %v13167_v16 }
 0x308   :  { %v4180_v14 = vsel %vm808_vm2, %v13163_v44, %v4179_v60  ;;  %v10301_v45 = vadd.f32 %v9766_v51, %v3793_v13  ;;  %v3717_v46 = vadd.f32 %v3619_v38, %v3482_v29  ;;  %v3516_v51 = vmul.f32 %v9512_v48, %v13167_v16  ;;  %v3206_v29 = vpop.permute.xlu0 %3205 }
 0x309   :  { %v10319_v13 = vsel %vm808_vm2, %v4179_v60, %v4181_v61  ;;  %v4483_v18 = vrot.slane %v10286_v59, 1  ;;  %v3832_v42 = vmul.f32 %v9563_v24, %v13167_v16  ;;  %v4076_v2 = vmul.f32 %v9577_v30, %v13167_v16 }
 0x30a   :  { %13164 = vst [vmem:[#allocation123_spill] sm:$0xff] %v10301_v45  ;;  %v3139_v8 = vmul.f32 %v9493_v9, %v13167_v16  ;;  %v3376_v4 = vrot.slane %v3281_v63, 1  ;;  %v3611_v31 = vrot.slane %v3516_v51, 2  ;;  %v3760_v44 = vmul.f32 %v9605_v55, %v13151_v7  ;;  %v13178_v45 = vld [vmem:[#allocation32_spill] sm:$0xff] }
 0x30b   :  { %v3930_v38 = vrot.slane %v3832_v42, 1  ;;  %v4174_v61 = vrot.slane %v4076_v2, 2  ;;  %v4384_v59 = vmul.f32 %v10236_v49, %v13167_v16  ;;  %v4620_v60 = vmul.f32 %v10258_v43, %v13167_v16  ;;  %v13172_v42 = vld [vmem:[#allocation33_spill] sm:$0xff] }
 0x30c   :  { %v3377_v39 = vsel %vm571_vm1, %v13169_v53, %v3376_v4  ;;  %v3612_v9 = vsel %vm808_vm2, %v13171_v11, %v3611_v31  ;;  %v3282_v63 = vmul.f32 %v9504_v3, %v3206_v29  ;;  %v3517_v51 = vmul.f32 %v9512_v48, %v3206_v29  ;;  %v13177_v53 = vld [vmem:[#allocation67_spill] sm:$0xff] }
 0x30d   :  { %v3479_v2 = vadd.f32 %v3377_v39, %v13172_v42  ;;  %v3931_v22 = vsel %vm571_vm1, %v13174_v32, %v3930_v38  ;;  %v13176_v16 = vrot.slane %v13175_v23, 2  ;;  %v4476_v0 = vrot.slane %v4384_v59, 1  ;;  %v13180_v42 = vld [vmem:[#allocation92_spill] sm:$0xff] }
 0x30e   :  { %v4038_v27 = vadd.f32 %v3931_v22, %v13177_v53  ;;  %v4712_v6 = vrot.slane %v4620_v60, 2  ;;  %v3378_v36 = vrot.slane %v3282_v63, 1  ;;  %v3613_v11 = vrot.slane %v3517_v51, 2  ;;  %v13183_v60 = vld [vmem:[#allocation105_spill] sm:$0xff] }
 0x30f   :  { %v4175_v12 = vsel %vm808_vm2, %v13176_v16, %v4174_v61  ;;  %v3714_v52 = vadd.f32 %v3612_v9, %v3479_v2  ;;  %v13179_v58 = vrot.slane %v13178_v45, 1  ;;  %v3833_v39 = vmul.f32 %v9563_v24, %v3206_v29 }
 0x310   :  { %v4077_v40 = vmul.f32 %v9577_v30, %v3206_v29  ;;  %v4282_v32 = vadd.f32 %v4175_v12, %v4038_v27  ;;  %v13182_v16 = vrot.slane %v13181_v21, 2  ;;  %v3379_v22 = vsel %vm571_vm1, %v3376_v4, %v3378_v36 }
 0x311   :  { %v4477_v47 = vsel %vm571_vm1, %v13179_v58, %v4476_v0  ;;  %v3791_v63 = vadd.f32 %v13183_v60, %v3714_v52  ;;  %v3480_v9 = vadd.f32 %v3379_v22, %v3139_v8  ;;  %v3614_v45 = vsel %vm808_vm2, %v3611_v31, %v3613_v11  ;;  %v13184_v58 = vld [vmem:[#allocation111_spill] sm:$0xff] }
 0x312   :  { %v4583_v23 = vadd.f32 %v4477_v47, %v13180_v42  ;;  %v4713_v59 = vsel %vm808_vm2, %v13182_v16, %v4712_v6  ;;  %v3932_v51 = vrot.slane %v3833_v39, 1  ;;  %v4349_v2 = vadd.f32 %v13184_v58, %v4282_v32  ;;  %v13187_v52 = vld [vmem:[#allocation143_spill] sm:$0xff]  ;;  %v3226_v58 = vpop.permute.xlu1 %3225 }
 0x313   :  { %v4176_v25 = vrot.slane %v4077_v40, 2  ;;  %v4385_v27 = vmul.f32 %v10236_v49, %v3206_v29  ;;  %v4040_v47 = vadd.f32 %v3936_v57, %v3791_v63  ;;  %v3715_v12 = vadd.f32 %v3614_v45, %v3480_v9 }
 0x314   :  { %v10363_v53 = vadd.f32 %v4713_v59, %v4583_v23  ;;  %v3933_v21 = vsel %vm571_vm1, %v3930_v38, %v3932_v51  ;;  %v4621_v42 = vmul.f32 %v10258_v43, %v3206_v29  ;;  %v13186_v36 = vrot.slane %v10262_v5, 2  ;;  %v10379_v29 = vld [vmem:[%s12003_s1 + $0x6] ss:$0 sm:$0xff] }
 0x315   :  { %v13188_v8 = vrot.slane %v13187_v52, 2  ;;  %v4719_v31 = vrot.slane %v10309_v33, 2  ;;  %v4585_v11 = vadd.f32 %v4482_v56, %v4349_v2  ;;  %v4039_v39 = vadd.f32 %v3933_v21, %v9777_v15  ;;  %v13190_v15 = vld [vmem:[#allocation58_spill] sm:$0xff]  ;;  %v13197_v52 = vld [vmem:[#allocation44_spill] sm:$0xff] }
 0x316   :  { %13185 = vst [vmem:[#allocation104_spill] sm:$0xff] %v10363_v53  ;;  %v4284_v40 = vadd.f32 %v4180_v14, %v4040_v47  ;;  %v3792_v32 = vadd.f32 %v3760_v44, %v3715_v12  ;;  %v4177_v57 = vsel %vm808_vm2, %v4174_v61, %v4176_v25  ;;  %v4478_v23 = vrot.slane %v4385_v27, 1  ;;  %v13236_v2 = vld [vmem:[#allocation72_spill] sm:$0xff] }
 0x317   :  { %v4718_v4 = vsel %vm808_vm2, %v13188_v8, %v13186_v36  ;;  %v4319_v38 = vmul.f32 %v10379_v29, %v13151_v7  ;;  %v4283_v59 = vadd.f32 %v4177_v57, %v4039_v39  ;;  %v4714_v33 = vrot.slane %v4621_v42, 2 }
 0x318   :  { %v10383_v16 = vadd.f32 %v4718_v4, %v4585_v11  ;;  %v3794_v56 = vadd.f32 %v10291_v50, %v3717_v46  ;;  %v4351_v14 = vadd.f32 %v13190_v15, %v4284_v40  ;;  %v4041_v44 = vadd.f32 %v10312_v1, %v3792_v32  ;;  %v13192_v50 = vld [vmem:[#allocation87_spill] sm:$0xff] }
 0x319   :  { %v4479_v25 = vsel %vm571_vm1, %v4476_v0, %v4478_v23  ;;  %v13191_v61 = vrot.slane %v10249_v20, 1  ;;  %v4350_v60 = vadd.f32 %v4319_v38, %v4283_v59  ;;  %v4715_v7 = vsel %vm808_vm2, %v4712_v6, %v4714_v33  ;;  %v13201_v23 = vld [vmem:[#allocation131_spill] sm:$0xff]  ;;  %v10452_v59 = vld [vmem:[%s12003_s1 + $0x2] ss:$0 sm:$0xff] }
 0x31a   :  { %13189 = vst [vmem:[#allocation142_spill] sm:$0xff] %v10383_v16  ;;  %v4584_v63 = vadd.f32 %v4479_v25, %v9786_v35  ;;  %v4587_v9 = vadd.f32 %v9845_v19, %v4351_v14  ;;  %v4285_v45 = vadd.f32 %v10319_v13, %v4041_v44  ;;  %v3293_v46 = vmul.f32 %v9504_v3, %v13192_v50  ;;  %v13195_v19 = vld [vmem:[#allocation98_spill] sm:$0xff] }
 0x31b   :  { %v4484_v22 = vsel %vm571_vm1, %v13191_v61, %v4483_v18  ;;  %v3528_v1 = vmul.f32 %v9512_v48, %v13192_v50  ;;  %v3844_v35 = vmul.f32 %v9563_v24, %v13192_v50  ;;  %v4088_v3 = vmul.f32 %v9577_v30, %v13192_v50  ;;  %v13204_v25 = vld [vmem:[#allocation126_spill] sm:$0xff] }
 0x31c   :  { %v4586_v20 = vadd.f32 %v4484_v22, %v4350_v60  ;;  %v10401_v51 = vadd.f32 %v4715_v7, %v4584_v63  ;;  %v10406_v18 = vadd.f32 %v9856_v26, %v4587_v9  ;;  %v4352_v6 = vadd.f32 %v13195_v19, %v4285_v45 }
 0x31d   :  { %v3396_v13 = vrot.slane %v3293_v46, 1  ;;  %v10413_v48 = vadd.f32 %v10227_v10, %v10282_v37  ;;  %v10417_v27 = vadd.f32 %v9828_v34, %v3794_v56  ;;  %v13196_v47 = vmov %v13186_v36  ;;  %v10428_v10 = vld [vmem:[%s12003_s1] ss:$0 sm:$0xff]  ;;  %v13202_v56 = vld [vmem:[#allocation61_spill] sm:$0xff] }
 0x31e   :  { %13193 = vst [vmem:[#allocation16_spill] sm:$0xff] %v10401_v51  ;;  %v4720_v26 = vsel %vm808_vm2, %v13196_v47, %v4719_v31  ;;  %v4588_v12 = vadd.f32 %v9851_v62, %v4352_v6  ;;  %v3631_v21 = vrot.slane %v3528_v1, 2  ;;  %v3950_v42 = vrot.slane %v3844_v35, 1  ;;  %v10437_v62 = vld [vmem:[%s12003_s1 + $0x1] ss:$0 sm:$0xff] }
 0x31f   :  { %13194 = vst [vmem:[#allocation107_spill] sm:$0xff] %v10406_v18  ;;  %v4396_v36 = vmul.f32 %v10236_v49, %v13192_v50  ;;  %v3147_v34 = vmul.f32 %v10428_v10, %v13192_v50  ;;  %v4632_v5 = vmul.f32 %v10258_v43, %v13192_v50  ;;  %v3294_v37 = vmul.f32 %v10437_v62, %v3226_v58  ;;  %v13206_v1 = vld [vmem:[#allocation128_spill] sm:$0xff] }
 0x320   :  { %v13198_v8 = vrot.slane %v13197_v52, 1  ;;  %v10443_v31 = vadd.f32 %v4720_v26, %v4586_v20  ;;  %v10446_v11 = vadd.f32 %v9882_v54, %v4588_v12  ;;  %v4194_v39 = vrot.slane %v4088_v3, 2  ;;  %v13209_v3 = vld [vmem:[#allocation129_spill] sm:$0xff] }
 0x321   :  { %v4496_v40 = vrot.slane %v4396_v36, 1  ;;  %v4732_v32 = vrot.slane %v4632_v5, 2  ;;  %v3398_v57 = vrot.slane %v3294_v37, 1  ;;  %v3529_v33 = vmul.f32 %v10452_v59, %v3226_v58  ;;  %v13212_v37 = vld [vmem:[#allocation31_spill] sm:$0xff] }
 0x322   :  { %v3397_v4 = vsel %vm571_vm1, %v13198_v8, %v3396_v13  ;;  %13199 = vst [vmem:[#allocation24_spill] sm:$0xff] %v10443_v31  ;;  %v13203_v15 = vrot.slane %v13202_v56, 2  ;;  %v3768_v54 = vmul.f32 %v9605_v55, %v9698_v28  ;;  %v3845_v44 = vmul.f32 %v9563_v24, %v3226_v58  ;;  %v13208_v24 = vld [vmem:[#allocation62_spill] sm:$0xff] }
 0x323   :  { %13200 = vst [vmem:[#allocation68_spill] sm:$0xff] %v10446_v11  ;;  %v3487_v38 = vadd.f32 %v3397_v4, %v13201_v23  ;;  %v13205_v61 = vrot.slane %v13204_v25, 1  ;;  %v3399_v60 = vsel %vm571_vm1, %v3396_v13, %v3398_v57  ;;  %v3633_v63 = vrot.slane %v3529_v33, 2  ;;  %v13214_v4 = vld [vmem:[#allocation37_spill] sm:$0xff]  ;;  %v10508_v33 = vld [vmem:[%s12003_s1 + $0x3] ss:$0 sm:$0xff] }
 0x324   :  { %v3632_v14 = vsel %vm808_vm2, %v13203_v15, %v3631_v21  ;;  %v4089_v9 = vmul.f32 %v9577_v30, %v3226_v58  ;;  %v3488_v45 = vadd.f32 %v3399_v60, %v3147_v34  ;;  %v3952_v46 = vrot.slane %v3845_v44, 1  ;;  %v13211_v34 = vld [vmem:[#allocation112_spill] sm:$0xff] }
 0x325   :  { %v10464_v22 = vsel %vm571_vm1, %v13205_v61, %v3950_v42  ;;  %v3722_v7 = vadd.f32 %v3632_v14, %v3487_v38  ;;  %v13207_v20 = vrot.slane %v13206_v1, 2  ;;  %v4397_v55 = vmul.f32 %v10236_v49, %v3226_v58  ;;  %v13216_v14 = vld [vmem:[#allocation71_spill] sm:$0xff]  ;;  %v13217_v44 = vld [vmem:[#allocation84_spill] sm:$0xff]  ;;  %v10535_v1 = vld [vmem:[%s12003_s1 + $0x5] ss:$0 sm:$0xff] }
 0x326   :  { %v3634_v28 = vsel %vm808_vm2, %v3631_v21, %v3633_v63  ;;  %v4196_v6 = vrot.slane %v4089_v9, 2  ;;  %v13210_v13 = vrot.slane %v13209_v3, 1  ;;  %v10482_v26 = vsel %vm571_vm1, %v3950_v42, %v3952_v46  ;;  %v10527_v63 = vld [vmem:[%s12003_s1 + $0x4] ss:$0 sm:$0xff] }
 0x327   :  { %v10471_v35 = vsel %vm808_vm2, %v13207_v20, %v4194_v39  ;;  %v3799_v19 = vadd.f32 %v13208_v24, %v3722_v7  ;;  %v3723_v30 = vadd.f32 %v3634_v28, %v3488_v45  ;;  %v4498_v12 = vrot.slane %v4397_v55, 1  ;;  %v13218_v45 = vld [vmem:[#allocation77_spill] sm:$0xff]  ;;  %v13219_v20 = vld [vmem:[#allocation123_spill] sm:$0xff]  ;;  %v13220_v55 = vld [vmem:[#allocation76_spill] sm:$0xff] }
 0x328   :  { %v10479_v47 = vsel %vm571_vm1, %v13210_v13, %v4496_v40  ;;  %v4633_v36 = vmul.f32 %v10258_v43, %v3226_v58  ;;  %v10489_v21 = vsel %vm808_vm2, %v4194_v39, %v4196_v6  ;;  %v13213_v52 = vrot.slane %v13212_v37, 2  ;;  %v13221_v24 = vld [vmem:[#allocation138_spill] sm:$0xff] }
 0x329   :  { %v10486_v5 = vadd.f32 %v13211_v34, %v3799_v19  ;;  %v3145_v57 = vmul.f32 %v10428_v10, %v13214_v4  ;;  %v3800_v23 = vadd.f32 %v3768_v54, %v3723_v30  ;;  %v10499_v42 = vsel %vm571_vm1, %v4496_v40, %v4498_v12  ;;  %v13215_v40 = vld [vmem:[#allocation53_spill] sm:$0xff]  ;;  %v13223_v13 = vld [vmem:[#allocation42_spill] sm:$0xff] }
 0x32a   :  { %v10494_v8 = vsel %vm808_vm2, %v13213_v52, %v4732_v32  ;;  %v4734_v38 = vrot.slane %v4633_v36, 2  ;;  %v3290_v58 = vmul.f32 %v10437_v62, %v13214_v4  ;;  %v3525_v39 = vmul.f32 %v10452_v59, %v13214_v4  ;;  %v13224_v36 = vld [vmem:[#allocation106_spill] sm:$0xff] }
 0x32b   :  { %v3764_v56 = vmul.f32 %v10508_v33, %v13214_v4  ;;  %v10514_v15 = vmul.f32 %v10508_v33, %v13192_v50  ;;  %v3795_v54 = vadd.f32 %v13216_v14, %v13215_v40  ;;  %v10519_v25 = vadd.f32 %v13217_v44, %v3800_v23  ;;  %v13225_v37 = vld [vmem:[#allocation134_spill] sm:$0xff]  ;;  %v13229_v44 = vld [vmem:[#allocation109_spill] sm:$0xff] }
 0x32c   :  { %v10522_v61 = vsel %vm808_vm2, %v4732_v32, %v4734_v38  ;;  %v3391_v60 = vrot.slane %v3290_v58, 1  ;;  %v3841_v7 = vmul.f32 %v10527_v63, %v13214_v4  ;;  %v3626_v9 = vrot.slane %v3525_v39, 2  ;;  %v3221_v39 = vpop.permute.xlu0 %3220 }
 0x32d   :  { %v3796_v46 = vadd.f32 %v3764_v56, %v13218_v45  ;;  %v4085_v32 = vmul.f32 %v10535_v1, %v13214_v4  ;;  %v4286_v28 = vadd.f32 %v13220_v55, %v13219_v20  ;;  %v13222_v19 = vrot.slane %v13221_v24, 1  ;;  %v13227_v56 = vld [vmem:[#allocation137_spill] sm:$0xff]  ;;  %v13230_v24 = vld [vmem:[#allocation103_spill] sm:$0xff] }
 0x32e   :  { %v3945_v3 = vrot.slane %v3841_v7, 1  ;;  %v4287_v30 = vadd.f32 %v13223_v13, %v10417_v27  ;;  %v4323_v12 = vmul.f32 %v10379_v29, %v13214_v4  ;;  %v13226_v52 = vrot.slane %v13225_v37, 2 }
 0x32f   :  { %v3392_v6 = vsel %vm571_vm1, %v13222_v19, %v3391_v60  ;;  %v4189_v38 = vrot.slane %v4085_v32, 2  ;;  %v4325_v58 = vmul.f32 %v10379_v29, %v13192_v50  ;;  %v13228_v40 = vrot.slane %v13227_v56, 1 }
 0x330   :  { %v3485_v34 = vadd.f32 %v3392_v6, %v13224_v36  ;;  %v3627_v23 = vsel %vm808_vm2, %v13226_v52, %v3626_v9  ;;  %v4353_v27 = vadd.f32 %v13229_v44, %v4286_v28  ;;  %v4354_v7 = vadd.f32 %v4323_v12, %v4287_v30  ;;  %v13232_v30 = vld [vmem:[#allocation96_spill] sm:$0xff] }
 0x331   :  { %v3946_v14 = vsel %vm571_vm1, %v13228_v40, %v3945_v3  ;;  %v4393_v45 = vmul.f32 %v10236_v49, %v13214_v4  ;;  %v13231_v19 = vrot.slane %v13230_v24, 2  ;;  %v4629_v50 = vmul.f32 %v10258_v43, %v13214_v4 }
 0x332   :  { %v3720_v20 = vadd.f32 %v3627_v23, %v3485_v34  ;;  %v4044_v55 = vadd.f32 %v3946_v14, %v3795_v54  ;;  %v3291_v13 = vmul.f32 %v10437_v62, %v3221_v39  ;;  %v3526_v36 = vmul.f32 %v10452_v59, %v3221_v39  ;;  %v13233_v34 = vld [vmem:[#allocation108_spill] sm:$0xff] }
 0x333   :  { %v4190_v32 = vsel %vm808_vm2, %v13231_v19, %v4189_v38  ;;  %v4491_v6 = vrot.slane %v4393_v45, 1  ;;  %v3842_v28 = vmul.f32 %v10527_v63, %v3221_v39  ;;  %v4727_v52 = vrot.slane %v4629_v50, 2  ;;  %v13235_v45 = vld [vmem:[#allocation132_spill] sm:$0xff] }
 0x334   :  { %v3797_v12 = vadd.f32 %v13232_v30, %v3720_v20  ;;  %v4288_v37 = vadd.f32 %v4190_v32, %v4044_v55  ;;  %v4086_v54 = vmul.f32 %v10535_v1, %v3221_v39  ;;  %v13234_v23 = vrot.slane %v13233_v34, 1 }
 0x335   :  { %v3393_v40 = vrot.slane %v3291_v13, 1  ;;  %v3628_v14 = vrot.slane %v3526_v36, 2  ;;  %v3947_v4 = vrot.slane %v3842_v28, 1  ;;  %v13237_v0 = vrot.slane %v13236_v2, 2 }
 0x336   :  { %v4492_v56 = vsel %vm571_vm1, %v13234_v23, %v4491_v6  ;;  %v4046_v44 = vadd.f32 %v10464_v22, %v3797_v12  ;;  %v4355_v24 = vadd.f32 %v13235_v45, %v4288_v37  ;;  %v4191_v30 = vrot.slane %v4086_v54, 2  ;;  %v13241_v54 = vld [vmem:[#allocation110_spill] sm:$0xff]  ;;  %v3241_v45 = vpop.permute.xlu1 %3240 }
 0x337   :  { %v4589_v19 = vadd.f32 %v4492_v56, %v4353_v27  ;;  %v4728_v20 = vsel %vm808_vm2, %v13237_v0, %v4727_v52  ;;  %v3394_v55 = vsel %vm571_vm1, %v3391_v60, %v3393_v40  ;;  %v3629_v32 = vsel %vm808_vm2, %v3626_v9, %v3628_v14  ;;  %v13239_v60 = vld [vmem:[#allocation140_spill] sm:$0xff] }
 0x338   :  { %v3948_v50 = vsel %vm571_vm1, %v3945_v3, %v3947_v4  ;;  %v4290_v13 = vadd.f32 %v10471_v35, %v4046_v44  ;;  %v4591_v36 = vadd.f32 %v10479_v47, %v4355_v24  ;;  %v3486_v22 = vadd.f32 %v3394_v55, %v3145_v57  ;;  %v13243_v24 = vld [vmem:[#allocation154_spill] sm:$0xff] }
 0x339   :  { %v10583_v28 = vadd.f32 %v4728_v20, %v4589_v19  ;;  %v4045_v12 = vadd.f32 %v3948_v50, %v3796_v46  ;;  %v4192_v27 = vsel %vm808_vm2, %v4189_v38, %v4191_v30  ;;  %v4394_v2 = vmul.f32 %v10236_v49, %v3221_v39  ;;  %v13242_v46 = vld [vmem:[#allocation149_spill] sm:$0xff] }
 0x33a   :  { %v4630_v0 = vmul.f32 %v10258_v43, %v3221_v39  ;;  %v4357_v37 = vadd.f32 %v13239_v60, %v4290_v13  ;;  %v10590_v9 = vadd.f32 %v10494_v8, %v4591_v36  ;;  %v3721_v3 = vadd.f32 %v3629_v32, %v3486_v22  ;;  %v13247_v22 = vld [vmem:[#allocation122_spill] sm:$0xff] }
 0x33b   :  { %13238 = vst [vmem:[#allocation69_spill] sm:$0xff] %v10583_v28  ;;  %v3153_v35 = vmul.f32 %v10428_v10, %v13241_v54  ;;  %v4289_v47 = vadd.f32 %v4192_v27, %v4045_v12  ;;  %v4493_v34 = vrot.slane %v4394_v2, 1  ;;  %v3302_v57 = vmul.f32 %v10437_v62, %v13241_v54  ;;  %v13249_v2 = vld [vmem:[#allocation29_spill] sm:$0xff] }
 0x33c   :  { %13240 = vst [vmem:[#allocation117_spill] sm:$0xff] %v10590_v9  ;;  %v4729_v23 = vrot.slane %v4630_v0, 2  ;;  %v4593_v38 = vadd.f32 %v13242_v46, %v4357_v37  ;;  %v3798_v56 = vadd.f32 %v10514_v15, %v3721_v3  ;;  %v3537_v39 = vmul.f32 %v10452_v59, %v13241_v54  ;;  %v13250_v37 = vld [vmem:[#allocation93_spill] sm:$0xff] }
 0x33d   :  { %v3853_v8 = vmul.f32 %v10527_v63, %v13241_v54  ;;  %v4356_v40 = vadd.f32 %v4325_v58, %v4289_v47  ;;  %v4494_v14 = vsel %vm571_vm1, %v4491_v6, %v4493_v34  ;;  %v3411_v44 = vrot.slane %v3302_v57, 1  ;;  %v13251_v34 = vld [vmem:[#allocation127_spill] sm:$0xff] }
 0x33e   :  { %v4730_v4 = vsel %vm808_vm2, %v4727_v52, %v4729_v23  ;;  %v10605_v19 = vadd.f32 %v13243_v24, %v4593_v38  ;;  %v4047_v20 = vadd.f32 %v10482_v26, %v3798_v56  ;;  %v4590_v55 = vadd.f32 %v4494_v14, %v4354_v7  ;;  %v13254_v56 = vld [vmem:[#allocation153_spill] sm:$0xff]  ;;  %v13255_v14 = vld [vmem:[#allocation91_spill] sm:$0xff] }
 0x33f   :  { %v3646_v15 = vrot.slane %v3537_v39, 2  ;;  %v4592_v32 = vadd.f32 %v10499_v42, %v4356_v40  ;;  %v3965_v50 = vrot.slane %v3853_v8, 1  ;;  %v4097_v30 = vmul.f32 %v10535_v1, %v13241_v54 }
 0x340   :  { %13244 = vst [vmem:[#allocation135_spill] sm:$0xff] %v10605_v19  ;;  %v4405_v58 = vmul.f32 %v10236_v49, %v13241_v54  ;;  %v4291_v6 = vadd.f32 %v10489_v21, %v4047_v20  ;;  %v10614_v52 = vadd.f32 %v4730_v4, %v4590_v55  ;;  %v4641_v13 = vmul.f32 %v10258_v43, %v13241_v54 }
 0x341   :  { %v3303_v26 = vmul.f32 %v10437_v62, %v3241_v45  ;;  %v10620_v7 = vadd.f32 %v10522_v61, %v4592_v32  ;;  %v4209_v42 = vrot.slane %v4097_v30, 2  ;;  %v13248_v12 = vrot.slane %v13247_v22, 1  ;;  %v13253_v61 = vld [vmem:[#allocation41_spill] sm:$0xff] }
 0x342   :  { %13245 = vst [vmem:[#allocation20_spill] sm:$0xff] %v10614_v52  ;;  %v4511_v36 = vrot.slane %v4405_v58, 1  ;;  %v4358_v0 = vadd.f32 %v13249_v2, %v4291_v6  ;;  %v4747_v60 = vrot.slane %v4641_v13, 2  ;;  %v3538_v47 = vmul.f32 %v10452_v59, %v3241_v45  ;;  %v13257_v58 = vld [vmem:[#allocation156_spill] sm:$0xff]  ;;  %v13260_v22 = vld [vmem:[#allocation45_spill] sm:$0xff] }
 0x343   :  { %13246 = vst [vmem:[#allocation33_spill] sm:$0xff] %v10620_v7  ;;  %v3412_v27 = vsel %vm571_vm1, %v13248_v12, %v3411_v44  ;;  %v3413_v21 = vrot.slane %v3303_v26, 1  ;;  %v13252_v23 = vrot.slane %v13251_v34, 2  ;;  %v3774_v46 = vmul.f32 %v10508_v33, %v13253_v61  ;;  %v13259_v13 = vld [vmem:[#allocation64_spill] sm:$0xff] }
 0x344   :  { %v3493_v3 = vadd.f32 %v3412_v27, %v13250_v37  ;;  %v3854_v38 = vmul.f32 %v10527_v63, %v3241_v45  ;;  %v4594_v39 = vadd.f32 %v13254_v56, %v4358_v0  ;;  %v13256_v4 = vrot.slane %v13255_v14, 1  ;;  %v13264_v34 = vld [vmem:[#allocation160_spill] sm:$0xff] }
 0x345   :  { %v3647_v57 = vsel %vm808_vm2, %v13252_v23, %v3646_v15  ;;  %v3414_v8 = vsel %vm571_vm1, %v3411_v44, %v3413_v21  ;;  %v3648_v55 = vrot.slane %v3538_v47, 2  ;;  %v4098_v30 = vmul.f32 %v10535_v1, %v3241_v45  ;;  %v13262_v21 = vld [vmem:[#allocation11_spill] sm:$0xff]  ;;  %v13265_v56 = vld [vmem:[#allocation40_spill] sm:$0xff] }
 0x346   :  { %v3728_v40 = vadd.f32 %v3647_v57, %v3493_v3  ;;  %v3966_v24 = vsel %vm571_vm1, %v13256_v4, %v3965_v50  ;;  %v3494_v20 = vadd.f32 %v3414_v8, %v3153_v35  ;;  %v3967_v32 = vrot.slane %v3854_v38, 1 }
 0x347   :  { %v10641_v6 = vadd.f32 %v13257_v58, %v4594_v39  ;;  %v13261_v12 = vrot.slane %v13260_v22, 2  ;;  %v4406_v44 = vmul.f32 %v10236_v49, %v3241_v45  ;;  %v3649_v2 = vsel %vm808_vm2, %v3646_v15, %v3648_v55  ;;  %v13267_v39 = vld [vmem:[#allocation130_spill] sm:$0xff] }
 0x348   :  { %v3805_v26 = vadd.f32 %v13259_v13, %v3728_v40  ;;  %v10652_v35 = vsel %vm571_vm1, %v3965_v50, %v3967_v32  ;;  %v4211_v0 = vrot.slane %v4098_v30, 2  ;;  %v13263_v37 = vrot.slane %v13262_v21, 1  ;;  %v13268_v30 = vld [vmem:[#allocation79_spill] sm:$0xff]  ;;  %v13269_v58 = vld [vmem:[#allocation90_spill] sm:$0xff] }
 0x349   :  { %13258 = vst [vmem:[#allocation113_spill] sm:$0xff] %v10641_v6  ;;  %v10647_v27 = vsel %vm808_vm2, %v13261_v12, %v4209_v42  ;;  %v3729_v47 = vadd.f32 %v3649_v2, %v3494_v20  ;;  %v4513_v57 = vrot.slane %v4406_v44, 1  ;;  %v4642_v61 = vmul.f32 %v10258_v43, %v3241_v45  ;;  %v13271_v44 = vld [vmem:[#allocation133_spill] sm:$0xff]  ;;  %v13273_v21 = vld [vmem:[#allocation146_spill] sm:$0xff] }
 0x34a   :  { %v4512_v3 = vsel %vm571_vm1, %v13263_v37, %v4511_v36  ;;  %v10658_v23 = vadd.f32 %v13264_v34, %v3805_v26  ;;  %v10662_v38 = vsel %vm808_vm2, %v4209_v42, %v4211_v0  ;;  %v13266_v15 = vrot.slane %v13265_v56, 2  ;;  %v13270_v26 = vld [vmem:[#allocation161_spill] sm:$0xff]  ;;  %v13274_v34 = vld [vmem:[#allocation116_spill] sm:$0xff] }
 0x34b   :  { %v3151_v8 = vmul.f32 %v10428_v10, %v13267_v39  ;;  %v3299_v40 = vmul.f32 %v10437_v62, %v13267_v39  ;;  %v3806_v14 = vadd.f32 %v3774_v46, %v3729_v47  ;;  %v10674_v4 = vsel %vm571_vm1, %v4511_v36, %v4513_v57 }
 0x34c   :  { %v10667_v50 = vsel %vm808_vm2, %v13266_v15, %v4747_v60  ;;  %v4749_v20 = vrot.slane %v4642_v61, 2  ;;  %v3534_v45 = vmul.f32 %v10452_v59, %v13267_v39  ;;  %v3770_v55 = vmul.f32 %v10508_v33, %v13267_v39  ;;  %v13275_v61 = vld [vmem:[#allocation100_spill] sm:$0xff] }
 0x34d   :  { %v3406_v42 = vrot.slane %v3299_v40, 1  ;;  %v3772_v32 = vmul.f32 %v10508_v33, %v13241_v54  ;;  %v3801_v13 = vadd.f32 %v13269_v58, %v13268_v30  ;;  %v10685_v22 = vadd.f32 %v13270_v26, %v3806_v14  ;;  %v3236_v30 = vpop.permute.xlu0 %3235 }
 0x34e   :  { %v10688_v36 = vsel %vm808_vm2, %v4747_v60, %v4749_v20  ;;  %v3641_v46 = vrot.slane %v3534_v45, 2  ;;  %v3850_v12 = vmul.f32 %v10527_v63, %v13267_v39  ;;  %v13272_v2 = vrot.slane %v13271_v44, 1  ;;  %v13276_v60 = vld [vmem:[#allocation136_spill] sm:$0xff]  ;;  %v13278_v20 = vld [vmem:[#allocation147_spill] sm:$0xff]  ;;  %v13279_v44 = vld [vmem:[#allocation14_spill] sm:$0xff] }
 0x34f   :  { %v3802_v37 = vadd.f32 %v3770_v55, %v13273_v21  ;;  %v4094_v47 = vmul.f32 %v10535_v1, %v13267_v39  ;;  %v4292_v57 = vadd.f32 %v13274_v34, %v10486_v5  ;;  %v13277_v15 = vrot.slane %v13276_v60, 2 }
 0x350   :  { %v3407_v0 = vsel %vm571_vm1, %v13272_v2, %v3406_v42  ;;  %v3960_v14 = vrot.slane %v3850_v12, 1  ;;  %v4293_v45 = vadd.f32 %v13278_v20, %v10519_v25  ;;  %v4329_v55 = vmul.f32 %v10379_v29, %v13267_v39 }
 0x351   :  { %v3491_v56 = vadd.f32 %v3407_v0, %v13275_v61  ;;  %v3642_v40 = vsel %vm808_vm2, %v13277_v15, %v3641_v46  ;;  %v4204_v58 = vrot.slane %v4094_v47, 2  ;;  %v4331_v26 = vmul.f32 %v10379_v29, %v13241_v54  ;;  %v13280_v0 = vld [vmem:[#allocation118_spill] sm:$0xff]  ;;  %v13282_v61 = vld [vmem:[#allocation25_spill] sm:$0xff] }
 0x352   :  { %v4359_v5 = vadd.f32 %v13279_v44, %v4292_v57  ;;  %v13281_v21 = vrot.slane %v13280_v0, 1  ;;  %v4402_v12 = vmul.f32 %v10236_v49, %v13267_v39  ;;  %v4638_v25 = vmul.f32 %v10258_v43, %v13267_v39  ;;  %v13284_v57 = vld [vmem:[#allocation94_spill] sm:$0xff] }
 0x353   :  { %v3726_v2 = vadd.f32 %v3642_v40, %v3491_v56  ;;  %v13283_v60 = vrot.slane %v13282_v61, 2  ;;  %v4360_v20 = vadd.f32 %v4329_v55, %v4293_v45  ;;  %v3300_v54 = vmul.f32 %v10437_v62, %v3236_v30  ;;  %v13287_v45 = vld [vmem:[#allocation121_spill] sm:$0xff] }
 0x354   :  { %v3961_v34 = vsel %vm571_vm1, %v13281_v21, %v3960_v14  ;;  %v4506_v40 = vrot.slane %v4402_v12, 1  ;;  %v4742_v44 = vrot.slane %v4638_v25, 2  ;;  %v3535_v0 = vmul.f32 %v10452_v59, %v3236_v30  ;;  %v13289_v12 = vld [vmem:[#allocation12_spill] sm:$0xff] }
 0x355   :  { %v4050_v47 = vadd.f32 %v3961_v34, %v3801_v13  ;;  %v4205_v15 = vsel %vm808_vm2, %v13283_v60, %v4204_v58  ;;  %v3803_v56 = vadd.f32 %v13284_v57, %v3726_v2  ;;  %v3408_v52 = vrot.slane %v3300_v54, 1  ;;  %v13285_v34 = vld [vmem:[#allocation34_spill] sm:$0xff] }
 0x356   :  { %v3851_v6 = vmul.f32 %v10527_v63, %v3236_v30  ;;  %v4095_v39 = vmul.f32 %v10535_v1, %v3236_v30  ;;  %v13286_v61 = vrot.slane %v13285_v34, 1  ;;  %v13288_v55 = vrot.slane %v13287_v45, 2 }
 0x357   :  { %v4294_v21 = vadd.f32 %v4205_v15, %v4050_v47  ;;  %v4052_v13 = vadd.f32 %v3966_v24, %v3803_v56  ;;  %v3643_v2 = vrot.slane %v3535_v0, 2  ;;  %v3409_v47 = vsel %vm571_vm1, %v3406_v42, %v3408_v52  ;;  %v13291_v0 = vld [vmem:[#allocation65_spill] sm:$0xff] }
 0x358   :  { %v4507_v60 = vsel %vm571_vm1, %v13286_v61, %v4506_v40  ;;  %v4743_v7 = vsel %vm808_vm2, %v13288_v55, %v4742_v44  ;;  %v3962_v15 = vrot.slane %v3851_v6, 1  ;;  %v3492_v11 = vadd.f32 %v3409_v47, %v3151_v8  ;;  %v13293_v42 = vld [vmem:[#allocation145_spill] sm:$0xff] }
 0x359   :  { %v4361_v25 = vadd.f32 %v13289_v12, %v4294_v21  ;;  %v4595_v57 = vadd.f32 %v4507_v60, %v4359_v5  ;;  %v4296_v54 = vadd.f32 %v10647_v27, %v4052_v13  ;;  %v3644_v24 = vsel %vm808_vm2, %v3641_v46, %v3643_v2 }
 0x35a   :  { %v4206_v56 = vrot.slane %v4095_v39, 2  ;;  %v3963_v61 = vsel %vm571_vm1, %v3960_v14, %v3962_v15  ;;  %v4403_v45 = vmul.f32 %v10236_v49, %v3236_v30  ;;  %v3727_v21 = vadd.f32 %v3644_v24, %v3492_v11 }
 0x35b   :  { %v4597_v34 = vadd.f32 %v4512_v3, %v4361_v25  ;;  %v10736_v31 = vadd.f32 %v4743_v7, %v4595_v57  ;;  %v4363_v55 = vadd.f32 %v13291_v0, %v4296_v54  ;;  %v4051_v5 = vadd.f32 %v3963_v61, %v3802_v37  ;;  %v13294_v3 = vld [vmem:[#allocation70_spill] sm:$0xff]  ;;  %v3256_v25 = vpop.permute.xlu1 %3255 }
 0x35c   :  { %v4207_v52 = vsel %vm808_vm2, %v4204_v58, %v4206_v56  ;;  %v4508_v27 = vrot.slane %v4403_v45, 1  ;;  %v4639_v8 = vmul.f32 %v10258_v43, %v3236_v30  ;;  %v3159_v7 = vmul.f32 %v10428_v10, %v13293_v42  ;;  %v13295_v30 = vld [vmem:[#allocation66_spill] sm:$0xff] }
 0x35d   :  { %13290 = vst [vmem:[#allocation9_spill] sm:$0xff] %v10736_v31  ;;  %v10743_v6 = vadd.f32 %v10667_v50, %v4597_v34  ;;  %v4599_v46 = vadd.f32 %v13294_v3, %v4363_v55  ;;  %v3804_v14 = vadd.f32 %v3772_v32, %v3727_v21  ;;  %v4295_v39 = vadd.f32 %v4207_v52, %v4051_v5  ;;  %v13302_v21 = vld [vmem:[#allocation148_spill] sm:$0xff] }
 0x35e   :  { %v3311_v13 = vmul.f32 %v10437_v62, %v13293_v42  ;;  %v4509_v11 = vsel %vm571_vm1, %v4506_v40, %v4508_v27  ;;  %v4744_v37 = vrot.slane %v4639_v8, 2  ;;  %v3546_v50 = vmul.f32 %v10452_v59, %v13293_v42 }
 0x35f   :  { %13292 = vst [vmem:[#allocation67_spill] sm:$0xff] %v10743_v6  ;;  %v3862_v58 = vmul.f32 %v10527_v63, %v13293_v42  ;;  %v10757_v60 = vadd.f32 %v13295_v30, %v4599_v46  ;;  %v4053_v2 = vadd.f32 %v10652_v35, %v3804_v14  ;;  %v4362_v12 = vadd.f32 %v4331_v26, %v4295_v39  ;;  %v13303_v46 = vld [vmem:[#allocation167_spill] sm:$0xff]  ;;  %v13304_v39 = vld [vmem:[#allocation150_spill] sm:$0xff] }
 0x360   :  { %v4596_v32 = vadd.f32 %v4509_v11, %v4360_v20  ;;  %v4745_v57 = vsel %vm808_vm2, %v4742_v44, %v4744_v37  ;;  %v3426_v47 = vrot.slane %v3311_v13, 1  ;;  %v3661_v15 = vrot.slane %v3546_v50, 2  ;;  %v13298_v44 = vld [vmem:[#allocation78_spill] sm:$0xff] }
 0x361   :  { %13296 = vst [vmem:[#allocation32_spill] sm:$0xff] %v10757_v60  ;;  %v3980_v40 = vrot.slane %v3862_v58, 1  ;;  %v4297_v54 = vadd.f32 %v10662_v38, %v4053_v2  ;;  %v4598_v24 = vadd.f32 %v10674_v4, %v4362_v12  ;;  %v4106_v34 = vmul.f32 %v10535_v1, %v13293_v42  ;;  %v13300_v38 = vld [vmem:[#allocation115_spill] sm:$0xff]  ;;  %v13306_v37 = vld [vmem:[#allocation162_spill] sm:$0xff]  ;;  %v13307_v12 = vld [vmem:[#allocation152_spill] sm:$0xff] }
 0x362   :  { %v10763_v56 = vadd.f32 %v4745_v57, %v4596_v32  ;;  %v4414_v35 = vmul.f32 %v10236_v49, %v13293_v42  ;;  %v4650_v26 = vmul.f32 %v10258_v43, %v13293_v42  ;;  %v3312_v20 = vmul.f32 %v10437_v62, %v3256_v25 }
 0x363   :  { %v13299_v61 = vrot.slane %v13298_v44, 1  ;;  %v4364_v0 = vadd.f32 %v13300_v38, %v4297_v54  ;;  %v10777_v4 = vadd.f32 %v10688_v36, %v4598_v24  ;;  %v4224_v55 = vrot.slane %v4106_v34, 2  ;;  %v13309_v54 = vld [vmem:[#allocation170_spill] sm:$0xff]  ;;  %v13311_v44 = vld [vmem:[#allocation99_spill] sm:$0xff] }
 0x364   :  { %13297 = vst [vmem:[#allocation92_spill] sm:$0xff] %v10763_v56  ;;  %v4526_v52 = vrot.slane %v4414_v35, 1  ;;  %v4762_v27 = vrot.slane %v4650_v26, 2  ;;  %v3428_v8 = vrot.slane %v3312_v20, 1  ;;  %v3547_v3 = vmul.f32 %v10452_v59, %v3256_v25 }
 0x365   :  { %v3427_v45 = vsel %vm571_vm1, %v13299_v61, %v3426_v47  ;;  %13301 = vst [vmem:[#allocation51_spill] sm:$0xff] %v10777_v4  ;;  %v4600_v14 = vadd.f32 %v13303_v46, %v4364_v0  ;;  %v13305_v13 = vrot.slane %v13304_v39, 2  ;;  %v3780_v50 = vmul.f32 %v10508_v33, %v13306_v37 }
 0x366   :  { %v3499_v5 = vadd.f32 %v3427_v45, %v13302_v21  ;;  %v3863_v36 = vmul.f32 %v10527_v63, %v3256_v25  ;;  %v3429_v58 = vsel %vm571_vm1, %v3426_v47, %v3428_v8  ;;  %v3663_v30 = vrot.slane %v3547_v3, 2  ;;  %v13312_v45 = vld [vmem:[#allocation155_spill] sm:$0xff] }
 0x367   :  { %v3662_v11 = vsel %vm808_vm2, %v13305_v13, %v3661_v15  ;;  %v13308_v32 = vrot.slane %v13307_v12, 1  ;;  %v10793_v24 = vadd.f32 %v13309_v54, %v4600_v14  ;;  %v3500_v34 = vadd.f32 %v3429_v58, %v3159_v7  ;;  %v13314_v7 = vld [vmem:[#allocation158_spill] sm:$0xff] }
 0x368   :  { %v3734_v2 = vadd.f32 %v3662_v11, %v3499_v5  ;;  %v3982_v35 = vrot.slane %v3863_v36, 1  ;;  %v4107_v26 = vmul.f32 %v10535_v1, %v3256_v25  ;;  %v3664_v20 = vsel %vm808_vm2, %v3661_v15, %v3663_v30  ;;  %v13316_v15 = vld [vmem:[#allocation144_spill] sm:$0xff]  ;;  %v13317_v11 = vld [vmem:[#allocation159_spill] sm:$0xff] }
 0x369   :  { %v3981_v57 = vsel %vm571_vm1, %v13308_v32, %v3980_v40  ;;  %13310 = vst [vmem:[#allocation105_spill] sm:$0xff] %v10793_v24  ;;  %v13313_v38 = vrot.slane %v13312_v45, 2  ;;  %v4415_v0 = vmul.f32 %v10236_v49, %v3256_v25  ;;  %v3735_v21 = vadd.f32 %v3664_v20, %v3500_v34  ;;  %v13319_v30 = vld [vmem:[#allocation35_spill] sm:$0xff] }
 0x36a   :  { %v3811_v61 = vadd.f32 %v13311_v44, %v3734_v2  ;;  %v10805_v5 = vsel %vm571_vm1, %v3980_v40, %v3982_v35  ;;  %v4226_v8 = vrot.slane %v4107_v26, 2  ;;  %v13315_v3 = vrot.slane %v13314_v7, 1  ;;  %v13321_v20 = vld [vmem:[#allocation163_spill] sm:$0xff]  ;;  %v13322_v44 = vld [vmem:[#allocation80_spill] sm:$0xff] }
 0x36b   :  { %v10801_v47 = vsel %vm808_vm2, %v13313_v38, %v4224_v55  ;;  %v4528_v39 = vrot.slane %v4415_v0, 1  ;;  %v4651_v13 = vmul.f32 %v10258_v43, %v3256_v25  ;;  %v13318_v37 = vrot.slane %v13317_v11, 2  ;;  %v13323_v38 = vld [vmem:[#allocation164_spill] sm:$0xff]  ;;  %v13327_v11 = vld [vmem:[#allocation166_spill] sm:$0xff] }
 0x36c   :  { %v10810_v46 = vsel %vm571_vm1, %v13315_v3, %v4526_v52  ;;  %v10813_v14 = vadd.f32 %v13316_v15, %v3811_v61  ;;  %v3812_v58 = vadd.f32 %v3780_v50, %v3735_v21  ;;  %v10822_v40 = vsel %vm808_vm2, %v4224_v55, %v4226_v8  ;;  %v13320_v50 = vld [vmem:[#allocation174_spill] sm:$0xff]  ;;  %v13324_v8 = vld [vmem:[#allocation63_spill] sm:$0xff] }
 0x36d   :  { %v10819_v36 = vsel %vm808_vm2, %v13318_v37, %v4762_v27  ;;  %v3157_v2 = vmul.f32 %v10428_v10, %v13319_v30  ;;  %v3308_v12 = vmul.f32 %v10437_v62, %v13319_v30  ;;  %v10829_v32 = vsel %vm571_vm1, %v4526_v52, %v4528_v39  ;;  %v13326_v39 = vld [vmem:[#allocation165_spill] sm:$0xff] }
 0x36e   :  { %v4764_v54 = vrot.slane %v4651_v13, 2  ;;  %v3543_v25 = vmul.f32 %v10452_v59, %v13319_v30  ;;  %v3776_v34 = vmul.f32 %v10508_v33, %v13319_v30  ;;  %v10836_v35 = vadd.f32 %v13320_v50, %v3812_v58  ;;  %v13328_v37 = vld [vmem:[#allocation73_spill] sm:$0xff] }
 0x36f   :  { %v3421_v55 = vrot.slane %v3308_v12, 1  ;;  %v3778_v26 = vmul.f32 %v10508_v33, %v13293_v42  ;;  %v3807_v61 = vadd.f32 %v13322_v44, %v13321_v20  ;;  %v3859_v21 = vmul.f32 %v10527_v63, %v13319_v30  ;;  %v13329_v12 = vld [vmem:[#allocation114_spill] sm:$0xff]  ;;  %v3251_v20 = vpop.permute.xlu0 %3250 }
 0x370   :  { %v10843_v52 = vsel %vm808_vm2, %v4762_v27, %v4764_v54  ;;  %v3656_v45 = vrot.slane %v3543_v25, 2  ;;  %v3808_v0 = vadd.f32 %v3776_v34, %v13323_v38  ;;  %v13325_v7 = vrot.slane %v13324_v8, 1  ;;  %v13331_v8 = vld [vmem:[#allocation49_spill] sm:$0xff] }
 0x371   :  { %v4103_v15 = vmul.f32 %v10535_v1, %v13319_v30  ;;  %v4298_v13 = vadd.f32 %v13326_v39, %v10658_v23  ;;  %v4299_v27 = vadd.f32 %v13327_v11, %v10685_v22  ;;  %v13330_v54 = vrot.slane %v13329_v12, 2 }
 0x372   :  { %v3422_v3 = vsel %vm571_vm1, %v13325_v7, %v3421_v55  ;;  %v3975_v34 = vrot.slane %v3859_v21, 1  ;;  %v4335_v50 = vmul.f32 %v10379_v29, %v13319_v30  ;;  %v4337_v38 = vmul.f32 %v10379_v29, %v13293_v42 }
 0x373   :  { %v3497_v58 = vadd.f32 %v3422_v3, %v13328_v37  ;;  %v3657_v25 = vsel %vm808_vm2, %v13330_v54, %v3656_v45  ;;  %v4219_v44 = vrot.slane %v4103_v15, 2  ;;  %v4365_v23 = vadd.f32 %v13331_v8, %v4298_v13  ;;  %v13332_v3 = vld [vmem:[#allocation48_spill] sm:$0xff]  ;;  %v13334_v54 = vld [vmem:[#allocation82_spill] sm:$0xff]  ;;  %v13336_v8 = vld [vmem:[#allocation151_spill] sm:$0xff] }
 0x374   :  { %v4411_v22 = vmul.f32 %v10236_v49, %v13319_v30  ;;  %v13333_v39 = vrot.slane %v13332_v3, 1  ;;  %v4366_v37 = vadd.f32 %v4335_v50, %v4299_v27  ;;  %v4647_v21 = vmul.f32 %v10258_v43, %v13319_v30  ;;  %v13337_v27 = vld [vmem:[#allocation102_spill] sm:$0xff] }
 0x375   :  { %v3732_v7 = vadd.f32 %v3657_v25, %v3497_v58  ;;  %v13335_v15 = vrot.slane %v13334_v54, 2  ;;  %v3309_v13 = vmul.f32 %v10437_v62, %v3251_v20  ;;  %v3544_v58 = vmul.f32 %v10452_v59, %v3251_v20 }
 0x376   :  { %v3976_v11 = vsel %vm571_vm1, %v13333_v39, %v3975_v34  ;;  %v4521_v42 = vrot.slane %v4411_v22, 1  ;;  %v4757_v56 = vrot.slane %v4647_v21, 2  ;;  %v3860_v25 = vmul.f32 %v10527_v63, %v3251_v20  ;;  %v13339_v22 = vld [vmem:[#allocation43_spill] sm:$0xff]  ;;  %v13341_v21 = vld [vmem:[#allocation157_spill] sm:$0xff] }
 0x377   :  { %v4056_v12 = vadd.f32 %v3976_v11, %v3807_v61  ;;  %v4220_v24 = vsel %vm808_vm2, %v13335_v15, %v4219_v44  ;;  %v3809_v4 = vadd.f32 %v13336_v8, %v3732_v7  ;;  %v13338_v50 = vrot.slane %v13337_v27, 1 }
 0x378   :  { %v3423_v61 = vrot.slane %v3309_v13, 1  ;;  %v4104_v39 = vmul.f32 %v10535_v1, %v3251_v20  ;;  %v13340_v15 = vrot.slane %v13339_v22, 2  ;;  %v3658_v7 = vrot.slane %v3544_v58, 2 }
 0x379   :  { %v4300_v3 = vadd.f32 %v4220_v24, %v4056_v12  ;;  %v4522_v30 = vsel %vm571_vm1, %v13338_v50, %v4521_v42  ;;  %v4058_v11 = vadd.f32 %v3981_v57, %v3809_v4  ;;  %v3977_v60 = vrot.slane %v3860_v25, 1 }
 0x37a   :  { %v4601_v54 = vadd.f32 %v4522_v30, %v4365_v23  ;;  %v4758_v51 = vsel %vm808_vm2, %v13340_v15, %v4757_v56  ;;  %v3424_v19 = vsel %vm571_vm1, %v3421_v55, %v3423_v61  ;;  %v4221_v24 = vrot.slane %v4104_v39, 2 }
 0x37b   :  { %v4367_v8 = vadd.f32 %v13341_v21, %v4300_v3  ;;  %v4302_v12 = vadd.f32 %v10801_v47, %v4058_v11  ;;  %v3498_v13 = vadd.f32 %v3424_v19, %v3157_v2  ;;  %v3659_v50 = vsel %vm808_vm2, %v3656_v45, %v3658_v7  ;;  %v13343_v3 = vld [vmem:[#allocation125_spill] sm:$0xff]  ;;  %v3271_v47 = vpop.permute.xlu1 %3270  ;;  %v13344_v2 = vld [vmem:[#allocation175_spill] sm:$0xff] }
 0x37c   :  { %v10890_v27 = vadd.f32 %v4758_v51, %v4601_v54  ;;  %v3978_v57 = vsel %vm571_vm1, %v3975_v34, %v3977_v60  ;;  %v4222_v23 = vsel %vm808_vm2, %v4219_v44, %v4221_v24  ;;  %v4412_v58 = vmul.f32 %v10236_v49, %v3251_v20  ;;  %v13345_v45 = vld [vmem:[#allocation95_spill] sm:$0xff] }
 0x37d   :  { %v4603_v4 = vadd.f32 %v10810_v46, %v4367_v8  ;;  %v4369_v30 = vadd.f32 %v13343_v3, %v4302_v12  ;;  %v3733_v55 = vadd.f32 %v3659_v50, %v3498_v13  ;;  %v4057_v25 = vadd.f32 %v3978_v57, %v3808_v0  ;;  %v13350_v3 = vld [vmem:[#allocation83_spill] sm:$0xff] }
 0x37e   :  { %13342 = vst [vmem:[#allocation111_spill] sm:$0xff] %v10890_v27  ;;  %v4648_v61 = vmul.f32 %v10258_v43, %v3251_v20  ;;  %v4523_v19 = vrot.slane %v4412_v58, 1  ;;  %v4423_v46 = vmul.f32 %v10236_v49, %v13344_v2  ;;  %v4659_v60 = vmul.f32 %v10258_v43, %v13344_v2 }
 0x37f   :  { %v10900_v51 = vadd.f32 %v10819_v36, %v4603_v4  ;;  %v4605_v34 = vadd.f32 %v13345_v45, %v4369_v30  ;;  %v3810_v44 = vadd.f32 %v3778_v26, %v3733_v55  ;;  %v4301_v39 = vadd.f32 %v4222_v23, %v4057_v25  ;;  %v13346_v36 = vld [vmem:[#allocation97_spill] sm:$0xff]  ;;  %v13352_v55 = vld [vmem:[#allocation179_spill] sm:$0xff] }
 0x380   :  { %v4759_v11 = vrot.slane %v4648_v61, 2  ;;  %v4524_v0 = vsel %vm571_vm1, %v4521_v42, %v4523_v19  ;;  %v4541_v54 = vrot.slane %v4423_v46, 1  ;;  %v4777_v20 = vrot.slane %v4659_v60, 2  ;;  %v13354_v19 = vld [vmem:[#allocation183_spill] sm:$0xff] }
 0x381   :  { %v3321_v22 = vmul.f32 %v10437_v62, %v3271_v47  ;;  %v10910_v15 = vadd.f32 %v13346_v36, %v4605_v34  ;;  %v4059_v7 = vadd.f32 %v10805_v5, %v3810_v44  ;;  %v4368_v21 = vadd.f32 %v4337_v38, %v4301_v39  ;;  %v13348_v5 = vld [vmem:[#allocation180_spill] sm:$0xff] }
 0x382   :  { %v4602_v8 = vadd.f32 %v4524_v0, %v4366_v37  ;;  %v4760_v24 = vsel %vm808_vm2, %v4757_v56, %v4759_v11  ;;  %v10915_v26 = vmul.f32 %v10452_v59, %v3271_v47  ;;  %v3872_v13 = vmul.f32 %v10527_v63, %v3271_v47  ;;  %v13359_v0 = vld [vmem:[#allocation27_spill] sm:$0xff]  ;;  %v13378_v56 = vld [vmem:[#allocation178_spill] sm:$0xff] }
 0x383   :  { %v3443_v12 = vrot.slane %v3321_v22, 1  ;;  %v4303_v42 = vadd.f32 %v10822_v40, %v4059_v7  ;;  %v4604_v50 = vadd.f32 %v10829_v32, %v4368_v21  ;;  %v10923_v57 = vmul.f32 %v10535_v1, %v3271_v47  ;;  %v13360_v7 = vld [vmem:[#allocation139_spill] sm:$0xff]  ;;  %v13361_v21 = vld [vmem:[#allocation168_spill] sm:$0xff] }
 0x384   :  { %v10920_v4 = vadd.f32 %v4760_v24, %v4602_v8  ;;  %v13349_v38 = vrot.slane %v13348_v5, 1  ;;  %v3997_v23 = vrot.slane %v3872_v13, 1  ;;  %v4424_v58 = vmul.f32 %v10236_v49, %v3271_v47  ;;  %v13356_v49 = vld [vmem:[#allocation182_spill] sm:$0xff]  ;;  %v13362_v13 = vld [vmem:[#allocation187_spill] sm:$0xff] }
 0x385   :  { %v4370_v30 = vadd.f32 %v13350_v3, %v4303_v42  ;;  %v10934_v40 = vadd.f32 %v10843_v52, %v4604_v50  ;;  %v13353_v25 = vrot.slane %v13352_v55, 1  ;;  %v13355_v46 = vrot.slane %v13354_v19, 1  ;;  %v13358_v52 = vld [vmem:[#allocation186_spill] sm:$0xff]  ;;  %v13364_v50 = vld [vmem:[#allocation176_spill] sm:$0xff] }
 0x386   :  { %13347 = vst [vmem:[#allocation143_spill] sm:$0xff] %v10920_v4  ;;  %v10928_v37 = vsel %vm571_vm1, %v13349_v38, %v3443_v12  ;;  %v4543_v45 = vrot.slane %v4424_v58, 1  ;;  %v4660_v34 = vmul.f32 %v10258_v43, %v3271_v47  ;;  %v13357_v44 = vrot.slane %v13356_v49, 2  ;;  %v13365_v38 = vld [vmem:[#allocation30_spill] sm:$0xff]  ;;  %v13366_v58 = vld [vmem:[#allocation177_spill] sm:$0xff]  ;;  %v3823_v4 = vpop.permute.xlu1 %3822 }
 0x387   :  { %13351 = vst [vmem:[#allocation58_spill] sm:$0xff] %v10934_v40  ;;  %v4542_v61 = vsel %vm571_vm1, %v13353_v25, %v4541_v54  ;;  %v10943_v60 = vsel %vm571_vm1, %v13355_v46, %v3997_v23  ;;  %v4606_v11 = vadd.f32 %v13358_v52, %v4370_v30  ;;  %v3163_v22 = vmul.f32 %v10428_v10, %v13359_v0 }
 0x388   :  { %v4778_v39 = vsel %vm808_vm2, %v13357_v44, %v4777_v20  ;;  %v3782_v36 = vmul.f32 %v10508_v33, %v13359_v0  ;;  %v3813_v8 = vadd.f32 %v13361_v21, %v13360_v7  ;;  %v10957_v24 = vsel %vm571_vm1, %v4541_v54, %v4543_v45  ;;  %v3266_v54 = vpop.permute.xlu0 %3265  ;;  %v13367_v45 = vld [vmem:[#allocation124_spill] sm:$0xff]  ;;  %v13368_v44 = vld [vmem:[#allocation169_spill] sm:$0xff] }
 0x389   :  { %v4779_v12 = vrot.slane %v4660_v34, 2  ;;  %v3868_v43 = vmul.f32 %v10527_v63, %v13359_v0  ;;  %v4112_v47 = vmul.f32 %v10535_v1, %v13359_v0  ;;  %v10964_v42 = vadd.f32 %v13362_v13, %v4606_v11 }
 0x38a   :  { %v3814_v5 = vadd.f32 %v3782_v36, %v13364_v50  ;;  %v4304_v23 = vadd.f32 %v13365_v38, %v10813_v14  ;;  %v4305_v3 = vadd.f32 %v13366_v58, %v10836_v35  ;;  %v4341_v19 = vmul.f32 %v10379_v29, %v13359_v0  ;;  %v10982_v14 = vld [vmem:[%s12003_s1 + $0x7] ss:$0 sm:$0xff]  ;;  %v13370_v36 = vld [vmem:[#allocation171_spill] sm:$0xff] }
 0x38b   :  { %13363 = vst [vmem:[#allocation87_spill] sm:$0xff] %v10964_v42  ;;  %v10972_v30 = vsel %vm808_vm2, %v4777_v20, %v4779_v12  ;;  %v3990_v55 = vrot.slane %v3868_v43, 1  ;;  %v4234_v25 = vrot.slane %v4112_v47, 2  ;;  %v4343_v46 = vmul.f32 %v10379_v29, %v13344_v2  ;;  %v10989_v20 = vld [vmem:[%s12003_s1 + $0x8] ss:$0 sm:$0xff]  ;;  %s5921_s1 = smov [#allocation2]  }
 0x38c   :  { %v4371_v34 = vadd.f32 %v13367_v45, %v4304_v23  ;;  %v4420_v35 = vmul.f32 %v10982_v14, %v13359_v0  ;;  %v4656_v49 = vmul.f32 %v10989_v20, %v13359_v0  ;;  %v13369_v52 = vrot.slane %v13368_v44, 1 }
 0x38d   :  { %v13371_v7 = vrot.slane %v13370_v36, 2  ;;  %v4372_v12 = vadd.f32 %v4341_v19, %v4305_v3  ;;  %v3318_v43 = vmul.f32 %v10437_v62, %v3266_v54  ;;  %v3553_v38 = vmul.f32 %v10452_v59, %v3266_v54  ;;  %v13374_v3 = vld [vmem:[#allocation173_spill] sm:$0xff] }
 0x38e   :  { %v3991_v11 = vsel %vm571_vm1, %v13369_v52, %v3990_v55  ;;  %v4536_v13 = vrot.slane %v4420_v35, 1  ;;  %v4772_v50 = vrot.slane %v4656_v49, 2  ;;  %v3869_v58 = vmul.f32 %v10527_v63, %v3266_v54  ;;  %v13372_v52 = vld [vmem:[#allocation172_spill] sm:$0xff]  ;;  %v13376_v49 = vld [vmem:[#allocation50_spill] sm:$0xff] }
 0x38f   :  { %v4235_v21 = vsel %vm808_vm2, %v13371_v7, %v4234_v25  ;;  %v4062_v47 = vadd.f32 %v3991_v11, %v3813_v8  ;;  %v3438_v23 = vrot.slane %v3318_v43, 1  ;;  %v4113_v0 = vmul.f32 %v10535_v1, %v3266_v54 }
 0x390   :  { %v4421_v45 = vmul.f32 %v10982_v14, %v3266_v54  ;;  %v13373_v36 = vrot.slane %v13372_v52, 1  ;;  %v13375_v19 = vrot.slane %v13374_v3, 2  ;;  %v3673_v8 = vrot.slane %v3553_v38, 2 }
 0x391   :  { %v4306_v44 = vadd.f32 %v4235_v21, %v4062_v47  ;;  %v13377_v59 = vrot.slane %v13376_v49, 1  ;;  %v3992_v43 = vrot.slane %v3869_v58, 1  ;;  %v4236_v32 = vrot.slane %v4113_v0, 2  ;;  %v13379_v21 = vld [vmem:[#allocation120_spill] sm:$0xff] }
 0x392   :  { %v4537_v7 = vsel %vm571_vm1, %v13373_v36, %v4536_v13  ;;  %v4773_v62 = vsel %vm808_vm2, %v13375_v19, %v4772_v50  ;;  %v13380_v47 = vrot.slane %v13379_v21, 2  ;;  %v4538_v36 = vrot.slane %v4421_v45, 1 }
 0x393   :  { %v4607_v35 = vadd.f32 %v4537_v7, %v4371_v34  ;;  %v3439_v11 = vsel %vm571_vm1, %v13377_v59, %v3438_v23  ;;  %v4373_v42 = vadd.f32 %v13378_v56, %v4306_v44  ;;  %v3993_v38 = vsel %vm571_vm1, %v3990_v55, %v3992_v43  ;;  %v13382_v59 = vld [vmem:[#allocation181_spill] sm:$0xff] }
 0x394   :  { %v3504_v40 = vadd.f32 %v3439_v11, %v3163_v22  ;;  %v3674_v52 = vsel %vm808_vm2, %v13380_v47, %v3673_v8  ;;  %v4237_v34 = vsel %vm808_vm2, %v4234_v25, %v4236_v32  ;;  %v4657_v7 = vmul.f32 %v10989_v20, %v3266_v54 }
 0x395   :  { %v11017_v3 = vadd.f32 %v4773_v62, %v4607_v35  ;;  %v4609_v23 = vadd.f32 %v4542_v61, %v4373_v42  ;;  %v4063_v0 = vadd.f32 %v3993_v38, %v3814_v5  ;;  %v4539_v56 = vsel %vm571_vm1, %v4536_v13, %v4538_v36  ;;  %v3750_v35 = vpop.permute.xlu0 %3749 }
 0x396   :  { %v3739_v58 = vadd.f32 %v3674_v52, %v3504_v40  ;;  %v4608_v22 = vadd.f32 %v4539_v56, %v4372_v12  ;;  %v4774_v44 = vrot.slane %v4657_v7, 2  ;;  %v3875_v19 = vmul.f32 %v10527_v63, %v3823_v4 }
 0x397   :  { %v4119_v45 = vmul.f32 %v10535_v1, %v3823_v4  ;;  %v11025_v8 = vadd.f32 %v4778_v39, %v4609_v23  ;;  %v4307_v62 = vadd.f32 %v4237_v34, %v4063_v0  ;;  %v4427_v55 = vmul.f32 %v10982_v14, %v3823_v4 }
 0x398   :  { %v4663_v32 = vmul.f32 %v10989_v20, %v3823_v4  ;;  %v4775_v54 = vsel %vm808_vm2, %v4772_v50, %v4774_v44  ;;  %v4002_v61 = vrot.slane %v3875_v19, 1  ;;  %v3165_v42 = vmul.f32 %v10428_v10, %v13344_v2  ;;  %v13385_v10 = vld [vmem:[#allocation184_spill] sm:$0xff] }
 0x399   :  { %v4246_v40 = vrot.slane %v4119_v45, 2  ;;  %v4374_v5 = vadd.f32 %v4343_v46, %v4307_v62  ;;  %v11032_v25 = vadd.f32 %v4775_v54, %v4608_v22  ;;  %v4548_v12 = vrot.slane %v4427_v55, 1 }
 0x39a   :  { %v4784_v13 = vrot.slane %v4663_v32, 2  ;;  %v3506_v39 = vadd.f32 %v10928_v37, %v3165_v42  ;;  %v13381_v49 = vrot.slane %v10915_v26, 2  ;;  %v13383_v11 = vrot.slane %v13382_v59, 2  ;;  %v13389_v32 = vld [vmem:[#allocation141_spill] sm:$0xff] }
 0x39b   :  { %v3784_v50 = vmul.f32 %v10508_v33, %v13344_v2  ;;  %v13384_v43 = vrot.slane %v10923_v57, 2  ;;  %v13386_v46 = vrot.slane %v13385_v10, 2  ;;  %v4610_v47 = vadd.f32 %v10957_v24, %v4374_v5 }
 0x39c   :  { %v3679_v4 = vsel %vm808_vm2, %v13383_v11, %v13381_v49  ;;  %v4346_v52 = vmul.f32 0.0, %v10379_v29  ;;  %v4428_v37 = vmul.f32 0.0, %v10982_v14  ;;  %v4664_v26 = vmul.f32 0.0, %v10989_v20 }
 0x39d   :  { %v4242_v21 = vsel %vm808_vm2, %v13386_v46, %v13384_v43  ;;  %v3741_v36 = vadd.f32 %v3679_v4, %v3506_v39  ;;  %v3816_v38 = vadd.f32 %v3784_v50, %v3739_v58  ;;  %v3786_v34 = vmul.f32 %v10508_v33, %v3750_v35 }
 0x39e   :  { %v3874_v2 = vmul.f32 %v10527_v63, %v3750_v35  ;;  %v11054_v57 = vadd.f32 %v10972_v30, %v4610_v47  ;;  %v4550_v7 = vrot.slane %v4428_v37, 1  ;;  %v4786_v23 = vrot.slane %v4664_v26, 2  ;;  %v13387_v30 = vld [vmem:[#allocation185_spill] sm:$0xff] }
 0x39f   :  { %v4118_v0 = vmul.f32 %v10535_v1, %v3750_v35  ;;  %v4065_v24 = vadd.f32 %v10943_v60, %v3816_v38  ;;  %v3818_v56 = vadd.f32 %v3786_v34, %v3741_v36  ;;  %v4345_v44 = vmul.f32 %v10379_v29, %v3750_v35  ;;  %v13390_v29 = vld [vmem:[#allocation188_spill] sm:$0xff] }
 0x3a0   :  { %v4000_v22 = vrot.slane %v3874_v2, 1  ;;  %v4426_v58 = vmul.f32 %v10982_v14, %v3750_v35  ;;  %v4662_v33 = vmul.f32 %v10989_v20, %v3750_v35  ;;  %v5025_v63 = vrot.slane %v10363_v53, 5 }
 0x3a1   :  { %v4244_v19 = vrot.slane %v4118_v0, 2  ;;  %v4309_v45 = vadd.f32 %v4242_v21, %v4065_v24  ;;  %v13388_v62 = vrot.slane %v13387_v30, 1  ;;  %v5026_v60 = vrot.slane %v10383_v16, 4 }
 0x3a2   :  { %v4003_v1 = vsel %vm571_vm1, %v4000_v22, %v4002_v61  ;;  %v13391_v5 = vrot.slane %v13390_v29, 2  ;;  %v4546_v39 = vrot.slane %v4426_v58, 1  ;;  %v4782_v49 = vrot.slane %v4662_v33, 2 }
 0x3a3   :  { %v4001_v55 = vsel %vm571_vm1, %v13388_v62, %v4000_v22  ;;  %v4067_v42 = vadd.f32 %v4003_v1, %v3818_v56  ;;  %v4247_v20 = vsel %vm808_vm2, %v4244_v19, %v4246_v40  ;;  %v4376_v35 = vadd.f32 %v4345_v44, %v4309_v45 }
 0x3a4   :  { %v4066_v54 = vadd.f32 %v4001_v55, %v13389_v32  ;;  %v4245_v14 = vsel %vm808_vm2, %v13391_v5, %v4244_v19  ;;  %v5027_v59 = vsel %vm2080_vm3, %v5026_v60, %v5025_v63  ;;  %v5028_v61 = vrot.slane %v10406_v18, 3  ;;  %v13395_v63 = vld [vmem:[#allocation135_spill] sm:$0xff] }
 0x3a5   :  { %v4311_v4 = vadd.f32 %v4247_v20, %v4067_v42  ;;  %v5030_v50 = vrot.slane %v10583_v28, 2  ;;  %v13392_v43 = vrot.slane %v10240_v17, 1  ;;  %v4549_v46 = vsel %vm571_vm1, %v4546_v39, %v4548_v12 }
 0x3a6   :  { %v4310_v11 = vadd.f32 %v4245_v14, %v4066_v54  ;;  %v13393_v21 = vrot.slane %v10280_v41, 2  ;;  %v4785_v47 = vsel %vm808_vm2, %v4782_v49, %v4784_v13  ;;  %v4612_v38 = vadd.f32 %v4549_v46, %v4376_v35 }
 0x3a7   :  { %v4547_v10 = vsel %vm571_vm1, %v13392_v43, %v4546_v39  ;;  %v4378_v26 = vadd.f32 %v4346_v52, %v4311_v4  ;;  %v5029_v34 = vsel %vm2083_vm4, %v5028_v61, %v5027_v59  ;;  %v5032_v2 = vrot.slane %v10590_v9, 1 }
 0x3a8   :  { %v4783_v40 = vsel %vm808_vm2, %v13393_v21, %v4782_v49  ;;  %v4377_v37 = vadd.f32 %v4346_v52, %v4310_v11  ;;  %v4611_v36 = vadd.f32 %v4547_v10, %v10413_v48  ;;  %v5035_v17 = vrot.slane %v10736_v31, 7  ;;  %v13394_v52 = vld [vmem:[#allocation32_spill] sm:$0xff] }
 0x3a9   :  { %v5037_v0 = vrot.slane %v10743_v6, 6  ;;  %v4614_v24 = vadd.f32 %v4550_v7, %v4378_v26  ;;  %v11090_v56 = vadd.f32 %v4785_v47, %v4612_v38  ;;  %v5031_v13 = vsel %vm2086_vm5, %v5030_v50, %v5029_v34 }
 0x3aa   :  { %v4613_v12 = vadd.f32 %v4550_v7, %v4377_v37  ;;  %v11088_v41 = vadd.f32 %v4783_v40, %v4611_v36  ;;  %v5039_v22 = vrot.slane %v13394_v52, 5  ;;  %v5040_v48 = vrot.slane %v10890_v27, 4 }
 0x3ab   :  { %v5042_v44 = vrot.slane %v10900_v51, 3  ;;  %v11098_v58 = vadd.f32 %v4786_v23, %v4614_v24  ;;  %v5033_v33 = vsel %vm2089_vm6, %v5032_v2, %v5031_v13  ;;  %v5044_v7 = vrot.slane %v10910_v15, 2 }
 0x3ac   :  { %v11096_v19 = vadd.f32 %v4786_v23, %v4613_v12  ;;  %v5034_v45 = vsel %vm2092_vm7, %v13395_v63, %v5033_v33  ;;  %v5041_v30 = vsel %vm2080_vm3, %v5040_v48, %v5039_v22  ;;  %v5046_v62 = vrot.slane %v11017_v3, 1 }
 0x3ad   :  { %v5049_v55 = vrot.slane %v11088_v41, 7  ;;  %v5036_v1 = vsel %vm2095_vm8, %v5035_v17, %v5034_v45  ;;  %v5043_v60 = vsel %vm2083_vm4, %v5042_v44, %v5041_v30  ;;  %v4961_v32 = vrot.slane %v10363_v53, 3 }
 0x3ae   :  { %v5051_v23 = vrot.slane %v11096_v19, 6  ;;  %v5038_v54 = vsel %vm2098_vm9, %v5037_v0, %v5036_v1  ;;  %v5045_v42 = vsel %vm2086_vm5, %v5044_v7, %v5043_v60  ;;  %v4962_v29 = vrot.slane %v10383_v16, 2 }
 0x3af   :  { %v4964_v5 = vrot.slane %v10406_v18, 1  ;;  %v5047_v14 = vsel %vm2089_vm6, %v5046_v62, %v5045_v42  ;;  %v4967_v20 = vrot.slane %v10590_v9, 7  ;;  %v4969_v35 = vrot.slane %v13395_v63, 6 }
 0x3b0   :  { %v4971_v39 = vrot.slane %v10736_v31, 5  ;;  %v5048_v49 = vsel %vm2092_vm7, %v11025_v8, %v5047_v14  ;;  %v4963_v59 = vsel %vm2080_vm3, %v4962_v29, %v4961_v32  ;;  %v4973_v11 = vrot.slane %v10743_v6, 4 }
 0x3b1   :  { %v4975_v4 = vrot.slane %v13394_v52, 3  ;;  %v5050_v61 = vsel %vm2095_vm8, %v5049_v55, %v5048_v49  ;;  %v4965_v50 = vsel %vm2083_vm4, %v4964_v5, %v4963_v59  ;;  %v4976_v43 = vrot.slane %v10890_v27, 2 }
 0x3b2   :  { %v4978_v10 = vrot.slane %v10900_v51, 1  ;;  %v5052_v46 = vsel %vm2098_vm9, %v5051_v23, %v5050_v61  ;;  %v4966_v21 = vsel %vm2086_vm5, %v10583_v28, %v4965_v50  ;;  %v4981_v40 = vrot.slane %v11017_v3, 7 }
 0x3b3   :  { %v4983_v47 = vrot.slane %v11025_v8, 6  ;;  %v5760_v37 = vpack.i.bf16 %v5052_v46, %v5038_v54  ;;  %v4968_v26 = vsel %vm2089_vm6, %v4967_v20, %v4966_v21  ;;  %v4977_v36 = vsel %vm2080_vm3, %v4976_v43, %v4975_v4 }
 0x3b4   :  { %v4985_v38 = vrot.slane %v11088_v41, 5  ;;  %v4970_v34 = vsel %vm2092_vm7, %v4969_v35, %v4968_v26  ;;  %v4979_v2 = vsel %vm2083_vm4, %v4978_v10, %v4977_v36  ;;  %v4987_v17 = vrot.slane %v11096_v19, 4 }
 0x3b5   :  { %v4897_v0 = vrot.slane %v10363_v53, 1  ;;  %5761 = vrot.lane.b32.xlu1 %v5760_v37, %s5920_s5  ;;  %v4972_v12 = vsel %vm2095_vm8, %v4971_v39, %v4970_v34  ;;  %v4980_v24 = vsel %vm2086_vm5, %v10910_v15, %v4979_v2  ;;  %v4899_v13 = vrot.slane %v10406_v18, 7 }
 0x3b6   :  { %v4901_v22 = vrot.slane %v10583_v28, 6  ;;  %v4974_v48 = vsel %vm2098_vm9, %v4973_v11, %v4972_v12  ;;  %v4982_v44 = vsel %vm2089_vm6, %v4981_v40, %v4980_v24  ;;  %v4903_v7 = vrot.slane %v10590_v9, 5 }
 0x3b7   :  { %v4898_v33 = vsel %vm2080_vm3, %v10383_v16, %v4897_v0  ;;  %v4984_v45 = vsel %vm2092_vm7, %v4983_v47, %v4982_v44  ;;  %v4905_v62 = vrot.slane %v13395_v63, 4  ;;  %v4907_v55 = vrot.slane %v10736_v31, 3 }
 0x3b8   :  { %v4900_v30 = vsel %vm2083_vm4, %v4899_v13, %v4898_v33  ;;  %v4986_v1 = vsel %vm2095_vm8, %v4985_v38, %v4984_v45  ;;  %v4909_v23 = vrot.slane %v10743_v6, 2  ;;  %v4911_v32 = vrot.slane %v13394_v52, 1 }
 0x3b9   :  { %v4902_v60 = vsel %vm2086_vm5, %v4901_v22, %v4900_v30  ;;  %v4988_v54 = vsel %vm2098_vm9, %v4987_v17, %v4986_v1  ;;  %v4913_v29 = vrot.slane %v10900_v51, 7  ;;  %v4915_v5 = vrot.slane %v10910_v15, 6 }
 0x3ba   :  { %v4904_v42 = vsel %vm2089_vm6, %v4903_v7, %v4902_v60  ;;  %v5755_v14 = vpack.i.bf16 %v4988_v54, %v4974_v48  ;;  %v4912_v35 = vsel %vm2080_vm3, %v10890_v27, %v4911_v32  ;;  %v4917_v39 = vrot.slane %v11017_v3, 5  ;;  %v13397_v54 = vld [vmem:[#allocation24_spill] sm:$0xff] }
 0x3bb   :  { %v4906_v20 = vsel %vm2092_vm7, %v4905_v62, %v4904_v42  ;;  %v4914_v59 = vsel %vm2083_vm4, %v4913_v29, %v4912_v35  ;;  %v4919_v11 = vrot.slane %v11025_v8, 4  ;;  %v4921_v4 = vrot.slane %v11088_v41, 3  ;;  %v13399_v35 = vld [vmem:[#allocation33_spill] sm:$0xff] }
 0x3bc   :  { %v4908_v49 = vsel %vm2095_vm8, %v4907_v55, %v4906_v20  ;;  %5756 = vrot.lane.b32.xlu0 %v5755_v14, %s5920_s5  ;;  %v4916_v50 = vsel %vm2086_vm5, %v4915_v5, %v4914_v59  ;;  %v4923_v43 = vrot.slane %v11096_v19, 2  ;;  %v5089_v10 = vrot.slane %v10363_v53, 7  ;;  %v13398_v14 = vld [vmem:[#allocation68_spill] sm:$0xff] }
 0x3bd   :  { %v4910_v61 = vsel %vm2098_vm9, %v4909_v23, %v4908_v49  ;;  %v4918_v46 = vsel %vm2089_vm6, %v4917_v39, %v4916_v50  ;;  %v5090_v21 = vrot.slane %v10383_v16, 6  ;;  %v5092_v40 = vrot.slane %v10406_v18, 5  ;;  %v13396_v23 = vld [vmem:[#allocation16_spill] sm:$0xff] }
 0x3be   :  { %v5094_v47 = vrot.slane %v10583_v28, 4  ;;  %v4920_v37 = vsel %vm2092_vm7, %v4919_v11, %v4918_v46  ;;  %v5096_v26 = vrot.slane %v10590_v9, 3  ;;  %v5098_v36 = vrot.slane %v13395_v63, 2 }
 0x3bf   :  { %v5100_v38 = vrot.slane %v10736_v31, 1  ;;  %v4922_v34 = vsel %vm2095_vm8, %v4921_v4, %v4920_v37  ;;  %v5091_v2 = vsel %vm2080_vm3, %v5090_v21, %v5089_v10  ;;  %v5103_v17 = vrot.slane %v13394_v52, 7  ;;  %v13400_v4 = vld [vmem:[#allocation113_spill] sm:$0xff]  ;;  %v13401_v10 = vld [vmem:[#allocation92_spill] sm:$0xff]  ;;  %v13402_v21 = vld [vmem:[#allocation51_spill] sm:$0xff] }
 0x3c0   :  { %v5104_v0 = vrot.slane %v10890_v27, 6  ;;  %v4924_v12 = vsel %vm2098_vm9, %v4923_v43, %v4922_v34  ;;  %v5093_v24 = vsel %vm2083_vm4, %v5092_v40, %v5091_v2  ;;  %v5106_v13 = vrot.slane %v10900_v51, 5  ;;  %v13403_v37 = vld [vmem:[#allocation20_spill] sm:$0xff]  ;;  %v13405_v34 = vld [vmem:[#allocation143_spill] sm:$0xff] }
 0x3c1   :  { %v5108_v22 = vrot.slane %v10910_v15, 4  ;;  %v5750_v48 = vpack.i.bf16 %v4924_v12, %v4910_v61  ;;  %v5095_v44 = vsel %vm2086_vm5, %v5094_v47, %v5093_v24  ;;  %v5110_v7 = vrot.slane %v11017_v3, 3  ;;  %v13406_v12 = vld [vmem:[#allocation58_spill] sm:$0xff] }
 0x3c2   :  { %v5105_v33 = vsel %vm2080_vm3, %v5104_v0, %v5103_v17  ;;  %v5097_v45 = vsel %vm2089_vm6, %v5096_v26, %v5095_v44  ;;  %v5112_v62 = vrot.slane %v11025_v8, 2  ;;  %v5114_v55 = vrot.slane %v11088_v41, 1 }
 0x3c3   :  { %v5107_v30 = vsel %vm2083_vm4, %v5106_v13, %v5105_v33  ;;  %5751 = vrot.lane.b32.xlu2 %v5750_v48, %s5920_s5  ;;  %v5099_v1 = vsel %vm2092_vm7, %v5098_v36, %v5097_v45  ;;  %v5233_v32 = vrot.slane %v13396_v23, 3  ;;  %v5234_v42 = vrot.slane %v13397_v54, 2  ;;  %v13404_v36 = vld [vmem:[#allocation105_spill] sm:$0xff] }
 0x3c4   :  { %v5109_v60 = vsel %vm2086_vm5, %v5108_v22, %v5107_v30  ;;  %v5101_v29 = vsel %vm2095_vm8, %v5100_v38, %v5099_v1  ;;  %v5236_v20 = vrot.slane %v13398_v14, 1  ;;  %v5239_v39 = vrot.slane %v13399_v35, 7  ;;  %v13407_v1 = vld [vmem:[#allocation87_spill] sm:$0xff] }
 0x3c5   :  { %v5111_v5 = vsel %vm2089_vm6, %v5110_v7, %v5109_v60  ;;  %v5102_v49 = vsel %vm2098_vm9, %v10743_v6, %v5101_v29  ;;  %v5235_v11 = vsel %vm2080_vm3, %v5234_v42, %v5233_v32  ;;  %v5241_v61 = vrot.slane %v13400_v4, 6 }
 0x3c6   :  { %v5113_v59 = vsel %vm2092_vm7, %v5112_v62, %v5111_v5  ;;  %v5237_v43 = vsel %vm2083_vm4, %v5236_v20, %v5235_v11  ;;  %v5243_v46 = vrot.slane %v13401_v10, 5  ;;  %v5245_v40 = vrot.slane %v13402_v21, 4 }
 0x3c7   :  { %v5115_v50 = vsel %vm2095_vm8, %v5114_v55, %v5113_v59  ;;  %v5238_v26 = vsel %vm2086_vm5, %v13403_v37, %v5237_v43  ;;  %v5247_v38 = vrot.slane %v13404_v36, 3  ;;  %v5248_v2 = vrot.slane %v13405_v34, 2 }
 0x3c8   :  { %v5116_v47 = vsel %vm2098_vm9, %v11096_v19, %v5115_v50  ;;  %v5240_v0 = vsel %vm2089_vm6, %v5239_v39, %v5238_v26  ;;  %v5250_v24 = vrot.slane %v13406_v12, 1  ;;  %v5253_v13 = vrot.slane %v11032_v25, 7 }
 0x3c9   :  { %v5765_v17 = vpack.i.bf16 %v5116_v47, %v5102_v49  ;;  %v5242_v22 = vsel %vm2092_vm7, %v5241_v61, %v5240_v0  ;;  %v5249_v48 = vsel %vm2080_vm3, %v5248_v2, %v5247_v38  ;;  %v5255_v44 = vrot.slane %v11054_v57, 6 }
 0x3ca   :  { %v5257_v33 = vrot.slane %v11090_v56, 5  ;;  %v5244_v7 = vsel %vm2095_vm8, %v5243_v46, %v5242_v22  ;;  %v5251_v45 = vsel %vm2083_vm4, %v5250_v24, %v5249_v48  ;;  %v5259_v30 = vrot.slane %v11098_v58, 4 }
 0x3cb   :  { %v5169_v62 = vrot.slane %v13396_v23, 1  ;;  %5766 = vrot.lane.b32.xlu2 %v5765_v17, %s5920_s5  ;;  %v5246_v55 = vsel %vm2098_vm9, %v5245_v40, %v5244_v7  ;;  %v5252_v60 = vsel %vm2086_vm5, %v13407_v1, %v5251_v45  ;;  %v5171_v32 = vrot.slane %v13398_v14, 7 }
 0x3cc   :  { %v5173_v42 = vrot.slane %v13403_v37, 6  ;;  %v5254_v29 = vsel %vm2089_vm6, %v5253_v13, %v5252_v60  ;;  %v5175_v20 = vrot.slane %v13399_v35, 5  ;;  %v5177_v39 = vrot.slane %v13400_v4, 4 }
 0x3cd   :  { %v5170_v5 = vsel %vm2080_vm3, %v13397_v54, %v5169_v62  ;;  %v5256_v49 = vsel %vm2092_vm7, %v5255_v44, %v5254_v29  ;;  %v5179_v11 = vrot.slane %v13401_v10, 3  ;;  %v5181_v61 = vrot.slane %v13402_v21, 2 }
 0x3ce   :  { %v5172_v59 = vsel %vm2083_vm4, %v5171_v32, %v5170_v5  ;;  %v5258_v50 = vsel %vm2095_vm8, %v5257_v33, %v5256_v49  ;;  %v5183_v46 = vrot.slane %v13404_v36, 1  ;;  %v5185_v40 = vrot.slane %v13406_v12, 7 }
 0x3cf   :  { %v5174_v43 = vsel %vm2086_vm5, %v5173_v42, %v5172_v59  ;;  %v5260_v47 = vsel %vm2098_vm9, %v5259_v30, %v5258_v50  ;;  %v5187_v38 = vrot.slane %v13407_v1, 6  ;;  %v5189_v2 = vrot.slane %v11032_v25, 5 }
 0x3d0   :  { %v5176_v26 = vsel %vm2089_vm6, %v5175_v20, %v5174_v43  ;;  %v5775_v17 = vpack.i.bf16 %v5260_v47, %v5246_v55  ;;  %v5184_v24 = vsel %vm2080_vm3, %v13405_v34, %v5183_v46  ;;  %v5191_v13 = vrot.slane %v11054_v57, 4 }
 0x3d1   :  { %v5178_v0 = vsel %vm2092_vm7, %v5177_v39, %v5176_v26  ;;  %v5186_v48 = vsel %vm2083_vm4, %v5185_v40, %v5184_v24  ;;  %v5193_v44 = vrot.slane %v11090_v56, 3  ;;  %v5195_v33 = vrot.slane %v11098_v58, 2 }
 0x3d2   :  { %v5180_v22 = vsel %vm2095_vm8, %v5179_v11, %v5178_v0  ;;  %5776 = vrot.lane.b32.xlu1 %v5775_v17, %s5920_s5  ;;  %v5188_v45 = vsel %vm2086_vm5, %v5187_v38, %v5186_v48  ;;  %v5297_v30 = vrot.slane %v13396_v23, 5  ;;  %v5298_v62 = vrot.slane %v13397_v54, 4 }
 0x3d3   :  { %v5182_v7 = vsel %vm2098_vm9, %v5181_v61, %v5180_v22  ;;  %v5190_v55 = vsel %vm2089_vm6, %v5189_v2, %v5188_v45  ;;  %v5300_v60 = vrot.slane %v13398_v14, 3  ;;  %v5302_v32 = vrot.slane %v13403_v37, 2 }
 0x3d4   :  { %v5304_v42 = vrot.slane %v13399_v35, 1  ;;  %v5192_v29 = vsel %vm2092_vm7, %v5191_v13, %v5190_v55  ;;  %v5299_v5 = vsel %vm2080_vm3, %v5298_v62, %v5297_v30  ;;  %v5307_v20 = vrot.slane %v13401_v10, 7 }
 0x3d5   :  { %v5309_v39 = vrot.slane %v13402_v21, 6  ;;  %v5194_v49 = vsel %vm2095_vm8, %v5193_v44, %v5192_v29  ;;  %v5301_v59 = vsel %vm2083_vm4, %v5300_v60, %v5299_v5  ;;  %v5311_v11 = vrot.slane %v13404_v36, 5 }
 0x3d6   :  { %v5312_v61 = vrot.slane %v13405_v34, 4  ;;  %v5196_v50 = vsel %vm2098_vm9, %v5195_v33, %v5194_v49  ;;  %v5303_v43 = vsel %vm2086_vm5, %v5302_v32, %v5301_v59  ;;  %v5314_v46 = vrot.slane %v13406_v12, 3 }
 0x3d7   :  { %v5316_v40 = vrot.slane %v13407_v1, 2  ;;  %v5770_v47 = vpack.i.bf16 %v5196_v50, %v5182_v7  ;;  %v5305_v26 = vsel %vm2089_vm6, %v5304_v42, %v5303_v43  ;;  %v5318_v2 = vrot.slane %v11032_v25, 1 }
 0x3d8   :  { %v5313_v38 = vsel %vm2080_vm3, %v5312_v61, %v5311_v11  ;;  %v5306_v17 = vsel %vm2092_vm7, %v13400_v4, %v5305_v26  ;;  %v5321_v24 = vrot.slane %v11090_v56, 7  ;;  %v5323_v13 = vrot.slane %v11098_v58, 6 }
 0x3d9   :  { %v5315_v0 = vsel %vm2083_vm4, %v5314_v46, %v5313_v38  ;;  %5771 = vrot.lane.b32.xlu0 %v5770_v47, %s5920_s5  ;;  %v5308_v22 = vsel %vm2095_vm8, %v5307_v20, %v5306_v17  ;;  %v5361_v44 = vrot.slane %v13396_v23, 7  ;;  %v5362_v33 = vrot.slane %v13397_v54, 6 }
 0x3da   :  { %v5317_v48 = vsel %vm2086_vm5, %v5316_v40, %v5315_v0  ;;  %v5310_v7 = vsel %vm2098_vm9, %v5309_v39, %v5308_v22  ;;  %v5364_v30 = vrot.slane %v13398_v14, 5  ;;  %v5366_v62 = vrot.slane %v13403_v37, 4 }
 0x3db   :  { %v5319_v45 = vsel %vm2089_vm6, %v5318_v2, %v5317_v48  ;;  %v5363_v60 = vsel %vm2080_vm3, %v5362_v33, %v5361_v44  ;;  %v5368_v32 = vrot.slane %v13399_v35, 3  ;;  %v5370_v42 = vrot.slane %v13400_v4, 2 }
 0x3dc   :  { %v5320_v55 = vsel %vm2092_vm7, %v11054_v57, %v5319_v45  ;;  %v5365_v5 = vsel %vm2083_vm4, %v5364_v30, %v5363_v60  ;;  %v5372_v20 = vrot.slane %v13401_v10, 1  ;;  %v5375_v39 = vrot.slane %v13404_v36, 7  ;;  %v13408_v45 = vld [vmem:[#allocation10_spill] sm:$0xff] }
 0x3dd   :  { %v5322_v29 = vsel %vm2095_vm8, %v5321_v24, %v5320_v55  ;;  %v5367_v59 = vsel %vm2086_vm5, %v5366_v62, %v5365_v5  ;;  %v5376_v11 = vrot.slane %v13405_v34, 6  ;;  %v5378_v61 = vrot.slane %v13406_v12, 5  ;;  %v13409_v62 = vld [vmem:[#allocation23_spill] sm:$0xff] }
 0x3de   :  { %v5324_v49 = vsel %vm2098_vm9, %v5323_v13, %v5322_v29  ;;  %v5369_v43 = vsel %vm2089_vm6, %v5368_v32, %v5367_v59  ;;  %v5380_v46 = vrot.slane %v13407_v1, 4  ;;  %v5382_v40 = vrot.slane %v11032_v25, 3 }
 0x3df   :  { %v5780_v50 = vpack.i.bf16 %v5324_v49, %v5310_v7  ;;  %v5371_v47 = vsel %vm2092_vm7, %v5370_v42, %v5369_v43  ;;  %v5377_v26 = vsel %vm2080_vm3, %v5376_v11, %v5375_v39  ;;  %v5384_v38 = vrot.slane %v11054_v57, 2 }
 0x3e0   :  { %v5379_v2 = vsel %vm2083_vm4, %v5378_v61, %v5377_v26  ;;  %v5386_v17 = vrot.slane %v11090_v56, 1  ;;  %v5373_v24 = vsel %vm2095_vm8, %v5372_v20, %v5371_v47  ;;  %v2648_v30 = vsel %vm2614_vm10, %v13408_v45, 0.0  ;;  %v13410_v20 = vld [vmem:[#allocation28_spill] sm:$0xff] }
 0x3e1   :  { %5781 = vrot.lane.b32.xlu2 %v5780_v50, %s5920_s5  ;;  %v5381_v0 = vsel %vm2086_vm5, %v5380_v46, %v5379_v2  ;;  %v5374_v44 = vsel %vm2098_vm9, %v13402_v21, %v5373_v24  ;;  %v2647_v55 = vsel %vm2614_vm10, %v13409_v62, 0.0  ;;  %v2718_v60 = vmul.f32 %v13408_v45, %v13408_v45 }
 0x3e2   :  { %v5383_v13 = vsel %vm2089_vm6, %v5382_v40, %v5381_v0  ;;  %v2717_v32 = vmul.f32 %v13409_v62, %v13409_v62  ;;  %v2649_v42 = vadd.f32 %v2648_v30, %v2647_v55  ;;  %v4867_v29 = vrot.slane %v10383_v16, 7  ;;  %v13411_v0 = vld [vmem:[#allocation52_spill] sm:$0xff] }
 0x3e3   :  { %v5385_v22 = vsel %vm2092_vm7, %v5384_v38, %v5383_v13  ;;  %v4869_v5 = vrot.slane %v10406_v18, 6  ;;  %v2650_v39 = vsel %vm2614_vm10, %v13410_v20, 0.0  ;;  %v2750_v49 = vsel %vm2614_vm10, %v2718_v60, 0.0 }
 0x3e4   :  { %v5387_v48 = vsel %vm2095_vm8, %v5386_v17, %v5385_v22  ;;  %v4871_v59 = vrot.slane %v10583_v28, 5  ;;  %v2749_v11 = vsel %vm2614_vm10, %v2717_v32, 0.0  ;;  %v11350_v61 = vadd.f32 %v2650_v39, %v2649_v42 }
 0x3e5   :  { %v5388_v33 = vsel %vm2098_vm9, %v11098_v58, %v5387_v48  ;;  %v4873_v50 = vrot.slane %v10590_v9, 4  ;;  %v5429_v43 = vsel %vm2614_vm10, %v13396_v23, 0.0  ;;  %v4868_v46 = vsel %vm2080_vm3, %v4867_v29, %v10363_v53 }
 0x3e6   :  { %v5785_v7 = vpack.i.bf16 %v5388_v33, %v5374_v44  ;;  %v4875_v40 = vrot.slane %v13395_v63, 3  ;;  %v4881_v47 = vrot.slane %v10890_v27, 7  ;;  %v11359_v26 = vadd.f32 %v2750_v49, %v2749_v11 }
 0x3e7   :  { %v4870_v38 = vsel %vm2083_vm4, %v4869_v5, %v4868_v46  ;;  %v4877_v2 = vrot.slane %v10736_v31, 2  ;;  %v4883_v17 = vrot.slane %v10900_v51, 6  ;;  %v11366_v24 = vmul.f32 %v13411_v0, %v13411_v0 }
 0x3e8   :  { %5786 = vrot.lane.b32.xlu0 %v5785_v7, %s5920_s5  ;;  %v5428_v13 = vsel %vm2614_vm10, %v10363_v53, 0.0  ;;  %v4872_v22 = vsel %vm2086_vm5, %v4871_v59, %v4870_v38  ;;  %v4885_v48 = vrot.slane %v10910_v15, 5  ;;  %v11374_v44 = vsel %vm2614_vm10, %v10383_v16, 0.0  ;;  %s11744_s5 = sshll.u32 %s5921_s1, 4  ;;  %s5608_s5 = int_to_ptr.vmem [resolvable:$true] %s11744_s5 }
 0x3e9   :  { %13412 = vst [vmem:[#allocation98_spill] sm:$0xff] %v11366_v24  ;;  %v11376_v33 = vadd.f32 %v5429_v43, %v5428_v13  ;;  %v4874_v7 = vsel %vm2089_vm6, %v4873_v50, %v4872_v22  ;;  %v4879_v45 = vrot.slane %v10743_v6, 1  ;;  %v4882_v62 = vsel %vm2080_vm3, %v4881_v47, %v13394_v52 }
 0x3ea   :  { %13413 = vst [vmem:[#allocation44_spill] sm:$0xff] %v11374_v44  ;;  %v4876_v30 = vsel %vm2092_vm7, %v4875_v40, %v4874_v7  ;;  %v4887_v55 = vrot.slane %v11017_v3, 4  ;;  %v5060_v60 = vrot.slane %v10383_v16, 5  ;;  %v4884_v42 = vsel %vm2083_vm4, %v4883_v17, %v4882_v62 }
 0x3eb   :  { %13414 = vst [vmem:[#allocation131_spill] sm:$0xff] %v11376_v33  ;;  %v4878_v32 = vsel %vm2095_vm8, %v4877_v2, %v4876_v30  ;;  %v4889_v29 = vrot.slane %v11025_v8, 3  ;;  %v5062_v5 = vrot.slane %v10406_v18, 4  ;;  %v4886_v39 = vsel %vm2086_vm5, %v4885_v48, %v4884_v42 }
 0x3ec   :  { %v5059_v49 = vrot.slane %v10363_v53, 6  ;;  %v5064_v59 = vrot.slane %v10583_v28, 3  ;;  %v4996_v11 = vrot.slane %v10383_v16, 3  ;;  %v11394_v50 = vsel %vm2098_vm9, %v4879_v45, %v4878_v32 }
 0x3ed   :  { %v4891_v43 = vrot.slane %v11088_v41, 2  ;;  %v5066_v46 = vrot.slane %v10590_v9, 2  ;;  %v4932_v40 = vrot.slane %v10383_v16, 1  ;;  %v5068_v38 = vrot.slane %v13395_v63, 1 }
 0x3ee   :  { %v5061_v47 = vsel %vm2080_vm3, %v5060_v60, %v5059_v49  ;;  %v4995_v2 = vrot.slane %v10363_v53, 4  ;;  %v4998_v17 = vrot.slane %v10406_v18, 2  ;;  %v4888_v13 = vsel %vm2089_vm6, %v4887_v55, %v4886_v39 }
 0x3ef   :  { %v5063_v22 = vsel %vm2083_vm4, %v5062_v5, %v5061_v47  ;;  %v5000_v48 = vrot.slane %v10583_v28, 1  ;;  %v4931_v7 = vrot.slane %v10363_v53, 2  ;;  %v4890_v45 = vsel %vm2092_vm7, %v4889_v29, %v4888_v13  ;;  %v13415_v13 = vld [vmem:[#allocation15_spill] sm:$0xff] }
 0x3f0   :  { %v5065_v30 = vsel %vm2086_vm5, %v5064_v59, %v5063_v22  ;;  %v4997_v62 = vsel %vm2080_vm3, %v4996_v11, %v4995_v2  ;;  %v5003_v60 = vrot.slane %v13395_v63, 7  ;;  %v5071_v42 = vrot.slane %v10743_v6, 7 }
 0x3f1   :  { %v5067_v32 = vsel %vm2089_vm6, %v5066_v46, %v5065_v30  ;;  %v4933_v55 = vsel %vm2080_vm3, %v4932_v40, %v4931_v7  ;;  %v4935_v5 = vrot.slane %v10583_v28, 7  ;;  %v4999_v49 = vsel %vm2083_vm4, %v4998_v17, %v4997_v62 }
 0x3f2   :  { %v5069_v39 = vsel %vm2092_vm7, %v5068_v38, %v5067_v32  ;;  %v5005_v29 = vrot.slane %v10736_v31, 6  ;;  %v4937_v59 = vrot.slane %v10590_v9, 6  ;;  %v5001_v47 = vsel %vm2086_vm5, %v5000_v48, %v4999_v49 }
 0x3f3   :  { %v5070_v11 = vsel %vm2095_vm8, %v10736_v31, %v5069_v39  ;;  %v5007_v46 = vrot.slane %v10743_v6, 5  ;;  %v4939_v2 = vrot.slane %v13395_v63, 5  ;;  %v5002_v40 = vsel %vm2089_vm6, %v10590_v9, %v5001_v47 }
 0x3f4   :  { %v4934_v38 = vsel %vm2083_vm4, %v10406_v18, %v4933_v55  ;;  %v4941_v17 = vrot.slane %v10736_v31, 4  ;;  %v2652_v22 = vsel %vm2614_vm10, %v13415_v13, 0.0  ;;  %v11432_v7 = vsel %vm2095_vm8, %v4891_v43, %v4890_v45  ;;  %v13421_v31 = vld [vmem:[#allocation18_spill] sm:$0xff] }
 0x3f5   :  { %v11435_v48 = vsel %vm2098_vm9, %v5071_v42, %v5070_v11  ;;  %v5004_v30 = vsel %vm2092_vm7, %v5003_v60, %v5002_v40  ;;  %v4936_v62 = vsel %vm2086_vm5, %v4935_v5, %v4934_v38  ;;  %v5073_v32 = vrot.slane %v13394_v52, 6  ;;  %v13416_v60 = vld [vmem:[#allocation74_spill] sm:$0xff]  ;;  %v13417_v40 = vld [vmem:[#allocation13_spill] sm:$0xff] }
 0x3f6   :  { %v5006_v39 = vsel %vm2095_vm8, %v5005_v29, %v5004_v30  ;;  %v4938_v55 = vsel %vm2089_vm6, %v4937_v59, %v4936_v62  ;;  %v4943_v49 = vrot.slane %v10743_v6, 3  ;;  %v11448_v42 = vadd.f32 %v2652_v22, %v11350_v61  ;;  %v13418_v61 = vld [vmem:[#allocation86_spill] sm:$0xff]  ;;  %v13419_v30 = vld [vmem:[#allocation85_spill] sm:$0xff] }
 0x3f7   :  { %v5008_v43 = vsel %vm2098_vm9, %v5007_v46, %v5006_v39  ;;  %v4940_v45 = vsel %vm2092_vm7, %v4939_v2, %v4938_v55  ;;  %v11452_v5 = vsel %vm2614_vm10, %v13416_v60, 0.0  ;;  %v5074_v11 = vrot.slane %v10890_v27, 5 }
 0x3f8   :  { %v5009_v29 = vrot.slane %v13394_v52, 4  ;;  %v4942_v59 = vsel %vm2095_vm8, %v4941_v17, %v4940_v45  ;;  %v11459_v38 = vsel %vm2614_vm10, %v13417_v40, 0.0  ;;  %v5076_v46 = vrot.slane %v10900_v51, 4  ;;  %v13420_v45 = vld [vmem:[#allocation17_spill] sm:$0xff] }
 0x3f9   :  { %v5010_v2 = vrot.slane %v10890_v27, 3  ;;  %v11465_v22 = vsel %vm2614_vm10, %v13418_v61, 0.0  ;;  %v11469_v62 = vsel %vm2614_vm10, %v13419_v30, 0.0  ;;  %v5078_v39 = vrot.slane %v10910_v15, 3  ;;  %v13423_v30 = vld [vmem:[#allocation21_spill] sm:$0xff] }
 0x3fa   :  { %v5012_v17 = vrot.slane %v10900_v51, 2  ;;  %v11474_v55 = vsel %vm2098_vm9, %v4943_v49, %v4942_v59  ;;  %v11478_v16 = vsel %vm2614_vm10, %v13420_v45, 0.0  ;;  %v5080_v53 = vrot.slane %v11017_v3, 2 }
 0x3fb   :  { %v5014_v6 = vrot.slane %v10910_v15, 1  ;;  %v11484_v63 = vsel %vm2614_vm10, %v13421_v31, 0.0  ;;  %v11488_v9 = vsel %vm2614_vm10, %v13423_v30, 0.0  ;;  %v5075_v28 = vsel %vm2080_vm3, %v5074_v11, %v5073_v32 }
 0x3fc   :  { %13422 = vst [vmem:[#allocation61_spill] sm:$0xff] %v11484_v63  ;;  %v5082_v49 = vrot.slane %v11025_v8, 1  ;;  %v4945_v59 = vrot.slane %v13394_v52, 2  ;;  %v2719_v45 = vmul.f32 %v13410_v20, %v13410_v20  ;;  %v5077_v18 = vsel %vm2083_vm4, %v5076_v46, %v5075_v28 }
 0x3fd   :  { %13424 = vst [vmem:[#allocation126_spill] sm:$0xff] %v11488_v9  ;;  %v5011_v44 = vsel %vm2080_vm3, %v5010_v2, %v5009_v29  ;;  %v5017_v31 = vrot.slane %v11025_v8, 7  ;;  %v4946_v33 = vrot.slane %v10890_v27, 1  ;;  %v5079_v30 = vsel %vm2086_vm5, %v5078_v39, %v5077_v18 }
 0x3fe   :  { %v5013_v24 = vsel %vm2083_vm4, %v5012_v17, %v5011_v44  ;;  %v5019_v32 = vrot.slane %v11088_v41, 6  ;;  %v2721_v11 = vmul.f32 %v13416_v60, %v13416_v60  ;;  %v5081_v52 = vsel %vm2089_vm6, %v5080_v53, %v5079_v30 }
 0x3ff   :  { %v5085_v20 = vrot.slane %v11096_v19, 7  ;;  %v5015_v29 = vsel %vm2086_vm5, %v5014_v6, %v5013_v24  ;;  %v5021_v46 = vrot.slane %v11096_v19, 5  ;;  %v5083_v2 = vsel %vm2092_vm7, %v5082_v49, %v5081_v52 }
 0x400   :  { %v5016_v44 = vsel %vm2089_vm6, %v11017_v3, %v5015_v29  ;;  %v4893_v39 = vrot.slane %v11096_v19, 1  ;;  %v5084_v60 = vsel %vm2095_vm8, %v11088_v41, %v5083_v2  ;;  %v4947_v17 = vsel %vm2080_vm3, %v4946_v33, %v4945_v59 }
 0x401   :  { %v5018_v53 = vsel %vm2092_vm7, %v5017_v31, %v5016_v44  ;;  %v4949_v52 = vrot.slane %v10910_v15, 7  ;;  %v5086_v49 = vsel %vm2098_vm9, %v5085_v20, %v5084_v60  ;;  %v4951_v29 = vrot.slane %v11017_v3, 6 }
 0x402   :  { %v5020_v6 = vsel %vm2095_vm8, %v5019_v32, %v5018_v53  ;;  %v4953_v63 = vrot.slane %v11025_v8, 5  ;;  %v4948_v20 = vsel %vm2083_vm4, %v10900_v51, %v4947_v17  ;;  %v4957_v53 = vrot.slane %v11096_v19, 3 }
 0x403   :  { %v4950_v60 = vsel %vm2086_vm5, %v4949_v52, %v4948_v20  ;;  %v11545_v17 = vmul.f32 %v13418_v61, %v13418_v61 }
 0x41d   :  { %v11443_v47 = vpop.permute.xlu2 %5751 }
 0x425   :  { %v5767_v28 = vpop.permute.xlu2 %5766 }
 0x426   :  { %v5769_v27 = vunpack.i.h.bf16 %v5767_v28  ;;  %v5768_v18 = vunpack.i.l.bf16 %v5767_v28  ;;  %v5022_v28 = vsel %vm2098_vm9, %v5021_v46, %v5020_v6  ;;  %v4955_v46 = vrot.slane %v11088_v41, 4 }
 0x427   :  { %v5762_v30 = vpop.permute.xlu1 %5761  ;;  %v4894_v6 = vsel %vm2098_vm9, %v4893_v39, %v11432_v7  ;;  %v5270_v7 = vrot.slane %v13398_v14, 2 }
 0x428   :  { %v5764_v24 = vunpack.i.h.bf16 %v5762_v30  ;;  %v5763_v9 = vunpack.i.l.bf16 %v5762_v30  ;;  %v5402_v2 = vsel %vm2614_vm10, %v5086_v49, %v5769_v27  ;;  %v5401_v31 = vsel %vm2614_vm10, %v11435_v48, %v5768_v18  ;;  %v13425_v30 = vld [vmem:[#allocation57_spill] sm:$0xff] }
 0x429   :  { %v11534_v27 = vsel %vm2614_vm10, %v13425_v30, 0.0  ;;  %v5754_v48 = vunpack.i.h.bf16 %v11443_v47  ;;  %v4952_v18 = vsel %vm2089_vm6, %v4951_v29, %v4950_v60  ;;  %v11554_v49 = vsel %vm2614_vm10, %v2721_v11, 0.0 }
 0x42a   :  { %v5399_v33 = vsel %vm2614_vm10, %v5008_v43, %v5763_v9  ;;  %v5400_v59 = vsel %vm2614_vm10, %v5022_v28, %v5764_v24  ;;  %v11538_v9 = vmul.f32 %v13417_v40, %v13417_v40  ;;  %v5753_v43 = vunpack.i.l.bf16 %v11443_v47 }
 0x42b   :  { %v5412_v32 = vpack.c.bf16 %v5401_v31, %v5399_v33  ;;  %v5416_v44 = vpack.c.bf16 %v5402_v2, %v5400_v59  ;;  %v4954_v24 = vsel %vm2092_vm7, %v4953_v63, %v4952_v18  ;;  %v11551_v40 = vsel %vm2614_vm10, %v2719_v45, 0.0 }
 0x42c   :  { %v5267_v47 = vrot.slane %v13396_v23, 4  ;;  %v4956_v28 = vsel %vm2095_vm8, %v4955_v46, %v4954_v24  ;;  %v5268_v2 = vrot.slane %v13397_v54, 3  ;;  %v5204_v63 = vrot.slane %v13397_v54, 1 }
 0x42d   :  { %5421 = vst [vmem:[#allocation2 + $0x48] sm:$0xff] %v5412_v32  ;;  %v4958_v39 = vsel %vm2098_vm9, %v4957_v53, %v4956_v28  ;;  %v5395_v45 = vsel %vm2614_vm10, %v11394_v50, %v5753_v43  ;;  %v5396_v11 = vsel %vm2614_vm10, %v4894_v6, %v5754_v48  ;;  %v5272_v59 = vrot.slane %v13403_v37, 1 }
 0x42e   :  { %5425 = vst [vmem:[#allocation2 + $0x68] sm:$0xff] %v5416_v44  ;;  %v5757_v52 = vpop.permute.xlu0 %5756  ;;  %v5281_v32 = vrot.slane %v13404_v36, 4  ;;  %v5282_v46 = vrot.slane %v13405_v34, 3  ;;  %v5203_v60 = vrot.slane %v13396_v23, 2  ;;  %v5217_v53 = vrot.slane %v13404_v36, 2 }
 0x42f   :  { %v5759_v29 = vunpack.i.h.bf16 %v5757_v52  ;;  %v5758_v61 = vunpack.i.l.bf16 %v5757_v52  ;;  %v5218_v50 = vrot.slane %v13405_v34, 1  ;;  %v5269_v48 = vsel %vm2080_vm3, %v5268_v2, %v5267_v47 }
 0x430   :  { %v5284_v43 = vrot.slane %v13406_v12, 2  ;;  %v5139_v18 = vrot.slane %v13397_v54, 7  ;;  %v5286_v6 = vrot.slane %v13407_v1, 1  ;;  %v5205_v24 = vsel %vm2080_vm3, %v5204_v63, %v5203_v60 }
 0x431   :  { %v5397_v31 = vsel %vm2614_vm10, %v11474_v55, %v5758_v61  ;;  %v5398_v33 = vsel %vm2614_vm10, %v4958_v39, %v5759_v29  ;;  %v5275_v55 = vrot.slane %v13400_v4, 7  ;;  %v5207_v52 = vrot.slane %v13403_v37, 7 }
 0x432   :  { %v5411_v44 = vpack.c.bf16 %v5397_v31, %v5395_v45  ;;  %v5415_v20 = vpack.c.bf16 %v5398_v33, %v5396_v11  ;;  %v5141_v28 = vrot.slane %v13398_v14, 6  ;;  %v5271_v29 = vsel %vm2083_vm4, %v5270_v7, %v5269_v48 }
 0x433   :  { %v5206_v61 = vsel %vm2083_vm4, %v13398_v14, %v5205_v24  ;;  %v2655_v2 = vadd.f32 %v11452_v5, %v11448_v42  ;;  %v5283_v39 = vsel %vm2080_vm3, %v5282_v46, %v5281_v32  ;;  %v5219_v45 = vsel %vm2080_vm3, %v5218_v50, %v5217_v53 }
 0x434   :  { %5420 = vst [vmem:[#allocation2 + $0x40] sm:$0xff] %v5411_v44  ;;  %v5221_v63 = vrot.slane %v13407_v1, 7  ;;  %v2656_v11 = vsel %vm2614_vm10, %v13411_v0, 0.0  ;;  %v5209_v31 = vrot.slane %v13399_v35, 6  ;;  %v5140_v7 = vsel %vm2080_vm3, %v5139_v18, %v13396_v23  ;;  %v13426_v18 = vld [vmem:[#allocation59_spill] sm:$0xff] }
 0x435   :  { %5424 = vst [vmem:[#allocation2 + $0x60] sm:$0xff] %v5415_v20  ;;  %v5143_v33 = vrot.slane %v13403_v37, 5  ;;  %v2657_v44 = vadd.f32 %v2656_v11, %v2655_v2  ;;  %v11598_v20 = vsel %vm2086_vm5, %v5272_v59, %v5271_v29  ;;  %v5208_v42 = vsel %vm2086_vm5, %v5207_v52, %v5206_v61 }
 0x436   :  { %v5211_v5 = vrot.slane %v13400_v4, 5  ;;  %v5142_v32 = vsel %vm2083_vm4, %v5141_v28, %v5140_v7  ;;  %v5285_v46 = vsel %vm2083_vm4, %v5284_v43, %v5283_v39  ;;  %v5220_v0 = vsel %vm2083_vm4, %v13406_v12, %v5219_v45 }
 0x437   :  { %v5223_v60 = vrot.slane %v11032_v25, 6  ;;  %v2659_v53 = vadd.f32 %v11459_v38, %v2657_v44  ;;  %v5222_v50 = vsel %vm2086_vm5, %v5221_v63, %v5220_v0  ;;  %v5145_v59 = vrot.slane %v13399_v35, 4 }
 0x438   :  { %v5153_v48 = vrot.slane %v13405_v34, 7  ;;  %v2660_v24 = vsel %vm2614_vm10, %v13426_v18, 0.0  ;;  %v5210_v52 = vsel %vm2089_vm6, %v5209_v31, %v5208_v42  ;;  %v5144_v43 = vsel %vm2086_vm5, %v5143_v33, %v5142_v32  ;;  %v13427_v42 = vld [vmem:[#allocation54_spill] sm:$0xff] }
 0x439   :  { %v5147_v28 = vrot.slane %v13400_v4, 3  ;;  %v2661_v29 = vadd.f32 %v2660_v24, %v2659_v53  ;;  %v5212_v61 = vsel %vm2092_vm7, %v5211_v5, %v5210_v52  ;;  %v5213_v38 = vrot.slane %v13401_v10, 4 }
 0x43a   :  { %v5225_v2 = vrot.slane %v11054_v57, 5  ;;  %v5227_v39 = vrot.slane %v11090_v56, 4  ;;  %v5224_v45 = vsel %vm2089_vm6, %v5223_v60, %v5222_v50  ;;  %v5149_v63 = vrot.slane %v13401_v10, 2 }
 0x43b   :  { %v5155_v11 = vrot.slane %v13406_v12, 6  ;;  %v2663_v31 = vadd.f32 %v11465_v22, %v2661_v29  ;;  %v5146_v7 = vsel %vm2089_vm6, %v5145_v59, %v5144_v43  ;;  %v5154_v33 = vsel %vm2080_vm3, %v5153_v48, %v13404_v36 }
 0x43c   :  { %v5157_v44 = vrot.slane %v13407_v1, 5  ;;  %v2664_v5 = vsel %vm2614_vm10, %v13427_v42, 0.0  ;;  %v5287_v32 = vsel %vm2086_vm5, %v5286_v6, %v5285_v46  ;;  %v5215_v0 = vrot.slane %v13402_v21, 3 }
 0x43d   :  { %v5148_v60 = vsel %vm2092_vm7, %v5147_v28, %v5146_v7  ;;  %v2665_v53 = vadd.f32 %v2664_v5, %v2663_v31  ;;  %v5214_v50 = vsel %vm2095_vm8, %v5213_v38, %v5212_v61  ;;  %v5226_v22 = vsel %vm2092_vm7, %v5225_v2, %v5224_v45  ;;  %v13428_v61 = vld [vmem:[#allocation55_spill] sm:$0xff] }
 0x43e   :  { %v5229_v59 = vrot.slane %v11098_v58, 3  ;;  %v5151_v48 = vrot.slane %v13402_v21, 1  ;;  %v5228_v24 = vsel %vm2095_vm8, %v5227_v39, %v5226_v22  ;;  %v5156_v52 = vsel %vm2083_vm4, %v5155_v11, %v5154_v33 }
 0x43f   :  { %v5159_v43 = vrot.slane %v11032_v25, 4  ;;  %v2667_v6 = vadd.f32 %v11469_v62, %v2665_v53  ;;  %v5150_v46 = vsel %vm2095_vm8, %v5149_v63, %v5148_v60  ;;  %v5158_v28 = vsel %vm2086_vm5, %v5157_v44, %v5156_v52 }
 0x440   :  { %v5332_v29 = vrot.slane %v13397_v54, 5  ;;  %v2668_v38 = vsel %vm2614_vm10, %v13428_v61, 0.0  ;;  %v5288_v2 = vsel %vm2089_vm6, %v11032_v25, %v5287_v32  ;;  %v5331_v39 = vrot.slane %v13396_v23, 6 }
 0x441   :  { %v2669_v11 = vadd.f32 %v2668_v38, %v2667_v6  ;;  %v2720_v31 = vmul.f32 %v13415_v13, %v13415_v13  ;;  %v5216_v62 = vsel %vm2098_vm9, %v5215_v0, %v5214_v50  ;;  %v5230_v63 = vsel %vm2098_vm9, %v5229_v59, %v5228_v24  ;;  %v13429_v0 = vld [vmem:[#allocation46_spill] sm:$0xff] }
 0x442   :  { %v5161_v7 = vrot.slane %v11054_v57, 3  ;;  %v5334_v33 = vrot.slane %v13398_v14, 4  ;;  %v5152_v44 = vsel %vm2098_vm9, %v5151_v48, %v5150_v46  ;;  %v5160_v5 = vsel %vm2089_vm6, %v5159_v43, %v5158_v28 }
 0x443   :  { %v5163_v32 = vrot.slane %v11090_v56, 2  ;;  %v2671_v60 = vadd.f32 %v11478_v16, %v2669_v11  ;;  %v5165_v22 = vrot.slane %v11098_v58, 1  ;;  %v5333_v13 = vsel %vm2080_vm3, %v5332_v29, %v5331_v39 }
 0x444   :  { %v5777_v45 = vpop.permute.xlu1 %5776  ;;  %v2672_v50 = vsel %vm2614_vm10, %v13429_v0, 0.0  ;;  %v5336_v24 = vrot.slane %v13403_v37, 3  ;;  %v2754_v48 = vsel %vm2614_vm10, %v2720_v31, 0.0  ;;  %v5162_v43 = vsel %vm2092_vm7, %v5161_v7, %v5160_v5  ;;  %v13431_v5 = vld [vmem:[#allocation56_spill] sm:$0xff] }
 0x445   :  { %v5778_v53 = vunpack.i.l.bf16 %v5777_v45  ;;  %v5779_v59 = vunpack.i.h.bf16 %v5777_v45  ;;  %v2673_v52 = vadd.f32 %v2672_v50, %v2671_v60  ;;  %v5335_v6 = vsel %vm2083_vm4, %v5334_v33, %v5333_v13  ;;  %v13430_v45 = vld [vmem:[#allocation61_spill] sm:$0xff] }
 0x446   :  { %v5338_v16 = vrot.slane %v13399_v35, 2  ;;  %v2753_v46 = vadd.f32 %v11551_v40, %v11359_v26  ;;  %v5164_v28 = vsel %vm2095_vm8, %v5163_v32, %v5162_v43  ;;  %v5345_v29 = vrot.slane %v13404_v36, 6 }
 0x447   :  { %v5346_v38 = vrot.slane %v13405_v34, 5  ;;  %v2675_v39 = vadd.f32 %v13430_v45, %v2673_v52  ;;  %v5405_v11 = vsel %vm2614_vm10, %v5216_v62, %v5778_v53  ;;  %v5340_v7 = vrot.slane %v13400_v4, 1 }
 0x448   :  { %v2676_v33 = vsel %vm2614_vm10, %v13431_v5, 0.0  ;;  %v2755_v60 = vadd.f32 %v2754_v48, %v2753_v46  ;;  %v5406_v13 = vsel %vm2614_vm10, %v5230_v63, %v5779_v59  ;;  %v5166_v50 = vsel %vm2098_vm9, %v5165_v22, %v5164_v28  ;;  %v13432_v48 = vld [vmem:[#allocation126_spill] sm:$0xff] }
 0x449   :  { %v2677_v32 = vadd.f32 %v2676_v33, %v2675_v39  ;;  %v5337_v43 = vsel %vm2086_vm5, %v5336_v24, %v5335_v6  ;;  %v5348_v52 = vrot.slane %v13406_v12, 4  ;;  %v5350_v62 = vrot.slane %v13407_v1, 3 }
 0x44a   :  { %v5347_v47 = vsel %vm2080_vm3, %v5346_v38, %v5345_v29  ;;  %v2757_v22 = vadd.f32 %v11554_v49, %v2755_v60  ;;  %v5274_v24 = vsel %vm2089_vm6, %v13399_v35, %v11598_v20  ;;  %v5277_v6 = vrot.slane %v13401_v10, 6 }
 0x44b   :  { %v5772_v31 = vpop.permute.xlu0 %5771  ;;  %v2679_v46 = vadd.f32 %v13432_v48, %v2677_v32  ;;  %v5276_v29 = vsel %vm2092_vm7, %v5275_v55, %v5274_v24  ;;  %v5279_v38 = vrot.slane %v13402_v21, 5  ;;  %v5339_v49 = vsel %vm2089_vm6, %v5338_v16, %v5337_v43  ;;  %v5782_v48 = vpop.permute.xlu2 %5781 }
 0x44c   :  { %v5774_v26 = vunpack.i.h.bf16 %v5772_v31  ;;  %v5773_v40 = vunpack.i.l.bf16 %v5772_v31  ;;  %v13433_v31 = vld [vmem:[#allocation60_spill] sm:$0xff]  ;;  %v5349_v20 = vsel %vm2083_vm4, %v5348_v52, %v5347_v47  ;;  %v5352_v60 = vrot.slane %v11032_v25, 2  ;;  %v13438_v52 = vld [vmem:[#allocation19_spill] sm:$0xff] }
 0x44d   :  { %v2680_v39 = vsel %vm2614_vm10, %v13433_v31, 0.0  ;;  %v5293_v55 = vrot.slane %v11098_v58, 5  ;;  %v5341_v32 = vsel %vm2092_vm7, %v5340_v7, %v5339_v49  ;;  %v5278_v43 = vsel %vm2095_vm8, %v5277_v6, %v5276_v29 }
 0x44e   :  { %v5403_v53 = vsel %vm2614_vm10, %v5152_v44, %v5773_v40  ;;  %v5404_v45 = vsel %vm2614_vm10, %v5166_v50, %v5774_v26  ;;  %v5291_v44 = vrot.slane %v11090_v56, 6  ;;  %v2681_v28 = vadd.f32 %v2680_v39, %v2679_v46  ;;  %v13435_v26 = vld [vmem:[#allocation98_spill] sm:$0xff] }
 0x44f   :  { %v5413_v63 = vpack.c.bf16 %v5405_v11, %v5403_v53  ;;  %v5417_v59 = vpack.c.bf16 %v5406_v13, %v5404_v45  ;;  %v13434_v11 = vrot.slane %v11054_v57, 7  ;;  %v2758_v40 = vsel %vm2614_vm10, %v13435_v26, 0.0  ;;  %v13436_v53 = vld [vmem:[#allocation131_spill] sm:$0xff]  ;;  %v13437_v45 = vld [vmem:[#allocation44_spill] sm:$0xff] }
 0x450   :  { %v2683_v13 = vadd.f32 %v11534_v27, %v2681_v28  ;;  %v5351_v50 = vsel %vm2086_vm5, %v5350_v62, %v5349_v20  ;;  %v5432_v16 = vadd.f32 %v13437_v45, %v13436_v53  ;;  %v2684_v27 = vsel %vm2614_vm10, %v13438_v52, 0.0  ;;  %v13439_v28 = vld [vmem:[#allocation22_spill] sm:$0xff] }
 0x451   :  { %v5290_v33 = vsel %vm2092_vm7, %v13434_v11, %v5288_v2  ;;  %5422 = vst [vmem:[#allocation2 + $0x50] sm:$0xff] %v5413_v63  ;;  %v2759_v2 = vadd.f32 %v2758_v40, %v2757_v22  ;;  %v5343_v46 = vrot.slane %v13402_v21, 7  ;;  %v5354_v63 = vrot.slane %v11054_v57, 1  ;;  %v13440_v40 = vld [vmem:[#allocation107_spill] sm:$0xff] }
 0x452   :  { %5426 = vst [vmem:[#allocation2 + $0x70] sm:$0xff] %v5417_v59  ;;  %v5292_v47 = vsel %vm2095_vm8, %v5291_v44, %v5290_v33  ;;  %v2685_v59 = vadd.f32 %v2684_v27, %v2683_v13  ;;  %v2760_v7 = vsel %vm2614_vm10, %v11538_v9, 0.0  ;;  %v5342_v62 = vsel %vm2095_vm8, %v13401_v10, %v5341_v32 }
 0x453   :  { %v5353_v39 = vsel %vm2089_vm6, %v5352_v60, %v5351_v50  ;;  %v2724_v22 = vmul.f32 %v13426_v18, %v13426_v18  ;;  %v2764_v24 = vsel %vm2614_vm10, %v11545_v17, 0.0  ;;  %v5280_v6 = vsel %vm2098_vm9, %v5279_v38, %v5278_v43 }
 0x454   :  { %v5294_v44 = vsel %vm2098_vm9, %v5293_v55, %v5292_v47  ;;  %v2686_v29 = vsel %vm2614_vm10, %v13439_v28, 0.0  ;;  %v2761_v11 = vadd.f32 %v2760_v7, %v2759_v2  ;;  %v5784_v9 = vunpack.i.h.bf16 %v5782_v48 }
 0x455   :  { %v5783_v33 = vunpack.i.l.bf16 %v5782_v48  ;;  %v5357_v49 = vrot.slane %v11098_v58, 7  ;;  %v5433_v20 = vsel %vm2614_vm10, %v13397_v54, 0.0  ;;  %v5344_v18 = vsel %vm2098_vm9, %v5343_v46, %v5342_v62  ;;  %v13441_v48 = vld [vmem:[#allocation75_spill] sm:$0xff] }
 0x456   :  { %v5355_v60 = vsel %vm2092_vm7, %v5354_v63, %v5353_v39  ;;  %v2687_v17 = vadd.f32 %v2686_v29, %v2685_v59  ;;  %v5434_v13 = vadd.f32 %v5433_v20, %v5432_v16  ;;  %v5435_v55 = vsel %vm2614_vm10, %v13440_v40, 0.0  ;;  %v13442_v29 = vld [vmem:[#allocation69_spill] sm:$0xff] }
 0x457   :  { %v5356_v38 = vsel %vm2095_vm8, %v11090_v56, %v5355_v60  ;;  %v5437_v32 = vsel %vm2614_vm10, %v13398_v14, 0.0  ;;  %v2762_v50 = vsel %vm2614_vm10, %v2724_v22, 0.0  ;;  %v5407_v43 = vsel %vm2614_vm10, %v5280_v6, %v5783_v33  ;;  %v13443_v33 = vld [vmem:[#allocation119_spill] sm:$0xff] }
 0x458   :  { %v5436_v45 = vadd.f32 %v5435_v55, %v5434_v13  ;;  %v2763_v16 = vadd.f32 %v2762_v50, %v2761_v11  ;;  %v5408_v47 = vsel %vm2614_vm10, %v5294_v44, %v5784_v9  ;;  %v5358_v27 = vsel %vm2098_vm9, %v5357_v49, %v5356_v38  ;;  %v13445_v38 = vld [vmem:[#allocation85_spill] sm:$0xff] }
 0x459   :  { %v2688_v46 = vsel %vm2614_vm10, %v13441_v48, 0.0  ;;  %v5439_v11 = vsel %vm2614_vm10, %v13442_v29, 0.0  ;;  %v2726_v6 = vmul.f32 %v13427_v42, %v13427_v42  ;;  %v2690_v49 = vsel %vm2614_vm10, %v13443_v33, 0.0 }
 0x45a   :  { %v5787_v26 = vpop.permute.xlu0 %5786  ;;  %v2689_v7 = vadd.f32 %v2688_v46, %v2687_v17  ;;  %v5438_v62 = vadd.f32 %v5437_v32, %v5436_v45  ;;  %v2765_v9 = vadd.f32 %v2764_v24, %v2763_v16  ;;  %v5441_v20 = vsel %vm2614_vm10, %v13403_v37, 0.0  ;;  %v13444_v17 = vld [vmem:[#allocation117_spill] sm:$0xff]  ;;  %v13447_v16 = vld [vmem:[#allocation135_spill] sm:$0xff] }
 0x45b   :  { %v5789_v2 = vunpack.i.h.bf16 %v5787_v26  ;;  %v5788_v53 = vunpack.i.l.bf16 %v5787_v26  ;;  %v5443_v13 = vsel %vm2614_vm10, %v13444_v17, 0.0  ;;  %v2727_v42 = vmul.f32 %v13445_v38, %v13445_v38  ;;  %v13446_v32 = vld [vmem:[#allocation81_spill] sm:$0xff] }
 0x45c   :  { %v5440_v44 = vadd.f32 %v5439_v11, %v5438_v62  ;;  %v2766_v24 = vsel %vm2614_vm10, %v2726_v6, 0.0  ;;  %v2692_v50 = vsel %vm2614_vm10, %v13446_v32, 0.0  ;;  %v5449_v62 = vsel %vm2614_vm10, %v13400_v4, 0.0  ;;  %v13449_v11 = vld [vmem:[#allocation9_spill] sm:$0xff] }
 0x45d   :  { %v5410_v63 = vsel %vm2614_vm10, %v5358_v27, %v5789_v2  ;;  %v5409_v59 = vsel %vm2614_vm10, %v5344_v18, %v5788_v53  ;;  %v2691_v18 = vadd.f32 %v2690_v49, %v2689_v7  ;;  %v2767_v55 = vadd.f32 %v2766_v24, %v2765_v9  ;;  %v13452_v24 = vld [vmem:[#allocation67_spill] sm:$0xff] }
 0x45e   :  { %v5418_v39 = vpack.c.bf16 %v5410_v63, %v5408_v47  ;;  %v5414_v22 = vpack.c.bf16 %v5409_v59, %v5407_v43  ;;  %v5442_v60 = vadd.f32 %v5441_v20, %v5440_v44  ;;  %v5445_v2 = vsel %vm2614_vm10, %v13399_v35, 0.0  ;;  %v13448_v59 = vld [vmem:[#allocation88_spill] sm:$0xff]  ;;  %v13450_v44 = vld [vmem:[#allocation17_spill] sm:$0xff] }
 0x45f   :  { %v2693_v53 = vadd.f32 %v2692_v50, %v2691_v18  ;;  %v5447_v43 = vsel %vm2614_vm10, %v13447_v16, 0.0  ;;  %v2728_v47 = vmul.f32 %v13428_v61, %v13428_v61  ;;  %v2768_v27 = vsel %vm2614_vm10, %v2727_v42, 0.0  ;;  %v13451_v18 = vld [vmem:[#allocation38_spill] sm:$0xff] }
 0x460   :  { %5427 = vst [vmem:[#allocation2 + $0x78] sm:$0xff] %v5418_v39  ;;  %v5444_v26 = vadd.f32 %v5443_v13, %v5442_v60  ;;  %v2769_v63 = vadd.f32 %v2768_v27, %v2767_v55  ;;  %v2694_v7 = vsel %vm2614_vm10, %v13448_v59, 0.0  ;;  %v5451_v6 = vsel %vm2614_vm10, %v13449_v11, 0.0 }
 0x461   :  { %5423 = vst [vmem:[#allocation2 + $0x58] sm:$0xff] %v5414_v22  ;;  %v2695_v39 = vadd.f32 %v2694_v7, %v2693_v53  ;;  %v2729_v9 = vmul.f32 %v13450_v44, %v13450_v44  ;;  %v2770_v61 = vsel %vm2614_vm10, %v2728_v47, 0.0  ;;  %v2696_v60 = vsel %vm2614_vm10, %v13451_v18, 0.0  ;;  %v13456_v44 = vld [vmem:[#allocation47_spill] sm:$0xff] }
 0x462   :  { %5615 = dma.vmem_to_hbm [thread:$0]  %s5608_s5, 2048, %s5610_s20, [#allocation3], %s5922_s2, %s5922_s2, %s5923_s21   ;;  %v5446_v45 = vadd.f32 %v5445_v2, %v5444_v26  ;;  %v2771_v20 = vadd.f32 %v2770_v61, %v2769_v63  ;;  %v5453_v13 = vsel %vm2614_vm10, %v13401_v10, 0.0  ;;  %v5455_v26 = vsel %vm2614_vm10, %v13452_v24, 0.0  ;;  %v13454_v63 = vld [vmem:[#allocation32_spill] sm:$0xff] }
 0x463   :  { %v2697_v38 = vadd.f32 %v2696_v60, %v2695_v39  ;;  %v2730_v55 = vmul.f32 %v13429_v0, %v13429_v0  ;;  %v2772_v50 = vsel %vm2614_vm10, %v2729_v9, 0.0  ;;  %v5457_v47 = vsel %vm2614_vm10, %v13402_v21, 0.0  ;;  %v13457_v60 = vld [vmem:[#allocation111_spill] sm:$0xff] }
 0x464   :  { %v5448_v46 = vadd.f32 %v5447_v43, %v5446_v45  ;;  %v2773_v53 = vadd.f32 %v2772_v50, %v2771_v20  ;;  %v13453_v45 = vld [vmem:[#allocation89_spill] sm:$0xff]  ;;  %v5459_v7 = vsel %vm2614_vm10, %v13454_v63, 0.0  ;;  %v2700_v9 = vsel %vm2614_vm10, %v13456_v44, 0.0  ;;  %v13458_v50 = vld [vmem:[#allocation36_spill] sm:$0xff] }
 0x465   :  { %v2698_v43 = vsel %vm2614_vm10, %v13453_v45, 0.0  ;;  %v2774_v0 = vsel %vm2614_vm10, %v2730_v55, 0.0  ;;  %v5461_v61 = vsel %vm2614_vm10, %v13404_v36, 0.0 }
 0x466   :  { %v5450_v22 = vadd.f32 %v5449_v62, %v5448_v46  ;;  %v2699_v27 = vadd.f32 %v2698_v43, %v2697_v38  ;;  %v13455_v62 = vld [vmem:[#allocation18_spill] sm:$0xff]  ;;  %v2732_v38 = vmul.f32 %v13431_v5, %v13431_v5 }
 0x467   :  { %v2731_v39 = vmul.f32 %v13455_v62, %v13455_v62 }
 0x468   :  { %v5452_v49 = vadd.f32 %v5451_v6, %v5450_v22  ;;  %v2775_v6 = vadd.f32 %v2774_v0, %v2773_v53  ;;  %v5465_v53 = vsel %vm2614_vm10, %v13405_v34, 0.0  ;;  %v2778_v5 = vsel %vm2614_vm10, %v2732_v38, 0.0  ;;  %v13460_v0 = vld [vmem:[#allocation39_spill] sm:$0xff] }
 0x46a   :  { %v5454_v42 = vadd.f32 %v5453_v13, %v5452_v49  ;;  %v2701_v49 = vadd.f32 %v2700_v9, %v2699_v27  ;;  %v5463_v13 = vsel %vm2614_vm10, %v13457_v60, 0.0  ;;  %v5467_v27 = vsel %vm2614_vm10, %v10900_v51, 0.0 }
 0x46c   :  { %v5456_v2 = vadd.f32 %v5455_v26, %v5454_v42  ;;  %v2776_v42 = vsel %vm2614_vm10, %v2731_v39, 0.0 }
 0x46d   :  { %v2777_v55 = vadd.f32 %v2776_v42, %v2775_v6  ;;  %v5469_v6 = vsel %vm2614_vm10, %v13406_v12, 0.0 }
 0x46e   :  { %v5458_v46 = vadd.f32 %v5457_v47, %v5456_v2  ;;  %v2702_v2 = vsel %vm2614_vm10, %v13458_v50, 0.0 }
 0x46f   :  { %v2703_v43 = vadd.f32 %v2702_v2, %v2701_v49  ;;  %v2779_v39 = vadd.f32 %v2778_v5, %v2777_v55  ;;  %v5471_v49 = vsel %vm2614_vm10, %v10910_v15, 0.0  ;;  %v5473_v2 = vsel %vm2614_vm10, %v13407_v1, 0.0 }
 0x470   :  { %v5460_v22 = vadd.f32 %v5459_v7, %v5458_v46  ;;  %v13459_v46 = vld [vmem:[#allocation21_spill] sm:$0xff] }
 0x471   :  { %v2733_v7 = vmul.f32 %v13459_v46, %v13459_v46 }
 0x472   :  { %v5462_v20 = vadd.f32 %v5461_v61, %v5460_v22  ;;  %v2704_v22 = vsel %vm2614_vm10, %v13460_v0, 0.0 }
 0x473   :  { %v2705_v9 = vadd.f32 %v2704_v22, %v2703_v43  ;;  %v5499_v43 = vmul.f32 %v13396_v23, %v13396_v23  ;;  %v13463_v22 = vld [vmem:[#allocation26_spill] sm:$0xff] }
 0x474   :  { %v5464_v26 = vadd.f32 %v5463_v13, %v5462_v20  ;;  %v2734_v20 = vmul.f32 %v13433_v31, %v13433_v31  ;;  %v2780_v13 = vsel %vm2614_vm10, %v2733_v7, 0.0  ;;  %v2735_v31 = vmul.f32 %v13425_v30, %v13425_v30 }
 0x475   :  { %v2781_v38 = vadd.f32 %v2780_v13, %v2779_v39  ;;  %v5479_v30 = vsel %vm2614_vm10, %v11025_v8, 0.0 }
 0x476   :  { %v5466_v47 = vadd.f32 %v5465_v53, %v5464_v26  ;;  %v13461_v26 = vld [vmem:[#allocation101_spill] sm:$0xff]  ;;  %v2782_v46 = vsel %vm2614_vm10, %v2734_v20, 0.0  ;;  %v2736_v20 = vmul.f32 %v13438_v52, %v13438_v52  ;;  %v2784_v13 = vsel %vm2614_vm10, %v2735_v31, 0.0 }
 0x477   :  { %v2706_v55 = vsel %vm2614_vm10, %v13461_v26, 0.0  ;;  %v2783_v5 = vadd.f32 %v2782_v46, %v2781_v38  ;;  %v5483_v52 = vsel %vm2614_vm10, %v11088_v41, 0.0  ;;  %v2737_v31 = vmul.f32 %v13439_v28, %v13439_v28 }
 0x478   :  { %v5468_v62 = vadd.f32 %v5467_v27, %v5466_v47  ;;  %v2707_v53 = vadd.f32 %v2706_v55, %v2705_v9  ;;  %v5475_v27 = vsel %vm2614_vm10, %v11017_v3, 0.0  ;;  %v5477_v9 = vsel %vm2614_vm10, %v11032_v25, 0.0 }
 0x479   :  { %v2785_v38 = vadd.f32 %v2784_v13, %v2783_v5  ;;  %v2786_v5 = vsel %vm2614_vm10, %v2736_v20, 0.0  ;;  %v5487_v20 = vsel %vm2614_vm10, %v11096_v19, 0.0 }
 0x47a   :  { %v5470_v61 = vadd.f32 %v5469_v6, %v5468_v62  ;;  %v13462_v62 = vld [vmem:[#allocation104_spill] sm:$0xff]  ;;  %v2708_v6 = vsel %vm2614_vm10, %v13463_v22, 0.0 }
 0x47b   :  { %v5498_v39 = vmul.f32 %v13462_v62, %v13462_v62  ;;  %v2709_v23 = vadd.f32 %v2708_v6, %v2707_v53  ;;  %v2787_v6 = vadd.f32 %v2786_v5, %v2785_v38  ;;  %v2788_v38 = vsel %vm2614_vm10, %v2737_v31, 0.0 }
 0x47c   :  { %v5472_v42 = vadd.f32 %v5471_v49, %v5470_v61  ;;  %v5531_v49 = vsel %vm2614_vm10, %v5499_v43, 0.0  ;;  %v5501_v43 = vmul.f32 %v13397_v54, %v13397_v54  ;;  %v5503_v54 = vmul.f32 %v13398_v14, %v13398_v14 }
 0x47d   :  { %v5530_v55 = vsel %vm2614_vm10, %v5498_v39, 0.0  ;;  %v2710_v46 = vrot.slane %v2709_v23, 4  ;;  %v5485_v39 = vsel %vm2614_vm10, %v11090_v56, 0.0  ;;  %v5489_v14 = vsel %vm2614_vm10, %v11098_v58, 0.0 }
 0x47e   :  { %v5474_v47 = vadd.f32 %v5473_v2, %v5472_v42  ;;  %v5481_v2 = vsel %vm2614_vm10, %v11054_v57, 0.0 }
 0x480   :  { %v5476_v7 = vadd.f32 %v5475_v27, %v5474_v47  ;;  %v13464_v47 = vld [vmem:[#allocation142_spill] sm:$0xff]  ;;  %v5532_v27 = vadd.f32 %v5531_v49, %v5530_v55  ;;  %v5535_v49 = vsel %vm2614_vm10, %v5501_v43, 0.0 }
 0x481   :  { %v5500_v53 = vmul.f32 %v13464_v47, %v13464_v47  ;;  %v5504_v47 = vmul.f32 %v13442_v29, %v13442_v29  ;;  %v5506_v29 = vmul.f32 %v13444_v17, %v13444_v17  ;;  %v5508_v17 = vmul.f32 %v13447_v16, %v13447_v16 }
 0x482   :  { %v5478_v61 = vadd.f32 %v5477_v9, %v5476_v7  ;;  %v5502_v9 = vmul.f32 %v13440_v40, %v13440_v40  ;;  %v2789_v40 = vadd.f32 %v2788_v38, %v2787_v6  ;;  %v5510_v16 = vmul.f32 %v13449_v11, %v13449_v11 }
 0x484   :  { %v5480_v42 = vadd.f32 %v5479_v30, %v5478_v61  ;;  %v5533_v61 = vsel %vm2614_vm10, %v5500_v53, 0.0  ;;  %v2711_v30 = vadd.f32 %v2710_v46, %v2709_v23  ;;  %v5537_v23 = vsel %vm2614_vm10, %v5502_v9, 0.0 }
 0x485   :  { %v5534_v28 = vadd.f32 %v5533_v61, %v5532_v27  ;;  %v5539_v53 = vsel %vm2614_vm10, %v5503_v54, 0.0  ;;  %v2740_v61 = vmul.f32 %v13446_v32, %v13446_v32  ;;  %v2741_v32 = vmul.f32 %v13448_v59, %v13448_v59 }
 0x486   :  { %v5482_v7 = vadd.f32 %v5481_v2, %v5480_v42  ;;  %v2738_v42 = vmul.f32 %v13441_v48, %v13441_v48  ;;  %v2712_v43 = vrot.slane %v2711_v30, 2  ;;  %v2739_v48 = vmul.f32 %v13443_v33, %v13443_v33 }
 0x487   :  { %v5536_v2 = vadd.f32 %v5535_v49, %v5534_v28  ;;  %v5507_v49 = vmul.f32 %v13399_v35, %v13399_v35  ;;  %v5509_v35 = vmul.f32 %v13400_v4, %v13400_v4  ;;  %v5549_v59 = vsel %vm2614_vm10, %v5508_v17, 0.0 }
 0x488   :  { %v5484_v62 = vadd.f32 %v5483_v52, %v5482_v7  ;;  %v2790_v7 = vsel %vm2614_vm10, %v2738_v42, 0.0  ;;  %v5505_v52 = vmul.f32 %v13403_v37, %v13403_v37  ;;  %v2713_v6 = vadd.f32 %v2712_v43, %v2711_v30 }
 0x489   :  { %v5538_v46 = vadd.f32 %v5537_v23, %v5536_v2  ;;  %v2791_v5 = vadd.f32 %v2790_v7, %v2789_v40  ;;  %v2792_v33 = vsel %vm2614_vm10, %v2739_v48, 0.0  ;;  %v5545_v30 = vsel %vm2614_vm10, %v5506_v29, 0.0 }
 0x48a   :  { %v5486_v13 = vadd.f32 %v5485_v39, %v5484_v62  ;;  %v5541_v39 = vsel %vm2614_vm10, %v5504_v47, 0.0  ;;  %v5543_v37 = vsel %vm2614_vm10, %v5505_v52, 0.0  ;;  %v2714_v42 = vrot.slane %v2713_v6, 1 }
 0x48b   :  { %v5540_v62 = vadd.f32 %v5539_v53, %v5538_v46  ;;  %v2793_v28 = vadd.f32 %v2792_v33, %v2791_v5  ;;  %v2794_v40 = vsel %vm2614_vm10, %v2740_v61, 0.0  ;;  %v5547_v2 = vsel %vm2614_vm10, %v5507_v49, 0.0 }
 0x48c   :  { %v5488_v55 = vadd.f32 %v5487_v20, %v5486_v13  ;;  %v2715_v53 = vadd.f32 %v2714_v42, %v2713_v6  ;;  %v2796_v4 = vsel %vm2614_vm10, %v2741_v32, 0.0  ;;  %v2742_v46 = vmul.f32 %v13451_v18, %v13451_v18 }
 0x48d   :  { %v5542_v54 = vadd.f32 %v5541_v39, %v5540_v62  ;;  %v2795_v47 = vadd.f32 %v2794_v40, %v2793_v28  ;;  %v5511_v48 = vmul.f32 %v13401_v10, %v13401_v10  ;;  %v5551_v7 = vsel %vm2614_vm10, %v5509_v35, 0.0 }
 0x48e   :  { %v5490_v27 = vadd.f32 %v5489_v14, %v5488_v55  ;;  %v5512_v5 = vmul.f32 %v13452_v24, %v13452_v24  ;;  %v5553_v62 = vsel %vm2614_vm10, %v5510_v16, 0.0  ;;  %v2743_v18 = vmul.f32 %v13453_v45, %v13453_v45 }
 0x48f   :  { %v5544_v20 = vadd.f32 %v5543_v37, %v5542_v54  ;;  %v2797_v11 = vadd.f32 %v2796_v4, %v2795_v47  ;;  %v2798_v10 = vsel %vm2614_vm10, %v2742_v46, 0.0  ;;  %v5513_v39 = vmul.f32 %v13402_v21, %v13402_v21 }
 0x490   :  { %v5491_v31 = vrot.slane %v5490_v27, 4  ;;  %v5555_v6 = vsel %vm2614_vm10, %v5511_v48, 0.0  ;;  %v5514_v24 = vmul.f32 %v13454_v63, %v13454_v63  ;;  %v5557_v61 = vsel %vm2614_vm10, %v5512_v5, 0.0 }
 0x491   :  { %v5546_v55 = vadd.f32 %v5545_v30, %v5544_v20  ;;  %v2744_v49 = vmul.f32 %v13456_v44, %v13456_v44  ;;  %v2800_v45 = vsel %vm2614_vm10, %v2743_v18, 0.0  ;;  %v5515_v37 = vmul.f32 %v13404_v36, %v13404_v36 }
 0x492   :  { %v5492_v9 = vadd.f32 %v5491_v31, %v5490_v27  ;;  %v5559_v21 = vsel %vm2614_vm10, %v5513_v39, 0.0  ;;  %v5516_v20 = vmul.f32 %v13457_v60, %v13457_v60  ;;  %v5561_v63 = vsel %vm2614_vm10, %v5514_v24, 0.0 }
 0x493   :  { %v5548_v23 = vadd.f32 %v5547_v2, %v5546_v55  ;;  %v2745_v30 = vmul.f32 %v13458_v50, %v13458_v50  ;;  %v2802_v44 = vsel %vm2614_vm10, %v2744_v49, 0.0  ;;  %v5517_v42 = vmul.f32 %v13405_v34, %v13405_v34 }
 0x494   :  { %v5493_v13 = vrot.slane %v5492_v9, 2  ;;  %v5563_v36 = vsel %vm2614_vm10, %v5515_v37, 0.0  ;;  %v5518_v55 = vmul.f32 %v10900_v51, %v10900_v51  ;;  %v5565_v60 = vsel %vm2614_vm10, %v5516_v20, 0.0 }
 0x495   :  { %v5550_v27 = vadd.f32 %v5549_v59, %v5548_v23  ;;  %v2746_v35 = vmul.f32 %v13460_v0, %v13460_v0  ;;  %v2804_v50 = vsel %vm2614_vm10, %v2745_v30, 0.0  ;;  %v5519_v2 = vmul.f32 %v13406_v12, %v13406_v12 }
 0x496   :  { %v5494_v38 = vadd.f32 %v5493_v13, %v5492_v9  ;;  %v2799_v9 = vadd.f32 %v2798_v10, %v2797_v11  ;;  %v5567_v34 = vsel %vm2614_vm10, %v5517_v42, 0.0  ;;  %v5520_v23 = vmul.f32 %v10910_v15, %v10910_v15 }
 0x497   :  { %v5552_v31 = vadd.f32 %v5551_v7, %v5550_v27  ;;  %v5569_v51 = vsel %vm2614_vm10, %v5518_v55, 0.0  ;;  %v2747_v59 = vmul.f32 %v13461_v26, %v13461_v26  ;;  %v2806_v0 = vsel %vm2614_vm10, %v2746_v35, 0.0 }
 0x498   :  { %v5495_v14 = vrot.slane %v5494_v38, 1  ;;  %v2801_v13 = vadd.f32 %v2800_v45, %v2799_v9  ;;  %v5571_v12 = vsel %vm2614_vm10, %v5519_v2, 0.0  ;;  %v5522_v27 = vmul.f32 %v11017_v3, %v11017_v3 }
 0x499   :  { %v5554_v29 = vadd.f32 %v5553_v62, %v5552_v31  ;;  %v5573_v15 = vsel %vm2614_vm10, %v5520_v23, 0.0  ;;  %v2748_v48 = vmul.f32 %v13463_v22, %v13463_v22  ;;  %v2808_v26 = vsel %vm2614_vm10, %v2747_v59, 0.0 }
 0x49a   :  { %v5496_v43 = vadd.f32 %v5495_v14, %v5494_v38  ;;  %v2803_v38 = vadd.f32 %v2802_v44, %v2801_v13  ;;  %v5523_v7 = vmul.f32 %v11032_v25, %v11032_v25  ;;  %v5524_v31 = vmul.f32 %v11025_v8, %v11025_v8 }
 0x49b   :  { %v5556_v54 = vadd.f32 %v5555_v6, %v5554_v29  ;;  %v5577_v3 = vsel %vm2614_vm10, %v5522_v27, 0.0  ;;  %v2810_v62 = vsel %vm2614_vm10, %v2748_v48, 0.0  ;;  %v5525_v22 = vmul.f32 %v11054_v57, %v11054_v57 }
 0x49c   :  { %v5497_v52 = vadd.f32 %v5496_v43, %v2715_v53  ;;  %v2805_v14 = vadd.f32 %v2804_v50, %v2803_v38  ;;  %v5521_v53 = vmul.f32 %v13407_v1, %v13407_v1  ;;  %v5579_v29 = vsel %vm2614_vm10, %v5523_v7, 0.0 }
 0x49d   :  { %v5558_v33 = vadd.f32 %v5557_v61, %v5556_v54  ;;  %v5526_v25 = vmul.f32 %v11088_v41, %v11088_v41  ;;  %v5581_v39 = vsel %vm2614_vm10, %v5524_v31, 0.0  ;;  %v5527_v8 = vmul.f32 %v11090_v56, %v11090_v56 }
 0x49e   :  { %5601 = vst.msk [vmem:[#allocation4] sm:$0x1] %vm5600_vm11, %v5497_v52  ;;  %v2807_v43 = vadd.f32 %v2806_v0, %v2805_v14  ;;  %v5575_v1 = vsel %vm2614_vm10, %v5521_v53, 0.0  ;;  %v5583_v9 = vsel %vm2614_vm10, %v5525_v22, 0.0  ;;  %v5528_v57 = vmul.f32 %v11096_v19, %v11096_v19 }
 0x49f   :  { %5626 = dma.vmem_to_hbm [thread:$0]  %s5622_s23, 16, %s5624_s26, [#allocation5]   ;;  %v5560_v28 = vadd.f32 %v5559_v21, %v5558_v33  ;;  %v5585_v61 = vsel %vm2614_vm10, %v5526_v25, 0.0  ;;  %v5529_v49 = vmul.f32 %v11098_v58, %v11098_v58  ;;  %v5587_v41 = vsel %vm2614_vm10, %v5527_v8, 0.0 }
 0x4a0   :  { %v2809_v52 = vadd.f32 %v2808_v26, %v2807_v43  ;;  %v5589_v21 = vsel %vm2614_vm10, %v5528_v57, 0.0 }
 0x4a1   :  { %v5562_v17 = vadd.f32 %v5561_v63, %v5560_v28  ;;  %v5591_v13 = vsel %vm2614_vm10, %v5529_v49, 0.0 }
 0x4a2   :  { %v2811_v18 = vadd.f32 %v2810_v62, %v2809_v52 }
 0x4a3   :  { %v5564_v32 = vadd.f32 %v5563_v36, %v5562_v17 }
 0x4a4   :  { %v2812_v54 = vrot.slane %v2811_v18, 4 }
 0x4a5   :  { %v5566_v40 = vadd.f32 %v5565_v60, %v5564_v32 }
 0x4a6   :  { %v2813_v45 = vadd.f32 %v2812_v54, %v2811_v18 }
 0x4a7   :  { %v5568_v47 = vadd.f32 %v5567_v34, %v5566_v40 }
 0x4a8   :  { %v2814_v28 = vrot.slane %v2813_v45, 2 }
 0x4a9   :  { %v5570_v16 = vadd.f32 %v5569_v51, %v5568_v47 }
 0x4aa   :  { %v2815_v17 = vadd.f32 %v2814_v28, %v2813_v45 }
 0x4ab   :  { %v5572_v4 = vadd.f32 %v5571_v12, %v5570_v16 }
 0x4ac   :  { %v2816_v44 = vrot.slane %v2815_v17, 1 }
 0x4ad   :  { %v5574_v46 = vadd.f32 %v5573_v15, %v5572_v4 }
 0x4ae   :  { %v2817_v58 = vadd.f32 %v2816_v44, %v2815_v17 }
 0x4af   :  { %v5576_v11 = vadd.f32 %v5575_v1, %v5574_v46 }
 0x4b1   :  { %v5578_v5 = vadd.f32 %v5577_v3, %v5576_v11 }
 0x4b3   :  { %v5580_v10 = vadd.f32 %v5579_v29, %v5578_v5 }
 0x4b5   :  { %v5582_v6 = vadd.f32 %v5581_v39, %v5580_v10 }
 0x4b7   :  { %v5584_v24 = vadd.f32 %v5583_v9, %v5582_v6 }
 0x4b9   :  { %v5586_v33 = vadd.f32 %v5585_v61, %v5584_v24 }
 0x4bb   :  { %v5588_v37 = vadd.f32 %v5587_v41, %v5586_v33 }
 0x4bd   :  { %v5590_v56 = vadd.f32 %v5589_v21, %v5588_v37 }
 0x4bf   :  { %v5592_v20 = vadd.f32 %v5591_v13, %v5590_v56 }
 0x4c1   :  { %v5593_v63 = vrot.slane %v5592_v20, 4 }
 0x4c3   :  { %v5594_v19 = vadd.f32 %v5593_v63, %v5592_v20 }
 0x4c5   :  { %v5595_v30 = vrot.slane %v5594_v19, 2 }
 0x4c7   :  { %v5596_v42 = vadd.f32 %v5595_v30, %v5594_v19 }
 0x4c9   :  { %v5597_v36 = vrot.slane %v5596_v42, 1 }
 0x4cb   :  { %v5598_v38 = vadd.f32 %v5597_v36, %v5596_v42 }
 0x4cd   :  { %v5599_v32 = vadd.f32 %v5598_v38, %v2817_v58 }
 0x4cf   :  { %5602 = vst.msk [vmem:[#allocation6] sm:$0x1] %vm5600_vm11, %v5599_v32 }
 0x4d0   :  { %5637 = dma.vmem_to_hbm [thread:$0]  %s5633_s27, 16, %s5635_s30, [#allocation5]  }
 0x4d1   :  { %5915 = dma.done.wait [#allocation3], 2048  }
 0x4d2   :  { %5916 = vsyncadd [#allocation3], 4294965248 }
 0x4d3   :  { %5917 = dma.done.wait [#allocation5], 32  }
 0x4d4   :  { %5918 = vsyncadd [#allocation5], 4294967264 }
 0x4d5   :  { %5650 = vsyncpa [#allocation3], 1 }
 0x4d6   :  { %5651 = vsyncpa [#allocation5], 1 }

</bundles_post_ra>
